<compile_context>
chip_gen: v7x
topology: tpu7x:2x2x1
jax: 0.10.0
libtpu: 0.0.40
codegen_flags: <defaults>
</compile_context>

<pallas_src>
import jax
import jax.numpy as jnp
from jax.experimental import pallas as pl
from jax.experimental.pallas import tpu as pltpu


def nested_unet_forward(x, w1, b1, w2, b2):
    """Pallas forward of NestedUNet: conv2(relu(conv1(x))).

    x : (N, 3, H, W) float32, NCHW (PyTorch layout)
    w1: (3, 3, 3, 64)   HWIO (== torch conv1.weight (64,3,3,3) permuted (2,3,1,0))
    b1: (64,)
    w2: (3, 3, 64, 128) HWIO
    b2: (128,)
    returns (N, 128, H, W) float32, NCHW.
    """
    n, cin, h, w = x.shape
    kh, kw, _, c1 = w1.shape
    c2 = w2.shape[-1]
    assert (kh, kw) == (3, 3) and w1.shape[2] == cin and w2.shape[2] == c1

    hp = h + 2                              # grid height (1-pixel zero border)
    wq = ((w + 2) + 7) // 8 * 8             # grid width, padded to multiple of 8
    rp = hp * wq                            # flat rows of one padded image grid
    k1 = 9 * cin                            # conv1 im2col depth (27)
    cip = (k1 + 1 + 7) // 8 * 8             # 32; channel k1 is the validity mask
    slack = 8                               # zero rows above/below x_buf (+-1 shifts)
    r1 = rp + 2 * slack
    kcat = 3 * c1                           # 192: dx-folded conv2 contraction depth

    # static row chunks so per-chunk accumulators stay in a few vregs
    rch = 128
    chunks = []
    _r = 0
    while _r < rp:
        _sz = min(rch, rp - _r)
        chunks.append((_r, _sz))
        _r += _sz

    # ------------- host-side layout prep (tiny, one-time) -------------
    x_nhwc = jnp.transpose(x, (0, 2, 3, 1)).astype(jnp.float32)        # (N,H,W,Cin)
    x_p = jnp.pad(x_nhwc, ((0, 0), (1, 1), (1, 1), (0, 0)))            # (N,H+2,W+2,Cin)
    cols = [x_p[:, ky:ky + h, kx:kx + w, :] for ky in range(3) for kx in range(3)]
    cols.append(jnp.ones((n, h, w, 1), jnp.float32))                   # validity flag
    x_im = jnp.concatenate(cols, axis=-1)                              # (N,H,W,28)

    grid_buf = jnp.zeros((n, hp, wq, cip), jnp.float32)
    grid_buf = grid_buf.at[:, 1:h + 1, 1:w + 1, :k1 + 1].set(x_im)
    x_flat = grid_buf.reshape(n, rp, cip)
    x_buf = jnp.pad(x_flat, ((0, 0), (slack, slack), (0, 0))).astype(jnp.bfloat16)

    w1_p = jnp.zeros((cip, c1), jnp.float32).at[:k1, :].set(
        w1.reshape(k1, c1)).astype(jnp.bfloat16)                       # (32, 64)
    w2_p = w2.reshape(3, kcat, c2).astype(jnp.bfloat16)                # (3, 192, 128)
    b1_r = b1.reshape(1, c1).astype(jnp.float32)
    b2_r = b2.reshape(1, c2).astype(jnp.float32)

    def kernel(x_ref, w1_ref, b1_ref, w2_ref, b2_ref, o_ref, hcat_ref):
        # re-zero only the slack rows of the persistent hcat scratch (cheap);
        # its interior [wq, wq+rp) is fully overwritten each grid step.
        zrow = jnp.zeros((wq, kcat), hcat_ref.dtype)
        hcat_ref[0:wq, :] = zrow
        hcat_ref[wq + rp:wq + rp + wq, :] = zrow

        # ---- phase 1: conv1 (+bias, ReLU, border mask), dx folded into lanes
        for (r0, sz) in chunks:
            for j in range(3):                        # dx tap -> hcat lane group j
                xs = x_ref[slack + r0 + j - 1: slack + r0 + j - 1 + sz, :]
                hj = jnp.dot(xs, w1_ref[...], preferred_element_type=jnp.float32)
                hj = jnp.maximum(hj + b1_ref[...], 0.0)
                # channel k1 carries the shifted validity mask (zero pad/border)
                hj = hj * xs[:, k1:k1 + 1].astype(jnp.float32)
                hcat_ref[wq + r0: wq + r0 + sz, j * c1:(j + 1) * c1] = (
                    hj.astype(hcat_ref.dtype))

        # ---- phase 2: conv2 = 3 MXU matmuls (K=192), sublane-aligned dy shifts
        for (r0, sz) in chunks:
            acc = jnp.zeros((sz, c2), jnp.float32)
            for dy in range(3):
                acc = acc + jnp.dot(
                    hcat_ref[dy * wq + r0: dy * wq + r0 + sz, :], w2_ref[dy],
                    preferred_element_type=jnp.float32)
            o_ref[r0:r0 + sz, :] = (acc + b2_ref[...]).astype(o_ref.dtype)

    out_flat = pl.pallas_call(
        kernel,
        out_shape=jax.ShapeDtypeStruct((n, rp, c2), jnp.float32),
        grid_spec=pltpu.PrefetchScalarGridSpec(
            num_scalar_prefetch=0,
            grid=(n,),
            in_specs=[
                pl.BlockSpec((None, r1, cip), lambda i: (i, 0, 0)),    # im2col'd x
                pl.BlockSpec((cip, c1), lambda i: (0, 0)),             # w1 packed
                pl.BlockSpec((1, c1), lambda i: (0, 0)),               # b1
                pl.BlockSpec((3, kcat, c2), lambda i: (0, 0, 0)),      # w2 dx-folded
                pl.BlockSpec((1, c2), lambda i: (0, 0)),               # b2
            ],
            out_specs=pl.BlockSpec((None, rp, c2), lambda i: (i, 0, 0)),
            scratch_shapes=[pltpu.VMEM((rp + 2 * wq, kcat), jnp.bfloat16)],
        ),
        compiler_params=pltpu.CompilerParams(
            dimension_semantics=("parallel",),
        ),
    )(x_buf, w1_p, b1_r, w2_p, b2_r)

    # crop padded grid back to (N, H, W, C2) and return NCHW like PyTorch
    out = out_flat.reshape(n, hp, wq, c2)[:, 1:h + 1, 1:w + 1, :]
    return jnp.transpose(out, (0, 3, 1, 2))


def _reference_forward(x, w1, b1, w2, b2):
    """Pure-JAX reference: conv2(relu(conv1(x))), SAME padding, NCHW."""
    dn = ("NCHW", "HWIO", "NCHW")
    y = jax.lax.conv_general_dilated(x, w1, (1, 1), "SAME", dimension_numbers=dn)
    y = jnp.maximum(y + b1.reshape(1, -1, 1, 1), 0.0)
    y = jax.lax.conv_general_dilated(y, w2, (1, 1), "SAME", dimension_numbers=dn)
    return y + b2.reshape(1, -1, 1, 1)


if __name__ == "__main__":
    key = jax.random.PRNGKey(0)
    kx, kw1, kb1, kw2, kb2 = jax.random.split(key, 5)

    N, CIN, H, W = 2, 3, 16, 16           # conv1 requires 3 input channels
    C1, C2 = 64, 128

    x = jax.random.normal(kx, (N, CIN, H, W), dtype=jnp.float32)
    w1 = jax.random.normal(kw1, (3, 3, CIN, C1), jnp.float32) / jnp.sqrt(9.0 * CIN)
    b1 = 0.1 * jax.random.normal(kb1, (C1,), jnp.float32)
    w2 = jax.random.normal(kw2, (3, 3, C1, C2), jnp.float32) / jnp.sqrt(9.0 * C1)
    b2 = 0.1 * jax.random.normal(kb2, (C2,), jnp.float32)

    fwd = jax.jit(nested_unet_forward)
    y = jax.block_until_ready(fwd(x, w1, b1, w2, b2))

    y_ref = _reference_forward(x, w1, b1, w2, b2)
    assert y.shape == (N, C2, H, W) and y.dtype == jnp.float32
    max_err = float(jnp.max(jnp.abs(y - y_ref)))
    # bf16 MXU operands with f32 accumulation -> slightly relaxed tolerance
    assert bool(jnp.allclose(y, y_ref, atol=1e-1, rtol=5e-2)), (
        f"max abs err = {max_err}")
    print("KERNEL_OK")
</pallas_src>

<mosaic_0001>
module attributes {stable_mosaic.version = 11 : i64} {
  func.func @kernel(%arg0: i32, %arg1: memref<1x448x32xbf16, #tpu.memory_space<vmem>>, %arg2: memref<32x64xbf16, #tpu.memory_space<vmem>>, %arg3: memref<1x64xf32, #tpu.memory_space<vmem>>, %arg4: memref<3x192x128xbf16, #tpu.memory_space<vmem>>, %arg5: memref<1x128xf32, #tpu.memory_space<vmem>>, %arg6: memref<1x432x128xf32, #tpu.memory_space<vmem>>, %arg7: memref<480x192xbf16, #tpu.memory_space<vmem>>) attributes {dimension_semantics = [#tpu.dimension_semantics<parallel>], iteration_bounds = array<i64: 2>, scalar_prefetch = 0 : i64, scratch_operands = 1 : i64, tpu.core_type = #tpu.core_type<tc>, window_params = [{transform_indices = @transform_0, window_bounds = array<i64: 1, 448, 32>}, {pipeline_mode = #tpu.pipeline_mode<synchronous>, transform_indices = @transform_1, window_bounds = array<i64: 32, 64>}, {pipeline_mode = #tpu.pipeline_mode<synchronous>, transform_indices = @transform_2, window_bounds = array<i64: 1, 64>}, {pipeline_mode = #tpu.pipeline_mode<synchronous>, transform_indices = @transform_3, window_bounds = array<i64: 3, 192, 128>}, {pipeline_mode = #tpu.pipeline_mode<synchronous>, transform_indices = @transform_4, window_bounds = array<i64: 1, 128>}, {transform_indices = @transform_5, window_bounds = array<i64: 1, 432, 128>}]} {
    %cst = arith.constant 0.000000e+00 : bf16
    %0 = vector.broadcast %cst : bf16 to vector<24x192xbf16>
    %c0 = arith.constant 0 : index
    %c0_0 = arith.constant 0 : index
    %1 = vector.load %arg7[%c0, %c0_0] : memref<480x192xbf16, #tpu.memory_space<vmem>>, vector<24x192xbf16>
    tpu.vector_store %arg7[%c0, %c0_0], %0 {strides = array<i32>} : memref<480x192xbf16, #tpu.memory_space<vmem>>, vector<24x192xbf16>,
    %c456 = arith.constant 456 : index
    %c0_1 = arith.constant 0 : index
    %2 = vector.load %arg7[%c456, %c0_1] : memref<480x192xbf16, #tpu.memory_space<vmem>>, vector<24x192xbf16>
    tpu.vector_store %arg7[%c456, %c0_1], %0 {strides = array<i32>} : memref<480x192xbf16, #tpu.memory_space<vmem>>, vector<24x192xbf16>,
    %c0_2 = arith.constant 0 : index
    %c7 = arith.constant 7 : index
    %c0_3 = arith.constant 0 : index
    %3 = vector.load %arg1[%c0_2, %c7, %c0_3] : memref<1x448x32xbf16, #tpu.memory_space<vmem>>, vector<1x128x32xbf16>
    %4 = vector.shape_cast %3 : vector<1x128x32xbf16> to vector<128x32xbf16>
    %c0_4 = arith.constant 0 : index
    %c0_5 = arith.constant 0 : index
    %5 = vector.load %arg2[%c0_4, %c0_5] : memref<32x64xbf16, #tpu.memory_space<vmem>>, vector<32x64xbf16>
    %cst_6 = arith.constant dense<0.000000e+00> : vector<128x64xf32>
    %6 = tpu.matmul %4, %5, %cst_6 {dimension_numbers = #tpu.dot_dimension_numbers<[1], [0], [0], [1], [0, 0, 1, 1], [], []>} : vector<128x32xbf16>, vector<32x64xbf16>, vector<128x64xf32> -> vector<128x64xf32>
    %c0_7 = arith.constant 0 : index
    %c0_8 = arith.constant 0 : index
    %7 = vector.load %arg3[%c0_7, %c0_8] : memref<1x64xf32, #tpu.memory_space<vmem>>, vector<1x64xf32>
    %8 = vector.broadcast %7 : vector<1x64xf32> to vector<128x64xf32>
    %9 = arith.addf %6, %8 : vector<128x64xf32>
    %cst_9 = arith.constant 0.000000e+00 : f32
    %10 = vector.broadcast %cst_9 : f32 to vector<128x64xf32>
    %11 = arith.maximumf %9, %10 : vector<128x64xf32>
    %12 = vector.extract_strided_slice %4 {offsets = [0, 27], sizes = [128, 1], strides = [1, 1]} : vector<128x32xbf16> to vector<128x1xbf16>
    %13 = arith.extf %12 : vector<128x1xbf16> to vector<128x1xf32>
    %14 = vector.broadcast %13 : vector<128x1xf32> to vector<128x64xf32>
    %15 = arith.mulf %11, %14 : vector<128x64xf32>
    %16 = arith.truncf %15 : vector<128x64xf32> to vector<128x64xbf16>
    %c24 = arith.constant 24 : index
    %c0_10 = arith.constant 0 : index
    %17 = vector.load %arg7[%c24, %c0_10] : memref<480x192xbf16, #tpu.memory_space<vmem>>, vector<128x64xbf16>
    tpu.vector_store %arg7[%c24, %c0_10], %16 {strides = array<i32>} : memref<480x192xbf16, #tpu.memory_space<vmem>>, vector<128x64xbf16>,
    %c0_11 = arith.constant 0 : index
    %c8 = arith.constant 8 : index
    %c0_12 = arith.constant 0 : index
    %18 = vector.load %arg1[%c0_11, %c8, %c0_12] : memref<1x448x32xbf16, #tpu.memory_space<vmem>>, vector<1x128x32xbf16>
    %19 = vector.shape_cast %18 : vector<1x128x32xbf16> to vector<128x32xbf16>
    %c0_13 = arith.constant 0 : index
    %c0_14 = arith.constant 0 : index
    %20 = vector.load %arg2[%c0_13, %c0_14] : memref<32x64xbf16, #tpu.memory_space<vmem>>, vector<32x64xbf16>
    %cst_15 = arith.constant dense<0.000000e+00> : vector<128x64xf32>
    %21 = tpu.matmul %19, %20, %cst_15 {dimension_numbers = #tpu.dot_dimension_numbers<[1], [0], [0], [1], [0, 0, 1, 1], [], []>} : vector<128x32xbf16>, vector<32x64xbf16>, vector<128x64xf32> -> vector<128x64xf32>
    %c0_16 = arith.constant 0 : index
    %c0_17 = arith.constant 0 : index
    %22 = vector.load %arg3[%c0_16, %c0_17] : memref<1x64xf32, #tpu.memory_space<vmem>>, vector<1x64xf32>
    %23 = vector.broadcast %22 : vector<1x64xf32> to vector<128x64xf32>
    %24 = arith.addf %21, %23 : vector<128x64xf32>
    %cst_18 = arith.constant 0.000000e+00 : f32
    %25 = vector.broadcast %cst_18 : f32 to vector<128x64xf32>
    %26 = arith.maximumf %24, %25 : vector<128x64xf32>
    %27 = vector.extract_strided_slice %19 {offsets = [0, 27], sizes = [128, 1], strides = [1, 1]} : vector<128x32xbf16> to vector<128x1xbf16>
    %28 = arith.extf %27 : vector<128x1xbf16> to vector<128x1xf32>
    %29 = vector.broadcast %28 : vector<128x1xf32> to vector<128x64xf32>
    %30 = arith.mulf %26, %29 : vector<128x64xf32>
    %31 = arith.truncf %30 : vector<128x64xf32> to vector<128x64xbf16>
    %c24_19 = arith.constant 24 : index
    %c64 = arith.constant 64 : index
    %32 = vector.load %arg7[%c24_19, %c64] : memref<480x192xbf16, #tpu.memory_space<vmem>>, vector<128x64xbf16>
    tpu.vector_store %arg7[%c24_19, %c64], %31 {strides = array<i32>} : memref<480x192xbf16, #tpu.memory_space<vmem>>, vector<128x64xbf16>,
    %c0_20 = arith.constant 0 : index
    %c9 = arith.constant 9 : index
    %c0_21 = arith.constant 0 : index
    %33 = vector.load %arg1[%c0_20, %c9, %c0_21] : memref<1x448x32xbf16, #tpu.memory_space<vmem>>, vector<1x128x32xbf16>
    %34 = vector.shape_cast %33 : vector<1x128x32xbf16> to vector<128x32xbf16>
    %c0_22 = arith.constant 0 : index
    %c0_23 = arith.constant 0 : index
    %35 = vector.load %arg2[%c0_22, %c0_23] : memref<32x64xbf16, #tpu.memory_space<vmem>>, vector<32x64xbf16>
    %cst_24 = arith.constant dense<0.000000e+00> : vector<128x64xf32>
    %36 = tpu.matmul %34, %35, %cst_24 {dimension_numbers = #tpu.dot_dimension_numbers<[1], [0], [0], [1], [0, 0, 1, 1], [], []>} : vector<128x32xbf16>, vector<32x64xbf16>, vector<128x64xf32> -> vector<128x64xf32>
    %c0_25 = arith.constant 0 : index
    %c0_26 = arith.constant 0 : index
    %37 = vector.load %arg3[%c0_25, %c0_26] : memref<1x64xf32, #tpu.memory_space<vmem>>, vector<1x64xf32>
    %38 = vector.broadcast %37 : vector<1x64xf32> to vector<128x64xf32>
    %39 = arith.addf %36, %38 : vector<128x64xf32>
    %cst_27 = arith.constant 0.000000e+00 : f32
    %40 = vector.broadcast %cst_27 : f32 to vector<128x64xf32>
    %41 = arith.maximumf %39, %40 : vector<128x64xf32>
    %42 = vector.extract_strided_slice %34 {offsets = [0, 27], sizes = [128, 1], strides = [1, 1]} : vector<128x32xbf16> to vector<128x1xbf16>
    %43 = arith.extf %42 : vector<128x1xbf16> to vector<128x1xf32>
    %44 = vector.broadcast %43 : vector<128x1xf32> to vector<128x64xf32>
    %45 = arith.mulf %41, %44 : vector<128x64xf32>
    %46 = arith.truncf %45 : vector<128x64xf32> to vector<128x64xbf16>
    %c24_28 = arith.constant 24 : index
    %c128 = arith.constant 128 : index
    %47 = vector.load %arg7[%c24_28, %c128] : memref<480x192xbf16, #tpu.memory_space<vmem>>, vector<128x64xbf16>
    tpu.vector_store %arg7[%c24_28, %c128], %46 {strides = array<i32>} : memref<480x192xbf16, #tpu.memory_space<vmem>>, vector<128x64xbf16>,
    %c0_29 = arith.constant 0 : index
    %c135 = arith.constant 135 : index
    %c0_30 = arith.constant 0 : index
    %48 = vector.load %arg1[%c0_29, %c135, %c0_30] : memref<1x448x32xbf16, #tpu.memory_space<vmem>>, vector<1x128x32xbf16>
    %49 = vector.shape_cast %48 : vector<1x128x32xbf16> to vector<128x32xbf16>
    %c0_31 = arith.constant 0 : index
    %c0_32 = arith.constant 0 : index
    %50 = vector.load %arg2[%c0_31, %c0_32] : memref<32x64xbf16, #tpu.memory_space<vmem>>, vector<32x64xbf16>
    %cst_33 = arith.constant dense<0.000000e+00> : vector<128x64xf32>
    %51 = tpu.matmul %49, %50, %cst_33 {dimension_numbers = #tpu.dot_dimension_numbers<[1], [0], [0], [1], [0, 0, 1, 1], [], []>} : vector<128x32xbf16>, vector<32x64xbf16>, vector<128x64xf32> -> vector<128x64xf32>
    %c0_34 = arith.constant 0 : index
    %c0_35 = arith.constant 0 : index
    %52 = vector.load %arg3[%c0_34, %c0_35] : memref<1x64xf32, #tpu.memory_space<vmem>>, vector<1x64xf32>
    %53 = vector.broadcast %52 : vector<1x64xf32> to vector<128x64xf32>
    %54 = arith.addf %51, %53 : vector<128x64xf32>
    %cst_36 = arith.constant 0.000000e+00 : f32
    %55 = vector.broadcast %cst_36 : f32 to vector<128x64xf32>
    %56 = arith.maximumf %54, %55 : vector<128x64xf32>
    %57 = vector.extract_strided_slice %49 {offsets = [0, 27], sizes = [128, 1], strides = [1, 1]} : vector<128x32xbf16> to vector<128x1xbf16>
    %58 = arith.extf %57 : vector<128x1xbf16> to vector<128x1xf32>
    %59 = vector.broadcast %58 : vector<128x1xf32> to vector<128x64xf32>
    %60 = arith.mulf %56, %59 : vector<128x64xf32>
    %61 = arith.truncf %60 : vector<128x64xf32> to vector<128x64xbf16>
    %c152 = arith.constant 152 : index
    %c0_37 = arith.constant 0 : index
    %62 = vector.load %arg7[%c152, %c0_37] : memref<480x192xbf16, #tpu.memory_space<vmem>>, vector<128x64xbf16>
    tpu.vector_store %arg7[%c152, %c0_37], %61 {strides = array<i32>} : memref<480x192xbf16, #tpu.memory_space<vmem>>, vector<128x64xbf16>,
    %c0_38 = arith.constant 0 : index
    %c136 = arith.constant 136 : index
    %c0_39 = arith.constant 0 : index
    %63 = vector.load %arg1[%c0_38, %c136, %c0_39] : memref<1x448x32xbf16, #tpu.memory_space<vmem>>, vector<1x128x32xbf16>
    %64 = vector.shape_cast %63 : vector<1x128x32xbf16> to vector<128x32xbf16>
    %c0_40 = arith.constant 0 : index
    %c0_41 = arith.constant 0 : index
    %65 = vector.load %arg2[%c0_40, %c0_41] : memref<32x64xbf16, #tpu.memory_space<vmem>>, vector<32x64xbf16>
    %cst_42 = arith.constant dense<0.000000e+00> : vector<128x64xf32>
    %66 = tpu.matmul %64, %65, %cst_42 {dimension_numbers = #tpu.dot_dimension_numbers<[1], [0], [0], [1], [0, 0, 1, 1], [], []>} : vector<128x32xbf16>, vector<32x64xbf16>, vector<128x64xf32> -> vector<128x64xf32>
    %c0_43 = arith.constant 0 : index
    %c0_44 = arith.constant 0 : index
    %67 = vector.load %arg3[%c0_43, %c0_44] : memref<1x64xf32, #tpu.memory_space<vmem>>, vector<1x64xf32>
    %68 = vector.broadcast %67 : vector<1x64xf32> to vector<128x64xf32>
    %69 = arith.addf %66, %68 : vector<128x64xf32>
    %cst_45 = arith.constant 0.000000e+00 : f32
    %70 = vector.broadcast %cst_45 : f32 to vector<128x64xf32>
    %71 = arith.maximumf %69, %70 : vector<128x64xf32>
    %72 = vector.extract_strided_slice %64 {offsets = [0, 27], sizes = [128, 1], strides = [1, 1]} : vector<128x32xbf16> to vector<128x1xbf16>
    %73 = arith.extf %72 : vector<128x1xbf16> to vector<128x1xf32>
    %74 = vector.broadcast %73 : vector<128x1xf32> to vector<128x64xf32>
    %75 = arith.mulf %71, %74 : vector<128x64xf32>
    %76 = arith.truncf %75 : vector<128x64xf32> to vector<128x64xbf16>
    %c152_46 = arith.constant 152 : index
    %c64_47 = arith.constant 64 : index
    %77 = vector.load %arg7[%c152_46, %c64_47] : memref<480x192xbf16, #tpu.memory_space<vmem>>, vector<128x64xbf16>
    tpu.vector_store %arg7[%c152_46, %c64_47], %76 {strides = array<i32>} : memref<480x192xbf16, #tpu.memory_space<vmem>>, vector<128x64xbf16>,
    %c0_48 = arith.constant 0 : index
    %c137 = arith.constant 137 : index
    %c0_49 = arith.constant 0 : index
    %78 = vector.load %arg1[%c0_48, %c137, %c0_49] : memref<1x448x32xbf16, #tpu.memory_space<vmem>>, vector<1x128x32xbf16>
    %79 = vector.shape_cast %78 : vector<1x128x32xbf16> to vector<128x32xbf16>
    %c0_50 = arith.constant 0 : index
    %c0_51 = arith.constant 0 : index
    %80 = vector.load %arg2[%c0_50, %c0_51] : memref<32x64xbf16, #tpu.memory_space<vmem>>, vector<32x64xbf16>
    %cst_52 = arith.constant dense<0.000000e+00> : vector<128x64xf32>
    %81 = tpu.matmul %79, %80, %cst_52 {dimension_numbers = #tpu.dot_dimension_numbers<[1], [0], [0], [1], [0, 0, 1, 1], [], []>} : vector<128x32xbf16>, vector<32x64xbf16>, vector<128x64xf32> -> vector<128x64xf32>
    %c0_53 = arith.constant 0 : index
    %c0_54 = arith.constant 0 : index
    %82 = vector.load %arg3[%c0_53, %c0_54] : memref<1x64xf32, #tpu.memory_space<vmem>>, vector<1x64xf32>
    %83 = vector.broadcast %82 : vector<1x64xf32> to vector<128x64xf32>
    %84 = arith.addf %81, %83 : vector<128x64xf32>
    %cst_55 = arith.constant 0.000000e+00 : f32
    %85 = vector.broadcast %cst_55 : f32 to vector<128x64xf32>
    %86 = arith.maximumf %84, %85 : vector<128x64xf32>
    %87 = vector.extract_strided_slice %79 {offsets = [0, 27], sizes = [128, 1], strides = [1, 1]} : vector<128x32xbf16> to vector<128x1xbf16>
    %88 = arith.extf %87 : vector<128x1xbf16> to vector<128x1xf32>
    %89 = vector.broadcast %88 : vector<128x1xf32> to vector<128x64xf32>
    %90 = arith.mulf %86, %89 : vector<128x64xf32>
    %91 = arith.truncf %90 : vector<128x64xf32> to vector<128x64xbf16>
    %c152_56 = arith.constant 152 : index
    %c128_57 = arith.constant 128 : index
    %92 = vector.load %arg7[%c152_56, %c128_57] : memref<480x192xbf16, #tpu.memory_space<vmem>>, vector<128x64xbf16>
    tpu.vector_store %arg7[%c152_56, %c128_57], %91 {strides = array<i32>} : memref<480x192xbf16, #tpu.memory_space<vmem>>, vector<128x64xbf16>,
    %c0_58 = arith.constant 0 : index
    %c263 = arith.constant 263 : index
    %c0_59 = arith.constant 0 : index
    %93 = vector.load %arg1[%c0_58, %c263, %c0_59] : memref<1x448x32xbf16, #tpu.memory_space<vmem>>, vector<1x128x32xbf16>
    %94 = vector.shape_cast %93 : vector<1x128x32xbf16> to vector<128x32xbf16>
    %c0_60 = arith.constant 0 : index
    %c0_61 = arith.constant 0 : index
    %95 = vector.load %arg2[%c0_60, %c0_61] : memref<32x64xbf16, #tpu.memory_space<vmem>>, vector<32x64xbf16>
    %cst_62 = arith.constant dense<0.000000e+00> : vector<128x64xf32>
    %96 = tpu.matmul %94, %95, %cst_62 {dimension_numbers = #tpu.dot_dimension_numbers<[1], [0], [0], [1], [0, 0, 1, 1], [], []>} : vector<128x32xbf16>, vector<32x64xbf16>, vector<128x64xf32> -> vector<128x64xf32>
    %c0_63 = arith.constant 0 : index
    %c0_64 = arith.constant 0 : index
    %97 = vector.load %arg3[%c0_63, %c0_64] : memref<1x64xf32, #tpu.memory_space<vmem>>, vector<1x64xf32>
    %98 = vector.broadcast %97 : vector<1x64xf32> to vector<128x64xf32>
    %99 = arith.addf %96, %98 : vector<128x64xf32>
    %cst_65 = arith.constant 0.000000e+00 : f32
    %100 = vector.broadcast %cst_65 : f32 to vector<128x64xf32>
    %101 = arith.maximumf %99, %100 : vector<128x64xf32>
    %102 = vector.extract_strided_slice %94 {offsets = [0, 27], sizes = [128, 1], strides = [1, 1]} : vector<128x32xbf16> to vector<128x1xbf16>
    %103 = arith.extf %102 : vector<128x1xbf16> to vector<128x1xf32>
    %104 = vector.broadcast %103 : vector<128x1xf32> to vector<128x64xf32>
    %105 = arith.mulf %101, %104 : vector<128x64xf32>
    %106 = arith.truncf %105 : vector<128x64xf32> to vector<128x64xbf16>
    %c280 = arith.constant 280 : index
    %c0_66 = arith.constant 0 : index
    %107 = vector.load %arg7[%c280, %c0_66] : memref<480x192xbf16, #tpu.memory_space<vmem>>, vector<128x64xbf16>
    tpu.vector_store %arg7[%c280, %c0_66], %106 {strides = array<i32>} : memref<480x192xbf16, #tpu.memory_space<vmem>>, vector<128x64xbf16>,
    %c0_67 = arith.constant 0 : index
    %c264 = arith.constant 264 : index
    %c0_68 = arith.constant 0 : index
    %108 = vector.load %arg1[%c0_67, %c264, %c0_68] : memref<1x448x32xbf16, #tpu.memory_space<vmem>>, vector<1x128x32xbf16>
    %109 = vector.shape_cast %108 : vector<1x128x32xbf16> to vector<128x32xbf16>
    %c0_69 = arith.constant 0 : index
    %c0_70 = arith.constant 0 : index
    %110 = vector.load %arg2[%c0_69, %c0_70] : memref<32x64xbf16, #tpu.memory_space<vmem>>, vector<32x64xbf16>
    %cst_71 = arith.constant dense<0.000000e+00> : vector<128x64xf32>
    %111 = tpu.matmul %109, %110, %cst_71 {dimension_numbers = #tpu.dot_dimension_numbers<[1], [0], [0], [1], [0, 0, 1, 1], [], []>} : vector<128x32xbf16>, vector<32x64xbf16>, vector<128x64xf32> -> vector<128x64xf32>
    %c0_72 = arith.constant 0 : index
    %c0_73 = arith.constant 0 : index
    %112 = vector.load %arg3[%c0_72, %c0_73] : memref<1x64xf32, #tpu.memory_space<vmem>>, vector<1x64xf32>
    %113 = vector.broadcast %112 : vector<1x64xf32> to vector<128x64xf32>
    %114 = arith.addf %111, %113 : vector<128x64xf32>
    %cst_74 = arith.constant 0.000000e+00 : f32
    %115 = vector.broadcast %cst_74 : f32 to vector<128x64xf32>
    %116 = arith.maximumf %114, %115 : vector<128x64xf32>
    %117 = vector.extract_strided_slice %109 {offsets = [0, 27], sizes = [128, 1], strides = [1, 1]} : vector<128x32xbf16> to vector<128x1xbf16>
    %118 = arith.extf %117 : vector<128x1xbf16> to vector<128x1xf32>
    %119 = vector.broadcast %118 : vector<128x1xf32> to vector<128x64xf32>
    %120 = arith.mulf %116, %119 : vector<128x64xf32>
    %121 = arith.truncf %120 : vector<128x64xf32> to vector<128x64xbf16>
    %c280_75 = arith.constant 280 : index
    %c64_76 = arith.constant 64 : index
    %122 = vector.load %arg7[%c280_75, %c64_76] : memref<480x192xbf16, #tpu.memory_space<vmem>>, vector<128x64xbf16>
    tpu.vector_store %arg7[%c280_75, %c64_76], %121 {strides = array<i32>} : memref<480x192xbf16, #tpu.memory_space<vmem>>, vector<128x64xbf16>,
    %c0_77 = arith.constant 0 : index
    %c265 = arith.constant 265 : index
    %c0_78 = arith.constant 0 : index
    %123 = vector.load %arg1[%c0_77, %c265, %c0_78] : memref<1x448x32xbf16, #tpu.memory_space<vmem>>, vector<1x128x32xbf16>
    %124 = vector.shape_cast %123 : vector<1x128x32xbf16> to vector<128x32xbf16>
    %c0_79 = arith.constant 0 : index
    %c0_80 = arith.constant 0 : index
    %125 = vector.load %arg2[%c0_79, %c0_80] : memref<32x64xbf16, #tpu.memory_space<vmem>>, vector<32x64xbf16>
    %cst_81 = arith.constant dense<0.000000e+00> : vector<128x64xf32>
    %126 = tpu.matmul %124, %125, %cst_81 {dimension_numbers = #tpu.dot_dimension_numbers<[1], [0], [0], [1], [0, 0, 1, 1], [], []>} : vector<128x32xbf16>, vector<32x64xbf16>, vector<128x64xf32> -> vector<128x64xf32>
    %c0_82 = arith.constant 0 : index
    %c0_83 = arith.constant 0 : index
    %127 = vector.load %arg3[%c0_82, %c0_83] : memref<1x64xf32, #tpu.memory_space<vmem>>, vector<1x64xf32>
    %128 = vector.broadcast %127 : vector<1x64xf32> to vector<128x64xf32>
    %129 = arith.addf %126, %128 : vector<128x64xf32>
    %cst_84 = arith.constant 0.000000e+00 : f32
    %130 = vector.broadcast %cst_84 : f32 to vector<128x64xf32>
    %131 = arith.maximumf %129, %130 : vector<128x64xf32>
    %132 = vector.extract_strided_slice %124 {offsets = [0, 27], sizes = [128, 1], strides = [1, 1]} : vector<128x32xbf16> to vector<128x1xbf16>
    %133 = arith.extf %132 : vector<128x1xbf16> to vector<128x1xf32>
    %134 = vector.broadcast %133 : vector<128x1xf32> to vector<128x64xf32>
    %135 = arith.mulf %131, %134 : vector<128x64xf32>
    %136 = arith.truncf %135 : vector<128x64xf32> to vector<128x64xbf16>
    %c280_85 = arith.constant 280 : index
    %c128_86 = arith.constant 128 : index
    %137 = vector.load %arg7[%c280_85, %c128_86] : memref<480x192xbf16, #tpu.memory_space<vmem>>, vector<128x64xbf16>
    tpu.vector_store %arg7[%c280_85, %c128_86], %136 {strides = array<i32>} : memref<480x192xbf16, #tpu.memory_space<vmem>>, vector<128x64xbf16>,
    %c0_87 = arith.constant 0 : index
    %c391 = arith.constant 391 : index
    %c0_88 = arith.constant 0 : index
    %138 = vector.load %arg1[%c0_87, %c391, %c0_88] : memref<1x448x32xbf16, #tpu.memory_space<vmem>>, vector<1x48x32xbf16>
    %139 = vector.shape_cast %138 : vector<1x48x32xbf16> to vector<48x32xbf16>
    %c0_89 = arith.constant 0 : index
    %c0_90 = arith.constant 0 : index
    %140 = vector.load %arg2[%c0_89, %c0_90] : memref<32x64xbf16, #tpu.memory_space<vmem>>, vector<32x64xbf16>
    %cst_91 = arith.constant dense<0.000000e+00> : vector<48x64xf32>
    %141 = tpu.matmul %139, %140, %cst_91 {dimension_numbers = #tpu.dot_dimension_numbers<[1], [0], [0], [1], [0, 0, 1, 1], [], []>} : vector<48x32xbf16>, vector<32x64xbf16>, vector<48x64xf32> -> vector<48x64xf32>
    %c0_92 = arith.constant 0 : index
    %c0_93 = arith.constant 0 : index
    %142 = vector.load %arg3[%c0_92, %c0_93] : memref<1x64xf32, #tpu.memory_space<vmem>>, vector<1x64xf32>
    %143 = vector.broadcast %142 : vector<1x64xf32> to vector<48x64xf32>
    %144 = arith.addf %141, %143 : vector<48x64xf32>
    %cst_94 = arith.constant 0.000000e+00 : f32
    %145 = vector.broadcast %cst_94 : f32 to vector<48x64xf32>
    %146 = arith.maximumf %144, %145 : vector<48x64xf32>
    %147 = vector.extract_strided_slice %139 {offsets = [0, 27], sizes = [48, 1], strides = [1, 1]} : vector<48x32xbf16> to vector<48x1xbf16>
    %148 = arith.extf %147 : vector<48x1xbf16> to vector<48x1xf32>
    %149 = vector.broadcast %148 : vector<48x1xf32> to vector<48x64xf32>
    %150 = arith.mulf %146, %149 : vector<48x64xf32>
    %151 = arith.truncf %150 : vector<48x64xf32> to vector<48x64xbf16>
    %c408 = arith.constant 408 : index
    %c0_95 = arith.constant 0 : index
    %152 = vector.load %arg7[%c408, %c0_95] : memref<480x192xbf16, #tpu.memory_space<vmem>>, vector<48x64xbf16>
    tpu.vector_store %arg7[%c408, %c0_95], %151 {strides = array<i32>} : memref<480x192xbf16, #tpu.memory_space<vmem>>, vector<48x64xbf16>,
    %c0_96 = arith.constant 0 : index
    %c392 = arith.constant 392 : index
    %c0_97 = arith.constant 0 : index
    %153 = vector.load %arg1[%c0_96, %c392, %c0_97] : memref<1x448x32xbf16, #tpu.memory_space<vmem>>, vector<1x48x32xbf16>
    %154 = vector.shape_cast %153 : vector<1x48x32xbf16> to vector<48x32xbf16>
    %c0_98 = arith.constant 0 : index
    %c0_99 = arith.constant 0 : index
    %155 = vector.load %arg2[%c0_98, %c0_99] : memref<32x64xbf16, #tpu.memory_space<vmem>>, vector<32x64xbf16>
    %cst_100 = arith.constant dense<0.000000e+00> : vector<48x64xf32>
    %156 = tpu.matmul %154, %155, %cst_100 {dimension_numbers = #tpu.dot_dimension_numbers<[1], [0], [0], [1], [0, 0, 1, 1], [], []>} : vector<48x32xbf16>, vector<32x64xbf16>, vector<48x64xf32> -> vector<48x64xf32>
    %c0_101 = arith.constant 0 : index
    %c0_102 = arith.constant 0 : index
    %157 = vector.load %arg3[%c0_101, %c0_102] : memref<1x64xf32, #tpu.memory_space<vmem>>, vector<1x64xf32>
    %158 = vector.broadcast %157 : vector<1x64xf32> to vector<48x64xf32>
    %159 = arith.addf %156, %158 : vector<48x64xf32>
    %cst_103 = arith.constant 0.000000e+00 : f32
    %160 = vector.broadcast %cst_103 : f32 to vector<48x64xf32>
    %161 = arith.maximumf %159, %160 : vector<48x64xf32>
    %162 = vector.extract_strided_slice %154 {offsets = [0, 27], sizes = [48, 1], strides = [1, 1]} : vector<48x32xbf16> to vector<48x1xbf16>
    %163 = arith.extf %162 : vector<48x1xbf16> to vector<48x1xf32>
    %164 = vector.broadcast %163 : vector<48x1xf32> to vector<48x64xf32>
    %165 = arith.mulf %161, %164 : vector<48x64xf32>
    %166 = arith.truncf %165 : vector<48x64xf32> to vector<48x64xbf16>
    %c408_104 = arith.constant 408 : index
    %c64_105 = arith.constant 64 : index
    %167 = vector.load %arg7[%c408_104, %c64_105] : memref<480x192xbf16, #tpu.memory_space<vmem>>, vector<48x64xbf16>
    tpu.vector_store %arg7[%c408_104, %c64_105], %166 {strides = array<i32>} : memref<480x192xbf16, #tpu.memory_space<vmem>>, vector<48x64xbf16>,
    %c0_106 = arith.constant 0 : index
    %c393 = arith.constant 393 : index
    %c0_107 = arith.constant 0 : index
    %168 = vector.load %arg1[%c0_106, %c393, %c0_107] : memref<1x448x32xbf16, #tpu.memory_space<vmem>>, vector<1x48x32xbf16>
    %169 = vector.shape_cast %168 : vector<1x48x32xbf16> to vector<48x32xbf16>
    %c0_108 = arith.constant 0 : index
    %c0_109 = arith.constant 0 : index
    %170 = vector.load %arg2[%c0_108, %c0_109] : memref<32x64xbf16, #tpu.memory_space<vmem>>, vector<32x64xbf16>
    %cst_110 = arith.constant dense<0.000000e+00> : vector<48x64xf32>
    %171 = tpu.matmul %169, %170, %cst_110 {dimension_numbers = #tpu.dot_dimension_numbers<[1], [0], [0], [1], [0, 0, 1, 1], [], []>} : vector<48x32xbf16>, vector<32x64xbf16>, vector<48x64xf32> -> vector<48x64xf32>
    %c0_111 = arith.constant 0 : index
    %c0_112 = arith.constant 0 : index
    %172 = vector.load %arg3[%c0_111, %c0_112] : memref<1x64xf32, #tpu.memory_space<vmem>>, vector<1x64xf32>
    %173 = vector.broadcast %172 : vector<1x64xf32> to vector<48x64xf32>
    %174 = arith.addf %171, %173 : vector<48x64xf32>
    %cst_113 = arith.constant 0.000000e+00 : f32
    %175 = vector.broadcast %cst_113 : f32 to vector<48x64xf32>
    %176 = arith.maximumf %174, %175 : vector<48x64xf32>
    %177 = vector.extract_strided_slice %169 {offsets = [0, 27], sizes = [48, 1], strides = [1, 1]} : vector<48x32xbf16> to vector<48x1xbf16>
    %178 = arith.extf %177 : vector<48x1xbf16> to vector<48x1xf32>
    %179 = vector.broadcast %178 : vector<48x1xf32> to vector<48x64xf32>
    %180 = arith.mulf %176, %179 : vector<48x64xf32>
    %181 = arith.truncf %180 : vector<48x64xf32> to vector<48x64xbf16>
    %c408_114 = arith.constant 408 : index
    %c128_115 = arith.constant 128 : index
    %182 = vector.load %arg7[%c408_114, %c128_115] : memref<480x192xbf16, #tpu.memory_space<vmem>>, vector<48x64xbf16>
    tpu.vector_store %arg7[%c408_114, %c128_115], %181 {strides = array<i32>} : memref<480x192xbf16, #tpu.memory_space<vmem>>, vector<48x64xbf16>,
    %cst_116 = arith.constant 0.000000e+00 : f32
    %183 = vector.broadcast %cst_116 : f32 to vector<128x128xf32>
    %c0_117 = arith.constant 0 : index
    %c0_118 = arith.constant 0 : index
    %184 = vector.load %arg7[%c0_117, %c0_118] : memref<480x192xbf16, #tpu.memory_space<vmem>>, vector<128x192xbf16>
    %c0_119 = arith.constant 0 : index
    %c0_120 = arith.constant 0 : index
    %c0_121 = arith.constant 0 : index
    %185 = vector.load %arg4[%c0_119, %c0_120, %c0_121] : memref<3x192x128xbf16, #tpu.memory_space<vmem>>, vector<1x192x128xbf16>
    %186 = vector.shape_cast %185 : vector<1x192x128xbf16> to vector<192x128xbf16>
    %cst_122 = arith.constant dense<0.000000e+00> : vector<128x128xf32>
    %187 = tpu.matmul %184, %186, %cst_122 {dimension_numbers = #tpu.dot_dimension_numbers<[1], [0], [0], [1], [0, 0, 1, 1], [], []>} : vector<128x192xbf16>, vector<192x128xbf16>, vector<128x128xf32> -> vector<128x128xf32>
    %188 = arith.addf %183, %187 : vector<128x128xf32>
    %c24_123 = arith.constant 24 : index
    %c0_124 = arith.constant 0 : index
    %189 = vector.load %arg7[%c24_123, %c0_124] : memref<480x192xbf16, #tpu.memory_space<vmem>>, vector<128x192xbf16>
    %c1 = arith.constant 1 : index
    %c0_125 = arith.constant 0 : index
    %c0_126 = arith.constant 0 : index
    %190 = vector.load %arg4[%c1, %c0_125, %c0_126] : memref<3x192x128xbf16, #tpu.memory_space<vmem>>, vector<1x192x128xbf16>
    %191 = vector.shape_cast %190 : vector<1x192x128xbf16> to vector<192x128xbf16>
    %cst_127 = arith.constant dense<0.000000e+00> : vector<128x128xf32>
    %192 = tpu.matmul %189, %191, %cst_127 {dimension_numbers = #tpu.dot_dimension_numbers<[1], [0], [0], [1], [0, 0, 1, 1], [], []>} : vector<128x192xbf16>, vector<192x128xbf16>, vector<128x128xf32> -> vector<128x128xf32>
    %193 = arith.addf %188, %192 : vector<128x128xf32>
    %c48 = arith.constant 48 : index
    %c0_128 = arith.constant 0 : index
    %194 = vector.load %arg7[%c48, %c0_128] : memref<480x192xbf16, #tpu.memory_space<vmem>>, vector<128x192xbf16>
    %c2 = arith.constant 2 : index
    %c0_129 = arith.constant 0 : index
    %c0_130 = arith.constant 0 : index
    %195 = vector.load %arg4[%c2, %c0_129, %c0_130] : memref<3x192x128xbf16, #tpu.memory_space<vmem>>, vector<1x192x128xbf16>
    %196 = vector.shape_cast %195 : vector<1x192x128xbf16> to vector<192x128xbf16>
    %cst_131 = arith.constant dense<0.000000e+00> : vector<128x128xf32>
    %197 = tpu.matmul %194, %196, %cst_131 {dimension_numbers = #tpu.dot_dimension_numbers<[1], [0], [0], [1], [0, 0, 1, 1], [], []>} : vector<128x192xbf16>, vector<192x128xbf16>, vector<128x128xf32> -> vector<128x128xf32>
    %198 = arith.addf %193, %197 : vector<128x128xf32>
    %c0_132 = arith.constant 0 : index
    %c0_133 = arith.constant 0 : index
    %199 = vector.load %arg5[%c0_132, %c0_133] : memref<1x128xf32, #tpu.memory_space<vmem>>, vector<1x128xf32>
    %200 = vector.broadcast %199 : vector<1x128xf32> to vector<128x128xf32>
    %201 = arith.addf %198, %200 : vector<128x128xf32>
    %c0_134 = arith.constant 0 : index
    %c0_135 = arith.constant 0 : index
    %c0_136 = arith.constant 0 : index
    %202 = vector.load %arg6[%c0_134, %c0_135, %c0_136] : memref<1x432x128xf32, #tpu.memory_space<vmem>>, vector<1x128x128xf32>
    %203 = vector.shape_cast %202 : vector<1x128x128xf32> to vector<128x128xf32>
    %204 = vector.shape_cast %201 : vector<128x128xf32> to vector<1x128x128xf32>
    tpu.vector_store %arg6[%c0_134, %c0_135, %c0_136], %204 {strides = array<i32>} : memref<1x432x128xf32, #tpu.memory_space<vmem>>, vector<1x128x128xf32>,
    %cst_137 = arith.constant 0.000000e+00 : f32
    %205 = vector.broadcast %cst_137 : f32 to vector<128x128xf32>
    %c128_138 = arith.constant 128 : index
    %c0_139 = arith.constant 0 : index
    %206 = vector.load %arg7[%c128_138, %c0_139] : memref<480x192xbf16, #tpu.memory_space<vmem>>, vector<128x192xbf16>
    %c0_140 = arith.constant 0 : index
    %c0_141 = arith.constant 0 : index
    %c0_142 = arith.constant 0 : index
    %207 = vector.load %arg4[%c0_140, %c0_141, %c0_142] : memref<3x192x128xbf16, #tpu.memory_space<vmem>>, vector<1x192x128xbf16>
    %208 = vector.shape_cast %207 : vector<1x192x128xbf16> to vector<192x128xbf16>
    %cst_143 = arith.constant dense<0.000000e+00> : vector<128x128xf32>
    %209 = tpu.matmul %206, %208, %cst_143 {dimension_numbers = #tpu.dot_dimension_numbers<[1], [0], [0], [1], [0, 0, 1, 1], [], []>} : vector<128x192xbf16>, vector<192x128xbf16>, vector<128x128xf32> -> vector<128x128xf32>
    %210 = arith.addf %205, %209 : vector<128x128xf32>
    %c152_144 = arith.constant 152 : index
    %c0_145 = arith.constant 0 : index
    %211 = vector.load %arg7[%c152_144, %c0_145] : memref<480x192xbf16, #tpu.memory_space<vmem>>, vector<128x192xbf16>
    %c1_146 = arith.constant 1 : index
    %c0_147 = arith.constant 0 : index
    %c0_148 = arith.constant 0 : index
    %212 = vector.load %arg4[%c1_146, %c0_147, %c0_148] : memref<3x192x128xbf16, #tpu.memory_space<vmem>>, vector<1x192x128xbf16>
    %213 = vector.shape_cast %212 : vector<1x192x128xbf16> to vector<192x128xbf16>
    %cst_149 = arith.constant dense<0.000000e+00> : vector<128x128xf32>
    %214 = tpu.matmul %211, %213, %cst_149 {dimension_numbers = #tpu.dot_dimension_numbers<[1], [0], [0], [1], [0, 0, 1, 1], [], []>} : vector<128x192xbf16>, vector<192x128xbf16>, vector<128x128xf32> -> vector<128x128xf32>
    %215 = arith.addf %210, %214 : vector<128x128xf32>
    %c176 = arith.constant 176 : index
    %c0_150 = arith.constant 0 : index
    %216 = vector.load %arg7[%c176, %c0_150] : memref<480x192xbf16, #tpu.memory_space<vmem>>, vector<128x192xbf16>
    %c2_151 = arith.constant 2 : index
    %c0_152 = arith.constant 0 : index
    %c0_153 = arith.constant 0 : index
    %217 = vector.load %arg4[%c2_151, %c0_152, %c0_153] : memref<3x192x128xbf16, #tpu.memory_space<vmem>>, vector<1x192x128xbf16>
    %218 = vector.shape_cast %217 : vector<1x192x128xbf16> to vector<192x128xbf16>
    %cst_154 = arith.constant dense<0.000000e+00> : vector<128x128xf32>
    %219 = tpu.matmul %216, %218, %cst_154 {dimension_numbers = #tpu.dot_dimension_numbers<[1], [0], [0], [1], [0, 0, 1, 1], [], []>} : vector<128x192xbf16>, vector<192x128xbf16>, vector<128x128xf32> -> vector<128x128xf32>
    %220 = arith.addf %215, %219 : vector<128x128xf32>
    %c0_155 = arith.constant 0 : index
    %c0_156 = arith.constant 0 : index
    %221 = vector.load %arg5[%c0_155, %c0_156] : memref<1x128xf32, #tpu.memory_space<vmem>>, vector<1x128xf32>
    %222 = vector.broadcast %221 : vector<1x128xf32> to vector<128x128xf32>
    %223 = arith.addf %220, %222 : vector<128x128xf32>
    %c0_157 = arith.constant 0 : index
    %c128_158 = arith.constant 128 : index
    %c0_159 = arith.constant 0 : index
    %224 = vector.load %arg6[%c0_157, %c128_158, %c0_159] : memref<1x432x128xf32, #tpu.memory_space<vmem>>, vector<1x128x128xf32>
    %225 = vector.shape_cast %224 : vector<1x128x128xf32> to vector<128x128xf32>
    %226 = vector.shape_cast %223 : vector<128x128xf32> to vector<1x128x128xf32>
    tpu.vector_store %arg6[%c0_157, %c128_158, %c0_159], %226 {strides = array<i32>} : memref<1x432x128xf32, #tpu.memory_space<vmem>>, vector<1x128x128xf32>,
    %cst_160 = arith.constant 0.000000e+00 : f32
    %227 = vector.broadcast %cst_160 : f32 to vector<128x128xf32>
    %c256 = arith.constant 256 : index
    %c0_161 = arith.constant 0 : index
    %228 = vector.load %arg7[%c256, %c0_161] : memref<480x192xbf16, #tpu.memory_space<vmem>>, vector<128x192xbf16>
    %c0_162 = arith.constant 0 : index
    %c0_163 = arith.constant 0 : index
    %c0_164 = arith.constant 0 : index
    %229 = vector.load %arg4[%c0_162, %c0_163, %c0_164] : memref<3x192x128xbf16, #tpu.memory_space<vmem>>, vector<1x192x128xbf16>
    %230 = vector.shape_cast %229 : vector<1x192x128xbf16> to vector<192x128xbf16>
    %cst_165 = arith.constant dense<0.000000e+00> : vector<128x128xf32>
    %231 = tpu.matmul %228, %230, %cst_165 {dimension_numbers = #tpu.dot_dimension_numbers<[1], [0], [0], [1], [0, 0, 1, 1], [], []>} : vector<128x192xbf16>, vector<192x128xbf16>, vector<128x128xf32> -> vector<128x128xf32>
    %232 = arith.addf %227, %231 : vector<128x128xf32>
    %c280_166 = arith.constant 280 : index
    %c0_167 = arith.constant 0 : index
    %233 = vector.load %arg7[%c280_166, %c0_167] : memref<480x192xbf16, #tpu.memory_space<vmem>>, vector<128x192xbf16>
    %c1_168 = arith.constant 1 : index
    %c0_169 = arith.constant 0 : index
    %c0_170 = arith.constant 0 : index
    %234 = vector.load %arg4[%c1_168, %c0_169, %c0_170] : memref<3x192x128xbf16, #tpu.memory_space<vmem>>, vector<1x192x128xbf16>
    %235 = vector.shape_cast %234 : vector<1x192x128xbf16> to vector<192x128xbf16>
    %cst_171 = arith.constant dense<0.000000e+00> : vector<128x128xf32>
    %236 = tpu.matmul %233, %235, %cst_171 {dimension_numbers = #tpu.dot_dimension_numbers<[1], [0], [0], [1], [0, 0, 1, 1], [], []>} : vector<128x192xbf16>, vector<192x128xbf16>, vector<128x128xf32> -> vector<128x128xf32>
    %237 = arith.addf %232, %236 : vector<128x128xf32>
    %c304 = arith.constant 304 : index
    %c0_172 = arith.constant 0 : index
    %238 = vector.load %arg7[%c304, %c0_172] : memref<480x192xbf16, #tpu.memory_space<vmem>>, vector<128x192xbf16>
    %c2_173 = arith.constant 2 : index
    %c0_174 = arith.constant 0 : index
    %c0_175 = arith.constant 0 : index
    %239 = vector.load %arg4[%c2_173, %c0_174, %c0_175] : memref<3x192x128xbf16, #tpu.memory_space<vmem>>, vector<1x192x128xbf16>
    %240 = vector.shape_cast %239 : vector<1x192x128xbf16> to vector<192x128xbf16>
    %cst_176 = arith.constant dense<0.000000e+00> : vector<128x128xf32>
    %241 = tpu.matmul %238, %240, %cst_176 {dimension_numbers = #tpu.dot_dimension_numbers<[1], [0], [0], [1], [0, 0, 1, 1], [], []>} : vector<128x192xbf16>, vector<192x128xbf16>, vector<128x128xf32> -> vector<128x128xf32>
    %242 = arith.addf %237, %241 : vector<128x128xf32>
    %c0_177 = arith.constant 0 : index
    %c0_178 = arith.constant 0 : index
    %243 = vector.load %arg5[%c0_177, %c0_178] : memref<1x128xf32, #tpu.memory_space<vmem>>, vector<1x128xf32>
    %244 = vector.broadcast %243 : vector<1x128xf32> to vector<128x128xf32>
    %245 = arith.addf %242, %244 : vector<128x128xf32>
    %c0_179 = arith.constant 0 : index
    %c256_180 = arith.constant 256 : index
    %c0_181 = arith.constant 0 : index
    %246 = vector.load %arg6[%c0_179, %c256_180, %c0_181] : memref<1x432x128xf32, #tpu.memory_space<vmem>>, vector<1x128x128xf32>
    %247 = vector.shape_cast %246 : vector<1x128x128xf32> to vector<128x128xf32>
    %248 = vector.shape_cast %245 : vector<128x128xf32> to vector<1x128x128xf32>
    tpu.vector_store %arg6[%c0_179, %c256_180, %c0_181], %248 {strides = array<i32>} : memref<1x432x128xf32, #tpu.memory_space<vmem>>, vector<1x128x128xf32>,
    %cst_182 = arith.constant 0.000000e+00 : f32
    %249 = vector.broadcast %cst_182 : f32 to vector<48x128xf32>
    %c384 = arith.constant 384 : index
    %c0_183 = arith.constant 0 : index
    %250 = vector.load %arg7[%c384, %c0_183] : memref<480x192xbf16, #tpu.memory_space<vmem>>, vector<48x192xbf16>
    %c0_184 = arith.constant 0 : index
    %c0_185 = arith.constant 0 : index
    %c0_186 = arith.constant 0 : index
    %251 = vector.load %arg4[%c0_184, %c0_185, %c0_186] : memref<3x192x128xbf16, #tpu.memory_space<vmem>>, vector<1x192x128xbf16>
    %252 = vector.shape_cast %251 : vector<1x192x128xbf16> to vector<192x128xbf16>
    %cst_187 = arith.constant dense<0.000000e+00> : vector<48x128xf32>
    %253 = tpu.matmul %250, %252, %cst_187 {dimension_numbers = #tpu.dot_dimension_numbers<[1], [0], [0], [1], [0, 0, 1, 1], [], []>} : vector<48x192xbf16>, vector<192x128xbf16>, vector<48x128xf32> -> vector<48x128xf32>
    %254 = arith.addf %249, %253 : vector<48x128xf32>
    %c408_188 = arith.constant 408 : index
    %c0_189 = arith.constant 0 : index
    %255 = vector.load %arg7[%c408_188, %c0_189] : memref<480x192xbf16, #tpu.memory_space<vmem>>, vector<48x192xbf16>
    %c1_190 = arith.constant 1 : index
    %c0_191 = arith.constant 0 : index
    %c0_192 = arith.constant 0 : index
    %256 = vector.load %arg4[%c1_190, %c0_191, %c0_192] : memref<3x192x128xbf16, #tpu.memory_space<vmem>>, vector<1x192x128xbf16>
    %257 = vector.shape_cast %256 : vector<1x192x128xbf16> to vector<192x128xbf16>
    %cst_193 = arith.constant dense<0.000000e+00> : vector<48x128xf32>
    %258 = tpu.matmul %255, %257, %cst_193 {dimension_numbers = #tpu.dot_dimension_numbers<[1], [0], [0], [1], [0, 0, 1, 1], [], []>} : vector<48x192xbf16>, vector<192x128xbf16>, vector<48x128xf32> -> vector<48x128xf32>
    %259 = arith.addf %254, %258 : vector<48x128xf32>
    %c432 = arith.constant 432 : index
    %c0_194 = arith.constant 0 : index
    %260 = vector.load %arg7[%c432, %c0_194] : memref<480x192xbf16, #tpu.memory_space<vmem>>, vector<48x192xbf16>
    %c2_195 = arith.constant 2 : index
    %c0_196 = arith.constant 0 : index
    %c0_197 = arith.constant 0 : index
    %261 = vector.load %arg4[%c2_195, %c0_196, %c0_197] : memref<3x192x128xbf16, #tpu.memory_space<vmem>>, vector<1x192x128xbf16>
    %262 = vector.shape_cast %261 : vector<1x192x128xbf16> to vector<192x128xbf16>
    %cst_198 = arith.constant dense<0.000000e+00> : vector<48x128xf32>
    %263 = tpu.matmul %260, %262, %cst_198 {dimension_numbers = #tpu.dot_dimension_numbers<[1], [0], [0], [1], [0, 0, 1, 1], [], []>} : vector<48x192xbf16>, vector<192x128xbf16>, vector<48x128xf32> -> vector<48x128xf32>
    %264 = arith.addf %259, %263 : vector<48x128xf32>
    %c0_199 = arith.constant 0 : index
    %c0_200 = arith.constant 0 : index
    %265 = vector.load %arg5[%c0_199, %c0_200] : memref<1x128xf32, #tpu.memory_space<vmem>>, vector<1x128xf32>
    %266 = vector.broadcast %265 : vector<1x128xf32> to vector<48x128xf32>
    %267 = arith.addf %264, %266 : vector<48x128xf32>
    %c0_201 = arith.constant 0 : index
    %c384_202 = arith.constant 384 : index
    %c0_203 = arith.constant 0 : index
    %268 = vector.load %arg6[%c0_201, %c384_202, %c0_203] : memref<1x432x128xf32, #tpu.memory_space<vmem>>, vector<1x48x128xf32>
    %269 = vector.shape_cast %268 : vector<1x48x128xf32> to vector<48x128xf32>
    %270 = vector.shape_cast %267 : vector<48x128xf32> to vector<1x48x128xf32>
    tpu.vector_store %arg6[%c0_201, %c384_202, %c0_203], %270 {strides = array<i32>} : memref<1x432x128xf32, #tpu.memory_space<vmem>>, vector<1x48x128xf32>,
    return
  }
  func.func @transform_0(%arg0: i32) -> (i32, i32, i32) {
    %c0_i32 = arith.constant 0 : i32
    %c0_i32_0 = arith.constant 0 : i32
    %c0_i32_1 = arith.constant 0 : i32
    return %arg0, %c0_i32, %c0_i32_0 : i32, i32, i32
  }
  func.func @transform_1(%arg0: i32) -> (i32, i32) {
    %c0_i32 = arith.constant 0 : i32
    %c0_i32_0 = arith.constant 0 : i32
    %c0_i32_1 = arith.constant 0 : i32
    return %c0_i32, %c0_i32_0 : i32, i32
  }
  func.func @transform_2(%arg0: i32) -> (i32, i32) {
    %c0_i32 = arith.constant 0 : i32
    %c0_i32_0 = arith.constant 0 : i32
    %c0_i32_1 = arith.constant 0 : i32
    return %c0_i32, %c0_i32_0 : i32, i32
  }
  func.func @transform_3(%arg0: i32) -> (i32, i32, i32) {
    %c0_i32 = arith.constant 0 : i32
    %c0_i32_0 = arith.constant 0 : i32
    %c0_i32_1 = arith.constant 0 : i32
    %c0_i32_2 = arith.constant 0 : i32
    return %c0_i32, %c0_i32_0, %c0_i32_1 : i32, i32, i32
  }
  func.func @transform_4(%arg0: i32) -> (i32, i32) {
    %c0_i32 = arith.constant 0 : i32
    %c0_i32_0 = arith.constant 0 : i32
    %c0_i32_1 = arith.constant 0 : i32
    return %c0_i32, %c0_i32_0 : i32, i32
  }
  func.func @transform_5(%arg0: i32) -> (i32, i32, i32) {
    %c0_i32 = arith.constant 0 : i32
    %c0_i32_0 = arith.constant 0 : i32
    %c0_i32_1 = arith.constant 0 : i32
    return %arg0, %c0_i32, %c0_i32_0 : i32, i32, i32
  }
}

</mosaic_0001>

<bundles_post_ra>
// kernel: nested_unet_forward.1
= control target key start
LH: loop header
LB: loop body
LE: loop exit
PB: predicated region body
PF: predicated region fallthrough
CT: control target
= control target key end

     0   :  { %s9929_s18 = smov 0   ;;  %s14006_s0 = inlined_call_operand.vmem [shape: bf16[2,448,32], index: 0, kind: input, shape index: {}]   ;;  %s14007_s1 = inlined_call_operand.vmem [shape: bf16[32,64], index: 1, kind: input, shape index: {}]   ;;  %s14008_s2 = inlined_call_operand.vmem [shape: f32[1,64], index: 2, kind: input, shape index: {}]   ;;  %s14009_s3 = inlined_call_operand.vmem [shape: bf16[3,192,128], index: 3, kind: input, shape index: {}]   ;;  %s14010_s4 = inlined_call_operand.vmem [shape: f32[1,128], index: 4, kind: input, shape index: {}]   ;;  %s14011_s5 = inlined_call_operand.vmem [shape: f32[2,432,128], index: 5, kind: output, shape index: {}]  }
   0x1 LB: > { %s8058_s19 = sadd.s32 4294967295, %s9892_s18   ;;  %p8062_p0 = scmp.ge.s32.totalorder %s9892_s18, 1  ;;  %s9892_s18 = sphi %s9929_s18, %s15_s18  }
   0x2   : > { %p187_p1 = scmp.lt.s32.totalorder %s9892_s18, 3 }
   0x4   : > { %p188_p2 = pnand %p8062_p0, %p187_p1 }
   0x6   : > { %191 = sbr.rel (%p188_p2) target bundleno = 1136 (0x470), region = 40 }
   0xd   : > { %v9469_v0 = vld [vmem:[%s14007_s1] sm:$0xff]   ;;  %p215_p3 = scmp.lt.s32.totalorder %s8058_s19, 1  ;;  %v9470_v1 = vld [vmem:[%s14007_s1 + $0x8] sm:$0xff]   ;;  %v9894_v4 = vmov 27   ;;  %vm401_vm0 = vcmask 261120   ;;  %vm227_vm3 = vcmask 523264  }
   0xe   : > { %8819 = vmatprep.subr.bf16.mxu1 %v9469_v0  ;;  %v9471_v2 = vld [vmem:[%s14007_s1] sm:$0xff]   ;;  %v9474_v3 = vld [vmem:[%s14007_s1 + $0x8] sm:$0xff]   ;;  %9042 = vset.pattern.permute.xlu0 %v9894_v4  ;;  %vm308_vm1 = vsmask.f32 4352  ;;  %vm1209_vm2 = vsmask.f32 7424 }
   0xf   : > { %s14390_s19 = smov (!%p215_p3, %s8058_s19), 1  ;;  %8820 = vmatpush3.bf16.msra.mxu1 %v9469_v0  ;;  %8799 = vmatprep.subr.bf16.mxu0 %v9471_v2  ;;  %v9960_v5 = vld [vmem:[%s14007_s1] sm:$0xff]   ;;  %v9491_v40 = vld [vmem:[%s14007_s1 + $0x8] sm:$0xff]   ;;  %vm233_vm4 = vcmask 523268   ;;  %vm230_vm5 = vcmask 519168   ;;  %vm9897_vm6 = vmmov 0  }
  0x10   : > { %8821 = vmatprep.subr.bf16.mxu1 %v9470_v1  ;;  %s9027_s28 = smul.u32 224, %s14390_s19  ;;  %8800 = vmatpush3.bf16.msra.mxu0 %v9471_v2  ;;  %v9505_v63 = vld [vmem:[%s14007_s1] sm:$0xff]   ;;  %v9506_v0 = vld [vmem:[%s14007_s1 + $0x8] sm:$0xff]   ;;  %vm624_vm7 = vcmask 1040384   ;;  %vm706_vm8 = vcmask 1043456   ;;  %s9898_s9 = smov 64  }
  0x11   : > { %8801 = vmatprep.subr.bf16.mxu0 %v9474_v3  ;;  %9053 = vset.pattern.permute.xlu1 %v9894_v4  ;;  %vm1512_vm9 = vcmask 1046528   ;;  %vm1126_vm10 = vcmask 1048068   ;;  %vm1128_vm11 = vcmask 1048064   ;;  %vm1136_vm12 = vcmask 1043968   ;;  %s9028_s13 = smul.u32 432, %s14390_s19 }
  0x12   : > { %s9955_s6 = scalar_lea.vmem %s14006_s0, %s9027_s28 }
  0x13   : > { %8822 = vmatpush3.bf16.msra.mxu1 %v9470_v1  ;;  %v9963_v6 = vld [vmem:[%s9955_s6 + $0x4] sm:$0xff]   ;;  %v9966_v7 = vld [vmem:[%s9955_s6 + $0xc] sm:$0xff]   ;;  %v9969_v8 = vld [vmem:[%s9955_s6] sm:$0x8]  ;;  %s13073_s20 = scalar_lea.vmem %s14011_s5, %s9028_s13 }
  0x14   : > { %v9972_v9 = vld [vmem:[%s9955_s6 + $0x4] sm:$0xf]  ;;  %v9975_v10 = vld [vmem:[%s9955_s6 + $0x8] sm:$0xff]   ;;  %v9978_v11 = vld [vmem:[%s9955_s6 + $0x10] sm:$0xff]   ;;  %8802 = vmatpush3.bf16.msra.mxu0 %v9474_v3  ;;  %8823 = vmatprep.mubr.msk.bf16.mxu1 %vm401_vm0, %v9963_v6  ;;  %v539_v61 = vunpack.c.l.bf16 %v9969_v8 }
  0x15   : > { %v8066_v12 = vcombine.low %v9969_v8, %v9972_v9  ;;  %v9983_v13 = vld [vmem:[%s9955_s6 + $0x14] sm:$0xff]   ;;  %8839 = vmatprep.subr.bf16.mxu0 %v9960_v5  ;;  %v318_v17 = vshrl.u32 %v9975_v10, 16  ;;  %v321_v18 = vshll.u32 %v9975_v10, 16  ;;  %v327_v19 = vshrl.u32 %v9978_v11, 16  ;;  %v10000_v21 = vld [vmem:[%s9955_s6 + $0x1c] sm:$0xff]   ;;  %v10008_v29 = vld [vmem:[%s9955_s6 + $0x24] sm:$0xff]   ;;  %8859 = vmatprep.subr.bf16.mxu1 %v9505_v63 }
  0x16   : > { %v9986_v14 = vld [vmem:[%s9955_s6 + $0x18] sm:$0xff]   ;;  %8824 = vmatmul.mubr.msk.bf16.vlgmr.msra.gmra.mrb[0].mxu1 %vm401_vm0, %v9966_v7  ;;  %v330_v20 = vshll.u32 %v9978_v11, 16  ;;  %v10005_v24 = vld [vmem:[%s9955_s6 + $0x20] sm:$0xff]   ;;  %v10011_v30 = vld [vmem:[%s9955_s6 + $0x28] sm:$0xff]   ;;  %v540_v62 = vunpack.c.l.bf16 %v9972_v9 }
  0x17   : > { %v310_v15 = vshrl.u32 %v8066_v12, 16  ;;  %v313_v16 = vshll.u32 %v8066_v12, 16  ;;  %8827 = vmatprep.mubr.msk.bf16.mxu1 %vm401_vm0, %v9983_v13  ;;  %v336_v22 = vshrl.u32 %v9986_v14, 16  ;;  %v339_v23 = vshll.u32 %v9986_v14, 16  ;;  %v249_v35 = vld [vmem:[%s9955_s6 + $0x30] sm:$0xff]   ;;  %v251_v45 = vld [vmem:[%s9955_s6 + $0x38] sm:$0xff]   ;;  %8860 = vmatpush3.bf16.msra.mxu1 %v9505_v63 }
  0x18   : > { %v320_v27 = vrot.slane %v318_v17, 3  ;;  %v323_v28 = vrot.slane %v321_v18, 4  ;;  %v329_v31 = vrot.slane %v327_v19, 3  ;;  %v332_v32 = vrot.slane %v330_v20, 4  ;;  %v10021_v44 = vld [vmem:[%s9955_s6 + $0x2c] sm:$0xff]   ;;  %v10025_v46 = vld [vmem:[%s9955_s6 + $0x4] sm:$0xff]   ;;  %8861 = vmatprep.subr.bf16.mxu1 %v9506_v0 }
  0x19   : > { %v312_v25 = vrot.slane %v310_v15, 3  ;;  %v315_v26 = vrot.slane %v313_v16, 4  ;;  %v338_v33 = vrot.slane %v336_v22, 3  ;;  %v341_v34 = vrot.slane %v339_v23, 4  ;;  %v253_v51 = vld [vmem:[%s9955_s6 + $0x40] sm:$0xf] }
  0x1a   : > { %v324_v37 = vor.u32 %v323_v28, %v320_v27  ;;  %v333_v38 = vor.u32 %v332_v32, %v329_v31  ;;  %v345_v42 = vshrl.u32 %v10005_v24, 16  ;;  %v348_v43 = vshll.u32 %v10005_v24, 16  ;;  %v10040_v58 = vld [vmem:[%s9955_s6 + $0x34] sm:$0xff]   ;;  %v10043_v59 = vld [vmem:[%s9955_s6 + $0xc] sm:$0xff]   ;;  %v10057_v3 = vld [vmem:[%s14007_s1] sm:$0xff]  }
  0x1b   : > { %v316_v36 = vor.u32 %v315_v26, %v312_v25  ;;  %v342_v39 = vor.u32 %v341_v34, %v338_v33  ;;  %v354_v49 = vshrl.u32 %v10011_v30, 16  ;;  %v357_v50 = vshll.u32 %v10011_v30, 16  ;;  %v10061_v16 = vld [vmem:[%s9955_s6 + $0x14] sm:$0xff]   ;;  %v10075_v28 = vld [vmem:[%s9955_s6 + $0x3c] sm:$0xff]   ;;  %8862 = vmatpush3.bf16.msra.mxu1 %v9506_v0 }
  0x1c   : > { %v334_v47 = vsel %vm308_vm1, %v324_v37, %v333_v38  ;;  %v347_v52 = vrot.slane %v345_v42, 3  ;;  %v350_v53 = vrot.slane %v348_v43, 4  ;;  %v363_v54 = vshrl.u32 %v249_v35, 16  ;;  %v10080_v34 = vld [vmem:[%s9955_s6 + $0x1c] sm:$0xff]  }
  0x1d   : > { %v325_v41 = vsel %vm308_vm1, %v316_v36, %v324_v37  ;;  %v343_v48 = vsel %vm308_vm1, %v333_v38, %v342_v39  ;;  %v366_v55 = vshll.u32 %v249_v35, 16  ;;  %v356_v56 = vrot.slane %v354_v49, 3  ;;  %v10083_v35 = vld [vmem:[%s9955_s6 + $0x24] sm:$0xff]  }
  0x1e   : > { %8803 = vmatprep.mubr.msk.bf16.mxu0 %vm401_vm0, %v325_v41  ;;  %8828 = vmatmul.mubr.msk.bf16.gmra.mrb[4].mxu1 %vm401_vm0, %v10000_v21  ;;  %v359_v57 = vrot.slane %v357_v50, 4  ;;  %v351_v60 = vor.u32 %v350_v53, %v347_v52  ;;  %v8074_v2 = vcombine.low %v253_v51, %v253_v51  ;;  %v365_v4 = vrot.slane %v363_v54, 3  ;;  %v10099_v50 = vld [vmem:[%s14007_s1] sm:$0xff]  }
  0x1f   : > { %8804 = vmatmul.mubr.msk.bf16.vlgmr.msra.gmra.mrb[0].mxu0 %vm401_vm0, %v334_v47  ;;  %8831 = vmatprep.mubr.msk.bf16.mxu1 %vm401_vm0, %v10008_v29  ;;  %v372_v8 = vshrl.u32 %v251_v45, 16  ;;  %v375_v9 = vshll.u32 %v251_v45, 16  ;;  %v1213_v22 = vshll.u32 %v10025_v46, 16  ;;  %v956_v23 = vunpack.c.l.bf16 %v9963_v6  ;;  %v10092_v45 = vld [vmem:[%s9955_s6 + $0x2c] sm:$0xff]  }
  0x20   : > { %8807 = vmatprep.mubr.msk.bf16.mxu0 %vm401_vm0, %v343_v48  ;;  %8840 = vmatpush3.bf16.msra.mxu0 %v9960_v5  ;;  %v360_v1 = vor.u32 %v359_v57, %v356_v56  ;;  %v368_v5 = vrot.slane %v366_v55, 4  ;;  %v352_v12 = vsel %vm308_vm1, %v342_v39, %v351_v60  ;;  %v381_v15 = vshrl.u32 %v8074_v2, 16 }
  0x21   : > { %8841 = vmatprep.subr.bf16.mxu0 %v9491_v40  ;;  %v374_v18 = vrot.slane %v372_v8, 3  ;;  %v377_v19 = vrot.slane %v375_v9, 4  ;;  %v384_v20 = vshll.u32 %v8074_v2, 16  ;;  %v9043_v26 = vpack.i.bf16 %v540_v62, %v539_v61  ;;  %8899 = vmatprep.subr.bf16.mxu1 %v10099_v50 }
  0x22   : > { %v361_v17 = vsel %vm308_vm1, %v351_v60, %v360_v1  ;;  %v369_v25 = vor.u32 %v368_v5, %v365_v4  ;;  %v957_v27 = vunpack.c.h.bf16 %v9963_v6  ;;  %v383_v31 = vrot.slane %v381_v15, 3  ;;  %v10106_v60 = vld [vmem:[%s9955_s6 + $0x34] sm:$0xff]  }
  0x23   : > { %v543_v32 = vunpack.c.l.bf16 %v9978_v11  ;;  %v544_v33 = vunpack.c.h.bf16 %v9978_v11  ;;  %v378_v36 = vor.u32 %v377_v19, %v374_v18  ;;  %v386_v37 = vrot.slane %v384_v20, 4  ;;  %9044 = vperm.xlu0 %9042, %v9043_v26  }
  0x24   : > { %8842 = vmatpush3.bf16.msra.mxu0 %v9491_v40  ;;  %v1218_v6 = vshll.u32 %v10043_v59, 16  ;;  %v541_v38 = vunpack.c.l.bf16 %v9975_v10  ;;  %v1211_v39 = vshrl.u32 %v10025_v46, 16  ;;  %v1215_v40 = vrot.slane %v1213_v22, 1 }
  0x25   : > { %8879 = vmatprep.subr.bf16.mxu0 %v10057_v3  ;;  %v9054_v41 = vpack.i.bf16 %v544_v33, %v543_v32  ;;  %v542_v11 = vunpack.c.h.bf16 %v9975_v10  ;;  %v370_v42 = vsel %vm308_vm1, %v360_v1, %v369_v25  ;;  %v1226_v43 = vshll.u32 %v10061_v16, 16 }
  0x26   : > { %8832 = vmatmul.mubr.msk.bf16.gmra.mrb[8].mxu1 %vm401_vm0, %v10021_v44  ;;  %v545_v48 = vunpack.c.l.bf16 %v9986_v14  ;;  %v546_v49 = vunpack.c.h.bf16 %v9986_v14  ;;  %v379_v10 = vsel %vm308_vm1, %v369_v25, %v378_v36  ;;  %v387_v51 = vor.u32 %v386_v37, %v383_v31 }
  0x27   : > { %8808 = vmatmul.mubr.msk.bf16.gmra.mrb[4].mxu0 %vm401_vm0, %v352_v12  ;;  %8835 = vmatprep.mubr.msk.bf16.mxu1 %vm401_vm0, %v10040_v58  ;;  %v9048_v47 = vpack.i.bf16 %v542_v11, %v541_v38  ;;  %v1220_v52 = vrot.slane %v1218_v6, 1  ;;  %v1222_v53 = vshrl.u32 %v10043_v59, 16  ;;  %v1216_v54 = vor.u32 %v1215_v40, %v1211_v39 }
  0x28   : > { %8811 = vmatprep.mubr.msk.bf16.mxu0 %vm401_vm0, %v361_v17  ;;  %9055 = vperm.xlu1 %9053, %v9054_v41   ;;  %v9059_v55 = vpack.i.bf16 %v546_v49, %v545_v48  ;;  %v547_v56 = vunpack.c.l.bf16 %v10005_v24  ;;  %v548_v57 = vunpack.c.h.bf16 %v10005_v24  ;;  %v1234_v14 = vshll.u32 %v10080_v34, 16  ;;  %v1154_v48 = vld [vmem:[%s9955_s6 + $0x44] sm:$0x1] }
  0x29   : > { %9049 = vperm.xlu0 %9042, %v9048_v47   ;;  %v1242_v61 = vshll.u32 %v10083_v35, 16  ;;  %v549_v62 = vunpack.c.l.bf16 %v10011_v30  ;;  %v550_v63 = vunpack.c.h.bf16 %v10011_v30  ;;  %v1228_v24 = vrot.slane %v1226_v43, 1 }
  0x2a   : > { %v1230_v0 = vshrl.u32 %v10061_v16, 16  ;;  %v9064_v1 = vpack.i.bf16 %v548_v57, %v547_v56  ;;  %v388_v2 = vsel %vm308_vm1, %v378_v36, %v387_v51  ;;  %v1224_v4 = vor.u32 %v1222_v53, %v1220_v52 }
  0x2b   : > { %v9069_v5 = vpack.i.bf16 %v550_v63, %v549_v62  ;;  %v1238_v8 = vshrl.u32 %v10080_v34, 16  ;;  %v9074_v9 = vpack.i.bf16 %v957_v27, %v956_v23  ;;  %v1250_v12 = vshll.u32 %v10092_v45, 16 }
  0x2c   : > { %9060 = vperm.xlu1 %9053, %v9059_v55   ;;  %v958_v15 = vunpack.c.l.bf16 %v9966_v7  ;;  %v1236_v30 = vrot.slane %v1234_v14, 1  ;;  %v1244_v17 = vrot.slane %v1242_v61, 1  ;;  %v959_v18 = vunpack.c.h.bf16 %v9966_v7  ;;  %v1629_v61 = vld [vmem:[%s9955_s6 + $0x48] sm:$0xff]  }
  0x2d   : > { %9065 = vperm.xlu0 %9042, %v9064_v1   ;;  %v960_v19 = vunpack.c.l.bf16 %v9983_v13  ;;  %v1246_v20 = vshrl.u32 %v10083_v35, 16  ;;  %v961_v22 = vunpack.c.h.bf16 %v9983_v13  ;;  %v962_v25 = vunpack.c.l.bf16 %v10000_v21 }
  0x2e   : > { %8836 = vmatmul.mubr.msk.bf16.gmra.mrb[12].mxu1 %vm401_vm0, %v10075_v28  ;;  %v963_v23 = vunpack.c.h.bf16 %v10000_v21  ;;  %v1221_v26 = vsel %vm1209_vm2, %v1216_v54, %v1220_v52  ;;  %v1254_v27 = vshrl.u32 %v10092_v45, 16  ;;  %v1258_v31 = vshll.u32 %v10106_v60, 16  ;;  %v10135_v21 = vld [vmem:[%s9955_s6 + $0x3c] sm:$0xff]   ;;  %v1628_v52 = vld [vmem:[%s9955_s6 + $0x44] sm:$0xf] }
  0x2f   : > { %8812 = vmatmul.mubr.msk.bf16.gmra.mrb[8].mxu0 %vm401_vm0, %v370_v42  ;;  %v9079_v32 = vpack.i.bf16 %v959_v18, %v958_v15  ;;  %v1252_v7 = vrot.slane %v1250_v12, 1  ;;  %v9084_v33 = vpack.i.bf16 %v961_v22, %v960_v19  ;;  %v964_v36 = vunpack.c.l.bf16 %v10008_v29  ;;  %v1633_v15 = vld [vmem:[%s9955_s6 + $0x58] sm:$0xff]  }
  0x30   : > { %8815 = vmatprep.mubr.msk.bf16.mxu0 %vm401_vm0, %v379_v10  ;;  %9070 = vperm.xlu1 %9053, %v9069_v5   ;;  %v965_v37 = vunpack.c.h.bf16 %v10008_v29  ;;  %v1232_v13 = vor.u32 %v1230_v0, %v1228_v24  ;;  %v1240_v6 = vor.u32 %v1238_v8, %v1236_v30  ;;  %v9089_v38 = vpack.i.bf16 %v963_v23, %v962_v25  ;;  %v1631_v0 = vld [vmem:[%s9955_s6 + $0x50] sm:$0xff]   ;;  %v1635_v23 = vld [vmem:[%s9955_s6 + $0x60] sm:$0xff]  }
  0x31   : > { %9075 = vperm.xlu0 %9042, %v9074_v9   ;;  %v966_v39 = vunpack.c.l.bf16 %v10021_v44  ;;  %v967_v40 = vunpack.c.h.bf16 %v10021_v44  ;;  %v1248_v41 = vor.u32 %v1246_v20, %v1244_v17  ;;  %v968_v29 = vunpack.c.l.bf16 %v10040_v58 }
  0x32   : > { %v969_v11 = vunpack.c.h.bf16 %v10040_v58  ;;  %v1229_v42 = vsel %vm1209_vm2, %v1224_v4, %v1228_v24  ;;  %v9094_v43 = vpack.i.bf16 %v965_v37, %v964_v36  ;;  %v970_v45 = vunpack.c.l.bf16 %v10075_v28  ;;  %v1627_v58 = vld [vmem:[%s9955_s6 + $0x40] sm:$0x8] }
  0x33   : > { %v971_v47 = vunpack.c.h.bf16 %v10075_v28  ;;  %v1237_v49 = vsel %vm1209_vm2, %v1232_v13, %v1236_v30  ;;  %v10148_v10 = vsel %vm1209_vm2, %v1240_v6, %v1244_v17  ;;  %v1427_v44 = vunpack.c.l.bf16 %v10025_v46 }
  0x34   : > { %9080 = vperm.xlu1 %9053, %v9079_v32   ;;  %v1428_v51 = vunpack.c.h.bf16 %v10025_v46  ;;  %v9099_v53 = vpack.i.bf16 %v967_v40, %v966_v39  ;;  %v1429_v54 = vunpack.c.l.bf16 %v10043_v59  ;;  %v1430_v28 = vunpack.c.h.bf16 %v10043_v59  ;;  %v9502_v59 = vld [vmem:[%s14007_s1 + $0x8] sm:$0xff]  }
  0x35   : > { %9085 = vperm.xlu0 %9042, %v9084_v33   ;;  %v1253_v55 = vsel %vm1209_vm2, %v1248_v41, %v1252_v7  ;;  %v10157_v56 = vor.u32 %v1254_v27, %v1252_v7  ;;  %v10159_v57 = vrot.slane %v1258_v31, 1  ;;  %v9104_v14 = vpack.i.bf16 %v969_v11, %v968_v29  ;;  %v1637_v32 = vld [vmem:[%s9955_s6 + $0x68] sm:$0xff]   ;;  %v1639_v7 = vld [vmem:[%s9955_s6 + $0x70] sm:$0xff]  }
  0x36   : > { %v9109_v62 = vpack.i.bf16 %v971_v47, %v970_v45  ;;  %v1431_v46 = vunpack.c.l.bf16 %v10061_v16  ;;  %v1266_v63 = vshll.u32 %v10135_v21, 16  ;;  %v8113_v24 = vcombine.low %v1154_v48, %v1154_v48  ;;  %v9528_v48 = vld [vmem:[%s14007_s1 + $0x8] sm:$0xff]  }
  0x37   : > { %8816 = vmatmul.mubr.msk.bf16.gmra.mrb[12].mxu0 %vm401_vm0, %v388_v2  ;;  %v9114_v1 = vpack.i.bf16 %v1428_v51, %v1427_v44  ;;  %v1432_v2 = vunpack.c.h.bf16 %v10061_v16  ;;  %v1433_v4 = vunpack.c.l.bf16 %v10080_v34  ;;  %v1434_v5 = vunpack.c.h.bf16 %v10080_v34 }
  0x38   : > { %8843 = vmatprep.mubr.msk.bf16.mxu0 %vm401_vm0, %v1221_v26  ;;  %9090 = vperm.xlu1 %9053, %v9089_v38   ;;  %v9119_v8 = vpack.i.bf16 %v1430_v28, %v1429_v54  ;;  %v1435_v9 = vunpack.c.l.bf16 %v10083_v35  ;;  %v8125_v12 = vcombine.low %v1627_v58, %v1628_v52  ;;  %v1436_v30 = vunpack.c.h.bf16 %v10083_v35  ;;  %v10186_v35 = vld [vmem:[%s14007_s1] sm:$0xff]  }
  0x39   : > { %9095 = vperm.xlu0 %9042, %v9094_v43   ;;  %v1262_v17 = vshrl.u32 %v10106_v60, 16  ;;  %v1270_v16 = vshrl.u32 %v10135_v21, 16  ;;  %v10179_v34 = vrot.slane %v1266_v63, 1  ;;  %v10181_v18 = vshll.u32 %v8113_v24, 16 }
  0x3a   : > { %v1699_v19 = vshrl.u32 %v8125_v12, 16  ;;  %v1702_v20 = vshll.u32 %v8125_v12, 16  ;;  %v1710_v22 = vshll.u32 %v1629_v61, 16  ;;  %v1716_v60 = vshrl.u32 %v1631_v0, 16 }
  0x3b   : > { %v1719_v25 = vshll.u32 %v1631_v0, 16  ;;  %v9124_v26 = vpack.i.bf16 %v1432_v2, %v1431_v46  ;;  %v1725_v38 = vshrl.u32 %v1633_v15, 16  ;;  %v1728_v39 = vshll.u32 %v1633_v15, 16  ;;  %v1643_v46 = vld [vmem:[%s9955_s6 + $0x80] sm:$0xf]  ;;  %v1641_v0 = vld [vmem:[%s9955_s6 + $0x78] sm:$0xff]  }
  0x3c   : > { %9100 = vperm.xlu1 %9053, %v9099_v53   ;;  %v1701_v27 = vrot.slane %v1699_v19, 3  ;;  %v1704_v31 = vrot.slane %v1702_v20, 4  ;;  %v1712_v36 = vrot.slane %v1710_v22, 4  ;;  %v1718_v37 = vrot.slane %v1716_v60, 3  ;;  %v2523_v60 = vld [vmem:[%s9955_s6 + $0x4c] sm:$0xff]  }
  0x3d   : > { %9105 = vperm.xlu0 %9042, %v9104_v14   ;;  %v1721_v13 = vrot.slane %v1719_v25, 4  ;;  %v9129_v40 = vpack.i.bf16 %v1434_v5, %v1433_v4  ;;  %v1264_v41 = vor.u32 %v1262_v17, %v10159_v57  ;;  %v1730_v43 = vrot.slane %v1728_v39, 4  ;;  %v2126_v5 = vld [vmem:[%s9955_s6 + $0x44] sm:$0xff]   ;;  %v2525_v25 = vld [vmem:[%s9955_s6 + $0x54] sm:$0xff]  }
  0x3e   : > { %v1705_v6 = vor.u32 %v1704_v31, %v1701_v27  ;;  %v1734_v45 = vshrl.u32 %v1635_v23, 16  ;;  %v1737_v47 = vshll.u32 %v1635_v23, 16  ;;  %v9134_v44 = vpack.i.bf16 %v1436_v30, %v1435_v9  ;;  %v2130_v31 = vld [vmem:[%s9955_s6 + $0x54] sm:$0xff]  }
  0x3f   : > { %8844 = vmatmul.mubr.msk.bf16.vlgmr.msra.gmra.mrb[16].mxu0 %vm401_vm0, %v1229_v42  ;;  %v1722_v11 = vor.u32 %v1721_v13, %v1718_v37  ;;  %v1727_v42 = vrot.slane %v1725_v38, 3  ;;  %v1743_v53 = vshrl.u32 %v1637_v32, 16  ;;  %v1746_v54 = vshll.u32 %v1637_v32, 16  ;;  %v9521_v38 = vld [vmem:[%s14007_s1 + $0x8] sm:$0xff]  }
  0x40   : > { %8847 = vmatprep.mubr.msk.bf16.mxu0 %vm401_vm0, %v1237_v49  ;;  %8880 = vmatpush3.bf16.msra.mxu0 %v10057_v3  ;;  %v1707_v3 = vshrl.u32 %v1629_v61, 16  ;;  %v1736_v58 = vrot.slane %v1734_v45, 3  ;;  %v1739_v52 = vrot.slane %v1737_v47, 4  ;;  %v1752_v28 = vshrl.u32 %v1639_v7, 16 }
  0x41   : > { %8881 = vmatprep.subr.bf16.mxu0 %v9502_v59  ;;  %9110 = vperm.xlu1 %9053, %v9109_v62   ;;  %v1731_v51 = vor.u32 %v1730_v43, %v1727_v42  ;;  %v1261_v14 = vsel %vm1209_vm2, %v10157_v56, %v10159_v57  ;;  %v1269_v63 = vsel %vm1209_vm2, %v1264_v41, %v10179_v34  ;;  %v1745_v24 = vrot.slane %v1743_v53, 3  ;;  %v10216_v56 = vld [vmem:[%s14007_s1] sm:$0xff]   ;;  %v3010_v43 = vld [vmem:[%s9955_s6 + $0x88] sm:$0xff]  }
  0x42   : > { %v1709_v33 = vrot.slane %v1707_v3, 3  ;;  %9115 = vperm.xlu0 %9042, %v9114_v1   ;;  %v1740_v62 = vor.u32 %v1739_v52, %v1736_v58  ;;  %v1276_v57 = vrot.slane %v10181_v18, 1  ;;  %v1754_v2 = vrot.slane %v1752_v28, 3  ;;  %v2128_v3 = vld [vmem:[%s9955_s6 + $0x4c] sm:$0xff]   ;;  %v3008_v41 = vld [vmem:[%s9955_s6 + $0x80] sm:$0x8] }
  0x43   : > { %v1732_v61 = vsel %vm308_vm1, %v1722_v11, %v1731_v51  ;;  %v8133_v9 = vcombine.low %v1643_v46, %v1643_v46  ;;  %v1761_v21 = vshrl.u32 %v1641_v0, 16  ;;  %v1764_v15 = vshll.u32 %v1641_v0, 16  ;;  %v2134_v42 = vld [vmem:[%s9955_s6 + $0x64] sm:$0xff]   ;;  %v10263_v53 = vld [vmem:[%s9955_s6 + $0x6c] sm:$0xff]   ;;  %v2138_v46 = vld [vmem:[%s9955_s6 + $0x74] sm:$0xff]  }
  0x44   : > { %8882 = vmatpush3.bf16.msra.mxu0 %v9502_v59  ;;  %v1713_v29 = vor.u32 %v1712_v36, %v1709_v33  ;;  %v1748_v59 = vrot.slane %v1746_v54, 4  ;;  %v2600_v36 = vshll.u32 %v2523_v60, 16  ;;  %v2608_v45 = vshll.u32 %v2525_v25, 16 }
  0x45   : > { %8919 = vmatprep.subr.bf16.mxu0 %v10186_v35  ;;  %9120 = vperm.xlu1 %9053, %v9119_v8   ;;  %v1741_v8 = vsel %vm308_vm1, %v1731_v51, %v1740_v62  ;;  %v1766_v18 = vrot.slane %v1764_v15, 4  ;;  %v1770_v19 = vshrl.u32 %v8133_v9, 16  ;;  %v1773_v20 = vshll.u32 %v8133_v9, 16 }
  0x46   : > { %v1714_v49 = vsel %vm308_vm1, %v1705_v6, %v1713_v29  ;;  %9125 = vperm.xlu0 %9042, %v9124_v26   ;;  %v1749_v1 = vor.u32 %v1748_v59, %v1745_v24  ;;  %v2527_v6 = vld [vmem:[%s9955_s6 + $0x5c] sm:$0xff]   ;;  %v2602_v39 = vrot.slane %v2600_v36, 1  ;;  %v2612_v51 = vshrl.u32 %v2525_v25, 16 }
  0x47   : > { %8848 = vmatmul.mubr.msk.bf16.gmra.mrb[20].mxu0 %vm401_vm0, %v10148_v10  ;;  %v1723_v10 = vsel %vm308_vm1, %v1713_v29, %v1722_v11  ;;  %8863 = vmatprep.mubr.msk.bf16.mxu1 %vm401_vm0, %v1714_v49  ;;  %v1772_v26 = vrot.slane %v1770_v19, 3  ;;  %v1775_v27 = vrot.slane %v1773_v20, 4  ;;  %v3009_v29 = vld [vmem:[%s9955_s6 + $0x84] sm:$0xf]  ;;  %v2616_v58 = vshll.u32 %v2527_v6, 16  ;;  %v2140_v20 = vld [vmem:[%s9955_s6 + $0x7c] sm:$0xff]  }
  0x48   : > { %8851 = vmatprep.mubr.msk.bf16.mxu0 %vm401_vm0, %v1253_v55  ;;  %8864 = vmatmul.mubr.msk.bf16.vlgmr.msra.gmra.mrb[16].mxu1 %vm401_vm0, %v1723_v10  ;;  %v1755_v55 = vshll.u32 %v1639_v7, 16  ;;  %v1750_v12 = vsel %vm308_vm1, %v1740_v62, %v1749_v1  ;;  %v2529_v49 = vld [vmem:[%s9955_s6 + $0x64] sm:$0xff]   ;;  %v8184_v52 = vcombine.low %v3008_v41, %v3009_v29  ;;  %v3012_v62 = vld [vmem:[%s9955_s6 + $0x90] sm:$0xff]   ;;  %v3088_v59 = vshrl.u32 %v3010_v43, 16 }
  0x49   : > { %9130 = vperm.xlu1 %9053, %v9129_v40   ;;  %8900 = vmatpush3.bf16.msra.mxu1 %v10099_v50  ;;  %v1272_v50 = vor.u32 %v1270_v16, %v10179_v34  ;;  %v2521_v16 = vld [vmem:[%s9955_s6 + $0x44] sm:$0xff]   ;;  %v1763_v34 = vrot.slane %v1761_v21, 3  ;;  %v1776_v37 = vor.u32 %v1775_v27, %v1772_v26  ;;  %v2132_v40 = vld [vmem:[%s9955_s6 + $0x5c] sm:$0xff]   ;;  %v2624_v24 = vshll.u32 %v2529_v49, 16 }
  0x4a   : > { %8867 = vmatprep.mubr.msk.bf16.mxu1 %vm401_vm0, %v1732_v61  ;;  %8901 = vmatprep.subr.bf16.mxu1 %v9528_v48  ;;  %v1757_v4 = vrot.slane %v1755_v55, 4  ;;  %v2593_v7 = vshrl.u32 %v2521_v16, 16  ;;  %v2595_v33 = vshll.u32 %v2521_v16, 16  ;;  %v10259_v10 = vld [vmem:[%s14007_s1] sm:$0xff]   ;;  %v2618_v55 = vrot.slane %v2616_v58, 1  ;;  %v3020_v58 = vld [vmem:[%s9955_s6 + $0xb0] sm:$0xff]  }
  0x4b   : > { %9135 = vperm.xlu0 %9042, %v9134_v44   ;;  %v1277_v30 = vsel %vm1209_vm2, %v1272_v50, %v1276_v57  ;;  %v1767_v22 = vor.u32 %v1766_v18, %v1763_v34  ;;  %v3080_v61 = vshrl.u32 %v8184_v52, 16  ;;  %v3091_v0 = vshll.u32 %v3010_v43, 16  ;;  %v3014_v57 = vld [vmem:[%s9955_s6 + $0x98] sm:$0xff]   ;;  %v3016_v25 = vld [vmem:[%s9955_s6 + $0xa0] sm:$0xff]  }
  0x4c   : > { %v1758_v17 = vor.u32 %v1757_v4, %v1754_v2  ;;  %v2597_v13 = vrot.slane %v2595_v33, 1  ;;  %v2533_v2 = vld [vmem:[%s9955_s6 + $0x74] sm:$0xff]   ;;  %v9550_v4 = vld [vmem:[%s14007_s1 + $0x8] sm:$0xff]   ;;  %v2632_v9 = vshll.u32 %v10263_v53, 16  ;;  %v10282_v21 = vld [vmem:[%s9955_s6 + $0x7c] sm:$0xff]   ;;  %v3106_v27 = vshrl.u32 %v3014_v57, 16 }
  0x4d   : > { %8902 = vmatpush3.bf16.msra.mxu1 %v9528_v48  ;;  %v1777_v47 = vsel %vm308_vm1, %v1767_v22, %v1776_v37  ;;  %v2604_v48 = vshrl.u32 %v2523_v60, 16  ;;  %v3093_v34 = vrot.slane %v3091_v0, 4  ;;  %v2537_v26 = vld [vmem:[%s9955_s6 + $0x84] sm:$0x1]  ;;  %v2644_v37 = vshrl.u32 %v2533_v2, 16 }
  0x4e   : > { %8939 = vmatprep.subr.bf16.mxu1 %v10216_v56  ;;  %v1759_v23 = vsel %vm308_vm1, %v1749_v1, %v1758_v17  ;;  %v1768_v32 = vsel %vm308_vm1, %v1758_v17, %v1767_v22  ;;  %v2598_v11 = vor.u32 %v2597_v13, %v2593_v7  ;;  %v2620_v1 = vshrl.u32 %v2527_v6, 16 }
  0x4f   : > { %8852 = vmatmul.mubr.msk.bf16.gmra.mrb[24].mxu0 %vm401_vm0, %v1261_v14  ;;  %v2606_v54 = vor.u32 %v2604_v48, %v2602_v39  ;;  %v2136_v14 = vld [vmem:[%s9955_s6 + $0x6c] sm:$0xff]   ;;  %v3090_v17 = vrot.slane %v3088_v59, 3  ;;  %v2634_v19 = vrot.slane %v2632_v9, 1  ;;  %v3100_v22 = vshll.u32 %v3012_v62, 16 }
  0x50   : > { %8855 = vmatprep.mubr.msk.bf16.mxu0 %vm401_vm0, %v1269_v63  ;;  %8868 = vmatmul.mubr.msk.bf16.gmra.mrb[20].mxu1 %vm401_vm0, %v1741_v8  ;;  %v2603_v44 = vsel %vm1209_vm2, %v2598_v11, %v2602_v39  ;;  %v3083_v63 = vshll.u32 %v8184_v52, 16  ;;  %v2628_v8 = vshrl.u32 %v2529_v49, 16  ;;  %v2622_v16 = vor.u32 %v2620_v1, %v2618_v55  ;;  %v10324_v9 = vld [vmem:[%s9955_s6 + $0x8c] sm:$0xff]  }
  0x51   : > { %8871 = vmatprep.mubr.msk.bf16.mxu1 %vm401_vm0, %v1750_v12  ;;  %v3082_v12 = vrot.slane %v3080_v61, 3  ;;  %v2636_v7 = vshrl.u32 %v10263_v53, 16  ;;  %v3094_v33 = vor.u32 %v3093_v34, %v3090_v17  ;;  %v2648_v13 = vshll.u32 %v10282_v21, 16 }
  0x52   : > { %v3085_v15 = vrot.slane %v3083_v63, 4  ;;  %v8172_v29 = vcombine.low %v2537_v26, %v2537_v26  ;;  %v3115_v48 = vshrl.u32 %v3016_v25, 16  ;;  %v3118_v49 = vshll.u32 %v3016_v25, 16 }
  0x53   : > { %v2638_v41 = vor.u32 %v2636_v7, %v2634_v19  ;;  %v2652_v53 = vshrl.u32 %v10282_v21, 16  ;;  %v9895_v61 = vmov 0.0   ;;  %v3136_v17 = vshll.u32 %v3020_v58, 16  ;;  %v3511_v7 = vld [vmem:[%s9955_s6 + $0x94] sm:$0xff]  }
  0x54   : > { %v3086_v60 = vor.u32 %v3085_v15, %v3082_v12  ;;  %v3120_v63 = vrot.slane %v3118_v49, 4  ;;  %v10327_v12 = vld [vmem:[%s9955_s6 + $0x94] sm:$0xff]  }
  0x56   : > { %v3095_v11 = vsel %vm308_vm1, %v3086_v60, %v3094_v33 }
  0x57   : > { %8856 = vmatmul.mubr.msk.bf16.gmra.mrb[28].mxu0 %vm401_vm0, %v1277_v30  ;;  %v2626_v30 = vrot.slane %v2624_v24, 1 }
  0x58   : > { %8883 = vmatprep.mubr.msk.bf16.mxu0 %vm401_vm0, %v2126_v5  ;;  %8872 = vmatmul.mubr.msk.bf16.gmra.mrb[24].mxu1 %vm401_vm0, %v1759_v23  ;;  %v2640_v23 = vshll.u32 %v2533_v2, 16  ;;  %v9543_v2 = vld [vmem:[%s14007_s1 + $0x8] sm:$0xff]  }
  0x59   : > { %8875 = vmatprep.mubr.msk.bf16.mxu1 %vm401_vm0, %v1768_v32  ;;  %v2630_v18 = vor.u32 %v2628_v8, %v2626_v30  ;;  %v3018_v32 = vld [vmem:[%s9955_s6 + $0xa8] sm:$0xff]   ;;  %v9896_v8 = vmov 0  }
  0x5a   : > { %v2642_v39 = vrot.slane %v2640_v23, 1  ;;  %226 = vst [vmem:[#allocation2] sm:$0xff] %v9896_v8  ;;  %229 = vst [vmem:[#allocation2 + $0x10] sm:$0xf] %v9896_v8  ;;  %v3138_v23 = vrot.slane %v3136_v17, 4 }
  0x5b   : > { %v2635_v36 = vsel %vm1209_vm2, %v2630_v18, %v2634_v19  ;;  %232 = vst [vmem:[#allocation2 + $0x1c0] sm:$0xf0] %v9896_v8  ;;  %228 = vst.msk [vmem:[#allocation2 + $0x8] sm:$0xff] %vm227_vm3, %v9896_v8 }
  0x5c   : > { %v2646_v43 = vor.u32 %v2644_v37, %v2642_v39  ;;  %v2643_v52 = vsel %vm1209_vm2, %v2638_v41, %v2642_v39  ;;  %236 = vst.msk [vmem:[#allocation2 + $0x1d8] sm:$0xff] %vm227_vm3, %v9896_v8  ;;  %v10351_v37 = vld [vmem:[%s9955_s6 + $0xa4] sm:$0xff]   ;;  %v3985_v39 = vshrl.u32 %v10324_v9, 16 }
  0x5d   : > { %234 = vst.msk [vmem:[#allocation2 + $0x1c8] sm:$0xf0] %vm233_vm4, %v9896_v8 }
  0x5e   : > { %231 = vst.msk [vmem:[#allocation2 + $0x18] sm:$0xf] %vm230_vm5, %v9896_v8 }
  0x5f   : > { %8884 = vmatmul.mubr.msk.bf16.vlgmr.msra.gmra.mrb[32].mxu0 %vm401_vm0, %v2128_v3  ;;  %v3097_v3 = vshrl.u32 %v3012_v62, 16 }
  0x60   : > { %8887 = vmatprep.mubr.msk.bf16.mxu0 %vm401_vm0, %v2130_v31  ;;  %8920 = vmatpush3.bf16.msra.mxu0 %v10186_v35  ;;  %v2610_v35 = vrot.slane %v2608_v45, 1  ;;  %v3109_v31 = vshll.u32 %v3014_v57, 16  ;;  %v2650_v45 = vrot.slane %v2648_v13, 1  ;;  %v10354_v13 = vld [vmem:[%s9955_s6 + $0xac] sm:$0xff]  }
  0x61   : > { %8921 = vmatprep.subr.bf16.mxu0 %v9521_v38  ;;  %8876 = vmatmul.mubr.msk.bf16.gmra.mrb[28].mxu1 %vm401_vm0, %v1777_v47  ;;  %v3099_v6 = vrot.slane %v3097_v3, 3  ;;  %v10334_v3 = vld [vmem:[%s9955_s6 + $0x9c] sm:$0xff]  }
  0x62   : > { %8903 = vmatprep.mubr.msk.bf16.mxu1 %vm401_vm0, %v2603_v44  ;;  %v2614_v28 = vor.u32 %v2612_v51, %v2610_v35  ;;  %v2611_v50 = vsel %vm1209_vm2, %v2606_v54, %v2610_v35  ;;  %v3124_v44 = vshrl.u32 %v3018_v32, 16  ;;  %v3127_v51 = vshll.u32 %v3018_v32, 16 }
  0x63   : > { %v2656_v35 = vshll.u32 %v8172_v29, 16  ;;  %v2654_v0 = vor.u32 %v2652_v53, %v2650_v45  ;;  %v4001_v53 = vshrl.u32 %v10334_v3, 16 }
  0x64   : > { %8922 = vmatpush3.bf16.msra.mxu0 %v9521_v38  ;;  %v2619_v5 = vsel %vm1209_vm2, %v2614_v28, %v2618_v55  ;;  %v3102_v38 = vrot.slane %v3100_v22, 4  ;;  %v3022_v28 = vld [vmem:[%s9955_s6 + $0xb8] sm:$0xff]   ;;  %v3024_v55 = vld [vmem:[%s9955_s6 + $0xc0] sm:$0xf]  ;;  %v3126_v24 = vrot.slane %v3124_v44, 3  ;;  %v3129_v59 = vrot.slane %v3127_v51, 4 }
  0x65   : > { %8959 = vmatprep.subr.bf16.mxu0 %v10259_v10  ;;  %v2658_v57 = vrot.slane %v2656_v35, 1  ;;  %v8192_v1 = vcombine.low %v3024_v55, %v3024_v55  ;;  %v3145_v34 = vshll.u32 %v3022_v28, 16  ;;  %v3993_v44 = vshrl.u32 %v10327_v12, 16  ;;  %v9572_v51 = vld [vmem:[%s14007_s1 + $0x8] sm:$0xff]  }
  0x66   : > { %v3103_v47 = vor.u32 %v3102_v38, %v3099_v6  ;;  %v3130_v15 = vor.u32 %v3129_v59, %v3126_v24  ;;  %v4005_v35 = vshll.u32 %v10351_v37, 16  ;;  %v3517_v59 = vld [vmem:[%s9955_s6 + $0xac] sm:$0xff]  }
  0x67   : > { %8888 = vmatmul.mubr.msk.bf16.gmra.mrb[36].mxu0 %vm401_vm0, %v2132_v40  ;;  %v3108_v40 = vrot.slane %v3106_v27, 3  ;;  %v2659_v18 = vsel %vm1209_vm2, %v2654_v0, %v2658_v57  ;;  %v3151_v19 = vshrl.u32 %v8192_v1, 16  ;;  %v3147_v26 = vrot.slane %v3145_v34, 4  ;;  %v3509_v27 = vld [vmem:[%s9955_s6 + $0x8c] sm:$0xff]  }
  0x68   : > { %8891 = vmatprep.mubr.msk.bf16.mxu0 %vm401_vm0, %v2134_v42  ;;  %v3111_v42 = vrot.slane %v3109_v31, 4  ;;  %v3104_v62 = vsel %vm308_vm1, %v3094_v33, %v3103_v47  ;;  %v3981_v33 = vshll.u32 %v10324_v9, 16  ;;  %v4391_v0 = vld [vmem:[%s9955_s6 + $0xc8] sm:$0xff]  }
  0x69   : > { %8904 = vmatmul.mubr.msk.bf16.vlgmr.msra.gmra.mrb[32].mxu1 %vm401_vm0, %v2611_v50  ;;  %v3153_v31 = vrot.slane %v3151_v19, 3 }
  0x6a   : > { %8907 = vmatprep.mubr.msk.bf16.mxu1 %vm401_vm0, %v2619_v5  ;;  %8940 = vmatpush3.bf16.msra.mxu1 %v10216_v56  ;;  %v2627_v56 = vsel %vm1209_vm2, %v2622_v16, %v2626_v30  ;;  %v3112_v54 = vor.u32 %v3111_v42, %v3108_v40  ;;  %v3507_v5 = vld [vmem:[%s9955_s6 + $0x84] sm:$0xff]   ;;  %v3133_v30 = vshrl.u32 %v3020_v58, 16  ;;  %v3142_v16 = vshrl.u32 %v3022_v28, 16  ;;  %v10367_v42 = vld [vmem:[%s9955_s6 + $0xb4] sm:$0xff]  }
  0x6b   : > { %8941 = vmatprep.subr.bf16.mxu1 %v9550_v4  ;;  %v9570_v40 = vld [vmem:[%s14007_s1] sm:$0xff]   ;;  %v4021_v24 = vshll.u32 %v10367_v42, 16 }
  0x6c   : > { %v3113_v50 = vsel %vm308_vm1, %v3103_v47, %v3112_v54  ;;  %v3135_v60 = vrot.slane %v3133_v30, 3  ;;  %v3513_v47 = vld [vmem:[%s9955_s6 + $0x9c] sm:$0xff]  }
  0x6d   : > { %v4023_v17 = vrot.slane %v4021_v24, 1  ;;  %v4812_v24 = vld [vmem:[%s9955_s6 + $0xd4] sm:$0xff]  }
  0x6e   : > { %8942 = vmatpush3.bf16.msra.mxu1 %v9550_v4  ;;  %v10317_v4 = vld [vmem:[%s9955_s6 + $0x84] sm:$0xff]   ;;  %v3139_v38 = vor.u32 %v3138_v23, %v3135_v60  ;;  %v3521_v60 = vld [vmem:[%s9955_s6 + $0xbc] sm:$0xff]   ;;  %v4434_v23 = vshrl.u32 %v4391_v0, 16 }
  0x6f   : > { %8892 = vmatmul.mubr.msk.bf16.gmra.mrb[40].mxu0 %vm401_vm0, %v2136_v14  ;;  %v2651_v14 = vsel %vm1209_vm2, %v2646_v43, %v2650_v45  ;;  %8979 = vmatprep.subr.bf16.mxu1 %v9895_v61  ;;  %v3974_v6 = vshrl.u32 %v10317_v4, 16  ;;  %v3983_v43 = vrot.slane %v3981_v33, 1 }
  0x70   : > { %8895 = vmatprep.mubr.msk.bf16.mxu0 %vm401_vm0, %v2138_v46  ;;  %v3117_v46 = vrot.slane %v3115_v48, 3  ;;  %v3515_v48 = vld [vmem:[%s9955_s6 + $0xa4] sm:$0xff]   ;;  %v3140_v49 = vsel %vm308_vm1, %v3130_v15, %v3139_v38  ;;  %v4436_v33 = vrot.slane %v4434_v23, 3  ;;  %v9573_v23 = vld [vmem:[%s14009_s3 + $0x10] sm:$0xff]  }
  0x71   : > { %8908 = vmatmul.mubr.msk.bf16.gmra.mrb[36].mxu1 %vm401_vm0, %v2627_v56  ;;  %v3976_v56 = vshll.u32 %v10317_v4, 16  ;;  %v3519_v4 = vld [vmem:[%s9955_s6 + $0xb4] sm:$0xff]  }
  0x72   : > { %8911 = vmatprep.mubr.msk.bf16.mxu1 %vm401_vm0, %v2635_v36  ;;  %v3121_v21 = vor.u32 %v3120_v63, %v3117_v46  ;;  %v3989_v36 = vshll.u32 %v10327_v12, 16  ;;  %v4389_v46 = vld [vmem:[%s9955_s6 + $0xc0] sm:$0x8]  ;;  %v4390_v63 = vld [vmem:[%s9955_s6 + $0xc4] sm:$0xf]  ;;  %v4017_v12 = vshrl.u32 %v10354_v13, 16 }
  0x73   : > { %v3978_v29 = vrot.slane %v3976_v56, 1 }
  0x74   : > { %v3122_v22 = vsel %vm308_vm1, %v3112_v54, %v3121_v21  ;;  %v3131_v25 = vsel %vm308_vm1, %v3121_v21, %v3130_v15  ;;  %v3991_v45 = vrot.slane %v3989_v36, 1  ;;  %v4013_v54 = vshll.u32 %v10354_v13, 16 }
  0x75   : > { %v3979_v55 = vor.u32 %v3978_v29, %v3974_v6  ;;  %v3987_v15 = vor.u32 %v3985_v39, %v3983_v43  ;;  %v4395_v39 = vld [vmem:[%s9955_s6 + $0xd8] sm:$0xf] }
  0x76   : > { %v4015_v9 = vrot.slane %v4013_v54, 1  ;;  %v3995_v30 = vor.u32 %v3993_v44, %v3991_v45 }
  0x77   : > { %8896 = vmatmul.mubr.msk.bf16.gmra.mrb[44].mxu0 %vm401_vm0, %v2140_v20  ;;  %v3154_v20 = vshll.u32 %v8192_v1, 16  ;;  %v4007_v1 = vrot.slane %v4005_v35, 1 }
  0x78   : > { %8923 = vmatprep.mubr.msk.bf16.mxu0 %vm401_vm0, %v3095_v11  ;;  %v3997_v11 = vshll.u32 %v10334_v3, 16 }
  0x79   : > { %8912 = vmatmul.mubr.msk.bf16.gmra.mrb[40].mxu1 %vm401_vm0, %v2643_v52  ;;  %v3156_v32 = vrot.slane %v3154_v20, 4 }
  0x7a   : > { %8915 = vmatprep.mubr.msk.bf16.mxu1 %vm401_vm0, %v2651_v14  ;;  %v3999_v52 = vrot.slane %v3997_v11, 1  ;;  %v10386_v14 = vld [vmem:[%s9955_s6 + $0xbc] sm:$0xff]  }
  0x7b   : > { %v3157_v28 = vor.u32 %v3156_v32, %v3153_v31  ;;  %v4029_v34 = vshll.u32 %v10386_v14, 16 }
  0x7d   : > { %v4031_v31 = vrot.slane %v4029_v34, 1 }
  0x7f   : > { %8924 = vmatmul.mubr.msk.bf16.vlgmr.msra.gmra.mrb[48].mxu0 %vm401_vm0, %v3104_v62  ;;  %v3918_v62 = vld [vmem:[%s9955_s6 + $0xc4] sm:$0x1] }
  0x80   : > { %8927 = vmatprep.mubr.msk.bf16.mxu0 %vm401_vm0, %v3113_v50  ;;  %8960 = vmatpush3.bf16.msra.mxu0 %v10259_v10  ;;  %v3144_v10 = vrot.slane %v3142_v16, 3  ;;  %v3984_v50 = vsel %vm1209_vm2, %v3979_v55, %v3983_v43  ;;  %v8231_v21 = vcombine.low %v3918_v62, %v3918_v62  ;;  %v4025_v16 = vshrl.u32 %v10367_v42, 16 }
  0x81   : > { %8961 = vmatprep.subr.bf16.mxu0 %v9543_v2  ;;  %8916 = vmatmul.mubr.msk.bf16.gmra.mrb[44].mxu1 %vm401_vm0, %v2659_v18  ;;  %v4033_v18 = vshrl.u32 %v10386_v14, 16 }
  0x82   : > { %8943 = vmatprep.mubr.msk.bf16.mxu1 %vm401_vm0, %v3507_v5  ;;  %v3148_v41 = vor.u32 %v3147_v26, %v3144_v10  ;;  %v8243_v5 = vcombine.low %v4389_v46, %v4390_v63  ;;  %v10407_v3 = vshll.u32 %v8231_v21, 16  ;;  %v4437_v10 = vshll.u32 %v4391_v0, 16 }
  0x83   : > { %v3992_v26 = vsel %vm1209_vm2, %v3987_v15, %v3991_v45 }
  0x84   : > { %8962 = vmatpush3.bf16.msra.mxu0 %v9543_v2  ;;  %v3149_v58 = vsel %vm308_vm1, %v3139_v38, %v3148_v41  ;;  %v3158_v57 = vsel %vm308_vm1, %v3148_v41, %v3157_v28  ;;  %v4009_v2 = vshrl.u32 %v10351_v37, 16  ;;  %v4426_v19 = vshrl.u32 %v8243_v5, 16  ;;  %v4808_v41 = vld [vmem:[%s9955_s6 + $0xc4] sm:$0xff]  }
  0x85   : > { %9011 = vmatprep.subr.bf16.mxu0 %v9895_v61  ;;  %v4429_v20 = vshll.u32 %v8243_v5, 16  ;;  %v4439_v36 = vrot.slane %v4437_v10, 4  ;;  %v4003_v37 = vor.u32 %v4001_v53, %v3999_v52  ;;  %v4039_v43 = vrot.slane %v10407_v3, 1  ;;  %v9585_v28 = vld [vmem:[%s14007_s1 + $0x8] sm:$0xff]  }
  0x86   : > { %v4428_v32 = vrot.slane %v4426_v19, 3  ;;  %v4011_v13 = vor.u32 %v4009_v2, %v4007_v1  ;;  %v4845_v53 = vshrl.u32 %v4808_v41, 16  ;;  %v4847_v63 = vshll.u32 %v4808_v41, 16  ;;  %v4625_v10 = vld [vmem:[%s9955_s6 + $0xcc] sm:$0xff]  }
  0x87   : > { %8928 = vmatmul.mubr.msk.bf16.gmra.mrb[52].mxu0 %vm401_vm0, %v3122_v22  ;;  %v9561_v22 = vld [vmem:[%s14007_s1] sm:$0xff]   ;;  %v4431_v56 = vrot.slane %v4429_v20, 4  ;;  %v4440_v11 = vor.u32 %v4439_v36, %v4436_v33  ;;  %v4864_v19 = vshrl.u32 %v4812_v24, 16  ;;  %v4627_v36 = vld [vmem:[%s9955_s6 + $0xd4] sm:$0xff]   ;;  %v9599_v41 = vld [vmem:[%s14009_s3 + $0x88] sm:$0xff]  }
  0x88   : > { %8931 = vmatprep.mubr.msk.bf16.mxu0 %vm401_vm0, %v3131_v25  ;;  %v4393_v25 = vld [vmem:[%s9955_s6 + $0xd0] sm:$0xff]   ;;  %v4016_v42 = vsel %vm1209_vm2, %v4011_v13, %v4015_v9  ;;  %v9577_v33 = vld [vmem:[%s14009_s3 + $0x20] sm:$0xff]  }
  0x89   : > { %8944 = vmatmul.mubr.msk.bf16.vlgmr.msra.gmra.mrb[48].mxu1 %vm401_vm0, %v3509_v27  ;;  %v4000_v27 = vsel %vm1209_vm2, %v3995_v30, %v3999_v52  ;;  %v4443_v6 = vshrl.u32 %v4393_v25, 16  ;;  %v4446_v38 = vshll.u32 %v4393_v25, 16  ;;  %v4432_v29 = vor.u32 %v4431_v56, %v4428_v32  ;;  %v4810_v52 = vld [vmem:[%s9955_s6 + $0xcc] sm:$0xff]  }
  0x8a   : > { %8947 = vmatprep.mubr.msk.bf16.mxu1 %vm401_vm0, %v3511_v7  ;;  %8980 = vmatpush3.bf16.msra.mxu1 %v9570_v40  ;;  %v9564_v7 = vld [vmem:[%s14007_s1 + $0x8] sm:$0xff]   ;;  %v4008_v40 = vsel %vm1209_vm2, %v4003_v37, %v4007_v1  ;;  %v4814_v1 = vld [vmem:[%s9955_s6 + $0xdc] sm:$0x1]  ;;  %v4852_v5 = vshll.u32 %v4810_v52, 16 }
  0x8b   : > { %8981 = vmatprep.subr.bf16.mxu1 %v9895_v61  ;;  %v4445_v45 = vrot.slane %v4443_v6, 3  ;;  %v4448_v44 = vrot.slane %v4446_v38, 4  ;;  %v5036_v37 = vld [vmem:[#allocation2 + $0x8] sm:$0xff]  ;;  %v9597_v6 = vld [vmem:[%s14009_s3 + $0x78] sm:$0xff]  }
  0x8c   : > { %v4854_v15 = vrot.slane %v4852_v5, 1  ;;  %v9579_v38 = vld [vmem:[%s14009_s3 + $0x28] sm:$0xff]  }
  0x8d   : > { %v4449_v62 = vor.u32 %v4448_v44, %v4445_v45  ;;  %v9803_v45 = vld [vmem:[%s9955_s6 + $0x2c] sm:$0xff]   ;;  %v9586_v44 = vld [vmem:[%s14009_s3 + $0x40] sm:$0xff]  }
  0x8e   : > { %8982 = vmatpush3.bf16.msra.mxu1 %v9572_v51  ;;  %v9582_v51 = vld [vmem:[%s14007_s1] sm:$0xff]  }
  0x8f   : > { %8932 = vmatmul.mubr.msk.bf16.gmra.mrb[56].mxu0 %vm401_vm0, %v3140_v49  ;;  %8995 = vmatprep.subr.bf16.mxu1 %v9895_v61  ;;  %v4441_v49 = vsel %vm308_vm1, %v4432_v29, %v4440_v11  ;;  %v4450_v0 = vsel %vm308_vm1, %v4440_v11, %v4449_v62  ;;  %v9583_v11 = vld [vmem:[%s14009_s3 + $0x38] sm:$0xff]  }
  0x90   : > { %8935 = vmatprep.mubr.msk.bf16.mxu0 %vm401_vm0, %v3149_v58  ;;  %v4027_v58 = vor.u32 %v4025_v16, %v4023_v17  ;;  %v4856_v16 = vshrl.u32 %v4810_v52, 16 }
  0x91   : > { %8948 = vmatmul.mubr.msk.bf16.gmra.mrb[52].mxu1 %vm401_vm0, %v3513_v47  ;;  %v8246_v47 = vcombine.low %v4395_v39, %v4395_v39 }
  0x92   : > { %8951 = vmatprep.mubr.msk.bf16.mxu1 %vm401_vm0, %v3515_v48  ;;  %v4019_v48 = vor.u32 %v4017_v12, %v4015_v9  ;;  %v4032_v46 = vsel %vm1209_vm2, %v4027_v58, %v4031_v31  ;;  %v4860_v9 = vshll.u32 %v4812_v24, 16  ;;  %v8265_v12 = vcombine.low %v4814_v1, %v4814_v1  ;;  %v9807_v24 = vld [vmem:[%s9955_s6 + $0x34] sm:$0xff]  }
  0x93   : > { %v4452_v35 = vshrl.u32 %v8246_v47, 16  ;;  %v4455_v54 = vshll.u32 %v8246_v47, 16  ;;  %v4858_v25 = vor.u32 %v4856_v16, %v4854_v15  ;;  %v1437_v47 = vunpack.c.l.bf16 %v9803_v45 }
  0x94   : > { %v4024_v55 = vsel %vm1209_vm2, %v4019_v48, %v4023_v17  ;;  %v9567_v17 = vld [vmem:[%s14009_s3] sm:$0xff]   ;;  %v4862_v34 = vrot.slane %v4860_v9, 1  ;;  %v4868_v20 = vshll.u32 %v8265_v12, 16 }
  0x95   : > { %v9804_v48 = vld [vmem:[%s9955_s6 + $0x44] sm:$0xff]  }
  0x96   : > { %v4866_v32 = vor.u32 %v4864_v19, %v4862_v34  ;;  %v4870_v56 = vrot.slane %v4868_v20, 1 }
  0x97   : > { %8936 = vmatmul.mubr.msk.bf16.gmra.mrb[60].mxu0 %vm401_vm0, %v3158_v57  ;;  %v4454_v57 = vrot.slane %v4452_v35, 3  ;;  %v9805_v35 = vld [vmem:[%s9955_s6 + $0x4c] sm:$0xff]  }
  0x98   : > { %8963 = vmatprep.mubr.msk.bf16.mxu0 %vm401_vm0, %v3984_v50  ;;  %v4457_v50 = vrot.slane %v4455_v54, 4  ;;  %v4871_v13 = vsel %vm1209_vm2, %v4866_v32, %v4870_v56  ;;  %v2344_v54 = vunpack.c.l.bf16 %v9805_v35  ;;  %v10615_v32 = vld [vmem:[#allocation2] sm:$0xff] }
  0x99   : > { %8952 = vmatmul.mubr.msk.bf16.gmra.mrb[56].mxu1 %vm401_vm0, %v3517_v59  ;;  %v4035_v59 = vor.u32 %v4033_v18, %v4031_v31  ;;  %v4623_v18 = vld [vmem:[%s9955_s6 + $0xc4] sm:$0xff]   ;;  %v9576_v31 = vld [vmem:[%s14009_s3 + $0x18] sm:$0xff]  }
  0x9a   : > { %8955 = vmatprep.mubr.msk.bf16.mxu1 %vm401_vm0, %v3519_v4  ;;  %v4849_v4 = vrot.slane %v4847_v63, 1  ;;  %v4458_v14 = vor.u32 %v4457_v50, %v4454_v57  ;;  %v1438_v63 = vunpack.c.h.bf16 %v9803_v45  ;;  %v9808_v57 = vld [vmem:[%s9955_s6 + $0x54] sm:$0xff]   ;;  %v10637_v45 = vld [vmem:[%s9955_s6 + $0x40] sm:$0xf] }
  0x9b   : > { %v4040_v2 = vsel %vm1209_vm2, %v4035_v59, %v4039_v43  ;;  %v9600_v43 = vld [vmem:[%s14009_s3 + $0x90] sm:$0xff]   ;;  %v1439_v59 = vunpack.c.l.bf16 %v9807_v24  ;;  %v2346_v50 = vunpack.c.l.bf16 %v9808_v57  ;;  %v2347_v1 = vunpack.c.h.bf16 %v9808_v57 }
  0x9c   : > { %v4850_v21 = vor.u32 %v4849_v4, %v4845_v53  ;;  %v4459_v30 = vsel %vm308_vm1, %v4449_v62, %v4458_v14  ;;  %v2343_v53 = vunpack.c.h.bf16 %v9804_v48  ;;  %v10579_v4 = vld [vmem:[%s9955_s6 + $0x38] sm:$0xff]   ;;  %v9602_v14 = vld [vmem:[%s14009_s3 + $0xa0] sm:$0xff]  }
  0x9d   : > { %v553_v5 = vunpack.c.l.bf16 %v10579_v4 }
  0x9e   : > { %v4855_v3 = vsel %vm1209_vm2, %v4850_v21, %v4854_v15  ;;  %v1440_v21 = vunpack.c.h.bf16 %v9807_v24  ;;  %v10589_v15 = vld [vmem:[%s9955_s6 + $0x3c] sm:$0xff]   ;;  %v10599_v20 = vpack.i.bf16 %v2344_v54, %v2343_v53  ;;  %v10648_v53 = vld [vmem:[%s9955_s6 + $0x44] sm:$0x1] }
  0x9f   : > { %8964 = vmatmul.mubr.msk.bf16.vlgmr.msra.gmra.mrb[64].mxu0 %vm401_vm0, %v3992_v26  ;;  %v9595_v26 = vld [vmem:[%s14009_s3 + $0x68] sm:$0xff]  }
  0xa0   : > { %8967 = vmatprep.mubr.msk.bf16.mxu0 %vm401_vm0, %v4000_v27  ;;  %9012 = vmatpush3.bf16.msra.mxu0 %v9561_v22  ;;  %v9571_v22 = vld [vmem:[%s14009_s3 + $0x8] sm:$0xff]   ;;  %v4863_v27 = vsel %vm1209_vm2, %v4858_v25, %v4862_v34 }
  0xa1   : > { %9013 = vmatprep.subr.bf16.mxu0 %v9895_v61  ;;  %8956 = vmatmul.mubr.msk.bf16.gmra.mrb[60].mxu1 %vm401_vm0, %v3521_v60  ;;  %v9594_v60 = vld [vmem:[%s14009_s3 + $0x60] sm:$0xff]  }
  0xa2   : > { %8983 = vmatprep.mubr.msk.bf16.mxu1 %vm9897_vm6, %v9895_v61  ;;  %v10532_v39 = vpop.permute.xlu0 %9044 }
  0xa3   : > { %v9047_v9 = vunpack.i.h.bf16 %v10532_v39  ;;  %v9046_v12 = vunpack.i.l.bf16 %v10532_v39 }
  0xa4   : > { %9014 = vmatpush3.bf16.msra.mxu0 %v9564_v7  ;;  %v9596_v7 = vld [vmem:[%s14009_s3 + $0x70] sm:$0xff]  }
  0xa5   : > { %5455 = vmatprep.subr.bf16.mxu0 %v9896_v8  ;;  %v626_v56 = vrot.slane %v9047_v9, 7 }
  0xa7   : > { %8968 = vmatmul.mubr.msk.bf16.gmra.mrb[68].mxu0 %vm401_vm0, %v4008_v40  ;;  %v9580_v40 = vld [vmem:[%s14009_s3 + $0x30] sm:$0xff]   ;;  %v10543_v29 = vpop.permute.xlu1 %9055 }
  0xa8   : > { %8971 = vmatprep.mubr.msk.bf16.mxu0 %vm401_vm0, %v4016_v42  ;;  %v10548_v42 = vpop.permute.xlu0 %9049  ;;  %v9057_v16 = vunpack.i.l.bf16 %v10543_v29 }
  0xa9   : > { %8984 = vmatmul.mubr.msk.bf16.vlgmr.msra.gmra.mrb[64].mxu1 %vm401_vm0, %v4441_v49  ;;  %v2342_v49 = vunpack.c.l.bf16 %v9804_v48  ;;  %v9052_v34 = vunpack.i.h.bf16 %v10548_v42  ;;  %v1442_v48 = vunpack.c.h.bf16 %v10589_v15 }
  0xaa   : > { %8987 = vmatprep.mubr.msk.bf16.mxu1 %vm9897_vm6, %v9895_v61  ;;  %8996 = vmatpush3.bf16.msra.mxu1 %v9582_v51  ;;  %v9601_v51 = vld [vmem:[%s14009_s3 + $0x98] sm:$0xff]  }
  0xab   : > { %8997 = vmatprep.subr.bf16.mxu1 %v9895_v61  ;;  %v10564_v58 = vpop.permute.xlu1 %9060  ;;  %v10571_v62 = vpack.i.bf16 %v2342_v49, %v1437_v47  ;;  %v555_v47 = vunpack.c.l.bf16 %v10637_v45  ;;  %v14051_v45 = vunpack.c.l.bf16 %v10648_v53  ;;  %v9817_v53 = vld [vmem:[%s9955_s6 + $0x74] sm:$0xff]  }
  0xac   : > { %v10567_v52 = vpop.permute.xlu0 %9065 }
  0xad   : > { %v9067_v39 = vunpack.i.l.bf16 %v10567_v52 }
  0xae   : > { %8998 = vmatpush3.bf16.msra.mxu1 %v9585_v28  ;;  %v9806_v28 = vld [vmem:[%s9955_s6 + $0x30] sm:$0xff]  }
  0xaf   : > { %8972 = vmatmul.mubr.msk.bf16.gmra.mrb[72].mxu0 %vm401_vm0, %v4024_v55  ;;  %5262 = vmatprep.subr.bf16.mxu1 %v9896_v8  ;;  %v551_v55 = vunpack.c.l.bf16 %v9806_v28  ;;  %v10597_v19 = vpop.permute.xlu1 %9070 }
  0xb0   : > { %8975 = vmatprep.mubr.msk.bf16.mxu0 %vm401_vm0, %v4032_v46  ;;  %v2345_v46 = vunpack.c.h.bf16 %v9805_v35  ;;  %v9073_v49 = vunpack.i.h.bf16 %v10597_v19 }
  0xb1   : > { %8988 = vmatmul.mubr.msk.bf16.gmra.mrb[68].mxu1 %vm401_vm0, %v4450_v0  ;;  %v9588_v0 = vld [vmem:[%s14009_s3 + $0x48] sm:$0xff]  }
  0xb2   : > { %8991 = vmatprep.mubr.msk.bf16.mxu1 %vm9897_vm6, %v9895_v61 }
  0xb7   : > { %8976 = vmatmul.mubr.msk.bf16.gmra.mrb[76].mxu0 %vm401_vm0, %v4040_v2  ;;  %v552_v2 = vunpack.c.h.bf16 %v9806_v28 }
  0xb8   : > { %9015 = vmatprep.mubr.msk.bf16.mxu0 %vm9897_vm6, %v9895_v61 }
  0xb9   : > { %8992 = vmatmul.mubr.msk.bf16.gmra.mrb[72].mxu1 %vm401_vm0, %v4459_v30  ;;  %v1441_v30 = vunpack.c.l.bf16 %v10589_v15 }
  0xba   : > { %8999 = vmatprep.mubr.msk.bf16.mxu1 %vm9897_vm6, %v9895_v61 }
  0xbf   : > { %9016 = vmatmul.mubr.msk.bf16.vlgmr.msra.gmra.mrb[80].mxu0 %vm401_vm0, %v4855_v3  ;;  %v10601_v3 = vpack.i.bf16 %v551_v55, %v2345_v46 }
  0xc0   : > { %5456 = vmatpush1.bf16.msra.mxu0 %v9567_v17  ;;  %9019 = vmatprep.mubr.msk.bf16.mxu0 %vm9897_vm6, %v9895_v61  ;;  %v9058_v17 = vunpack.i.h.bf16 %v10543_v29  ;;  %v554_v29 = vunpack.c.h.bf16 %v10579_v4 }
  0xc1   : > { %5457 = vmatprep.subr.bf16.mxu0 %v9896_v8  ;;  %9000 = vmatmul.mubr.msk.bf16.vlgmr.msra.gmra.mrb[76].mxu1 %vm401_vm0, %v4623_v18  ;;  %v9051_v18 = vunpack.i.l.bf16 %v10548_v42 }
  0xc2   : > { %9003 = vmatprep.mubr.msk.bf16.mxu1 %vm9897_vm6, %v9895_v61  ;;  %5263 = vmatpush1.bf16.msra.mxu1 %v9594_v60 }
  0xc3   : > { %5264 = vmatprep.subr.bf16.mxu1 %v9896_v8 }
  0xc4   : > { %5458 = vmatpush1.bf16.msra.mxu0 %v9571_v22  ;;  %v9811_v22 = vld [vmem:[%s9955_s6 + $0x5c] sm:$0xff]  }
  0xc5   : > { %5459 = vmatprep.subr.bf16.mxu0 %v9896_v8  ;;  %v2348_v60 = vunpack.c.l.bf16 %v9811_v22  ;;  %v2349_v25 = vunpack.c.h.bf16 %v9811_v22 }
  0xc6   : > { %5265 = vmatpush1.bf16.msra.mxu1 %v9595_v26  ;;  %v10609_v26 = vpop.permute.xlu0 %9075 }
  0xc7   : > { %9020 = vmatmul.mubr.msk.bf16.gmra.mrb[84].mxu0 %vm401_vm0, %v4863_v27  ;;  %5266 = vmatprep.subr.bf16.mxu1 %v9896_v8  ;;  %v10611_v27 = vpack.i.bf16 %v1439_v59, %v1438_v63 }
  0xc8   : > { %5460 = vmatpush1.bf16.msra.mxu0 %v9573_v23  ;;  %9023 = vmatprep.mubr.msk.bf16.mxu0 %vm9897_vm6, %v9895_v61  ;;  %v9063_v23 = vunpack.i.h.bf16 %v10564_v58 }
  0xc9   : > { %5461 = vmatprep.subr.bf16.mxu0 %v9896_v8  ;;  %9004 = vmatmul.mubr.msk.bf16.gmra.mrb[80].mxu1 %vm401_vm0, %v4625_v10  ;;  %v9062_v10 = vunpack.i.l.bf16 %v10564_v58 }
  0xca   : > { %9007 = vmatprep.mubr.msk.bf16.mxu1 %vm9897_vm6, %v9895_v61  ;;  %5267 = vmatpush1.bf16.msra.mxu1 %v9596_v7  ;;  %v9598_v61 = vld [vmem:[%s14009_s3 + $0x80] sm:$0xff]   ;;  %v625_v7 = vrot.slane %v9046_v12, 7  ;;  %v638_v42 = vrot.slane %v9063_v23, 7  ;;  %v10651_v54 = vpop.permute.xlu0 %9085 }
  0xcb   : > { %5268 = vmatprep.subr.bf16.mxu1 %v9896_v8 }
  0xcc   : > { %5462 = vmatpush1.bf16.msra.mxu0 %v9576_v31  ;;  %v10613_v31 = vpack.i.bf16 %v2347_v1, %v2346_v50 }
  0xcd   : > { %5463 = vmatprep.subr.bf16.mxu0 %v9896_v8 }
  0xce   : > { %5269 = vmatpush1.bf16.msra.mxu1 %v9597_v6  ;;  %v630_v6 = vrot.slane %v9052_v34, 7  ;;  %v9603_v34 = vld [vmem:[%s14009_s3 + $0xa8] sm:$0xff]  }
  0xcf   : > { %9024 = vmatmul.mubr.msk.bf16.gmra.mrb[88].mxu0 %vm401_vm0, %v4871_v13  ;;  %5270 = vmatprep.subr.bf16.mxu1 %v9896_v8  ;;  %v632_v13 = vrot.slane %v9057_v16, 7 }
  0xd0   : > { %5464 = vmatpush1.bf16.msra.mxu0 %v9577_v33  ;;  %8327 = vmatprep.mubr.msk.bf16.mxu0 %vm227_vm3, %v5036_v37  ;;  %v10618_v33 = vpack.i.bf16 %v553_v5, %v552_v2  ;;  %v634_v37 = vrot.slane %v9058_v17, 7 }
  0xd1   : > { %5465 = vmatprep.subr.bf16.mxu0 %v9896_v8  ;;  %9008 = vmatmul.mubr.msk.bf16.gmra.mrb[84].mxu1 %vm401_vm0, %v4627_v36  ;;  %v10620_v36 = vpack.i.bf16 %v1441_v30, %v1440_v21  ;;  %v10658_v63 = vsel %vm624_vm7, %v630_v6, %v632_v13  ;;  %v10677_v21 = vrot.slane %v9073_v49, 7 }
  0xd2   : > { %5271 = vmatpush1.bf16.msra.mxu1 %v9598_v61  ;;  %v9068_v61 = vunpack.i.h.bf16 %v10567_v52  ;;  %v10645_v52 = vsel %vm624_vm7, %v625_v7, %v626_v56  ;;  %v10661_v24 = vsel %vm624_vm7, %v632_v13, %v634_v37  ;;  %v9604_v7 = vld [vmem:[%s14009_s3 + $0xb0] sm:$0xff]   ;;  %v9087_v13 = vunpack.i.l.bf16 %v10651_v54 }
  0xd3   : > { %5272 = vmatprep.subr.bf16.mxu1 %v9896_v8 }
  0xd4   : > { %5466 = vmatpush1.bf16.msra.mxu0 %v9579_v38  ;;  %v628_v38 = vrot.slane %v9051_v18, 7  ;;  %v10663_v59 = vrot.slane %v9068_v61, 7  ;;  %v9078_v18 = vunpack.i.h.bf16 %v10609_v26 }
  0xd5   : > { %5467 = vmatprep.subr.bf16.mxu0 %v9896_v8 }
  0xd6   : > { %5273 = vmatpush1.bf16.msra.mxu1 %v9599_v41  ;;  %v10630_v41 = vpack.i.bf16 %v2349_v25, %v2348_v60  ;;  %v10655_v46 = vsel %vm624_vm7, %v628_v38, %v630_v6  ;;  %v10667_v1 = vsel %vm624_vm7, %v626_v56, %v628_v38  ;;  %v9077_v25 = vunpack.i.l.bf16 %v10609_v26  ;;  %v10700_v26 = vpop.permute.xlu0 %9095 }
  0xd7   : > { %5274 = vmatprep.subr.bf16.mxu1 %v9896_v8 }
  0xd8   : > { %5468 = vmatpush1.bf16.msra.mxu0 %v9580_v40  ;;  %v10628_v40 = vld [vmem:[%s14008_s2] ss:$0 sm:$0xff] }
  0xd9   : > { %5469 = vmatprep.subr.bf16.mxu0 %v9896_v8 }
  0xda   : > { %5275 = vmatpush1.bf16.msra.mxu1 %v9600_v43  ;;  %v636_v43 = vrot.slane %v9062_v10, 7 }
  0xdb   : > { %5276 = vmatprep.subr.bf16.mxu1 %v9896_v8 }
  0xdc   : > { %5470 = vmatpush1.bf16.msra.mxu0 %v9583_v11  ;;  %v9592_v11 = vld [vmem:[%s14009_s3 + $0x58] sm:$0xff]   ;;  %v10671_v9 = vsel %vm624_vm7, %v636_v43, %v638_v42  ;;  %v10674_v12 = vsel %vm624_vm7, %v634_v37, %v636_v43  ;;  %v9088_v37 = vunpack.i.h.bf16 %v10651_v54 }
  0xdd   : > { %5471 = vmatprep.subr.bf16.mxu0 %v9896_v8 }
  0xde   : > { %5277 = vmatpush1.bf16.msra.mxu1 %v9601_v51  ;;  %v9081_v51 = vpop.permute.xlu1 %9080 }
  0xdf   : > { %5278 = vmatprep.subr.bf16.mxu1 %v9896_v8  ;;  %v9082_v22 = vunpack.i.l.bf16 %v9081_v51 }
  0xe0   : > { %5472 = vmatpush1.bf16.msra.mxu0 %v9586_v44  ;;  %v9072_v44 = vunpack.i.l.bf16 %v10597_v19  ;;  %v9083_v19 = vunpack.i.h.bf16 %v9081_v51 }
  0xe1   : > { %5473 = vmatprep.subr.bf16.mxu0 %v9896_v8  ;;  %v9590_v8 = vld [vmem:[%s14009_s3 + $0x50] sm:$0xff]  }
  0xe2   : > { %5279 = vmatpush1.bf16.msra.mxu1 %v9602_v14  ;;  %v10679_v30 = vrot.slane %v9072_v44, 7  ;;  %v9098_v44 = vunpack.i.h.bf16 %v10700_v26 }
  0xe3   : > { %5280 = vmatprep.subr.bf16.mxu1 %v10615_v32 }
  0xe4   : > { %5474 = vmatpush1.bf16.msra.mxu0 %v9588_v0  ;;  %v640_v0 = vrot.slane %v9067_v39, 7 }
  0xe5   : > { %5475 = vmatprep.subr.bf16.mxu0 %v10615_v32 }
  0xe6   : > { %v10689_v10 = vsel %vm624_vm7, %v638_v42, %v640_v0  ;;  %v10693_v56 = vsel %vm624_vm7, %v640_v0, %v10663_v59  ;;  %5281 = vmatpush1.bf16.msra.mxu1 %v9603_v34  ;;  %v9097_v0 = vunpack.i.l.bf16 %v10700_v26 }
  0xe7   : > { %5282 = vmatprep.subr.bf16.mxu1 %v10615_v32 }
  0xe8   : > { %5476 = vmatpush1.bf16.msra.mxu0 %v9590_v8  ;;  %v9091_v8 = vpop.permute.xlu1 %9090 }
  0xe9   : > { %5477 = vmatprep.subr.bf16.mxu0 %v10615_v32  ;;  %v8825_v58 = vpop.f32.mrb[0].mxu1  ;;  %v9093_v61 = vunpack.i.h.bf16 %v9091_v8  ;;  %v9092_v39 = vunpack.i.l.bf16 %v9091_v8 }
  0xea   : > { %v886_v28 = vadd.f32 %v8825_v58, %v10628_v40  ;;  %v877_v55 = vpop.f32.mrb[1].mxu1  ;;  %5283 = vmatpush1.bf16.msra.mxu1 %v9604_v7  ;;  %v9605_v7 = vld [vmem:[%s14009_s3 + $0xb8] sm:$0xff]  }
  0xeb   : > { %v878_v57 = vadd.f32 %v10628_v40, %v877_v55  ;;  %v8826_v50 = vpop.f32.mrb[2].mxu1  ;;  %5284 = vmatprep.subr.bf16.mxu1 %v10615_v32 }
  0xec   : > { %5478 = vmatpush1.bf16.msra.mxu0 %v9592_v11  ;;  %v942_v2 = vmax.f32 %v886_v28, 0.0  ;;  %v889_v5 = vadd.f32 %v8826_v50, %v10628_v40  ;;  %v880_v14 = vpop.f32.mrb[3].mxu1 }
  0xed   : > { %6067 = vmatprep.subr.bf16.mxu0 %v10615_v32  ;;  %v940_v17 = vmax.f32 %v878_v57, 0.0  ;;  %v881_v16 = vadd.f32 %v10628_v40, %v880_v14 }
  0xee   : > { %v943_v60 = vmax.f32 %v889_v5, 0.0  ;;  %v1054_v6 = vmul.f32 %v9082_v22, %v942_v2  ;;  %5285 = vmatpush1.bf16.msra.mxu1 %v9605_v7 }
  0xef   : > { %5488 = vmatmul.mubr.bf16.vlgmr.msra.gmra.mrb[92].mxu0 %v10615_v32  ;;  %v941_v23 = vmax.f32 %v881_v16, 0.0  ;;  %v1052_v11 = vmul.f32 %v9077_v25, %v940_v17  ;;  %5689 = vmatprep.subr.bf16.mxu1 %v10615_v32 }
  0xf0   : > { %v1055_v38 = vmul.f32 %v9083_v19, %v943_v60  ;;  %v10712_v60 = vpop.permute.xlu1 %9100 }
  0xf1   : > { %v1053_v42 = vmul.f32 %v9078_v18, %v941_v23  ;;  %v8829_v49 = vpop.f32.mrb[4].mxu1 }
  0xf2   : > { %v8805_v43 = vpop.f32.mrb[0].mxu0  ;;  %v902_v28 = vadd.f32 %v8829_v49, %v10628_v40  ;;  %v893_v54 = vpop.f32.mrb[5].mxu1  ;;  %v1069_v55 = vpack.c.bf16 %v1055_v38, %v1054_v6  ;;  %v9103_v38 = vunpack.i.h.bf16 %v10712_v60 }
  0xf3   : > { %v469_v51 = vadd.f32 %v8805_v43, %v10628_v40  ;;  %v460_v58 = vpop.f32.mrb[1].mxu0  ;;  %v894_v2 = vadd.f32 %v10628_v40, %v893_v54  ;;  %v8830_v5 = vpop.f32.mrb[6].mxu1  ;;  %v1068_v14 = vpack.c.bf16 %v1053_v42, %v1052_v11  ;;  %v9102_v11 = vunpack.i.l.bf16 %v10712_v60 }
  0xf4   : > { %v461_v57 = vadd.f32 %v10628_v40, %v460_v58  ;;  %v8806_v50 = vpop.f32.mrb[2].mxu0  ;;  %v946_v16 = vmax.f32 %v902_v28, 0.0  ;;  %v905_v19 = vadd.f32 %v8830_v5, %v10628_v40  ;;  %v896_v22 = vpop.f32.mrb[7].mxu1 }
  0xf5   : > { %v525_v17 = vmax.f32 %v469_v51, 0.0  ;;  %v472_v34 = vadd.f32 %v8806_v50, %v10628_v40  ;;  %v463_v18 = vpop.f32.mrb[3].mxu0  ;;  %v944_v8 = vmax.f32 %v894_v2, 0.0  ;;  %v897_v6 = vadd.f32 %v10628_v40, %v896_v22 }
  0xf6   : > { %v523_v25 = vmax.f32 %v461_v57, 0.0  ;;  %v464_v23 = vadd.f32 %v10628_v40, %v463_v18  ;;  %v947_v43 = vmax.f32 %v905_v19, 0.0  ;;  %v1058_v51 = vmul.f32 %v9092_v39, %v946_v16 }
  0xf7   : > { %v526_v42 = vmax.f32 %v472_v34, 0.0  ;;  %v676_v49 = vmul.f32 %v10655_v46, %v525_v17  ;;  %v945_v28 = vmax.f32 %v897_v6, 0.0  ;;  %v1084_v50 = vrot.slane %v1068_v14, 4 }
  0xf8   : > { %v524_v58 = vmax.f32 %v464_v23, 0.0  ;;  %v1059_v57 = vmul.f32 %v9093_v61, %v947_v43  ;;  %v1085_v2 = vrot.slane %v1069_v55, 4  ;;  %v674_v5 = vmul.f32 %v10645_v52, %v523_v25 }
  0xf9   : > { %v677_v54 = vmul.f32 %v10658_v63, %v526_v42  ;;  %v1056_v18 = vmul.f32 %v9087_v13, %v944_v8  ;;  %v1057_v34 = vmul.f32 %v9088_v37, %v945_v28  ;;  %v8833_v35 = vpop.f32.mrb[8].mxu1  ;;  %1099 = vrot.lane.b32.xlu1 %v1084_v50, %s9898_s9 }
  0xfa   : > { %v675_v22 = vmul.f32 %v10667_v1, %v524_v58  ;;  %v8809_v19 = vpop.f32.mrb[4].mxu0  ;;  %v1071_v39 = vpack.c.bf16 %v1059_v57, %v1058_v51  ;;  %v1086_v63 = vsel %vm706_vm8, %v1084_v50, %v1085_v2  ;;  %v909_v14 = vpop.f32.mrb[9].mxu1  ;;  %v918_v1 = vadd.f32 %v8833_v35, %v10628_v40 }
  0xfb   : > { %v691_v46 = vpack.c.bf16 %v677_v54, %v676_v49  ;;  %v485_v61 = vadd.f32 %v8809_v19, %v10628_v40  ;;  %v476_v55 = vpop.f32.mrb[5].mxu0  ;;  %v1070_v16 = vpack.c.bf16 %v1057_v34, %v1056_v18  ;;  %1101 = vrot.lane.b32.xlu0 %v1086_v63, %s9898_s9  ;;  %v8834_v13 = vpop.f32.mrb[10].mxu1  ;;  %v910_v35 = vadd.f32 %v10628_v40, %v909_v14 }
  0xfc   : > { %v690_v17 = vpack.c.bf16 %v675_v22, %v674_v5  ;;  %v477_v52 = vadd.f32 %v10628_v40, %v476_v55  ;;  %v8810_v37 = vpop.f32.mrb[6].mxu0  ;;  %v10734_v8 = vrot.slane %v1071_v39, 4  ;;  %v912_v42 = vpop.f32.mrb[11].mxu1  ;;  %v950_v58 = vmax.f32 %v918_v1, 0.0 }
  0xfd   : > { %v10732_v25 = vrot.slane %v691_v46, 4  ;;  %v529_v23 = vmax.f32 %v485_v61, 0.0  ;;  %v488_v6 = vadd.f32 %v8810_v37, %v10628_v40  ;;  %v479_v7 = vpop.f32.mrb[7].mxu0  ;;  %v1087_v49 = vrot.slane %v1070_v16, 4  ;;  %9140 = vperm.xlu1 %9053, %v10571_v62   ;;  %v10746_v34 = vpop.permute.xlu0 %9105 }
  0xfe   : > { %v707_v43 = vrot.slane %v690_v17, 4  ;;  %v527_v51 = vmax.f32 %v477_v52, 0.0  ;;  %v921_v57 = vadd.f32 %v8834_v13, %v10628_v40  ;;  %v1062_v5 = vmul.f32 %v9102_v11, %v950_v58 }
  0xff   : > { %v680_v28 = vmul.f32 %v10671_v9, %v529_v23  ;;  %v530_v54 = vmax.f32 %v488_v6, 0.0  ;;  %v480_v18 = vadd.f32 %v10628_v40, %v479_v7  ;;  %v913_v22 = vadd.f32 %v10628_v40, %v912_v42  ;;  %9145 = vperm.xlu0 %9042, %v10599_v20   ;;  %v9111_v7 = vpop.permute.xlu1 %9110 }
 0x100   : > { %v678_v50 = vmul.f32 %v10661_v24, %v527_v51  ;;  %731 = vst.msk [vmem:[#allocation2 + $0x10] sm:$0xf0] %vm233_vm4, %v707_v43  ;;  %v948_v19 = vmax.f32 %v910_v35, 0.0  ;;  %v951_v46 = vmax.f32 %v921_v57, 0.0  ;;  %v1088_v39 = vsel %vm706_vm8, %v1085_v2, %v1087_v49 }
 0x101   : > { %v681_v9 = vmul.f32 %v10689_v10, %v530_v54  ;;  %v528_v62 = vmax.f32 %v480_v18, 0.0  ;;  %v949_v63 = vmax.f32 %v913_v22, 0.0  ;;  %v8837_v11 = vpop.f32.mrb[12].mxu1  ;;  %v1090_v61 = vsel %vm706_vm8, %v1087_v49, %v10734_v8  ;;  %9150 = vperm.xlu1 %9053, %v10601_v3   ;;  %v10783_v22 = vpop.permute.xlu0 %9115 }
 0x102   : > { %v8813_v24 = vpop.f32.mrb[8].mxu0  ;;  %v709_v20 = vsel %vm706_vm8, %v707_v43, %v10732_v25  ;;  %v1060_v14 = vmul.f32 %v9097_v0, %v948_v19  ;;  %v1063_v10 = vmul.f32 %v9103_v38, %v951_v46  ;;  %v925_v16 = vpop.f32.mrb[13].mxu1  ;;  %v934_v60 = vadd.f32 %v8837_v11, %v10628_v40 }
 0x103   : > { %v693_v55 = vpack.c.bf16 %v681_v9, %v680_v28  ;;  %v501_v2 = vadd.f32 %v8813_v24, %v10628_v40  ;;  %v492_v17 = vpop.f32.mrb[9].mxu0  ;;  %732 = vst.msk [vmem:[#allocation2 + $0x20] sm:$0xff] %vm227_vm3, %v709_v20  ;;  %v679_v52 = vmul.f32 %v10674_v12, %v528_v62  ;;  %v1061_v1 = vmul.f32 %v9098_v44, %v949_v63  ;;  %v8838_v3 = vpop.f32.mrb[14].mxu1 }
 0x104   : > { %1103 = vrot.lane.b32.xlu0 %v1088_v39, %s9898_s9  ;;  %v493_v0 = vadd.f32 %v10628_v40, %v492_v17  ;;  %v10767_v38 = vpop.f32.mrb[10].mxu0  ;;  %v9108_v37 = vunpack.i.h.bf16 %v10746_v34  ;;  %v1073_v13 = vpack.c.bf16 %v1063_v10, %v1062_v5  ;;  %v647_v12 = vsel %vm624_vm7, %v10679_v30, %v10677_v21  ;;  %v928_v26 = vpop.f32.mrb[15].mxu1 }
 0x105   : > { %v533_v23 = vmax.f32 %v501_v2, 0.0  ;;  %v495_v6 = vpop.f32.mrb[11].mxu0  ;;  %v9107_v44 = vunpack.i.l.bf16 %v10746_v34  ;;  %v10774_v42 = vrot.slane %v693_v55, 4  ;;  %v692_v43 = vpack.c.bf16 %v679_v52, %v678_v50  ;;  %9155 = vperm.xlu1 %9053, %v10611_v27  }
 0x106   : > { %v1072_v49 = vpack.c.bf16 %v1061_v1, %v1060_v14  ;;  %v9112_v51 = vunpack.i.l.bf16 %v9111_v7  ;;  %v10776_v58 = vrot.slane %v1073_v13, 4  ;;  %v926_v54 = vadd.f32 %v10628_v40, %v925_v16  ;;  %v9121_v1 = vpop.permute.xlu1 %9120  ;;  %v10820_v13 = vpop.permute.xlu0 %9125 }
 0x107   : > { %v10778_v28 = vmul.f32 %v647_v12, %v533_v23  ;;  %v710_v35 = vrot.slane %v692_v43, 4  ;;  %v531_v5 = vmax.f32 %v493_v0, 0.0  ;;  %v954_v18 = vmax.f32 %v934_v60, 0.0  ;;  %v9815_v0 = vld [vmem:[%s9955_s6 + $0x64] sm:$0xff]  }
 0x108   : > { %v1091_v57 = vrot.slane %v1072_v49, 4  ;;  %9160 = vperm.xlu0 %9042, %v10613_v31   ;;  %v952_v34 = vmax.f32 %v926_v54, 0.0  ;;  %v937_v50 = vadd.f32 %v8838_v3, %v10628_v40  ;;  %v496_v9 = vadd.f32 %v10628_v40, %v495_v6 }
 0x109   : > { %14050 = vst [vmem:[#allocation3_spill] sm:$0xff] %v10778_v28  ;;  %v929_v19 = vadd.f32 %v10628_v40, %v928_v26  ;;  %v711_v31 = vsel %vm706_vm8, %v10732_v25, %v710_v35  ;;  %v713_v62 = vsel %vm706_vm8, %v710_v35, %v10774_v42  ;;  %v9113_v63 = vunpack.i.h.bf16 %v9111_v7  ;;  %1105 = vrot.lane.b32.xlu1 %v1090_v61, %s9898_s9 }
 0x10a   : > { %v10788_v46 = vpop.f32.mrb[12].mxu0  ;;  %v1092_v27 = vsel %vm706_vm8, %v10734_v8, %v1091_v57  ;;  %v10794_v39 = vsel %vm706_vm8, %v1091_v57, %v10776_v58  ;;  %v955_v24 = vmax.f32 %v937_v50, 0.0  ;;  %v532_v11 = vmax.f32 %v496_v9, 0.0  ;;  %733 = vst.msk [vmem:[#allocation2 + $0x30] sm:$0xff] %vm227_vm3, %v711_v31  ;;  %734 = vst.msk [vmem:[#allocation2 + $0x40] sm:$0xff] %vm227_vm3, %v713_v62  ;;  %v9131_v9 = vpop.permute.xlu1 %9130 }
 0x10b   : > { %v953_v20 = vmax.f32 %v929_v19, 0.0  ;;  %v10801_v55 = vpop.f32.mrb[13].mxu0  ;;  %v682_v8 = vmul.f32 %v10693_v56, %v531_v5  ;;  %v1066_v25 = vmul.f32 %v9112_v51, %v954_v18  ;;  %v645_v14 = vsel %vm624_vm7, %v10663_v59, %v10679_v30  ;;  %v9816_v30 = vld [vmem:[%s9955_s6 + $0x6c] sm:$0xff]   ;;  %v10853_v62 = vpop.permute.xlu0 %9135 }
 0x10c   : > { %9165 = vperm.xlu0 %9042, %v10618_v33   ;;  %v10810_v10 = vpop.f32.mrb[14].mxu0  ;;  %v9179_v61 = vpack.i.bf16 %v555_v47, %v554_v29  ;;  %v1064_v2 = vmul.f32 %v9107_v44, %v952_v34  ;;  %v1067_v17 = vmul.f32 %v9113_v63, %v955_v24  ;;  %v683_v16 = vmul.f32 %v645_v14, %v532_v11 }
 0x10d   : > { %v1065_v52 = vmul.f32 %v9108_v37, %v953_v20  ;;  %v10816_v56 = vpop.f32.mrb[15].mxu0  ;;  %v2350_v60 = vunpack.c.l.bf16 %v9815_v0  ;;  %v2351_v59 = vunpack.c.h.bf16 %v9815_v0  ;;  %v2352_v33 = vunpack.c.l.bf16 %v9816_v30  ;;  %9170 = vperm.xlu1 %9053, %v10620_v36  }
 0x10e   : > { %v2353_v3 = vunpack.c.h.bf16 %v9816_v30  ;;  %v1075_v4 = vpack.c.bf16 %v1067_v17, %v1066_v25  ;;  %v694_v23 = vpack.c.bf16 %v683_v16, %v682_v8  ;;  %v9184_v47 = vpack.i.bf16 %v14051_v45, %v1442_v48  ;;  %v9818_v8 = vld [vmem:[%s9955_s6 + $0x7c] sm:$0xff]  }
 0x10f   : > { %v1074_v29 = vpack.c.bf16 %v1065_v52, %v1064_v2  ;;  %v9118_v37 = vunpack.i.h.bf16 %v10783_v22  ;;  %v9123_v12 = vunpack.i.h.bf16 %v9121_v1  ;;  %v9122_v6 = vunpack.i.l.bf16 %v9121_v1 }
 0x110   : > { %v9127_v26 = vunpack.i.l.bf16 %v10820_v13  ;;  %9175 = vperm.xlu0 %9042, %v10630_v41   ;;  %v9117_v44 = vunpack.i.l.bf16 %v10783_v22  ;;  %v10831_v7 = vrot.slane %v1075_v4, 4  ;;  %v10833_v43 = vrot.slane %v694_v23, 4 }
 0x111   : > { %v1095_v36 = vrot.slane %v1074_v29, 4  ;;  %v9189_v15 = vpack.i.bf16 %v2351_v59, %v2350_v60  ;;  %v9194_v51 = vpack.i.bf16 %v2353_v3, %v2352_v33  ;;  %v2354_v48 = vunpack.c.l.bf16 %v9817_v53  ;;  %1107 = vrot.lane.b32.xlu1 %v1092_v27, %s9898_s9 }
 0x112   : > { %14052 = vst [vmem:[#allocation4_spill] sm:$0xff] %v10833_v43  ;;  %v8845_v49 = vpop.f32.mrb[16].mxu0  ;;  %v2355_v54 = vunpack.c.h.bf16 %v9817_v53  ;;  %v715_v18 = vsel %vm706_vm8, %v10774_v42, %v10833_v43  ;;  %v1518_v22 = vrot.slane %v9123_v12, 1  ;;  %v1516_v34 = vrot.slane %v9122_v6, 1  ;;  %v9833_v43 = vld [vmem:[%s9955_s6 + $0x74] sm:$0xff]  }
 0x113   : > { %v1357_v35 = vadd.f32 %v8845_v49, %v10628_v40  ;;  %v1348_v57 = vpop.f32.mrb[17].mxu0  ;;  %v10840_v41 = vsel %vm706_vm8, %v10776_v58, %v1095_v36  ;;  %v10844_v5 = vsel %vm706_vm8, %v1095_v36, %v10831_v7  ;;  %v10849_v50 = vrot.slane %v9127_v26, 1  ;;  %735 = vst.msk [vmem:[#allocation2 + $0x50] sm:$0xff] %vm227_vm3, %v715_v18  ;;  %v9819_v26 = vld [vmem:[%s9955_s6 + $0x40] sm:$0x8] }
 0x114   : > { %9180 = vperm.xlu0 %9042, %v9179_v61   ;;  %v1349_v19 = vadd.f32 %v10628_v40, %v1348_v57  ;;  %v8846_v27 = vpop.f32.mrb[18].mxu0  ;;  %v1514_v58 = vrot.slane %v9118_v37, 1  ;;  %v1513_v31 = vrot.slane %v9117_v44, 1  ;;  %v2356_v25 = vunpack.c.l.bf16 %v9818_v8 }
 0x115   : > { %v1413_v63 = vmax.f32 %v1357_v35, 0.0  ;;  %v1360_v24 = vadd.f32 %v8846_v27, %v10628_v40  ;;  %v1351_v42 = vpop.f32.mrb[19].mxu0  ;;  %v2357_v14 = vunpack.c.h.bf16 %v9818_v8  ;;  %v9128_v61 = vunpack.i.h.bf16 %v10820_v13  ;;  %9185 = vperm.xlu1 %9053, %v9184_v47  }
 0x116   : > { %v1411_v11 = vmax.f32 %v1349_v19, 0.0  ;;  %v1352_v20 = vadd.f32 %v10628_v40, %v1351_v42  ;;  %v9133_v2 = vunpack.i.h.bf16 %v9131_v9  ;;  %v9132_v17 = vunpack.i.l.bf16 %v9131_v9  ;;  %v9820_v19 = vld [vmem:[%s9955_s6 + $0x44] sm:$0xf] }
 0x117   : > { %v1414_v16 = vmax.f32 %v1360_v24, 0.0  ;;  %v9137_v52 = vunpack.i.l.bf16 %v10853_v62  ;;  %v1519_v1 = vsel %vm1512_vm9, %v1516_v34, %v1518_v22  ;;  %v1521_v0 = vsel %vm1512_vm9, %v1518_v22, %v10849_v50 }
 0x118   : > { %v1412_v60 = vmax.f32 %v1352_v20, 0.0  ;;  %9190 = vperm.xlu0 %9042, %v9189_v15   ;;  %v1564_v59 = vmul.f32 %v1519_v1, %v1413_v63  ;;  %v1515_v30 = vsel %vm1512_vm9, %v1513_v31, %v1514_v58  ;;  %v1517_v3 = vsel %vm1512_vm9, %v1514_v58, %v1516_v34  ;;  %v9821_v31 = vld [vmem:[%s9955_s6 + $0x48] sm:$0xff]  }
 0x119   : > { %v1565_v33 = vmul.f32 %v1521_v0, %v1414_v16  ;;  %v1562_v13 = vmul.f32 %v1515_v30, %v1411_v11  ;;  %v9199_v29 = vpack.i.bf16 %v2355_v54, %v2354_v48  ;;  %v9204_v45 = vpack.i.bf16 %v2357_v14, %v2356_v25  ;;  %1109 = vrot.lane.b32.xlu1 %v10794_v39, %s9898_s9  ;;  %v10891_v16 = vld [vmem:[%s9955_s6 + $0x50] sm:$0xff]   ;;  %v9823_v1 = vld [vmem:[%s9955_s6 + $0x44] sm:$0xff]  }
 0x11a   : > { %v1563_v4 = vmul.f32 %v1517_v3, %v1412_v60  ;;  %v8849_v23 = vpop.f32.mrb[20].mxu0  ;;  %v1526_v47 = vrot.slane %v9133_v2, 1  ;;  %v1927_v44 = vunpack.c.l.bf16 %v9819_v26  ;;  %v1524_v36 = vrot.slane %v9132_v17, 1 }
 0x11b   : > { %v1579_v37 = vpack.c.bf16 %v1565_v33, %v1564_v59  ;;  %v1373_v12 = vadd.f32 %v8849_v23, %v10628_v40  ;;  %v1364_v6 = vpop.f32.mrb[21].mxu0  ;;  %v1528_v49 = vrot.slane %v9137_v52, 1  ;;  %v1522_v54 = vrot.slane %v9128_v61, 1  ;;  %v10899_v30 = vpop.f32.mrb[16].mxu1 }
 0x11c   : > { %v1578_v15 = vpack.c.bf16 %v1563_v4, %v1562_v13  ;;  %9195 = vperm.xlu0 %9042, %v9194_v51   ;;  %v1365_v53 = vadd.f32 %v10628_v40, %v1364_v6  ;;  %v8850_v48 = vpop.f32.mrb[22].mxu0  ;;  %v1928_v27 = vunpack.c.l.bf16 %v9820_v19  ;;  %v9138_v58 = vunpack.i.h.bf16 %v10853_v62  ;;  %v10904_v23 = vpop.f32.mrb[17].mxu1 }
 0x11d   : > { %v10870_v35 = vrot.slane %v1579_v37, 4  ;;  %v1417_v57 = vmax.f32 %v1373_v12, 0.0  ;;  %v1376_v39 = vadd.f32 %v8850_v48, %v10628_v40  ;;  %v1367_v18 = vpop.f32.mrb[23].mxu0  ;;  %1111 = vrot.lane.b32.xlu1 %v10840_v41, %s9898_s9  ;;  %v1929_v63 = vunpack.c.l.bf16 %v9821_v31  ;;  %v9824_v48 = vld [vmem:[%s9955_s6 + $0x4c] sm:$0xff]  }
 0x11e   : > { %v1594_v22 = vrot.slane %v1578_v15, 4  ;;  %v1415_v34 = vmax.f32 %v1365_v53, 0.0  ;;  %v1368_v9 = vadd.f32 %v10628_v40, %v1367_v18  ;;  %v1930_v24 = vunpack.c.h.bf16 %v9821_v31 }
 0x11f   : > { %v1418_v51 = vmax.f32 %v1376_v39, 0.0  ;;  %v1527_v11 = vsel %vm1512_vm9, %v1524_v36, %v1526_v47  ;;  %v1529_v20 = vsel %vm1512_vm9, %v1526_v47, %v1528_v49  ;;  %v1523_v41 = vsel %vm1512_vm9, %v10849_v50, %v1522_v54  ;;  %v9825_v39 = vld [vmem:[%s9955_s6 + $0x54] sm:$0xff]  }
 0x120   : > { %v1596_v42 = vsel %vm706_vm8, %v1594_v22, %v10870_v35  ;;  %1618 = vst.msk [vmem:[#allocation2 + $0x18] sm:$0xf0] %vm233_vm4, %v1594_v22  ;;  %v1416_v8 = vmax.f32 %v1368_v9, 0.0  ;;  %9200 = vperm.xlu0 %9042, %v9199_v29   ;;  %v1568_v62 = vmul.f32 %v1527_v11, %v1417_v57  ;;  %v1525_v14 = vsel %vm1512_vm9, %v1522_v54, %v1524_v36  ;;  %v9826_v11 = vld [vmem:[%s9955_s6 + $0x58] sm:$0xff]  }
 0x121   : > { %1619 = vst.msk [vmem:[#allocation2 + $0x28] sm:$0xff] %vm227_vm3, %v1596_v42  ;;  %v1569_v25 = vmul.f32 %v1529_v20, %v1418_v51  ;;  %v1566_v61 = vmul.f32 %v1523_v41, %v1415_v34  ;;  %v1931_v52 = vunpack.c.l.bf16 %v10891_v16  ;;  %v2809_v0 = vunpack.c.l.bf16 %v9823_v1  ;;  %1113 = vrot.lane.b32.xlu1 %v10844_v5, %s9898_s9  ;;  %v10910_v5 = vpop.f32.mrb[18].mxu1 }
 0x122   : > { %v1567_v2 = vmul.f32 %v1525_v14, %v1416_v8  ;;  %v10888_v17 = vpop.f32.mrb[24].mxu0  ;;  %v10895_v60 = vrot.slane %v9138_v58, 1  ;;  %v9209_v13 = vpack.i.bf16 %v1928_v27, %v1927_v44  ;;  %v9214_v47 = vpack.i.bf16 %v1930_v24, %v1929_v63  ;;  %v10912_v36 = vpop.f32.mrb[19].mxu1 }
 0x123   : > { %v1581_v59 = vpack.c.bf16 %v1569_v25, %v1568_v62  ;;  %v1380_v50 = vpop.f32.mrb[25].mxu0  ;;  %v9219_v26 = vpack.i.bf16 %v2809_v0, %v1931_v52  ;;  %v2811_v54 = vunpack.c.l.bf16 %v9824_v48  ;;  %v2812_v57 = vunpack.c.h.bf16 %v9824_v48  ;;  %v10920_v22 = vpop.f32.mrb[20].mxu1  ;;  %v9827_v25 = vld [vmem:[%s9955_s6 + $0x5c] sm:$0xff]  }
 0x124   : > { %v1580_v33 = vpack.c.bf16 %v1567_v2, %v1566_v61  ;;  %9205 = vperm.xlu0 %9042, %v9204_v45   ;;  %v1381_v3 = vadd.f32 %v10628_v40, %v1380_v50  ;;  %v10902_v4 = vpop.f32.mrb[26].mxu0  ;;  %v2810_v45 = vunpack.c.h.bf16 %v9823_v1  ;;  %v1531_v44 = vsel %vm1512_vm9, %v1528_v49, %v10895_v60  ;;  %v10931_v27 = vpop.f32.mrb[21].mxu1  ;;  %v10958_v0 = vld [vmem:[%s9955_s6 + $0x60] sm:$0xff]  }
 0x125   : > { %v10906_v29 = vrot.slane %v1581_v59, 4  ;;  %v10908_v37 = vpop.f32.mrb[27].mxu0  ;;  %1115 = vrot.lane.b32.xlu1 %v10831_v7, %s9898_s9  ;;  %v2813_v18 = vunpack.c.l.bf16 %v9825_v39  ;;  %v10936_v58 = vpop.f32.mrb[22].mxu1  ;;  %v1932_v42 = vunpack.c.h.bf16 %v10891_v16  ;;  %v1933_v20 = vunpack.c.l.bf16 %v9826_v11 }
 0x126   : > { %v1597_v12 = vrot.slane %v1580_v33, 4  ;;  %v1419_v6 = vmax.f32 %v1381_v3, 0.0  ;;  %v10940_v31 = vpop.f32.mrb[23].mxu1  ;;  %v9224_v24 = vpack.i.bf16 %v2811_v54, %v2810_v45  ;;  %v2814_v41 = vunpack.c.h.bf16 %v9825_v39 }
 0x127   : > { %14053 = vst [vmem:[#allocation5_spill] sm:$0xff] %v10906_v29  ;;  %v5038_v15 = vld [vmem:[#allocation2 + $0x18] sm:$0xff]  ;;  %v9229_v62 = vpack.i.bf16 %v2813_v18, %v2812_v57  ;;  %v2815_v14 = vunpack.c.l.bf16 %v9827_v25  ;;  %v9234_v16 = vpack.i.bf16 %v1933_v20, %v1932_v42  ;;  %v1934_v1 = vunpack.c.h.bf16 %v9826_v11 }
 0x128   : > { %v5076_v53 = vld [vmem:[#allocation2 + $0x18] sm:$0xf0]  ;;  %v1598_v34 = vsel %vm706_vm8, %v10870_v35, %v1597_v12  ;;  %v1600_v9 = vsel %vm706_vm8, %v1597_v12, %v10906_v29  ;;  %v10926_v19 = vmul.f32 %v1531_v44, %v1419_v6  ;;  %9210 = vperm.xlu0 %9042, %v9209_v13   ;;  %8328 = vmatprep.mubr.msk.bf16.mxu0 %vm227_vm3, %v5038_v15  ;;  %v10929_v7 = vld [vmem:[#allocation2 + $0x28] sm:$0xff]  ;;  %v1935_v59 = vunpack.c.l.bf16 %v10958_v0 }
 0x129   : > { %v5127_v49 = vrot.slane %v5076_v53, 4  ;;  %1620 = vst.msk [vmem:[#allocation2 + $0x38] sm:$0xff] %vm227_vm3, %v1598_v34  ;;  %1621 = vst.msk [vmem:[#allocation2 + $0x48] sm:$0xff] %vm227_vm3, %v1600_v9  ;;  %v14012_v35 = vrot.slane %v10929_v7, 4  ;;  %9215 = vperm.xlu1 %9053, %v9214_v47   ;;  %v9239_v33 = vpack.i.bf16 %v2815_v14, %v2814_v41  ;;  %v2816_v3 = vunpack.c.h.bf16 %v9827_v25  ;;  %v10964_v13 = vld [vmem:[%s9955_s6 + $0x64] sm:$0xff]  }
 0x12a   : > { %v10938_v51 = vpop.f32.mrb[28].mxu0  ;;  %v2817_v47 = vunpack.c.l.bf16 %v10964_v13  ;;  %v9244_v45 = vpack.i.bf16 %v1935_v59, %v1934_v1 }
 0x12b   : > { %v5129_v63 = vsel %vm706_vm8, %v5127_v49, %v14012_v35  ;;  %v10947_v8 = vpop.f32.mrb[29].mxu0  ;;  %v10955_v52 = vpop.f32.mrb[24].mxu1  ;;  %v9618_v35 = vld [vmem:[%s14009_s3 + $0x60] sm:$0xff]  }
 0x12c   : > { %9220 = vperm.xlu0 %9042, %v9219_v26   ;;  %8307 = vmatprep.mubr.msk.bf16.mxu1 %vm227_vm3, %v5129_v63  ;;  %v10951_v61 = vpop.f32.mrb[30].mxu0  ;;  %14054 = vst [vmem:[#allocation6_spill] sm:$0xff] %v10955_v52  ;;  %v10961_v50 = vpop.f32.mrb[25].mxu1  ;;  %v9249_v15 = vpack.i.bf16 %v2817_v47, %v2816_v3  ;;  %v11072_v52 = vld [vmem:[%s14008_s2] ss:$0 sm:$0xff] }
 0x12d   : > { %v10953_v2 = vpop.f32.mrb[31].mxu0  ;;  %9225 = vperm.xlu1 %9053, %v9224_v24   ;;  %14055 = vst [vmem:[#allocation7_spill] sm:$0xff] %v10961_v50  ;;  %v10967_v12 = vpop.f32.mrb[26].mxu1  ;;  %6068 = vmatpush1.bf16.msra.mxu0 %v9618_v35  ;;  %v9619_v35 = vld [vmem:[%s14009_s3 + $0x68] sm:$0xff]   ;;  %v2818_v50 = vunpack.c.h.bf16 %v10964_v13 }
 0x12e   : > { %14056 = vst [vmem:[#allocation8_spill] sm:$0xff] %v10967_v12  ;;  %v10969_v6 = vpop.f32.mrb[27].mxu1  ;;  %6069 = vmatprep.subr.bf16.mxu0 %v10615_v32 }
 0x12f   : > { %14057 = vst [vmem:[#allocation9_spill] sm:$0xff] %v10969_v6  ;;  %v9830_v6 = vld [vmem:[%s9955_s6 + $0x68] sm:$0xff]  }
 0x130   : > { %9230 = vperm.xlu0 %9042, %v9229_v62   ;;  %v1937_v12 = vunpack.c.l.bf16 %v9830_v6 }
 0x131   : > { %9235 = vperm.xlu1 %9053, %v9234_v16   ;;  %6070 = vmatpush1.bf16.msra.mxu0 %v9619_v35  ;;  %v9832_v35 = vld [vmem:[%s9955_s6 + $0x70] sm:$0xff]  }
 0x132   : > { %v10971_v26 = vpop.f32.mrb[32].mxu0  ;;  %6071 = vmatprep.subr.bf16.mxu0 %v10615_v32 }
 0x133   : > { %v10973_v44 = vpop.f32.mrb[33].mxu0 }
 0x134   : > { %9240 = vperm.xlu0 %9042, %v9239_v33   ;;  %v10975_v53 = vpop.f32.mrb[34].mxu0  ;;  %v10979_v54 = vpop.f32.mrb[28].mxu1 }
 0x135   : > { %v10977_v48 = vpop.f32.mrb[35].mxu0  ;;  %14058 = vst [vmem:[#allocation10_spill] sm:$0xff] %v10979_v54  ;;  %9245 = vperm.xlu1 %9053, %v9244_v45   ;;  %v10981_v57 = vpop.f32.mrb[29].mxu1  ;;  %v1936_v54 = vunpack.c.h.bf16 %v10958_v0  ;;  %v9620_v0 = vld [vmem:[%s14009_s3 + $0x70] sm:$0xff]  }
 0x136   : > { %14059 = vst [vmem:[#allocation11_spill] sm:$0xff] %v10981_v57  ;;  %v10983_v39 = vpop.f32.mrb[30].mxu1  ;;  %v11041_v57 = vadd.f32 %v10628_v40, %v10801_v55  ;;  %v11056_v55 = vadd.f32 %v10628_v40, %v10816_v56  ;;  %v1938_v56 = vunpack.c.h.bf16 %v9830_v6  ;;  %6072 = vmatpush1.bf16.msra.mxu0 %v9620_v0 }
 0x137   : > { %14060 = vst [vmem:[#allocation12_spill] sm:$0xff] %v10983_v39  ;;  %v10985_v18 = vpop.f32.mrb[31].mxu1  ;;  %v11037_v39 = vadd.f32 %v10788_v46, %v10628_v40  ;;  %v11052_v46 = vadd.f32 %v10810_v10, %v10628_v40  ;;  %v9831_v10 = vld [vmem:[%s9955_s6 + $0x6c] sm:$0xff]   ;;  %6073 = vmatprep.subr.bf16.mxu0 %v10615_v32 }
 0x138   : > { %9250 = vperm.xlu0 %9042, %v9249_v15   ;;  %14061 = vst [vmem:[#allocation13_spill] sm:$0xff] %v10985_v18  ;;  %v11033_v18 = vadd.f32 %v10767_v38, %v10628_v40  ;;  %14067 = vst [vmem:[#allocation19_spill] sm:$0xff] %v11041_v57  ;;  %v11062_v38 = vpack.i.bf16 %v1937_v12, %v1936_v54  ;;  %v1940_v12 = vunpack.c.h.bf16 %v9832_v35  ;;  %v9834_v54 = vld [vmem:[%s9955_s6 + $0x78] sm:$0xff]   ;;  %v2822_v57 = vunpack.c.h.bf16 %v9833_v43 }
 0x139   : > { %14066 = vst [vmem:[#allocation18_spill] sm:$0xff] %v11037_v39  ;;  %v2820_v39 = vunpack.c.h.bf16 %v9831_v10  ;;  %v1941_v13 = vunpack.c.l.bf16 %v9834_v54 }
 0x13a   : > { %v10987_v34 = vpop.f32.mrb[36].mxu0  ;;  %14068 = vst [vmem:[#allocation20_spill] sm:$0xff] %v11062_v38  ;;  %v11076_v38 = vld [vmem:[%s9955_s6 + $0x7c] sm:$0xff]  }
 0x13b   : > { %v10989_v9 = vpop.f32.mrb[37].mxu0  ;;  %v2823_v28 = vunpack.c.l.bf16 %v11076_v38 }
 0x13c   : > { %v10991_v49 = vpop.f32.mrb[38].mxu0  ;;  %v10995_v24 = vpop.f32.mrb[32].mxu1 }
 0x13d   : > { %v10993_v63 = vpop.f32.mrb[39].mxu0  ;;  %v10997_v42 = vpop.f32.mrb[33].mxu1 }
 0x13e   : > { %v10999_v11 = vpop.f32.mrb[34].mxu1 }
 0x13f   : > { %v11001_v20 = vpop.f32.mrb[35].mxu1 }
 0x142   : > { %v11003_v62 = vpop.f32.mrb[40].mxu0 }
 0x143   : > { %v11005_v41 = vpop.f32.mrb[41].mxu0 }
 0x144   : > { %v11007_v25 = vpop.f32.mrb[42].mxu0  ;;  %v11011_v16 = vpop.f32.mrb[36].mxu1 }
 0x145   : > { %v11009_v14 = vpop.f32.mrb[43].mxu0  ;;  %v11013_v1 = vpop.f32.mrb[37].mxu1 }
 0x146   : > { %v11015_v59 = vpop.f32.mrb[38].mxu1 }
 0x147   : > { %14062 = vst [vmem:[#allocation14_spill] sm:$0xff] %v11015_v59  ;;  %v11017_v33 = vpop.f32.mrb[39].mxu1  ;;  %v1939_v59 = vunpack.c.l.bf16 %v9832_v35  ;;  %v11095_v35 = vadd.f32 %v10628_v40, %v10908_v37  ;;  %v11114_v37 = vadd.f32 %v11072_v52, %v10912_v36  ;;  %v11155_v36 = vadd.f32 %v11072_v52, %v10940_v31 }
 0x148   : > { %14063 = vst [vmem:[#allocation15_spill] sm:$0xff] %v11017_v33  ;;  %v2819_v33 = vunpack.c.l.bf16 %v9831_v10  ;;  %v11083_v10 = vadd.f32 %v10888_v17, %v10628_v40  ;;  %v11101_v17 = vadd.f32 %v11072_v52, %v10904_v23  ;;  %v11119_v23 = vpack.i.bf16 %v1941_v13, %v1940_v12 }
 0x149   : > { %14072 = vst [vmem:[#allocation24_spill] sm:$0xff] %v11114_v37  ;;  %14076 = vst [vmem:[#allocation28_spill] sm:$0xff] %v11155_v36  ;;  %v11159_v12 = vadd.f32 %v10628_v40, %v10947_v8  ;;  %v11169_v31 = vadd.f32 %v10951_v61, %v10628_v40  ;;  %v11173_v8 = vadd.f32 %v10628_v40, %v10953_v2 }
 0x14a   : > { %v11019_v3 = vpop.f32.mrb[44].mxu0  ;;  %v11097_v6 = vpack.i.bf16 %v2819_v33, %v2818_v50  ;;  %14070 = vst [vmem:[#allocation22_spill] sm:$0xff] %v11101_v17  ;;  %v9622_v50 = vld [vmem:[%s14009_s3 + $0x78] sm:$0xff]   ;;  %v11121_v33 = vpack.i.bf16 %v2823_v28, %v2822_v57  ;;  %v9624_v28 = vld [vmem:[%s14009_s3 + $0x80] sm:$0xff]   ;;  %v2824_v57 = vunpack.c.h.bf16 %v11076_v38 }
 0x14b   : > { %v11021_v47 = vpop.f32.mrb[45].mxu0  ;;  %6074 = vmatpush1.bf16.msra.mxu0 %v9622_v50  ;;  %v9838_v50 = vld [vmem:[%s9955_s6 + $0x84] sm:$0xff]  }
 0x14c   : > { %v11023_v45 = vpop.f32.mrb[46].mxu0  ;;  %6075 = vmatprep.subr.bf16.mxu0 %v10615_v32  ;;  %v11161_v32 = vld [vmem:[#allocation2 + $0x48] sm:$0xff]  ;;  %v3724_v61 = vunpack.c.h.bf16 %v9838_v50 }
 0x14d   : > { %14064 = vst [vmem:[#allocation16_spill] sm:$0xff] %v11023_v45  ;;  %v11025_v15 = vpop.f32.mrb[47].mxu0  ;;  %v2821_v45 = vunpack.c.l.bf16 %v9833_v43  ;;  %v11091_v43 = vadd.f32 %v10902_v4, %v10628_v40  ;;  %v11110_v4 = vadd.f32 %v10910_v5, %v11072_v52  ;;  %v11129_v5 = vadd.f32 %v11072_v52, %v10931_v27 }
 0x14e   : > { %14065 = vst [vmem:[#allocation17_spill] sm:$0xff] %v11025_v15  ;;  %v11087_v15 = vadd.f32 %v10899_v30, %v11072_v52  ;;  %v11104_v30 = vpack.i.bf16 %v1939_v59, %v1938_v56  ;;  %v9836_v56 = vld [vmem:[%s9955_s6 + $0x80] sm:$0xf]  ;;  %v11141_v27 = vadd.f32 %v10938_v51, %v10628_v40 }
 0x14f   : > { %v11106_v0 = vpack.i.bf16 %v2821_v45, %v2820_v39  ;;  %14071 = vst [vmem:[#allocation23_spill] sm:$0xff] %v11110_v4  ;;  %v11125_v39 = vadd.f32 %v10920_v22, %v11072_v52  ;;  %14074 = vst [vmem:[#allocation26_spill] sm:$0xff] %v11129_v5  ;;  %v1942_v45 = vunpack.c.h.bf16 %v9834_v54  ;;  %v1943_v29 = vunpack.c.l.bf16 %v9836_v56  ;;  %v11145_v54 = vld [vmem:[#allocation2 + $0x38] sm:$0xff]  ;;  %v9837_v22 = vld [vmem:[%s9955_s6 + $0x84] sm:$0x1]  ;;  %6076 = vmatpush1.bf16.msra.mxu0 %v9624_v28 }
 0x150   : > { %14069 = vst [vmem:[#allocation21_spill] sm:$0xff] %v11087_v15  ;;  %v11151_v56 = vadd.f32 %v10936_v58, %v11072_v52  ;;  %v2825_v13 = vunpack.c.l.bf16 %v9837_v22  ;;  %v11182_v5 = vld [vmem:[#allocation2] sm:$0xff]  ;;  %v9626_v22 = vld [vmem:[%s14009_s3 + $0x88] sm:$0xff]   ;;  %v9841_v15 = vld [vmem:[%s9955_s6 + $0x94] sm:$0xff]  }
 0x151   : > { %14073 = vst [vmem:[#allocation25_spill] sm:$0xff] %v11125_v39  ;;  %v11175_v59 = vpack.i.bf16 %v1943_v29, %v1942_v45  ;;  %v3723_v39 = vunpack.c.l.bf16 %v9838_v50  ;;  %6077 = vmatprep.subr.bf16.mxu0 %v11182_v5  ;;  %v9840_v45 = vld [vmem:[%s9955_s6 + $0x8c] sm:$0xff]   ;;  %v11194_v50 = vadd.f32 %v10971_v26, %v11072_v52  ;;  %v11202_v29 = vadd.f32 %v10975_v53, %v11072_v52 }
 0x152   : > { %14075 = vst [vmem:[#allocation27_spill] sm:$0xff] %v11151_v56  ;;  %v3725_v28 = vunpack.c.l.bf16 %v9840_v45  ;;  %v3726_v2 = vunpack.c.h.bf16 %v9840_v45  ;;  %v11207_v36 = vpack.i.bf16 %v2825_v13, %v2824_v57  ;;  %v14079_v26 = vrot.slane %v10929_v7, 4  ;;  %v9628_v45 = vld [vmem:[%s14009_s3 + $0x90] sm:$0xff]  }
 0x153   : > { %14077 = vst [vmem:[#allocation29_spill] sm:$0xff] %v11175_v59  ;;  %6078 = vmatpush1.bf16.msra.mxu0 %v9626_v22  ;;  %v11212_v4 = vpack.i.bf16 %v3724_v61, %v3723_v39  ;;  %v3727_v53 = vunpack.c.l.bf16 %v9841_v15  ;;  %v3728_v37 = vunpack.c.h.bf16 %v9841_v15  ;;  %v11221_v57 = vadd.f32 %v11072_v52, %v10977_v48  ;;  %v9842_v39 = vld [vmem:[%s9955_s6 + $0x9c] sm:$0xff]  }
 0x154   : > { %14078 = vst [vmem:[#allocation30_spill] sm:$0xff] %v11207_v36  ;;  %6079 = vmatprep.subr.bf16.mxu0 %v11182_v5  ;;  %v14081_v13 = vrot.slane %v11161_v32, 4  ;;  %v3729_v61 = vunpack.c.l.bf16 %v9842_v39 }
 0x155   : > { %14080 = vst [vmem:[#allocation31_spill] sm:$0xff] %v11212_v4  ;;  %v11232_v4 = vpack.i.bf16 %v3726_v2, %v3725_v28  ;;  %v11246_v2 = vadd.f32 %v11072_v52, %v10989_v9  ;;  %v11255_v28 = vpack.i.bf16 %v3728_v37, %v3727_v53  ;;  %v9630_v9 = vld [vmem:[%s14009_s3 + $0x98] sm:$0xff]   ;;  %v11270_v37 = vadd.f32 %v11072_v52, %v10993_v63 }
 0x156   : > { %v9845_v53 = vld [vmem:[%s9955_s6 + $0xb4] sm:$0xff]  }
 0x157   : > { %6080 = vmatpush1.bf16.msra.mxu0 %v9628_v45  ;;  %v3735_v45 = vunpack.c.l.bf16 %v9845_v53 }
 0x158   : > { %6081 = vmatprep.subr.bf16.mxu0 %v11182_v5 }
 0x15b   : > { %6082 = vmatpush1.bf16.msra.mxu0 %v9630_v9  ;;  %v11318_v9 = vadd.f32 %v11072_v52, %v11005_v41  ;;  %v9608_v41 = vld [vmem:[%s14009_s3 + $0xd0] sm:$0xff]  }
 0x15c   : > { %6083 = vmatprep.subr.bf16.mxu0 %v11182_v5 }
 0x16b   : > { %v1100_v51 = vpop.permute.xlu1 %1099 }
 0x16c   : > { %1127 = vst.msk [vmem:[#allocation2 + $0x10] sm:$0xf0] %vm1126_vm10, %v1100_v51  ;;  %v5132_v51 = vrot.slane %v11145_v54, 4 }
 0x16d   : > { %v1102_v58 = vpop.permute.xlu0 %1101 }
 0x16e   : > { %1129 = vst.msk [vmem:[#allocation2 + $0x20] sm:$0xff] %vm1128_vm11, %v1102_v58  ;;  %v11198_v58 = vadd.f32 %v11072_v52, %v10973_v44  ;;  %v5133_v44 = vsel %vm706_vm8, %v14079_v26, %v5132_v51  ;;  %v11226_v22 = vsel %vm706_vm8, %v5132_v51, %v14081_v13  ;;  %v3730_v26 = vunpack.c.h.bf16 %v9842_v39  ;;  %v9843_v13 = vld [vmem:[%s9955_s6 + $0xa4] sm:$0xff]  }
 0x16f   : > { %v11238_v51 = vadd.f32 %v10987_v34, %v11072_v52  ;;  %v3731_v39 = vunpack.c.l.bf16 %v9843_v13  ;;  %v3732_v59 = vunpack.c.h.bf16 %v9843_v13  ;;  %v9606_v34 = vld [vmem:[%s14009_s3 + $0xc0] sm:$0xff]   ;;  %v9844_v13 = vld [vmem:[%s9955_s6 + $0xac] sm:$0xff]  }
 0x170   : > { %v3733_v40 = vunpack.c.l.bf16 %v9844_v13  ;;  %v3734_v38 = vunpack.c.h.bf16 %v9844_v13  ;;  %v11276_v13 = vadd.f32 %v10995_v24, %v11072_v52  ;;  %v11292_v24 = vadd.f32 %v10999_v11, %v11072_v52 }
 0x173   : > { %v5037_v15 = vld [vmem:[#allocation2 + $0x10] sm:$0xff] }
 0x174   : > { %v5075_v56 = vld [vmem:[#allocation2 + $0x10] sm:$0xf0]  ;;  %5496 = vmatmul.mubr.bf16.gmra.mrb[96].mxu0 %v5037_v15  ;;  %v11258_v15 = vpack.i.bf16 %v3730_v26, %v3729_v61  ;;  %v3736_v61 = vunpack.c.h.bf16 %v9845_v53  ;;  %v9607_v53 = vld [vmem:[%s14009_s3 + $0xc8] sm:$0xff]   ;;  %v9846_v26 = vld [vmem:[%s9955_s6 + $0xbc] sm:$0xff]  }
 0x175   : > { %v11234_v48 = vld [vmem:[#allocation2 + $0x20] sm:$0xff]  ;;  %v5124_v36 = vrot.slane %v5075_v56, 4  ;;  %8329 = vmatprep.mubr.msk.bf16.mxu0 %vm227_vm3, %v10929_v7  ;;  %v11250_v56 = vadd.f32 %v10991_v49, %v11072_v52 }
 0x176   : > { %v14025_v17 = vrot.slane %v11234_v48, 4  ;;  %14082 = vst [vmem:[#allocation32_spill] sm:$0xff] %v11258_v15  ;;  %v9632_v7 = vld [vmem:[%s14009_s3 + $0xa0] sm:$0xff]   ;;  %v11310_v15 = vpack.i.bf16 %v3734_v38, %v3733_v40 }
 0x177   : > { %6084 = vmatpush1.bf16.msra.mxu0 %v9632_v7 }
 0x178   : > { %v5126_v49 = vsel %vm706_vm8, %v5124_v36, %v14025_v17  ;;  %v11280_v36 = vadd.f32 %v11072_v52, %v10997_v42  ;;  %v11282_v17 = vpack.i.bf16 %v3732_v59, %v3731_v39  ;;  %v3737_v42 = vunpack.c.l.bf16 %v9846_v26  ;;  %v9847_v39 = vld [vmem:[%s9955_s6 + $0x80] sm:$0x8]  ;;  %14084 = vst [vmem:[#allocation34_spill] sm:$0xff] %v11310_v15  ;;  %6085 = vmatprep.subr.bf16.mxu0 %v11182_v5 }
 0x179   : > { %5295 = vmatmul.mubr.bf16.vlgmr.msra.gmra.mrb[88].mxu1 %v5126_v49  ;;  %v11298_v59 = vadd.f32 %v11072_v52, %v11001_v20  ;;  %v3308_v49 = vunpack.c.l.bf16 %v9847_v39  ;;  %v11312_v20 = vpack.i.bf16 %v3736_v61, %v3735_v45  ;;  %v11322_v39 = vadd.f32 %v11007_v25, %v11072_v52 }
 0x17a   : > { %14083 = vst [vmem:[#allocation33_spill] sm:$0xff] %v11282_v17  ;;  %8308 = vmatprep.mubr.msk.bf16.mxu1 %vm227_vm3, %v5133_v44  ;;  %5690 = vmatpush1.bf16.msra.mxu1 %v9606_v34  ;;  %v3738_v44 = vunpack.c.h.bf16 %v9846_v26  ;;  %v9848_v34 = vld [vmem:[%s9955_s6 + $0x84] sm:$0xf]  ;;  %v11308_v17 = vadd.f32 %v11003_v62, %v11072_v52  ;;  %v14089_v15 = vmax.f32 %v11194_v50, 0.0  ;;  %v11392_v50 = vadd.f32 %v11019_v3, %v11072_v52 }
 0x17b   : > { %5691 = vmatprep.subr.bf16.mxu1 %v11182_v5  ;;  %v3309_v63 = vunpack.c.l.bf16 %v9848_v34  ;;  %14085 = vst [vmem:[#allocation35_spill] sm:$0xff] %v11312_v20  ;;  %v11330_v34 = vadd.f32 %v11072_v52, %v11009_v14  ;;  %v9634_v14 = vld [vmem:[%s14009_s3 + $0xa8] sm:$0xff]   ;;  %v14091_v3 = vmax.f32 %v11033_v18, 0.0 }
 0x17c   : > { %v9141_v26 = vpop.permute.xlu1 %9140  ;;  %5504 = vmatmul.mubr.bf16.gmra.mrb[100].mxu0 %v11234_v48  ;;  %v11338_v38 = vpack.i.bf16 %v3738_v44, %v3737_v42  ;;  %v14087_v42 = vmax.f32 %v11221_v57, 0.0 }
 0x17d   : > { %v9143_v40 = vunpack.i.h.bf16 %v9141_v26  ;;  %v9142_v45 = vunpack.i.l.bf16 %v9141_v26  ;;  %8330 = vmatprep.mubr.msk.bf16.mxu0 %vm227_vm3, %v11145_v54  ;;  %v11340_v11 = vpack.i.bf16 %v3309_v63, %v3308_v49  ;;  %6086 = vmatpush1.bf16.msra.mxu0 %v9634_v14 }
 0x17e   : > { %v9146_v61 = vpop.permute.xlu0 %9145  ;;  %5692 = vmatpush1.bf16.msra.mxu1 %v9607_v53  ;;  %v14086_v53 = vmax.f32 %v11198_v58, 0.0  ;;  %6087 = vmatprep.subr.bf16.mxu0 %v11182_v5 }
 0x17f   : > { %v9147_v62 = vunpack.i.l.bf16 %v9146_v61  ;;  %5693 = vmatprep.subr.bf16.mxu1 %v11182_v5  ;;  %v11345_v54 = vrot.slane %v9142_v45, 1  ;;  %v9148_v25 = vunpack.i.h.bf16 %v9146_v61  ;;  %v11357_v45 = vadd.f32 %v11011_v16, %v11072_v52 }
 0x180   : > { %v2438_v20 = vmul.f32 %v9143_v40, %v14086_v53  ;;  %v9151_v63 = vpop.permute.xlu1 %9150 }
 0x181   : > { %v2439_v44 = vmul.f32 %v9147_v62, %v14087_v42  ;;  %v1533_v58 = vsel %vm1512_vm9, %v10895_v60, %v11345_v54  ;;  %v9153_v40 = vunpack.i.h.bf16 %v9151_v63  ;;  %v9152_v61 = vunpack.i.l.bf16 %v9151_v63  ;;  %v9609_v62 = vld [vmem:[%s14009_s3 + $0xd8] sm:$0xff]   ;;  %v11375_v63 = vld [vmem:[%s9955_s6 + $0x88] sm:$0xff]  }
 0x182   : > { %v1104_v53 = vpop.permute.xlu0 %1103  ;;  %5694 = vmatpush1.bf16.msra.mxu1 %v9608_v41  ;;  %v14088_v42 = vmax.f32 %v11095_v35, 0.0  ;;  %v11372_v60 = vadd.f32 %v11072_v52, %v11013_v1  ;;  %v2440_v49 = vmul.f32 %v9148_v25, %v14089_v15  ;;  %v14090_v35 = vmax.f32 %v11202_v29, 0.0  ;;  %v9636_v1 = vld [vmem:[%s14009_s3 + $0xb0] sm:$0xff]  }
 0x183   : > { %1130 = vst.msk [vmem:[#allocation2 + $0x30] sm:$0xff] %vm1128_vm11, %v1104_v53  ;;  %v2454_v16 = vpack.c.bf16 %v2439_v44, %v2438_v20  ;;  %5695 = vmatprep.subr.bf16.mxu1 %v11182_v5  ;;  %v11380_v57 = vrot.slane %v9153_v40, 7  ;;  %v11396_v29 = vadd.f32 %v11072_v52, %v11021_v47  ;;  %6088 = vmatpush1.bf16.msra.mxu0 %v9636_v1  ;;  %v14096_v41 = vmax.f32 %v11270_v37, 0.0 }
 0x184   : > { %v1571_v26 = vmul.f32 %v1533_v58, %v14088_v42  ;;  %v2441_v58 = vmul.f32 %v9152_v61, %v14090_v35  ;;  %v9156_v53 = vpop.permute.xlu1 %9155  ;;  %6089 = vmatprep.subr.bf16.mxu0 %v11182_v5 }
 0x185   : > { %v2470_v14 = vrot.slane %v2454_v16, 4  ;;  %v649_v15 = vsel %vm624_vm7, %v10677_v21, %v11380_v57  ;;  %v9158_v40 = vunpack.i.h.bf16 %v9156_v53  ;;  %v9157_v61 = vunpack.i.l.bf16 %v9156_v53 }
 0x186   : > { %v1582_v44 = vpack.c.bf16 %v1571_v26, %v10926_v19  ;;  %v2455_v25 = vpack.c.bf16 %v2441_v58, %v2440_v49  ;;  %5696 = vmatpush1.bf16.msra.mxu1 %v9609_v62  ;;  %v9610_v19 = vld [vmem:[%s14009_s3 + $0xe0] sm:$0xff]   ;;  %v685_v16 = vmul.f32 %v649_v15, %v14091_v3  ;;  %v14092_v62 = vld [vmem:[#allocation17_spill] sm:$0xff] }
 0x187   : > { %v9161_v42 = vpop.permute.xlu0 %9160  ;;  %2485 = vrot.lane.b32.xlu1 %v2470_v14, %s9898_s9  ;;  %5697 = vmatprep.subr.bf16.mxu1 %v11182_v5  ;;  %v11410_v21 = vrot.slane %v9158_v40, 1  ;;  %v1534_v49 = vrot.slane %v9157_v61, 1  ;;  %v11414_v53 = vadd.f32 %v11072_v52, %v14092_v62  ;;  %v14094_v15 = vld [vmem:[#allocation3_spill] sm:$0xff] }
 0x188   : > { %v11404_v26 = vrot.slane %v1582_v44, 4  ;;  %v9163_v47 = vunpack.i.h.bf16 %v9161_v42  ;;  %v9162_v35 = vunpack.i.l.bf16 %v9161_v42  ;;  %v2471_v58 = vrot.slane %v2455_v25, 4  ;;  %v14093_v44 = vld [vmem:[#allocation5_spill] sm:$0xff]  ;;  %v1106_v7 = vpop.permute.xlu1 %1105  ;;  %v9638_v25 = vld [vmem:[%s14009_s3 + $0xb8] sm:$0xff]  }
 0x189   : > { %v695_v3 = vpack.c.bf16 %v685_v16, %v14094_v15  ;;  %v14095_v42 = vmax.f32 %v11246_v2, 0.0  ;;  %v1535_v1 = vsel %vm1512_vm9, %v11345_v54, %v1534_v49  ;;  %v1537_v61 = vsel %vm1512_vm9, %v1534_v49, %v11410_v21  ;;  %1131 = vst.msk [vmem:[#allocation2 + $0x40] sm:$0xff] %vm1128_vm11, %v1106_v7  ;;  %v14097_v16 = vld [vmem:[#allocation16_spill] sm:$0xff]  ;;  %6090 = vmatpush1.bf16.msra.mxu0 %v9638_v25 }
 0x18a   : > { %v1602_v18 = vsel %vm706_vm8, %v14093_v44, %v11404_v26  ;;  %v2443_v40 = vmul.f32 %v9163_v47, %v14096_v41  ;;  %v2472_v37 = vsel %vm706_vm8, %v2470_v14, %v2471_v58  ;;  %v11435_v41 = vld [vmem:[#allocation2 + $0x30] sm:$0xff]  ;;  %v11439_v47 = vadd.f32 %v14097_v16, %v11072_v52  ;;  %5698 = vmatpush1.bf16.msra.mxu1 %v9610_v19  ;;  %v14100_v14 = vld [vmem:[#allocation20_spill] sm:$0xff] }
 0x18b   : > { %v2442_v20 = vmul.f32 %v9162_v35, %v14095_v42  ;;  %1622 = vst.msk [vmem:[#allocation2 + $0x58] sm:$0xff] %vm227_vm3, %v1602_v18  ;;  %v9166_v2 = vpop.permute.xlu0 %9165  ;;  %v9611_v35 = vld [vmem:[%s14009_s3 + $0xe8] sm:$0xff]   ;;  %v14098_v54 = vmax.f32 %v11083_v10, 0.0  ;;  %v14099_v49 = vmax.f32 %v11091_v43, 0.0  ;;  %9255 = vperm.xlu1 %9053, %v14100_v14   ;;  %2487 = vrot.lane.b32.xlu0 %v2472_v37, %s9898_s9  ;;  %v5130_v42 = vrot.slane %v11435_v41, 4 }
 0x18c   : > { %v9168_v18 = vunpack.i.h.bf16 %v9166_v2  ;;  %v9167_v15 = vunpack.i.l.bf16 %v9166_v2  ;;  %5512 = vmatmul.mubr.bf16.gmra.mrb[104].mxu0 %v11435_v41  ;;  %v2338_v19 = vmax.f32 %v11396_v29, 0.0  ;;  %v2339_v16 = vmax.f32 %v11414_v53, 0.0  ;;  %5699 = vmatprep.subr.bf16.mxu1 %v11182_v5 }
 0x18d   : > { %v1572_v62 = vmul.f32 %v1535_v1, %v14098_v54  ;;  %v1573_v7 = vmul.f32 %v1537_v61, %v14099_v49  ;;  %v2456_v44 = vpack.c.bf16 %v2443_v40, %v2442_v20  ;;  %8331 = vmatprep.mubr.msk.bf16.mxu0 %vm227_vm3, %v11161_v32  ;;  %v9171_v20 = vpop.permute.xlu1 %9170  ;;  %v11461_v1 = vrot.slane %v695_v3, 4  ;;  %6493 = vmatprep.subr.bf16.mxu0 %v11182_v5 }
 0x18e   : > { %v11455_v43 = vrot.slane %v9168_v18, 7  ;;  %v650_v61 = vrot.slane %v9167_v15, 7  ;;  %v9173_v2 = vunpack.i.h.bf16 %v9171_v20  ;;  %v9172_v37 = vunpack.i.l.bf16 %v9171_v20  ;;  %5700 = vmatpush1.bf16.msra.mxu1 %v9611_v35 }
 0x18f   : > { %v1583_v10 = vpack.c.bf16 %v1573_v7, %v1572_v62  ;;  %v11459_v40 = vrot.slane %v2456_v44, 4  ;;  %v9176_v54 = vpop.permute.xlu0 %9175  ;;  %v14101_v49 = vrot.slane %v11234_v48, 4  ;;  %v9612_v7 = vld [vmem:[%s14009_s3 + $0xf0] sm:$0xff]   ;;  %9260 = vperm.xlu0 %9042, %v11097_v6   ;;  %5701 = vmatprep.subr.bf16.mxu1 %v11182_v5  ;;  %v2340_v29 = vmax.f32 %v11392_v50, 0.0 }
 0x190   : > { %v9178_v25 = vunpack.i.h.bf16 %v9176_v54  ;;  %v9177_v44 = vunpack.i.l.bf16 %v9176_v54  ;;  %v651_v48 = vsel %vm624_vm7, %v11380_v57, %v650_v61  ;;  %v653_v35 = vsel %vm624_vm7, %v650_v61, %v11455_v43  ;;  %v14121_v50 = vld [vmem:[#allocation29_spill] sm:$0xff] }
 0x191   : > { %v5131_v62 = vsel %vm706_vm8, %v14101_v49, %v5130_v42  ;;  %v11472_v3 = vrot.slane %v1583_v10, 4  ;;  %v2474_v18 = vsel %vm706_vm8, %v2471_v58, %v11459_v40  ;;  %v11481_v14 = vrot.slane %v9173_v2, 1  ;;  %v14102_v10 = vld [vmem:[#allocation19_spill] sm:$0xff]  ;;  %v1108_v49 = vpop.permute.xlu1 %1107 }
 0x192   : > { %5303 = vmatmul.mubr.bf16.gmra.mrb[92].mxu1 %v5131_v62  ;;  %v1538_v15 = vrot.slane %v9172_v37, 1  ;;  %2489 = vrot.lane.b32.xlu1 %v2474_v18, %s9898_s9  ;;  %v14103_v58 = vmax.f32 %v14102_v10, 0.0  ;;  %v14104_v57 = vmax.f32 %v11056_v55, 0.0  ;;  %v14105_v61 = vmax.f32 %v11238_v51, 0.0  ;;  %v11495_v37 = vld [vmem:[#allocation2 + $0x40] sm:$0xff]  ;;  %v11497_v62 = vld [vmem:[#allocation2 + $0x58] sm:$0xff] }
 0x193   : > { %8309 = vmatprep.mubr.msk.bf16.mxu1 %vm227_vm3, %v11226_v22  ;;  %v1604_v6 = vsel %vm706_vm8, %v11404_v26, %v11472_v3  ;;  %v14106_v55 = vmax.f32 %v11250_v56, 0.0  ;;  %1132 = vst.msk [vmem:[#allocation2 + $0x50] sm:$0xff] %vm1128_vm11, %v1108_v49  ;;  %v9181_v51 = vpop.permute.xlu0 %9180  ;;  %5702 = vmatpush1.bf16.msra.mxu1 %v9612_v7 }
 0x194   : > { %v686_v20 = vmul.f32 %v651_v48, %v14103_v58  ;;  %v687_v54 = vmul.f32 %v653_v35, %v14104_v57  ;;  %v2444_v2 = vmul.f32 %v9177_v44, %v14105_v61  ;;  %1623 = vst.msk [vmem:[#allocation2 + $0x68] sm:$0xff] %vm227_vm3, %v1604_v6  ;;  %v1539_v22 = vsel %vm1512_vm9, %v11410_v21, %v1538_v15  ;;  %v9613_v48 = vld [vmem:[%s14009_s3 + $0xf8] sm:$0xff]   ;;  %v11512_v35 = vpop.f32.mrb[40].mxu1 }
 0x195   : > { %v1541_v26 = vsel %vm1512_vm9, %v1538_v15, %v11481_v14  ;;  %v2445_v18 = vmul.f32 %v9178_v25, %v14106_v55  ;;  %v5134_v44 = vrot.slane %v11495_v37, 4  ;;  %v14107_v21 = vmax.f32 %v11159_v12, 0.0  ;;  %9265 = vperm.xlu0 %9042, %v11104_v30   ;;  %5703 = vmatprep.subr.bf16.mxu1 %v11182_v5  ;;  %v11520_v58 = vpop.f32.mrb[41].mxu1  ;;  %v9186_v61 = vpop.permute.xlu1 %9185 }
 0x196   : > { %v696_v6 = vpack.c.bf16 %v687_v54, %v686_v20  ;;  %v14108_v15 = vmax.f32 %v11173_v8, 0.0  ;;  %v9183_v25 = vunpack.i.h.bf16 %v9181_v51  ;;  %v9182_v57 = vunpack.i.l.bf16 %v9181_v51  ;;  %5520 = vmatmul.mubr.bf16.gmra.mrb[108].mxu0 %v11495_v37  ;;  %9270 = vperm.xlu1 %9053, %v11106_v0   ;;  %v11530_v8 = vpop.f32.mrb[42].mxu1 }
 0x197   : > { %v1574_v10 = vmul.f32 %v1539_v22, %v14107_v21  ;;  %v2457_v7 = vpack.c.bf16 %v2445_v18, %v2444_v2  ;;  %v5140_v20 = vrot.slane %v11497_v62, 4  ;;  %v5135_v12 = vsel %vm706_vm8, %v5130_v42, %v5134_v44  ;;  %8332 = vmatprep.mubr.msk.bf16.mxu0 %vm227_vm3, %v11497_v62  ;;  %v14109_v2 = vld [vmem:[#allocation4_spill] sm:$0xff]  ;;  %v11539_v22 = vpop.f32.mrb[43].mxu1  ;;  %v9191_v42 = vpop.permute.xlu0 %9190  ;;  %5704 = vmatpush1.bf16.msra.mxu1 %v9613_v48 }
 0x198   : > { %v1575_v56 = vmul.f32 %v1541_v26, %v14108_v15  ;;  %v656_v54 = vrot.slane %v9183_v25, 7  ;;  %v717_v0 = vsel %vm706_vm8, %v14109_v2, %v11461_v1  ;;  %v11537_v49 = vrot.slane %v696_v6, 4  ;;  %v9614_v6 = vld [vmem:[%s14009_s3 + $0x100] sm:$0xff]   ;;  %5705 = vmatprep.subr.bf16.mxu1 %v11182_v5 }
 0x199   : > { %v654_v26 = vrot.slane %v9182_v57, 7  ;;  %v9188_v55 = vunpack.i.h.bf16 %v9186_v61  ;;  %v9187_v18 = vunpack.i.l.bf16 %v9186_v61  ;;  %v14110_v51 = vrot.slane %v11161_v32, 4  ;;  %736 = vst.msk [vmem:[#allocation2 + $0x60] sm:$0xff] %vm227_vm3, %v717_v0 }
 0x19a   : > { %v1584_v30 = vpack.c.bf16 %v1575_v56, %v1574_v10  ;;  %v9193_v15 = vunpack.i.h.bf16 %v9191_v42  ;;  %v9192_v56 = vunpack.i.l.bf16 %v9191_v42  ;;  %5311 = vmatmul.mubr.bf16.gmra.mrb[96].mxu1 %v5135_v12  ;;  %v2475_v25 = vrot.slane %v2457_v7, 4  ;;  %9275 = vperm.xlu1 %9053, %v11119_v23  }
 0x19b   : > { %v5141_v21 = vsel %vm706_vm8, %v14110_v51, %v5140_v20  ;;  %v655_v32 = vsel %vm624_vm7, %v11455_v43, %v654_v26  ;;  %v657_v57 = vsel %vm624_vm7, %v654_v26, %v656_v54  ;;  %v1544_v61 = vrot.slane %v9188_v55, 1  ;;  %v1110_v54 = vpop.permute.xlu1 %1109  ;;  %v11567_v26 = vld [vmem:[#allocation2 + $0x50] sm:$0xff]  ;;  %v11569_v55 = vld [vmem:[#allocation2 + $0x68] sm:$0xff]  ;;  %5706 = vmatpush1.bf16.msra.mxu1 %v9614_v6 }
 0x19c   : > { %v11550_v10 = vrot.slane %v1584_v30, 4  ;;  %v1542_v2 = vrot.slane %v9187_v18, 1  ;;  %8310 = vmatprep.mubr.msk.bf16.mxu1 %vm227_vm3, %v5141_v21  ;;  %v14111_v30 = vld [vmem:[#allocation18_spill] sm:$0xff]  ;;  %v14113_v0 = vmax.f32 %v11052_v46, 0.0  ;;  %v14114_v43 = vmax.f32 %v11318_v9, 0.0  ;;  %1133 = vst.msk [vmem:[#allocation2 + $0x60] sm:$0xff] %vm1128_vm11, %v1110_v54  ;;  %v9196_v9 = vpop.permute.xlu0 %9195  ;;  %5707 = vmatprep.subr.bf16.mxu1 %v11182_v5 }
 0x19d   : > { %v14112_v12 = vmax.f32 %v14111_v30, 0.0  ;;  %v14115_v18 = vmax.f32 %v11330_v34, 0.0  ;;  %v2476_v46 = vsel %vm706_vm8, %v11459_v40, %v2475_v25  ;;  %v9198_v34 = vunpack.i.h.bf16 %v9196_v9 }
 0x19e   : > { %v1606_v48 = vsel %vm706_vm8, %v11472_v3, %v11550_v10  ;;  %v689_v42 = vmul.f32 %v657_v57, %v14113_v0  ;;  %v2446_v51 = vmul.f32 %v9192_v56, %v14114_v43  ;;  %v1543_v23 = vsel %vm1512_vm9, %v11481_v14, %v1542_v2  ;;  %v9615_v56 = vld [vmem:[%s14009_s3 + $0x108] sm:$0xff]   ;;  %2491 = vrot.lane.b32.xlu0 %v2476_v46, %s9898_s9  ;;  %v14120_v46 = vld [vmem:[#allocation14_spill] sm:$0xff] }
 0x19f   : > { %v688_v7 = vmul.f32 %v655_v32, %v14112_v12  ;;  %1624 = vst.msk [vmem:[#allocation2 + $0x78] sm:$0xff] %vm227_vm3, %v1606_v48  ;;  %v1545_v3 = vsel %vm1512_vm9, %v1542_v2, %v1544_v61  ;;  %v2447_v21 = vmul.f32 %v9193_v15, %v14115_v18  ;;  %v14116_v57 = vmax.f32 %v11141_v27, 0.0  ;;  %5528 = vmatmul.mubr.bf16.gmra.mrb[112].mxu0 %v11567_v26 }
 0x1a0   : > { %v14117_v61 = vmax.f32 %v11169_v31, 0.0  ;;  %v9197_v15 = vunpack.i.l.bf16 %v9196_v9  ;;  %v5138_v6 = vrot.slane %v11567_v26, 4  ;;  %v5144_v48 = vrot.slane %v11569_v55, 4  ;;  %8333 = vmatprep.mubr.msk.bf16.mxu0 %vm227_vm3, %v11569_v55  ;;  %v1112_v31 = vpop.permute.xlu1 %1111  ;;  %5708 = vmatpush1.bf16.msra.mxu1 %v9615_v56 }
 0x1a1   : > { %v697_v32 = vpack.c.bf16 %v689_v42, %v688_v7  ;;  %v1576_v14 = vmul.f32 %v1543_v23, %v14116_v57  ;;  %v2458_v40 = vpack.c.bf16 %v2447_v21, %v2446_v51  ;;  %v14118_v27 = vmax.f32 %v11322_v39, 0.0  ;;  %v9201_v51 = vpop.permute.xlu0 %9200  ;;  %5709 = vmatprep.subr.bf16.mxu1 %v11182_v5 }
 0x1a2   : > { %v1577_v2 = vmul.f32 %v1545_v3, %v14117_v61  ;;  %v719_v7 = vsel %vm706_vm8, %v11461_v1, %v11537_v49  ;;  %v14119_v42 = vmax.f32 %v11308_v17, 0.0  ;;  %v5139_v39 = vsel %vm706_vm8, %v5134_v44, %v5138_v6  ;;  %v9616_v17 = vld [vmem:[%s14009_s3 + $0x110] sm:$0xff]   ;;  %9280 = vperm.xlu0 %9042, %v11121_v33  }
 0x1a3   : > { %v2449_v12 = vmul.f32 %v9198_v34, %v14118_v27  ;;  %v720_v0 = vrot.slane %v697_v32, 4  ;;  %737 = vst.msk [vmem:[#allocation2 + $0x70] sm:$0xff] %vm227_vm3, %v719_v7  ;;  %v5145_v54 = vsel %vm706_vm8, %v5140_v20, %v5144_v48  ;;  %v2477_v1 = vrot.slane %v2458_v40, 4  ;;  %5319 = vmatmul.mubr.bf16.gmra.mrb[100].mxu1 %v5139_v39  ;;  %v11637_v57 = vld [vmem:[#allocation2 + $0x60] sm:$0xff]  ;;  %v11642_v61 = vld [vmem:[%s9955_s6 + $0x90] sm:$0xff]   ;;  %v9617_v40 = vld [vmem:[%s14009_s3 + $0x118] sm:$0xff]  }
 0x1a4   : > { %v1585_v30 = vpack.c.bf16 %v1577_v2, %v1576_v14  ;;  %v2448_v43 = vmul.f32 %v9197_v15, %v14119_v42  ;;  %1134 = vst.msk [vmem:[#allocation2 + $0x70] sm:$0xff] %vm1128_vm11, %v1112_v31  ;;  %v9203_v3 = vunpack.i.h.bf16 %v9201_v51  ;;  %v9202_v18 = vunpack.i.l.bf16 %v9201_v51  ;;  %8311 = vmatprep.mubr.msk.bf16.mxu1 %vm227_vm3, %v5145_v54  ;;  %v1114_v32 = vpop.permute.xlu1 %1113  ;;  %5710 = vmatpush1.bf16.msra.mxu1 %v9616_v17  ;;  %v11655_v15 = vpop.f32.mrb[44].mxu1  ;;  %v11676_v39 = vld [vmem:[%s9955_s6 + $0x84] sm:$0xff]  }
 0x1a5   : > { %v721_v44 = vsel %vm706_vm8, %v11537_v49, %v720_v0  ;;  %739 = vst.msk [vmem:[#allocation2 + $0x90] sm:$0xf] %vm230_vm5, %v720_v0  ;;  %v2478_v21 = vsel %vm706_vm8, %v2475_v25, %v2477_v1  ;;  %v11626_v9 = vadd.f32 %v14120_v46, %v11072_v52  ;;  %v3312_v2 = vunpack.c.l.bf16 %v11642_v61  ;;  %v9206_v53 = vpop.permute.xlu0 %9205  ;;  %5711 = vmatprep.subr.bf16.mxu1 %v11182_v5  ;;  %v11662_v0 = vpop.f32.mrb[45].mxu1 }
 0x1a6   : > { %v1607_v23 = vrot.slane %v1585_v30, 4  ;;  %v2459_v20 = vpack.c.bf16 %v2449_v12, %v2448_v43  ;;  %738 = vst.msk [vmem:[#allocation2 + $0x80] sm:$0xff] %vm227_vm3, %v721_v44  ;;  %v2450_v56 = vmul.f32 %v9202_v18, %v2338_v19  ;;  %v2451_v25 = vmul.f32 %v9203_v3, %v2339_v16  ;;  %2493 = vrot.lane.b32.xlu1 %v2478_v21, %s9898_s9  ;;  %v11639_v14 = vld [vmem:[#allocation2 + $0x78] sm:$0xff]  ;;  %v14122_v43 = vld [vmem:[#allocation15_spill] sm:$0xff] }
 0x1a7   : > { %1135 = vst.msk [vmem:[#allocation2 + $0x80] sm:$0xff] %vm1128_vm11, %v1114_v32  ;;  %v5142_v19 = vrot.slane %v11637_v57, 4  ;;  %v14026_v34 = vrot.slane %v11639_v14, 4  ;;  %v2341_v30 = vmax.f32 %v11439_v47, 0.0  ;;  %9285 = vperm.xlu0 %9042, %v14121_v50   ;;  %v9208_v12 = vunpack.i.h.bf16 %v9206_v53  ;;  %5536 = vmatmul.mubr.bf16.gmra.mrb[116].mxu0 %v11637_v57  ;;  %v14123_v18 = vld [vmem:[#allocation30_spill] sm:$0xff] }
 0x1a8   : > { %v1608_v49 = vsel %vm706_vm8, %v11550_v10, %v1607_v23  ;;  %1626 = vst.msk [vmem:[#allocation2 + $0x98] sm:$0xf] %vm230_vm5, %v1607_v23  ;;  %v11645_v10 = vpop.f32.mrb[48].mxu0  ;;  %v2479_v16 = vrot.slane %v2459_v20, 4  ;;  %v2460_v27 = vpack.c.bf16 %v2451_v25, %v2450_v56  ;;  %v9207_v31 = vunpack.i.l.bf16 %v9206_v53  ;;  %v11681_v23 = vpop.f32.mrb[46].mxu1  ;;  %8334 = vmatprep.mubr.msk.bf16.mxu0 %vm227_vm3, %v11639_v14  ;;  %5712 = vmatpush1.bf16.msra.mxu1 %v9617_v40  ;;  %v14133_v53 = vld [vmem:[#allocation22_spill] sm:$0xff] }
 0x1a9   : > { %1625 = vst.msk [vmem:[#allocation2 + $0x88] sm:$0xff] %vm227_vm3, %v1608_v49  ;;  %v11660_v7 = vpop.f32.mrb[49].mxu0  ;;  %v5143_v47 = vsel %vm706_vm8, %v5138_v6, %v5142_v19  ;;  %v11673_v51 = vadd.f32 %v11072_v52, %v14122_v43  ;;  %v4190_v54 = vunpack.c.l.bf16 %v11676_v39  ;;  %v1116_v6 = vpop.permute.xlu1 %1115  ;;  %v5149_v46 = vsel %vm706_vm8, %v5144_v48, %v14026_v34  ;;  %6260 = vmatprep.subr.bf16.mxu1 %v11182_v5 }
 0x1aa   : > { %v2480_v42 = vsel %vm706_vm8, %v2477_v1, %v2479_v16  ;;  %v11679_v17 = vpop.f32.mrb[50].mxu0  ;;  %v2452_v3 = vmul.f32 %v9207_v31, %v2340_v29  ;;  %v2453_v1 = vmul.f32 %v9208_v12, %v2341_v30  ;;  %9290 = vperm.xlu1 %9053, %v14123_v18   ;;  %v2481_v44 = vrot.slane %v2460_v27, 4  ;;  %1137 = vst.msk [vmem:[#allocation2 + $0x90] sm:$0xf] %vm1136_vm12, %v1116_v6  ;;  %v9211_v21 = vpop.permute.xlu0 %9210 }
 0x1ab   : > { %v11687_v20 = vpop.f32.mrb[51].mxu0  ;;  %v11695_v49 = vld [vmem:[#allocation2 + $0x70] sm:$0xff]  ;;  %v14125_v25 = vunpack.c.l.bf16 %v11375_v63  ;;  %v14126_v32 = vunpack.c.h.bf16 %v11375_v63  ;;  %v11705_v30 = vpop.f32.mrb[47].mxu1  ;;  %2495 = vrot.lane.b32.xlu0 %v2480_v42, %s9898_s9  ;;  %v9213_v48 = vunpack.i.h.bf16 %v9211_v21  ;;  %v9212_v50 = vunpack.i.l.bf16 %v9211_v21  ;;  %5327 = vmatmul.mubr.bf16.gmra.mrb[104].mxu1 %v5143_v47 }
 0x1ac   : > { %14124 = vst [vmem:[#allocation17_spill] sm:$0xff] %v11687_v20  ;;  %14127 = vst [vmem:[#allocation5_spill] sm:$0xff] %v11705_v30  ;;  %v2461_v27 = vpack.c.bf16 %v2453_v1, %v2452_v3  ;;  %v2482_v12 = vsel %vm706_vm8, %v2479_v16, %v2481_v44  ;;  %v11709_v31 = vpop.f32.mrb[52].mxu0  ;;  %8312 = vmatprep.mubr.msk.bf16.mxu1 %vm227_vm3, %v5149_v46  ;;  %v14027_v63 = vrot.slane %v11695_v49, 4  ;;  %v11719_v3 = vld [vmem:[%s9955_s6 + $0x8c] sm:$0xff]   ;;  %v14134_v40 = vmax.f32 %v14133_v53, 0.0 }
 0x1ad   : > { %v11702_v29 = vpack.i.bf16 %v14126_v32, %v14125_v25  ;;  %14128 = vst [vmem:[#allocation3_spill] sm:$0xff] %v11709_v31  ;;  %v11716_v18 = vpack.i.bf16 %v4190_v54, %v3312_v2  ;;  %v2013_v47 = vrot.slane %v9213_v48, 7  ;;  %v2012_v16 = vrot.slane %v9212_v50, 7  ;;  %v9216_v1 = vpop.permute.xlu1 %9215  ;;  %v11733_v48 = vpop.f32.mrb[53].mxu0  ;;  %v14142_v31 = vld [vmem:[#allocation21_spill] sm:$0xff] }
 0x1ae   : > { %2497 = vrot.lane.b32.xlu1 %v2482_v12, %s9898_s9  ;;  %v11724_v6 = vrot.slane %v2461_v27, 4  ;;  %v9218_v25 = vunpack.i.h.bf16 %v9216_v1  ;;  %v9217_v2 = vunpack.i.l.bf16 %v9216_v1  ;;  %v9221_v54 = vpop.permute.xlu0 %9220  ;;  %v11730_v56 = vld [vmem:[#allocation2 + $0x80] sm:$0xff]  ;;  %14129 = vst [vmem:[#allocation16_spill] sm:$0xff] %v11733_v48  ;;  %v11739_v42 = vpop.f32.mrb[54].mxu0  ;;  %v14143_v30 = vmax.f32 %v14142_v31, 0.0 }
 0x1af   : > { %v11714_v43 = vld [vmem:[#allocation2 + $0x98] sm:$0xf]  ;;  %v2014_v50 = vsel %vm624_vm7, %v2012_v16, %v2013_v47  ;;  %v14130_v12 = vld [vmem:[#allocation31_spill] sm:$0xff]  ;;  %v9223_v27 = vunpack.i.h.bf16 %v9221_v54  ;;  %v9222_v33 = vunpack.i.l.bf16 %v9221_v54  ;;  %14131 = vst [vmem:[#allocation20_spill] sm:$0xff] %v11739_v42  ;;  %v11741_v1 = vpop.f32.mrb[48].mxu1  ;;  %5544 = vmatmul.mubr.bf16.gmra.mrb[120].mxu0 %v11695_v49  ;;  %v5147_v16 = vsel %vm706_vm8, %v5142_v19, %v14027_v63  ;;  %v11753_v54 = vpop.f32.mrb[55].mxu0 }
 0x1b0   : > { %v11726_v21 = vld [vmem:[#allocation2 + $0x88] sm:$0xff]  ;;  %v5156_v5 = vrot.slane %v11714_v43, 4  ;;  %9295 = vperm.xlu0 %9042, %v14130_v12   ;;  %v2484_v46 = vsel %vm706_vm8, %v2481_v44, %v11724_v6  ;;  %14132 = vst [vmem:[#allocation19_spill] sm:$0xff] %v11741_v1  ;;  %v11745_v52 = vmul.f32 %v2014_v50, %v14134_v40  ;;  %v2017_v43 = vrot.slane %v9218_v25, 7  ;;  %14135 = vst [vmem:[#allocation4_spill] sm:$0xff] %v11753_v54  ;;  %v11755_v44 = vpop.f32.mrb[49].mxu1 }
 0x1b1   : > { %v5152_v32 = vrot.slane %v11726_v21, 4  ;;  %v2015_v34 = vrot.slane %v9217_v2, 7  ;;  %14136 = vst [vmem:[#allocation18_spill] sm:$0xff] %v11755_v44  ;;  %v2894_v12 = vrot.slane %v9223_v27, 1  ;;  %v11757_v1 = vrot.slane %v9222_v33, 7  ;;  %v9226_v53 = vpop.permute.xlu1 %9225  ;;  %v11764_v50 = vpop.f32.mrb[56].mxu0 }
 0x1b2   : > { %9300 = vperm.xlu1 %9053, %v11232_v4   ;;  %v14137_v40 = vrot.slane %v11639_v14, 4  ;;  %14138 = vst [vmem:[#allocation14_spill] sm:$0xff] %v11764_v50  ;;  %v9228_v54 = vunpack.i.h.bf16 %v9226_v53  ;;  %v9227_v44 = vunpack.i.l.bf16 %v9226_v53  ;;  %v9231_v27 = vpop.permute.xlu0 %9230  ;;  %v11768_v33 = vpop.f32.mrb[57].mxu0  ;;  %v14140_v42 = vld [vmem:[#allocation24_spill] sm:$0xff]  ;;  %v14146_v50 = vld [vmem:[#allocation23_spill] sm:$0xff] }
 0x1b3   : > { %v2016_v19 = vsel %vm624_vm7, %v2013_v47, %v2015_v34  ;;  %v2018_v63 = vsel %vm624_vm7, %v2015_v34, %v2017_v43  ;;  %14139 = vst [vmem:[#allocation29_spill] sm:$0xff] %v11768_v33  ;;  %v14141_v4 = vmax.f32 %v14140_v42, 0.0  ;;  %v2020_v2 = vsel %vm624_vm7, %v2017_v43, %v11757_v1  ;;  %5335 = vmatmul.mubr.bf16.gmra.mrb[108].mxu1 %v5147_v16  ;;  %v11781_v34 = vpop.f32.mrb[58].mxu0  ;;  %v11783_v53 = vpop.f32.mrb[50].mxu1 }
 0x1b4   : > { %v5153_v25 = vsel %vm706_vm8, %v14137_v40, %v5152_v32  ;;  %v11776_v40 = vmul.f32 %v2018_v63, %v14143_v30  ;;  %2499 = vrot.lane.b32.xlu0 %v2484_v46, %s9898_s9  ;;  %v9233_v47 = vunpack.i.h.bf16 %v9231_v27  ;;  %14144 = vst [vmem:[#allocation15_spill] sm:$0xff] %v11781_v34  ;;  %14145 = vst [vmem:[#allocation30_spill] sm:$0xff] %v11783_v53  ;;  %v14147_v33 = vmax.f32 %v14146_v50, 0.0  ;;  %v11790_v30 = vpop.f32.mrb[59].mxu0  ;;  %v11792_v63 = vpop.f32.mrb[51].mxu1 }
 0x1b5   : > { %v11772_v48 = vmul.f32 %v2016_v19, %v14141_v4  ;;  %v2897_v19 = vrot.slane %v9228_v54, 1  ;;  %v2895_v4 = vrot.slane %v9227_v44, 1  ;;  %v9232_v31 = vunpack.i.l.bf16 %v9231_v27  ;;  %8313 = vmatprep.mubr.msk.bf16.mxu1 %vm227_vm3, %v5153_v25  ;;  %14148 = vst [vmem:[#allocation31_spill] sm:$0xff] %v11790_v30  ;;  %14149 = vst [vmem:[#allocation22_spill] sm:$0xff] %v11792_v63  ;;  %v9236_v43 = vpop.permute.xlu1 %9235  ;;  %v11803_v25 = vpop.f32.mrb[60].mxu0 }
 0x1b6   : > { %v11787_v42 = vmul.f32 %v2020_v2, %v14147_v33  ;;  %v2901_v46 = vrot.slane %v9233_v47, 1  ;;  %9305 = vperm.xlu1 %9053, %v11255_v28   ;;  %v14150_v16 = vrot.slane %v11730_v56, 4  ;;  %v14151_v34 = vrot.slane %v11695_v49, 4  ;;  %14152 = vst [vmem:[#allocation24_spill] sm:$0xff] %v11803_v25  ;;  %v9241_v47 = vpop.permute.xlu0 %9240  ;;  %v11809_v63 = vpop.f32.mrb[61].mxu0 }
 0x1b7   : > { %v5157_v54 = vsel %vm706_vm8, %v5152_v32, %v5156_v5  ;;  %v2896_v27 = vsel %vm1512_vm9, %v2894_v12, %v2895_v4  ;;  %v2898_v28 = vsel %vm1512_vm9, %v2895_v4, %v2897_v19  ;;  %v2899_v33 = vrot.slane %v9232_v31, 1  ;;  %14153 = vst [vmem:[#allocation21_spill] sm:$0xff] %v11809_v63  ;;  %v11817_v50 = vpop.f32.mrb[62].mxu0  ;;  %v11819_v12 = vpop.f32.mrb[52].mxu1 }
 0x1b8   : > { %v5151_v2 = vsel %vm706_vm8, %v14151_v34, %v14150_v16  ;;  %v14154_v34 = vmax.f32 %v11280_v36, 0.0  ;;  %v14155_v32 = vmax.f32 %v11298_v59, 0.0  ;;  %2501 = vrot.lane.b32.xlu0 %v11724_v6, %s9898_s9  ;;  %v9238_v44 = vunpack.i.h.bf16 %v9236_v43  ;;  %14156 = vst [vmem:[#allocation23_spill] sm:$0xff] %v11817_v50  ;;  %14157 = vst [vmem:[#allocation36_spill] sm:$0xff] %v11819_v12  ;;  %v11823_v36 = vpop.f32.mrb[63].mxu0  ;;  %v14162_v50 = vld [vmem:[#allocation32_spill] sm:$0xff] }
 0x1b9   : > { %v9237_v25 = vunpack.i.l.bf16 %v9236_v43  ;;  %v2900_v4 = vsel %vm1512_vm9, %v2897_v19, %v2899_v33  ;;  %v2902_v31 = vsel %vm1512_vm9, %v2899_v33, %v2901_v46  ;;  %v9243_v63 = vunpack.i.h.bf16 %v9241_v47  ;;  %14158 = vst [vmem:[#allocation37_spill] sm:$0xff] %v11823_v36  ;;  %v9246_v12 = vpop.permute.xlu1 %9245  ;;  %v11832_v19 = vpop.f32.mrb[64].mxu0 }
 0x1ba   : > { %v2943_v16 = vmul.f32 %v2896_v27, %v14154_v34  ;;  %v2944_v5 = vmul.f32 %v2898_v28, %v14155_v32  ;;  %v9242_v53 = vunpack.i.l.bf16 %v9241_v47  ;;  %v11825_v27 = vpop.f32.mrb[53].mxu1  ;;  %v14160_v28 = vmax.f32 %v11276_v13, 0.0  ;;  %9310 = vperm.xlu1 %9053, %v14162_v50   ;;  %v9251_v20 = vpop.permute.xlu0 %9250 }
 0x1bb   : > { %14159 = vst [vmem:[#allocation38_spill] sm:$0xff] %v11825_v27  ;;  %v14161_v43 = vmax.f32 %v11292_v24, 0.0  ;;  %v2023_v32 = vrot.slane %v9238_v44, 7  ;;  %v2021_v33 = vrot.slane %v9237_v25, 7  ;;  %v11834_v30 = vrot.slane %v9243_v63, 1  ;;  %v11836_v27 = vpop.f32.mrb[65].mxu0  ;;  %5343 = vmatmul.mubr.bf16.gmra.mrb[112].mxu1 %v5151_v2 }
 0x1bc   : > { %v2959_v59 = vpack.c.bf16 %v2944_v5, %v2943_v16  ;;  %v2945_v6 = vmul.f32 %v2900_v4, %v14160_v28  ;;  %v2903_v47 = vrot.slane %v9242_v53, 1  ;;  %v9248_v36 = vunpack.i.h.bf16 %v9246_v12  ;;  %14163 = vst [vmem:[#allocation32_spill] sm:$0xff] %v11836_v27  ;;  %v14164_v5 = vld [vmem:[#allocation33_spill] sm:$0xff]  ;;  %v11839_v50 = vpop.f32.mrb[54].mxu1  ;;  %8314 = vmatprep.mubr.msk.bf16.mxu1 %vm227_vm3, %v5157_v54 }
 0x1bd   : > { %v2946_v34 = vmul.f32 %v2902_v31, %v14161_v43  ;;  %9315 = vperm.xlu0 %9042, %v14164_v5   ;;  %v9247_v24 = vunpack.i.l.bf16 %v9246_v12  ;;  %v9253_v4 = vunpack.i.h.bf16 %v9251_v20  ;;  %v5079_v44 = vld [vmem:[#allocation2 + $0x90] sm:$0xf]  ;;  %14165 = vst [vmem:[#allocation33_spill] sm:$0xff] %v11839_v50  ;;  %v11841_v31 = vpop.f32.mrb[66].mxu0  ;;  %v2022_v63 = vsel %vm624_vm7, %v11757_v1, %v2021_v33  ;;  %v11850_v12 = vpop.f32.mrb[55].mxu1  ;;  %v14171_v1 = vld [vmem:[#allocation28_spill] sm:$0xff] }
 0x1be   : > { %v2975_v16 = vrot.slane %v2959_v59, 4  ;;  %14166 = vst [vmem:[#allocation39_spill] sm:$0xff] %v11841_v31  ;;  %v2024_v53 = vsel %vm624_vm7, %v2021_v33, %v2023_v32  ;;  %v2904_v25 = vsel %vm1512_vm9, %v2901_v46, %v2903_v47  ;;  %v2906_v59 = vsel %vm1512_vm9, %v2903_v47, %v11834_v30  ;;  %14167 = vst [vmem:[#allocation40_spill] sm:$0xff] %v11850_v12  ;;  %v11852_v2 = vpop.f32.mrb[67].mxu0  ;;  %v14174_v50 = vld [vmem:[#allocation34_spill] sm:$0xff]  ;;  %v11862_v47 = vpop.f32.mrb[56].mxu1 }
 0x1bf   : > { %v2960_v13 = vpack.c.bf16 %v2946_v34, %v2945_v6  ;;  %14168 = vst [vmem:[#allocation41_spill] sm:$0xff] %v11852_v2  ;;  %v14169_v6 = vld [vmem:[#allocation26_spill] sm:$0xff]  ;;  %v14172_v5 = vmax.f32 %v14171_v1, 0.0  ;;  %v14173_v46 = vmax.f32 %v11372_v60, 0.0  ;;  %9320 = vperm.xlu1 %9053, %v14174_v50   ;;  %v11864_v54 = vpop.f32.mrb[68].mxu0  ;;  %v14175_v2 = vmax.f32 %v11673_v51, 0.0 }
 0x1c0   : > { %2999 = vst.msk [vmem:[#allocation2 + $0x98] sm:$0xf0] %vm233_vm4, %v2975_v16  ;;  %v14170_v43 = vmax.f32 %v14169_v6, 0.0  ;;  %v11868_v27 = vrot.slane %v9248_v36, 7  ;;  %v5154_v6 = vrot.slane %v5079_v44, 4  ;;  %v9252_v50 = vunpack.i.l.bf16 %v9251_v20  ;;  %v14176_v1 = vld [vmem:[#allocation35_spill] sm:$0xff] }
 0x1c1   : > { %v2976_v28 = vrot.slane %v2960_v13, 4  ;;  %v2066_v33 = vmul.f32 %v2024_v53, %v14172_v5  ;;  %v2947_v31 = vmul.f32 %v2904_v25, %v14173_v46  ;;  %v2948_v12 = vmul.f32 %v2906_v59, %v14175_v2  ;;  %9325 = vperm.xlu0 %9042, %v14176_v1   ;;  %v14178_v2 = vld [vmem:[#allocation25_spill] sm:$0xff]  ;;  %v14180_v46 = vld [vmem:[#allocation27_spill] sm:$0xff] }
 0x1c2   : > { %v2065_v34 = vmul.f32 %v2022_v63, %v14170_v43  ;;  %v2025_v13 = vrot.slane %v9247_v24, 7  ;;  %v11870_v63 = vpop.f32.mrb[57].mxu1  ;;  %v11872_v43 = vpop.f32.mrb[69].mxu0  ;;  %v11875_v25 = vrot.slane %v9253_v4, 1  ;;  %v14181_v1 = vmax.f32 %v14180_v46, 0.0 }
 0x1c3   : > { %v2977_v60 = vsel %vm706_vm8, %v2975_v16, %v2976_v28  ;;  %v11878_v5 = vpop.f32.mrb[58].mxu1  ;;  %v11880_v51 = vpop.f32.mrb[70].mxu0  ;;  %v2961_v36 = vpack.c.bf16 %v2948_v12, %v2947_v31  ;;  %v14177_v16 = vpack.c.bf16 %v11772_v48, %v11745_v52  ;;  %v2907_v31 = vrot.slane %v9252_v50, 1  ;;  %9330 = vperm.xlu1 %9053, %v11338_v38  }
 0x1c4   : > { %v2079_v53 = vpack.c.bf16 %v2066_v33, %v2065_v34  ;;  %3000 = vst.msk [vmem:[#allocation2 + $0xa8] sm:$0xff] %vm227_vm3, %v2977_v60  ;;  %v2026_v24 = vsel %vm624_vm7, %v2023_v32, %v2025_v13  ;;  %v2028_v44 = vsel %vm624_vm7, %v2025_v13, %v11868_v27  ;;  %v11889_v59 = vpop.f32.mrb[59].mxu1  ;;  %v11891_v20 = vpop.f32.mrb[71].mxu0  ;;  %v14179_v34 = vmax.f32 %v14178_v2, 0.0 }
 0x1c5   : > { %v2093_v4 = vrot.slane %v14177_v16, 4  ;;  %v2068_v60 = vmul.f32 %v2028_v44, %v14181_v1  ;;  %v14182_v32 = vpack.c.bf16 %v11787_v42, %v11776_v40  ;;  %v11901_v52 = vpop.f32.mrb[60].mxu1  ;;  %v11903_v48 = vpop.f32.mrb[72].mxu0  ;;  %v11905_v13 = vrot.slane %v2961_v36, 4  ;;  %9335 = vperm.xlu0 %9042, %v11340_v11  }
 0x1c6   : > { %v2067_v33 = vmul.f32 %v2026_v24, %v14179_v34  ;;  %14183 = vst [vmem:[#allocation26_spill] sm:$0xff] %v11903_v48  ;;  %v14184_v16 = vrot.slane %v11730_v56, 4  ;;  %v14185_v44 = vunpack.c.h.bf16 %v11676_v39  ;;  %v14186_v50 = vunpack.c.l.bf16 %v11719_v3  ;;  %v11915_v42 = vpop.f32.mrb[61].mxu1  ;;  %v11917_v2 = vpop.f32.mrb[73].mxu0  ;;  %v5553_v39 = vld [vmem:[#allocation2 + $0x38] sm:$0xff]  ;;  %v14250_v48 = vld [vmem:[#allocation36_spill] sm:$0xff] }
 0x1c7   : > { %v2094_v12 = vrot.slane %v14182_v32, 4  ;;  %2117 = vst.msk [vmem:[#allocation2 + $0x90] sm:$0xf0] %vm233_vm4, %v2093_v4  ;;  %v2096_v40 = vrot.slane %v2079_v53, 4  ;;  %14187 = vst [vmem:[#allocation28_spill] sm:$0xff] %v11917_v2  ;;  %v2908_v36 = vsel %vm1512_vm9, %v11834_v30, %v2907_v31  ;;  %v2910_v46 = vsel %vm1512_vm9, %v2907_v31, %v11875_v25  ;;  %v11925_v32 = vpop.f32.mrb[62].mxu1  ;;  %9340 = vperm.xlu1 %9053, %v11702_v29  }
 0x1c8   : > { %v5155_v24 = vsel %vm706_vm8, %v14184_v16, %v5154_v6  ;;  %v9349_v38 = vpack.i.bf16 %v14186_v50, %v14185_v44  ;;  %v2080_v34 = vpack.c.bf16 %v2068_v60, %v2067_v33  ;;  %v9853_v6 = vld [vmem:[%s9955_s6 + $0x94] sm:$0xff]   ;;  %v11927_v53 = vpop.f32.mrb[74].mxu0  ;;  %v2979_v33 = vsel %vm706_vm8, %v2976_v28, %v11905_v13  ;;  %v5882_v50 = vld [vmem:[#allocation2 + $0x98] sm:$0xf0]  ;;  %v14243_v2 = vld [vmem:[#allocation31_spill] sm:$0xff] }
 0x1c9   : > { %5351 = vmatmul.mubr.bf16.gmra.mrb[116].mxu1 %v5155_v24  ;;  %v4194_v1 = vunpack.c.l.bf16 %v9853_v6  ;;  %14188 = vst [vmem:[#allocation34_spill] sm:$0xff] %v11927_v53  ;;  %v14189_v60 = vmax.f32 %v11357_v45, 0.0  ;;  %v14190_v16 = vmax.f32 %v11626_v9, 0.0  ;;  %v2095_v11 = vsel %vm706_vm8, %v2093_v4, %v2094_v12  ;;  %v11937_v24 = vpop.f32.mrb[63].mxu1  ;;  %v11939_v44 = vpop.f32.mrb[75].mxu0  ;;  %3001 = vst.msk [vmem:[#allocation2 + $0xb8] sm:$0xff] %vm227_vm3, %v2979_v33  ;;  %9345 = vperm.xlu0 %9042, %v11716_v18  }
 0x1ca   : > { %8371 = vmatprep.mubr.msk.bf16.mxu1 %vm227_vm3, %v5553_v39  ;;  %14191 = vst [vmem:[#allocation35_spill] sm:$0xff] %v11939_v44  ;;  %v3313_v28 = vunpack.c.h.bf16 %v11642_v61  ;;  %v9854_v45 = vld [vmem:[%s9955_s6 + $0x98] sm:$0xff]   ;;  %2118 = vst.msk [vmem:[#allocation2 + $0xa0] sm:$0xff] %vm227_vm3, %v2095_v11  ;;  %v2097_v9 = vsel %vm706_vm8, %v2094_v12, %v2096_v40  ;;  %v11949_v4 = vpop.f32.mrb[76].mxu0  ;;  %v11951_v39 = vpop.f32.mrb[64].mxu1  ;;  %v14195_v61 = vunpack.c.h.bf16 %v11719_v3  ;;  %v4195_v12 = vunpack.c.h.bf16 %v9853_v6  ;;  %v14237_v53 = vld [vmem:[#allocation4_spill] sm:$0xff] }
 0x1cb   : > { %v2949_v30 = vmul.f32 %v2908_v36, %v14189_v60  ;;  %v2950_v31 = vmul.f32 %v2910_v46, %v14190_v16  ;;  %v3314_v36 = vunpack.c.l.bf16 %v9854_v45  ;;  %v11947_v46 = vrot.slane %v2080_v34, 4  ;;  %14192 = vst [vmem:[#allocation25_spill] sm:$0xff] %v11949_v4  ;;  %14193 = vst [vmem:[#allocation27_spill] sm:$0xff] %v11951_v39  ;;  %v11954_v29 = vpop.f32.mrb[77].mxu0  ;;  %v8985_v33 = vpop.f32.mrb[65].mxu1  ;;  %v11959_v11 = vld [vmem:[#allocation2 + $0xa8] sm:$0xff]  ;;  %9350 = vperm.xlu1 %9053, %v9349_v38  }
 0x1cc   : > { %2119 = vst.msk [vmem:[#allocation2 + $0xb0] sm:$0xff] %vm227_vm3, %v2097_v9  ;;  %14194 = vst [vmem:[#allocation42_spill] sm:$0xff] %v11954_v29  ;;  %v9354_v16 = vpack.i.bf16 %v4194_v1, %v14195_v61  ;;  %v9855_v34 = vld [vmem:[%s9955_s6 + $0x9c] sm:$0xff]   ;;  %v5932_v33 = vrot.slane %v5882_v50, 4  ;;  %v14028_v18 = vrot.slane %v11959_v11, 4  ;;  %v3315_v61 = vunpack.c.h.bf16 %v9854_v45 }
 0x1cd   : > { %v2962_v60 = vpack.c.bf16 %v2950_v31, %v2949_v30  ;;  %v4196_v44 = vunpack.c.l.bf16 %v9855_v34  ;;  %v2099_v39 = vsel %vm706_vm8, %v2096_v40, %v11947_v46  ;;  %v11964_v30 = vpop.f32.mrb[78].mxu0  ;;  %v11966_v31 = vpop.f32.mrb[66].mxu1  ;;  %v9359_v6 = vpack.i.bf16 %v3314_v36, %v3313_v28  ;;  %v9856_v29 = vld [vmem:[%s9955_s6 + $0xa0] sm:$0xff]  }
 0x1ce   : > { %14196 = vst [vmem:[#allocation43_spill] sm:$0xff] %v11964_v30  ;;  %14197 = vst [vmem:[#allocation44_spill] sm:$0xff] %v11966_v31  ;;  %v11972_v3 = vpop.f32.mrb[79].mxu0  ;;  %v8986_v1 = vpop.f32.mrb[67].mxu1  ;;  %v3316_v40 = vunpack.c.l.bf16 %v9856_v29  ;;  %v9621_v31 = vld [vmem:[%s14009_s3] sm:$0xff]   ;;  %v5934_v38 = vsel %vm706_vm8, %v5932_v33, %v14028_v18  ;;  %9355 = vperm.xlu0 %9042, %v9354_v16   ;;  %v9858_v33 = vld [vmem:[#allocation2 + $0x48] sm:$0xff] }
 0x1cf   : > { %v11968_v9 = vrot.slane %v2962_v60, 4  ;;  %2120 = vst.msk [vmem:[#allocation2 + $0xc0] sm:$0xff] %vm227_vm3, %v2099_v39  ;;  %14198 = vst [vmem:[#allocation45_spill] sm:$0xff] %v11972_v3  ;;  %v11978_v60 = vpop.f32.mrb[68].mxu1  ;;  %v11980_v50 = vpop.f32.mrb[80].mxu0  ;;  %v9364_v36 = vpack.i.bf16 %v4196_v44, %v4195_v12  ;;  %v4197_v1 = vunpack.c.h.bf16 %v9855_v34  ;;  %8416 = vmatprep.mubr.msk.bf16.mxu0 %vm227_vm3, %v5934_v38  ;;  %9360 = vperm.xlu1 %9053, %v9359_v6   ;;  %v12001_v44 = vld [vmem:[%s9955_s6 + $0xa8] sm:$0xff]  }
 0x1d0   : > { %14199 = vst [vmem:[#allocation46_spill] sm:$0xff] %v11978_v60  ;;  %14200 = vst [vmem:[#allocation47_spill] sm:$0xff] %v11980_v50  ;;  %v8989_v28 = vpop.f32.mrb[69].mxu1  ;;  %v9017_v45 = vpop.f32.mrb[81].mxu0  ;;  %v11991_v60 = vld [vmem:[%s9955_s6 + $0xa4] sm:$0xff]   ;;  %v3318_v12 = vunpack.c.l.bf16 %v12001_v44 }
 0x1d1   : > { %v2981_v39 = vsel %vm706_vm8, %v11905_v13, %v11968_v9  ;;  %5722 = vmatmul.mubr.bf16.vlgmr.msra.gmra.mrb[120].mxu1 %v11435_v41  ;;  %v4198_v50 = vunpack.c.l.bf16 %v11991_v60  ;;  %v11994_v3 = vpop.f32.mrb[70].mxu1  ;;  %v11996_v13 = vpop.f32.mrb[82].mxu0  ;;  %v9369_v28 = vpack.i.bf16 %v3316_v40, %v3315_v61  ;;  %v3317_v41 = vunpack.c.h.bf16 %v9856_v29  ;;  %v9623_v34 = vld [vmem:[%s14009_s3 + $0x8] sm:$0xff]   ;;  %v12011_v18 = vld [vmem:[#allocation2] sm:$0xff] }
 0x1d2   : > { %3002 = vst.msk [vmem:[#allocation2 + $0xc8] sm:$0xff] %vm227_vm3, %v2981_v39  ;;  %14201 = vst [vmem:[#allocation48_spill] sm:$0xff] %v11994_v3  ;;  %8372 = vmatprep.mubr.msk.bf16.mxu1 %vm227_vm3, %v9858_v33  ;;  %v8990_v39 = vpop.f32.mrb[71].mxu1  ;;  %v9018_v16 = vpop.f32.mrb[83].mxu0  ;;  %6261 = vmatpush1.bf16.msra.mxu1 %v9621_v31 }
 0x1d3   : > { %14202 = vst [vmem:[#allocation49_spill] sm:$0xff] %v11996_v13  ;;  %v12007_v45 = vpop.f32.mrb[72].mxu1  ;;  %v12009_v38 = vpop.f32.mrb[84].mxu0  ;;  %6262 = vmatprep.subr.bf16.mxu1 %v12011_v18  ;;  %9365 = vperm.xlu0 %9042, %v9364_v36   ;;  %v9374_v29 = vpack.i.bf16 %v4198_v50, %v4197_v1  ;;  %v9379_v16 = vpack.i.bf16 %v3318_v12, %v3317_v41 }
 0x1d4   : > { %14203 = vst [vmem:[#allocation50_spill] sm:$0xff] %v12007_v45  ;;  %14204 = vst [vmem:[#allocation51_spill] sm:$0xff] %v12009_v38  ;;  %v8993_v6 = vpop.f32.mrb[73].mxu1  ;;  %v9021_v61 = vpop.f32.mrb[85].mxu0  ;;  %9370 = vperm.xlu1 %9053, %v9369_v28   ;;  %v9625_v45 = vld [vmem:[%s14009_s3 + $0x10] sm:$0xff]  }
 0x1d5   : > { %v12014_v40 = vpop.f32.mrb[74].mxu1  ;;  %v12016_v33 = vpop.f32.mrb[86].mxu0 }
 0x1d6   : > { %14205 = vst [vmem:[#allocation52_spill] sm:$0xff] %v12014_v40  ;;  %14206 = vst [vmem:[#allocation53_spill] sm:$0xff] %v12016_v33  ;;  %v8994_v31 = vpop.f32.mrb[75].mxu1  ;;  %v9022_v39 = vpop.f32.mrb[87].mxu0  ;;  %6263 = vmatpush1.bf16.msra.mxu1 %v9623_v34  ;;  %v9627_v34 = vld [vmem:[%s14009_s3 + $0x18] sm:$0xff]   ;;  %v14223_v40 = vld [vmem:[#allocation12_spill] sm:$0xff] }
 0x1d7   : > { %v12021_v38 = vpop.f32.mrb[76].mxu1  ;;  %v12023_v13 = vpop.f32.mrb[88].mxu0  ;;  %6264 = vmatprep.subr.bf16.mxu1 %v12011_v18  ;;  %9375 = vperm.xlu0 %9042, %v9374_v29  }
 0x1d8   : > { %14207 = vst [vmem:[#allocation54_spill] sm:$0xff] %v12021_v38  ;;  %14208 = vst [vmem:[#allocation55_spill] sm:$0xff] %v12023_v13  ;;  %v9001_v50 = vpop.f32.mrb[77].mxu1  ;;  %v9025_v36 = vpop.f32.mrb[89].mxu0  ;;  %9380 = vperm.xlu1 %9053, %v9379_v16  }
 0x1d9   : > { %5730 = vmatmul.mubr.bf16.gmra.mrb[124].mxu1 %v11495_v37  ;;  %v12027_v1 = vpop.f32.mrb[78].mxu1  ;;  %v12029_v28 = vpop.f32.mrb[90].mxu0 }
 0x1da   : > { %14209 = vst [vmem:[#allocation56_spill] sm:$0xff] %v12027_v1  ;;  %14210 = vst [vmem:[#allocation57_spill] sm:$0xff] %v12029_v28  ;;  %8373 = vmatprep.mubr.msk.bf16.mxu1 %vm227_vm3, %v11497_v62  ;;  %v9002_v41 = vpop.f32.mrb[79].mxu1  ;;  %v9026_v12 = vpop.f32.mrb[91].mxu0  ;;  %6265 = vmatpush1.bf16.msra.mxu1 %v9625_v45  ;;  %v9629_v45 = vld [vmem:[%s14009_s3 + $0x20] sm:$0xff]   ;;  %v14239_v1 = vld [vmem:[#allocation29_spill] sm:$0xff] }
 0x1db   : > { %v12036_v6 = vpop.f32.mrb[80].mxu1  ;;  %v12038_v61 = vpop.f32.mrb[92].mxu0  ;;  %6266 = vmatprep.subr.bf16.mxu1 %v12011_v18 }
 0x1dc   : > { %14211 = vst [vmem:[#allocation58_spill] sm:$0xff] %v12036_v6  ;;  %14212 = vst [vmem:[#allocation59_spill] sm:$0xff] %v12038_v61  ;;  %v9005_v37 = vpop.f32.mrb[81].mxu1  ;;  %v5491_v29 = vpop.f32.mrb[93].mxu0 }
 0x1dd   : > { %v12041_v31 = vpop.f32.mrb[82].mxu1  ;;  %v12043_v39 = vpop.f32.mrb[94].mxu0  ;;  %v9633_v37 = vld [vmem:[%s14009_s3 + $0x30] sm:$0xff]   ;;  %v9861_v29 = vld [vmem:[%s14008_s2] ss:$0 sm:$0xff] }
 0x1de   : > { %14213 = vst [vmem:[#allocation60_spill] sm:$0xff] %v12041_v31  ;;  %14214 = vst [vmem:[#allocation61_spill] sm:$0xff] %v12043_v39  ;;  %v9006_v62 = vpop.f32.mrb[83].mxu1  ;;  %v5494_v50 = vpop.f32.mrb[95].mxu0  ;;  %6267 = vmatpush1.bf16.msra.mxu1 %v9627_v34  ;;  %v9631_v34 = vld [vmem:[%s14009_s3 + $0x28] sm:$0xff]   ;;  %v12118_v33 = vadd.f32 %v9861_v29, %v14223_v40 }
 0x1df   : > { %v12048_v16 = vpop.f32.mrb[84].mxu1  ;;  %6268 = vmatprep.subr.bf16.mxu1 %v12011_v18  ;;  %v14217_v62 = vld [vmem:[#allocation6_spill] sm:$0xff]  ;;  %v12136_v40 = vld [vmem:[%s14008_s2] ss:$0 sm:$0xff] }
 0x1e0   : > { %14215 = vst [vmem:[#allocation62_spill] sm:$0xff] %v12048_v16  ;;  %v9009_v36 = vpop.f32.mrb[85].mxu1  ;;  %v12095_v50 = vadd.f32 %v9861_v29, %v14217_v62  ;;  %v14222_v62 = vld [vmem:[#allocation11_spill] sm:$0xff]  ;;  %v14228_v16 = vld [vmem:[#allocation17_spill] sm:$0xff] }
 0x1e1   : > { %5738 = vmatmul.mubr.bf16.gmra.mrb[128].mxu1 %v11567_v26  ;;  %v12052_v41 = vpop.f32.mrb[86].mxu1  ;;  %v9635_v26 = vld [vmem:[%s14009_s3 + $0x38] sm:$0xff]   ;;  %v14218_v36 = vld [vmem:[#allocation7_spill] sm:$0xff]  ;;  %v12177_v31 = vadd.f32 %v12136_v40, %v14228_v16  ;;  %v12212_v16 = vadd.f32 %v12136_v40, %v14239_v1 }
 0x1e2   : > { %14216 = vst [vmem:[#allocation63_spill] sm:$0xff] %v12052_v41  ;;  %8374 = vmatprep.mubr.msk.bf16.mxu1 %vm227_vm3, %v11569_v55  ;;  %v9010_v12 = vpop.f32.mrb[87].mxu1  ;;  %6269 = vmatpush1.bf16.msra.mxu1 %v9629_v45  ;;  %v9637_v55 = vld [vmem:[%s14009_s3 + $0x40] sm:$0xff]   ;;  %v9641_v45 = vld [vmem:[%s14009_s3 + $0x58] sm:$0xff]   ;;  %v12155_v41 = vadd.f32 %v12136_v40, %v11660_v7 }
 0x1e3   : > { %6270 = vmatprep.subr.bf16.mxu1 %v12011_v18  ;;  %v12101_v12 = vadd.f32 %v9861_v29, %v14218_v36  ;;  %v14224_v36 = vld [vmem:[#allocation13_spill] sm:$0xff]  ;;  %14240 = vst [vmem:[#allocation17_spill] sm:$0xff] %v12212_v16  ;;  %v14245_v1 = vld [vmem:[#allocation18_spill] sm:$0xff] }
 0x1e4   : > { %v12121_v3 = vadd.f32 %v9861_v29, %v14224_v36  ;;  %14226 = vst [vmem:[#allocation7_spill] sm:$0xff] %v12155_v41  ;;  %v12230_v39 = vadd.f32 %v12136_v40, %v14245_v1  ;;  %v12255_v41 = vadd.f32 %v11832_v19, %v12136_v40 }
 0x1e6   : > { %6271 = vmatpush1.bf16.msra.mxu1 %v9631_v34  ;;  %v14219_v34 = vld [vmem:[#allocation8_spill] sm:$0xff]  ;;  %14252 = vst [vmem:[#allocation29_spill] sm:$0xff] %v12255_v41 }
 0x1e7   : > { %6272 = vmatprep.subr.bf16.mxu1 %v12011_v18 }
 0x1e9   : > { %5746 = vmatmul.mubr.bf16.gmra.mrb[132].mxu1 %v11637_v57  ;;  %v9639_v57 = vld [vmem:[%s14009_s3 + $0x48] sm:$0xff]  }
 0x1ea   : > { %8375 = vmatprep.mubr.msk.bf16.mxu1 %vm227_vm3, %v11639_v14  ;;  %6273 = vmatpush1.bf16.msra.mxu1 %v9633_v37  ;;  %v9640_v14 = vld [vmem:[%s14009_s3 + $0x50] sm:$0xff]   ;;  %v12105_v37 = vadd.f32 %v9861_v29, %v14219_v34  ;;  %v12151_v34 = vadd.f32 %v9861_v29, %v11655_v15  ;;  %v14235_v15 = vld [vmem:[#allocation20_spill] sm:$0xff] }
 0x1eb   : > { %6274 = vmatprep.subr.bf16.mxu1 %v12011_v18  ;;  %v12202_v13 = vadd.f32 %v14235_v15, %v12136_v40 }
 0x1ed   : > { %14236 = vst [vmem:[#allocation12_spill] sm:$0xff] %v12202_v13  ;;  %v14254_v13 = vld [vmem:[#allocation38_spill] sm:$0xff] }
 0x1ee   : > { %6275 = vmatpush1.bf16.msra.mxu1 %v9635_v26  ;;  %v14220_v26 = vld [vmem:[#allocation9_spill] sm:$0xff] }
 0x1ef   : > { %6276 = vmatprep.subr.bf16.mxu1 %v12011_v18  ;;  %14229 = vst [vmem:[#allocation9_spill] sm:$0xff] %v12177_v31  ;;  %v12266_v31 = vadd.f32 %v12136_v40, %v14254_v13  ;;  %v14257_v13 = vld [vmem:[#allocation39_spill] sm:$0xff] }
 0x1f1   : > { %5754 = vmatmul.mubr.bf16.gmra.mrb[136].mxu1 %v11695_v49  ;;  %v12087_v49 = vld [vmem:[#allocation2 + $0x98] sm:$0xff] }
 0x1f2   : > { %8376 = vmatprep.mubr.msk.bf16.mxu1 %vm227_vm3, %v11726_v21  ;;  %6277 = vmatpush1.bf16.msra.mxu1 %v9637_v55  ;;  %v12108_v55 = vadd.f32 %v9861_v29, %v14220_v26  ;;  %v12125_v26 = vadd.f32 %v9861_v29, %v11512_v35  ;;  %v12142_v35 = vadd.f32 %v9861_v29, %v11539_v22  ;;  %v12191_v22 = vld [vmem:[%s9955_s6 + $0xc4] sm:$0xff]  }
 0x1f3   : > { %6278 = vmatprep.subr.bf16.mxu1 %v12011_v18 }
 0x1f6   : > { %6279 = vmatpush1.bf16.msra.mxu1 %v9639_v57  ;;  %v14221_v57 = vld [vmem:[#allocation10_spill] sm:$0xff] }
 0x1f7   : > { %6280 = vmatprep.subr.bf16.mxu1 %v12011_v18  ;;  %v12111_v28 = vadd.f32 %v9861_v29, %v14221_v57  ;;  %v12128_v57 = vadd.f32 %v9861_v29, %v11520_v58  ;;  %v12146_v58 = vadd.f32 %v11645_v10, %v12136_v40  ;;  %v12160_v10 = vadd.f32 %v9861_v29, %v11662_v0 }
 0x1f8   : > { %v12208_v0 = vadd.f32 %v12136_v40, %v14237_v53  ;;  %v12225_v53 = vld [vmem:[#allocation2 + $0xc8] sm:$0xff] }
 0x1f9   : > { %5762 = vmatmul.mubr.bf16.gmra.mrb[140].mxu1 %v11730_v56  ;;  %14225 = vst [vmem:[#allocation6_spill] sm:$0xff] %v12146_v58  ;;  %v2486_v36 = vpop.permute.xlu1 %2485 }
 0x1fa   : > { %8377 = vmatprep.mubr.msk.bf16.mxu1 %vm227_vm3, %v12087_v49  ;;  %6281 = vmatpush1.bf16.msra.mxu1 %v9640_v14  ;;  %v12114_v14 = vadd.f32 %v9861_v29, %v14222_v62  ;;  %v12131_v62 = vadd.f32 %v9861_v29, %v11530_v8  ;;  %v12164_v8 = vadd.f32 %v11679_v17, %v12136_v40  ;;  %v14230_v17 = vld [vmem:[#allocation5_spill] sm:$0xff] }
 0x1fb   : > { %6282 = vmatprep.subr.bf16.mxu1 %v12011_v18  ;;  %2512 = vst.msk [vmem:[#allocation2 + $0x90] sm:$0xf0] %vm1126_vm10, %v2486_v36  ;;  %v12180_v6 = vadd.f32 %v9861_v29, %v14230_v17  ;;  %v12182_v36 = vld [vmem:[#allocation2 + $0xb8] sm:$0xff]  ;;  %v14233_v17 = vld [vmem:[#allocation16_spill] sm:$0xff]  ;;  %14238 = vst [vmem:[#allocation13_spill] sm:$0xff] %v12208_v0 }
 0x1fc   : > { %14227 = vst [vmem:[#allocation8_spill] sm:$0xff] %v12164_v8  ;;  %v12198_v4 = vadd.f32 %v12136_v40, %v14233_v17  ;;  %v5937_v38 = vrot.slane %v12182_v36, 4  ;;  %14246 = vst [vmem:[#allocation16_spill] sm:$0xff] %v12230_v39  ;;  %v14249_v8 = vld [vmem:[#allocation22_spill] sm:$0xff]  ;;  %v14255_v0 = vld [vmem:[#allocation32_spill] sm:$0xff] }
 0x1fd   : > { %v2488_v30 = vpop.permute.xlu0 %2487  ;;  %v12238_v15 = vadd.f32 %v12136_v40, %v14249_v8  ;;  %v14258_v8 = vld [vmem:[#allocation40_spill] sm:$0xff]  ;;  %v14259_v39 = vld [vmem:[#allocation41_spill] sm:$0xff] }
 0x1fe   : > { %6283 = vmatpush1.bf16.msra.mxu1 %v9641_v45  ;;  %v12171_v45 = vadd.f32 %v9861_v29, %v11681_v23  ;;  %v14231_v23 = vld [vmem:[#allocation3_spill] sm:$0xff]  ;;  %14234 = vst [vmem:[#allocation11_spill] sm:$0xff] %v12198_v4  ;;  %2513 = vst.msk [vmem:[#allocation2 + $0xa0] sm:$0xff] %vm1128_vm11, %v2488_v30  ;;  %v12273_v4 = vadd.f32 %v12136_v40, %v14255_v0  ;;  %v12288_v19 = vadd.f32 %v12136_v40, %v14258_v8 }
 0x1ff   : > { %6871 = vmatprep.subr.bf16.mxu1 %v12011_v18  ;;  %v12188_v7 = vadd.f32 %v14231_v23, %v12136_v40  ;;  %v14241_v29 = vld [vmem:[#allocation19_spill] sm:$0xff]  ;;  %v12223_v23 = vadd.f32 %v12136_v40, %v14243_v2  ;;  %v12323_v8 = vadd.f32 %v12136_v40, %v11872_v43  ;;  %v12337_v43 = vadd.f32 %v11880_v51, %v12136_v40 }
 0x200   : > { %v12216_v17 = vadd.f32 %v14241_v29, %v12136_v40  ;;  %v14247_v29 = vld [vmem:[#allocation30_spill] sm:$0xff]  ;;  %v12367_v51 = vadd.f32 %v11925_v32, %v12136_v40 }
 0x201   : > { %14232 = vst [vmem:[#allocation10_spill] sm:$0xff] %v12188_v7  ;;  %14244 = vst [vmem:[#allocation3_spill] sm:$0xff] %v12223_v23  ;;  %v12234_v61 = vadd.f32 %v14247_v29, %v12136_v40  ;;  %v12246_v7 = vadd.f32 %v14250_v48, %v12136_v40  ;;  %v14253_v48 = vrot.slane %v11959_v11, 4  ;;  %v14256_v29 = vld [vmem:[#allocation33_spill] sm:$0xff]  ;;  %v12284_v23 = vadd.f32 %v14257_v13, %v12136_v40  ;;  %v9642_v13 = vld [vmem:[%s14009_s3 + $0xc0] sm:$0xff]  }
 0x202   : > { %14242 = vst [vmem:[#allocation5_spill] sm:$0xff] %v12216_v17  ;;  %v12240_v30 = vld [vmem:[#allocation2 + $0x90] sm:$0xff]  ;;  %v12280_v1 = vadd.f32 %v14256_v29, %v12136_v40  ;;  %v14260_v29 = vrot.slane %v12225_v53, 4  ;;  %14262 = vst [vmem:[#allocation31_spill] sm:$0xff] %v12337_v43 }
 0x203   : > { %14248 = vst [vmem:[#allocation20_spill] sm:$0xff] %v12234_v61  ;;  %14251 = vst [vmem:[#allocation4_spill] sm:$0xff] %v12246_v7  ;;  %5770 = vmatmul.mubr.bf16.gmra.mrb[144].mxu1 %v12240_v30  ;;  %v5881_v58 = vld [vmem:[#allocation2 + $0x90] sm:$0xf0]  ;;  %v5938_v2 = vsel %vm706_vm8, %v14253_v48, %v5937_v38  ;;  %v12294_v48 = vadd.f32 %v12136_v40, %v14259_v39  ;;  %v12311_v61 = vadd.f32 %v11864_v54, %v12136_v40 }
 0x204   : > { %8378 = vmatprep.mubr.msk.bf16.mxu1 %vm227_vm3, %v11959_v11  ;;  %v5929_v16 = vrot.slane %v5881_v58, 4  ;;  %v12299_v7 = vsel %vm706_vm8, %v5937_v38, %v14260_v29  ;;  %v12307_v58 = vadd.f32 %v11862_v47, %v12136_v40  ;;  %v12319_v29 = vadd.f32 %v12136_v40, %v11870_v63 }
 0x205   : > { %v12275_v17 = vld [vmem:[#allocation2 + $0xa0] sm:$0xff]  ;;  %14261 = vst [vmem:[#allocation19_spill] sm:$0xff] %v12311_v61  ;;  %v12345_v54 = vadd.f32 %v12136_v40, %v11891_v20  ;;  %v12371_v63 = vadd.f32 %v12136_v40, %v11937_v24 }
 0x206   : > { %v14044_v0 = vrot.slane %v12275_v17, 4 }
 0x207   : > { %14263 = vst [vmem:[#allocation18_spill] sm:$0xff] %v12345_v54 }
 0x208   : > { %v5931_v39 = vsel %vm706_vm8, %v5929_v16, %v14044_v0  ;;  %v12330_v16 = vadd.f32 %v11878_v5, %v12136_v40 }
 0x209   : > { %6100 = vmatmul.mubr.bf16.vlgmr.msra.gmra.mrb[124].mxu0 %v5931_v39  ;;  %v12341_v39 = vadd.f32 %v12136_v40, %v11889_v59 }
 0x20a   : > { %v9256_v38 = vpop.permute.xlu1 %9255  ;;  %8417 = vmatprep.mubr.msk.bf16.mxu0 %vm227_vm3, %v5938_v2  ;;  %6494 = vmatpush1.bf16.msra.mxu0 %v9642_v13  ;;  %v9643_v2 = vld [vmem:[%s14009_s3 + $0xc8] sm:$0xff]  }
 0x20b   : > { %5778 = vmatmul.mubr.bf16.gmra.mrb[148].mxu1 %v12275_v17  ;;  %v9258_v5 = vunpack.i.h.bf16 %v9256_v38  ;;  %v9257_v47 = vunpack.i.l.bf16 %v9256_v38  ;;  %6495 = vmatprep.subr.bf16.mxu0 %v12011_v18  ;;  %v12359_v38 = vadd.f32 %v11901_v52, %v12136_v40  ;;  %v14264_v52 = vmax.f32 %v12101_v12, 0.0 }
 0x20c   : > { %8436 = vmatprep.mubr.msk.bf16.mxu1 %vm227_vm3, %v11726_v21  ;;  %v12363_v21 = vadd.f32 %v12136_v40, %v11915_v42  ;;  %v9644_v40 = vld [vmem:[%s14009_s3 + $0xd0] sm:$0xff]   ;;  %v14265_v42 = vmax.f32 %v12108_v55, 0.0  ;;  %v14266_v55 = vunpack.c.l.bf16 %v12191_v22  ;;  %v14269_v12 = vmax.f32 %v12142_v35, 0.0 }
 0x20d   : > { %v2031_v13 = vrot.slane %v9258_v5, 7  ;;  %v2029_v41 = vrot.slane %v9257_v47, 7 }
 0x20e   : > { %v2490_v59 = vpop.permute.xlu1 %2489  ;;  %v9261_v20 = vpop.permute.xlu0 %9260  ;;  %6496 = vmatpush1.bf16.msra.mxu0 %v9643_v2  ;;  %v9654_v2 = vld [vmem:[%s14009_s3 + $0x60] sm:$0xff]  }
 0x20f   : > { %v2030_v47 = vsel %vm624_vm7, %v11868_v27, %v2029_v41  ;;  %v2032_v32 = vsel %vm624_vm7, %v2029_v41, %v2031_v13  ;;  %2514 = vst.msk [vmem:[#allocation2 + $0xb0] sm:$0xff] %vm1128_vm11, %v2490_v59  ;;  %v9263_v5 = vunpack.i.h.bf16 %v9261_v20  ;;  %v9262_v24 = vunpack.i.l.bf16 %v9261_v20  ;;  %6497 = vmatprep.subr.bf16.mxu0 %v12011_v18  ;;  %v12405_v41 = vld [vmem:[%s9955_s6 + $0xac] sm:$0xff]  }
 0x210   : > { %v2069_v0 = vmul.f32 %v2030_v47, %v14264_v52  ;;  %v2070_v61 = vmul.f32 %v2032_v32, %v14265_v42  ;;  %v14267_v42 = vunpack.c.h.bf16 %v12191_v22  ;;  %v9645_v22 = vld [vmem:[%s14009_s3 + $0xd8] sm:$0xff]  }
 0x211   : > { %v2913_v59 = vrot.slane %v9263_v5, 1  ;;  %v2911_v20 = vrot.slane %v9262_v24, 1 }
 0x212   : > { %v2081_v52 = vpack.c.bf16 %v2070_v61, %v2069_v0  ;;  %v12401_v32 = vpack.i.bf16 %v14267_v42, %v14266_v55  ;;  %6498 = vmatpush1.bf16.msra.mxu0 %v9644_v40  ;;  %v14268_v55 = vmax.f32 %v12128_v57, 0.0 }
 0x213   : > { %6293 = vmatmul.mubr.bf16.vlgmr.msra.gmra.mrb[152].mxu1 %v11730_v56  ;;  %v2912_v24 = vsel %vm1512_vm9, %v11875_v25, %v2911_v20  ;;  %v2914_v61 = vsel %vm1512_vm9, %v2911_v20, %v2913_v59  ;;  %6499 = vmatprep.subr.bf16.mxu0 %v12011_v18 }
 0x214   : > { %v9266_v47 = vpop.permute.xlu0 %9265  ;;  %8437 = vmatprep.mubr.msk.bf16.mxu1 %vm227_vm3, %v12087_v49  ;;  %v2951_v42 = vmul.f32 %v2912_v24, %v14268_v55  ;;  %v2952_v5 = vmul.f32 %v2914_v61, %v14269_v12  ;;  %6872 = vmatpush1.bf16.msra.mxu1 %v9654_v2  ;;  %v9655_v49 = vld [vmem:[%s14009_s3 + $0x68] sm:$0xff]   ;;  %v12424_v27 = vrot.slane %v2081_v52, 4  ;;  %v12433_v2 = vld [vmem:[%s9955_s6 + $0xb4] sm:$0xff]   ;;  %v14271_v55 = vmax.f32 %v12105_v37, 0.0 }
 0x215   : > { %v9268_v0 = vunpack.i.h.bf16 %v9266_v47  ;;  %v9267_v43 = vunpack.i.l.bf16 %v9266_v47  ;;  %v9271_v56 = vpop.permute.xlu1 %9270  ;;  %6873 = vmatprep.subr.bf16.mxu1 %v12011_v18 }
 0x216   : > { %v9273_v25 = vunpack.i.h.bf16 %v9271_v56  ;;  %v9272_v20 = vunpack.i.l.bf16 %v9271_v56  ;;  %v2963_v35 = vpack.c.bf16 %v2952_v5, %v2951_v42  ;;  %v12430_v56 = vld [vmem:[#allocation2 + $0xb0] sm:$0xff]  ;;  %v2101_v5 = vsel %vm706_vm8, %v11947_v46, %v12424_v27  ;;  %6500 = vmatpush1.bf16.msra.mxu0 %v9645_v22 }
 0x217   : > { %v2035_v40 = vrot.slane %v9268_v0, 7  ;;  %v2033_v47 = vrot.slane %v9267_v43, 7  ;;  %v5935_v57 = vrot.slane %v12430_v56, 4  ;;  %2121 = vst.msk [vmem:[#allocation2 + $0xd0] sm:$0xff] %vm227_vm3, %v2101_v5  ;;  %6501 = vmatprep.subr.bf16.mxu0 %v12011_v18 }
 0x218   : > { %v12428_v12 = vrot.slane %v9273_v25, 1  ;;  %v2915_v24 = vrot.slane %v9272_v20, 1  ;;  %v2492_v61 = vpop.permute.xlu0 %2491  ;;  %v2982_v42 = vrot.slane %v2963_v35, 4  ;;  %v14270_v25 = vmax.f32 %v12095_v50, 0.0  ;;  %6874 = vmatpush1.bf16.msra.mxu1 %v9655_v49 }
 0x219   : > { %v2034_v0 = vsel %vm624_vm7, %v2031_v13, %v2033_v47  ;;  %v2036_v43 = vsel %vm624_vm7, %v2033_v47, %v2035_v40  ;;  %2515 = vst.msk [vmem:[#allocation2 + $0xc0] sm:$0xff] %vm1128_vm11, %v2492_v61  ;;  %v9276_v52 = vpop.permute.xlu1 %9275  ;;  %v9646_v47 = vld [vmem:[%s14009_s3 + $0xe0] sm:$0xff]   ;;  %v14272_v50 = vmax.f32 %v12125_v26, 0.0  ;;  %6875 = vmatprep.subr.bf16.mxu1 %v12011_v18  ;;  %v14273_v49 = vmax.f32 %v12131_v62, 0.0  ;;  %v9865_v62 = vld [vmem:[%s9955_s6 + $0xcc] sm:$0xff]  }
 0x21a   : > { %v2071_v20 = vmul.f32 %v2034_v0, %v14270_v25  ;;  %v2072_v54 = vmul.f32 %v2036_v43, %v14271_v55  ;;  %v2916_v13 = vsel %vm1512_vm9, %v2913_v59, %v2915_v24  ;;  %v2918_v46 = vsel %vm1512_vm9, %v2915_v24, %v12428_v12  ;;  %v9656_v59 = vld [vmem:[%s14009_s3 + $0x70] sm:$0xff]   ;;  %6502 = vmatpush1.bf16.msra.mxu0 %v9646_v47 }
 0x21b   : > { %v2953_v22 = vmul.f32 %v2916_v13, %v14272_v50  ;;  %v9278_v37 = vunpack.i.h.bf16 %v9276_v52  ;;  %v9277_v35 = vunpack.i.l.bf16 %v9276_v52  ;;  %v2983_v61 = vsel %vm706_vm8, %v11968_v9, %v2982_v42  ;;  %6301 = vmatmul.mubr.bf16.gmra.mrb[156].mxu1 %v12240_v30  ;;  %v9866_v13 = vld [vmem:[%s9955_s6 + $0xb0] sm:$0xff]   ;;  %v12485_v50 = vld [vmem:[%s9955_s6 + $0xb8] sm:$0xff]   ;;  %6503 = vmatprep.subr.bf16.mxu0 %v12011_v18 }
 0x21c   : > { %v2082_v55 = vpack.c.bf16 %v2072_v54, %v2071_v20  ;;  %v2954_v0 = vmul.f32 %v2918_v46, %v14273_v49  ;;  %v14274_v26 = vrot.slane %v12275_v17, 4  ;;  %3003 = vst.msk [vmem:[#allocation2 + $0xd8] sm:$0xff] %vm227_vm3, %v2983_v61  ;;  %8438 = vmatprep.mubr.msk.bf16.mxu1 %vm227_vm3, %v11959_v11  ;;  %v4741_v54 = vunpack.c.l.bf16 %v9865_v62  ;;  %v9647_v20 = vld [vmem:[%s14009_s3 + $0xe8] sm:$0xff]   ;;  %6876 = vmatpush1.bf16.msra.mxu1 %v9656_v59 }
 0x21d   : > { %v12472_v43 = vrot.slane %v9278_v37, 7  ;;  %v2037_v52 = vrot.slane %v9277_v35, 7  ;;  %v2494_v9 = vpop.permute.xlu1 %2493  ;;  %v4742_v5 = vunpack.c.h.bf16 %v9865_v62  ;;  %v3321_v46 = vunpack.c.h.bf16 %v9866_v13  ;;  %v9658_v35 = vld [vmem:[%s14009_s3 + $0x78] sm:$0xff]   ;;  %6877 = vmatprep.subr.bf16.mxu1 %v12011_v18 }
 0x21e   : > { %v5936_v24 = vsel %vm706_vm8, %v14274_v26, %v5935_v57  ;;  %v2964_v25 = vpack.c.bf16 %v2954_v0, %v2953_v22  ;;  %2516 = vst.msk [vmem:[#allocation2 + $0xd0] sm:$0xff] %vm1128_vm11, %v2494_v9  ;;  %v2102_v30 = vrot.slane %v2082_v55, 4  ;;  %v3322_v11 = vunpack.c.l.bf16 %v12485_v50  ;;  %6504 = vmatpush1.bf16.msra.mxu0 %v9647_v20 }
 0x21f   : > { %6108 = vmatmul.mubr.bf16.gmra.mrb[128].mxu0 %v5936_v24  ;;  %v2038_v37 = vsel %vm624_vm7, %v2035_v40, %v2037_v52  ;;  %v2040_v22 = vsel %vm624_vm7, %v2037_v52, %v12472_v43  ;;  %v3320_v47 = vunpack.c.l.bf16 %v9866_v13  ;;  %v14275_v55 = vmax.f32 %v12114_v14, 0.0  ;;  %6505 = vmatprep.subr.bf16.mxu0 %v12011_v18 }
 0x220   : > { %8418 = vmatprep.mubr.msk.bf16.mxu0 %vm227_vm3, %v12299_v7  ;;  %v3319_v7 = vunpack.c.h.bf16 %v12001_v44  ;;  %v12496_v61 = vrot.slane %v2964_v25, 4  ;;  %v14276_v40 = vmax.f32 %v12121_v3, 0.0  ;;  %v12502_v24 = vld [vmem:[#allocation2 + $0xc0] sm:$0xff]  ;;  %v2103_v44 = vsel %vm706_vm8, %v12424_v27, %v2102_v30  ;;  %v9648_v27 = vld [vmem:[%s14009_s3 + $0xf0] sm:$0xff]   ;;  %6878 = vmatpush1.bf16.msra.mxu1 %v9658_v35 }
 0x221   : > { %v2073_v49 = vmul.f32 %v2038_v37, %v14275_v55  ;;  %v9281_v26 = vpop.permute.xlu0 %9280  ;;  %v5939_v9 = vrot.slane %v12502_v24, 4  ;;  %2122 = vst.msk [vmem:[#allocation2 + $0xe0] sm:$0xff] %vm227_vm3, %v2103_v44  ;;  %v14277_v14 = vunpack.c.h.bf16 %v11991_v60  ;;  %v14278_v62 = vunpack.c.l.bf16 %v12405_v41  ;;  %v12548_v44 = vld [vmem:[%s9955_s6 + $0xbc] sm:$0xff]   ;;  %6879 = vmatprep.subr.bf16.mxu1 %v12011_v18 }
 0x222   : > { %v2074_v0 = vmul.f32 %v2040_v22, %v14276_v40  ;;  %v9283_v59 = vunpack.i.h.bf16 %v9281_v26  ;;  %v9282_v52 = vunpack.i.l.bf16 %v9281_v26  ;;  %v2985_v25 = vsel %vm706_vm8, %v2982_v42, %v12496_v61  ;;  %6506 = vmatpush1.bf16.msra.mxu0 %v9648_v27 }
 0x223   : > { %v12513_v3 = vpack.i.bf16 %v14278_v62, %v14277_v14  ;;  %v14279_v37 = vunpack.c.h.bf16 %v12405_v41  ;;  %v14280_v22 = vunpack.c.l.bf16 %v12433_v2  ;;  %v12526_v60 = vpack.i.bf16 %v4742_v5, %v4741_v54  ;;  %3004 = vst.msk [vmem:[#allocation2 + $0xe8] sm:$0xff] %vm227_vm3, %v2985_v25  ;;  %v9660_v54 = vld [vmem:[%s14009_s3 + $0x80] sm:$0xff]   ;;  %6309 = vmatmul.mubr.bf16.gmra.mrb[160].mxu1 %v12275_v17  ;;  %6507 = vmatprep.subr.bf16.mxu0 %v12011_v18 }
 0x224   : > { %v2083_v13 = vpack.c.bf16 %v2074_v0, %v2073_v49  ;;  %v2921_v40 = vrot.slane %v9283_v59, 1  ;;  %v2919_v42 = vrot.slane %v9282_v52, 1  ;;  %v5940_v20 = vsel %vm706_vm8, %v5935_v57, %v5939_v9  ;;  %v12541_v49 = vld [vmem:[#allocation2 + $0xd8] sm:$0xff]  ;;  %8439 = vmatprep.mubr.msk.bf16.mxu1 %vm227_vm3, %v12182_v36  ;;  %6880 = vmatpush1.bf16.msra.mxu1 %v9660_v54 }
 0x225   : > { %v12524_v55 = vpack.i.bf16 %v14280_v22, %v14279_v37  ;;  %v12535_v41 = vpack.i.bf16 %v3322_v11, %v3321_v46  ;;  %v12545_v26 = vpack.i.bf16 %v3320_v47, %v3319_v7  ;;  %v4205_v57 = vunpack.c.h.bf16 %v12548_v44  ;;  %v9869_v46 = vld [vmem:[%s9955_s6 + $0xc4] sm:$0x1]  ;;  %v12558_v7 = vld [vmem:[#allocation2 + $0xd0] sm:$0xff]  ;;  %v9649_v22 = vld [vmem:[%s14009_s3 + $0xf8] sm:$0xff]   ;;  %6881 = vmatprep.subr.bf16.mxu1 %v12011_v18 }
 0x226   : > { %v9286_v5 = vpop.permute.xlu0 %9285  ;;  %v12543_v0 = vrot.slane %v2083_v13, 4  ;;  %v4206_v11 = vunpack.c.l.bf16 %v9869_v46  ;;  %v2920_v35 = vsel %vm1512_vm9, %v12428_v12, %v2919_v42  ;;  %v2922_v59 = vsel %vm1512_vm9, %v2919_v42, %v2921_v40  ;;  %6508 = vmatpush1.bf16.msra.mxu0 %v9649_v22 }
 0x227   : > { %v9288_v17 = vunpack.i.h.bf16 %v9286_v5  ;;  %v9287_v52 = vunpack.i.l.bf16 %v9286_v5  ;;  %6116 = vmatmul.mubr.bf16.gmra.mrb[132].mxu0 %v5940_v20  ;;  %v14281_v47 = vmax.f32 %v12160_v10, 0.0  ;;  %v14282_v62 = vmax.f32 %v12180_v6, 0.0  ;;  %v9662_v6 = vld [vmem:[%s14009_s3 + $0x88] sm:$0xff]   ;;  %6509 = vmatprep.subr.bf16.mxu0 %v12011_v18 }
 0x228   : > { %v5945_v37 = vrot.slane %v12541_v49, 4  ;;  %v2105_v12 = vsel %vm706_vm8, %v2102_v30, %v12543_v0  ;;  %v14283_v27 = vrot.slane %v12225_v53, 4  ;;  %6882 = vmatpush1.bf16.msra.mxu1 %v9662_v6 }
 0x229   : > { %v2955_v14 = vmul.f32 %v2920_v35, %v14281_v47  ;;  %v2956_v25 = vmul.f32 %v2922_v59, %v14282_v62  ;;  %v9291_v13 = vpop.permute.xlu1 %9290  ;;  %v2043_v36 = vrot.slane %v9288_v17, 7  ;;  %v2041_v42 = vrot.slane %v9287_v52, 7  ;;  %2123 = vst.msk [vmem:[#allocation2 + $0xf0] sm:$0xff] %vm227_vm3, %v2105_v12  ;;  %6883 = vmatprep.subr.bf16.mxu1 %v12011_v18 }
 0x22a   : > { %v9293_v20 = vunpack.i.h.bf16 %v9291_v13  ;;  %v9292_v5 = vunpack.i.l.bf16 %v9291_v13  ;;  %v2496_v30 = vpop.permute.xlu0 %2495  ;;  %v5946_v46 = vsel %vm706_vm8, %v14283_v27, %v5945_v37  ;;  %v5943_v35 = vrot.slane %v12558_v7, 4  ;;  %v12590_v59 = vld [vmem:[#allocation2 + $0xe8] sm:$0xff] }
 0x22b   : > { %v2965_v10 = vpack.c.bf16 %v2956_v25, %v2955_v14  ;;  %v2042_v17 = vsel %vm624_vm7, %v12472_v43, %v2041_v42  ;;  %v2044_v54 = vsel %vm624_vm7, %v2041_v42, %v2043_v36  ;;  %2517 = vst.msk [vmem:[#allocation2 + $0xe0] sm:$0xff] %vm1128_vm11, %v2496_v30  ;;  %8419 = vmatprep.mubr.msk.bf16.mxu0 %vm227_vm3, %v5946_v46  ;;  %v14284_v62 = vmax.f32 %v12111_v28, 0.0  ;;  %v9650_v43 = vld [vmem:[%s14009_s3 + $0x100] sm:$0xff]  }
 0x22c   : > { %v2925_v52 = vrot.slane %v9293_v20, 1  ;;  %v2923_v47 = vrot.slane %v9292_v5, 1  ;;  %v14285_v13 = vmax.f32 %v12118_v33, 0.0  ;;  %v12595_v36 = vpack.i.bf16 %v4206_v11, %v4205_v57  ;;  %6317 = vmatmul.mubr.bf16.gmra.mrb[164].mxu1 %v12430_v56  ;;  %6510 = vmatpush1.bf16.msra.mxu0 %v9650_v43 }
 0x22d   : > { %v2986_v14 = vrot.slane %v2965_v10, 4  ;;  %v2075_v25 = vmul.f32 %v2042_v17, %v14284_v62  ;;  %v2498_v27 = vpop.permute.xlu1 %2497  ;;  %v5944_v33 = vsel %vm706_vm8, %v5939_v9, %v5943_v35  ;;  %v5949_v28 = vrot.slane %v12590_v59, 4  ;;  %v9664_v9 = vld [vmem:[%s14009_s3 + $0x90] sm:$0xff]   ;;  %8440 = vmatprep.mubr.msk.bf16.mxu1 %vm227_vm3, %v12225_v53  ;;  %v14289_v53 = vld [vmem:[#allocation16_spill] sm:$0xff]  ;;  %6511 = vmatprep.subr.bf16.mxu0 %v12011_v18 }
 0x22e   : > { %v2076_v12 = vmul.f32 %v2044_v54, %v14285_v13  ;;  %v2924_v42 = vsel %vm1512_vm9, %v2921_v40, %v2923_v47  ;;  %v2926_v20 = vsel %vm1512_vm9, %v2923_v47, %v2925_v52  ;;  %2518 = vst.msk [vmem:[#allocation2 + $0xf0] sm:$0xff] %vm1128_vm11, %v2498_v27  ;;  %v14286_v40 = vmax.f32 %v12151_v34, 0.0  ;;  %v9651_v54 = vld [vmem:[%s14009_s3 + $0x108] sm:$0xff]   ;;  %v9870_v52 = vld [vmem:[%s9955_s6 + $0xd4] sm:$0xff]   ;;  %6884 = vmatpush1.bf16.msra.mxu1 %v9664_v9 }
 0x22f   : > { %v2987_v57 = vsel %vm706_vm8, %v12496_v61, %v2986_v14  ;;  %v14287_v5 = vmax.f32 %v12171_v45, 0.0  ;;  %v9296_v30 = vpop.permute.xlu0 %9295  ;;  %6124 = vmatmul.mubr.bf16.gmra.mrb[136].mxu0 %v5944_v33  ;;  %v5950_v34 = vsel %vm706_vm8, %v5945_v37, %v5949_v28  ;;  %v4204_v45 = vunpack.c.l.bf16 %v12548_v44  ;;  %6885 = vmatprep.subr.bf16.mxu1 %v12011_v18 }
 0x230   : > { %v2084_v11 = vpack.c.bf16 %v2076_v12, %v2075_v25  ;;  %v2957_v22 = vmul.f32 %v2924_v42, %v14286_v40  ;;  %3005 = vst.msk [vmem:[#allocation2 + $0xf8] sm:$0xff] %vm227_vm3, %v2987_v57  ;;  %v9298_v6 = vunpack.i.h.bf16 %v9296_v30  ;;  %v9297_v46 = vunpack.i.l.bf16 %v9296_v30  ;;  %8420 = vmatprep.mubr.msk.bf16.mxu0 %vm227_vm3, %v5950_v34  ;;  %v9871_v57 = vld [vmem:[%s9955_s6 + $0xc0] sm:$0xf]  ;;  %v14291_v40 = vld [vmem:[#allocation20_spill] sm:$0xff]  ;;  %6512 = vmatpush1.bf16.msra.mxu0 %v9651_v54 }
 0x231   : > { %v2958_v10 = vmul.f32 %v2926_v20, %v14287_v5  ;;  %v9301_v56 = vpop.permute.xlu1 %9300  ;;  %v4743_v47 = vunpack.c.l.bf16 %v9870_v52  ;;  %v4744_v62 = vunpack.c.h.bf16 %v9870_v52  ;;  %v14288_v37 = vmax.f32 %v12238_v15, 0.0  ;;  %6513 = vmatprep.subr.bf16.mxu0 %v12011_v18 }
 0x232   : > { %v2106_v17 = vrot.slane %v2084_v11, 4  ;;  %v14290_v13 = vmax.f32 %v14289_v53, 0.0  ;;  %v9303_v12 = vunpack.i.h.bf16 %v9301_v56  ;;  %v9302_v27 = vunpack.i.l.bf16 %v9301_v56  ;;  %v12638_v33 = vld [vmem:[#allocation2 + $0xe0] sm:$0xff]  ;;  %v9652_v56 = vld [vmem:[%s14009_s3 + $0x110] sm:$0xff]  }
 0x233   : > { %v2966_v61 = vpack.c.bf16 %v2958_v10, %v2957_v22  ;;  %v3820_v25 = vmul.f32 %v9298_v6, %v14288_v37  ;;  %v2500_v42 = vpop.permute.xlu0 %2499  ;;  %v3323_v15 = vunpack.c.h.bf16 %v12485_v50  ;;  %v3324_v11 = vunpack.c.l.bf16 %v9871_v57  ;;  %v14293_v10 = vld [vmem:[#allocation5_spill] sm:$0xff]  ;;  %v9873_v37 = vld [vmem:[%s9955_s6 + $0xc4] sm:$0xf] }
 0x234   : > { %v3819_v44 = vmul.f32 %v9297_v46, %v14290_v13  ;;  %v2107_v20 = vsel %vm706_vm8, %v12543_v0, %v2106_v17  ;;  %2125 = vst.msk [vmem:[#allocation2 + $0x110] sm:$0xf] %vm230_vm5, %v2106_v17  ;;  %v14292_v22 = vmax.f32 %v14291_v40, 0.0  ;;  %v14294_v30 = vmax.f32 %v14293_v10, 0.0  ;;  %v9872_v17 = vld [vmem:[%s9955_s6 + $0xc0] sm:$0x8]  ;;  %6325 = vmatmul.mubr.bf16.gmra.mrb[168].mxu1 %v12502_v24  ;;  %6514 = vmatpush1.bf16.msra.mxu0 %v9652_v56 }
 0x235   : > { %v2988_v43 = vrot.slane %v2966_v61, 4  ;;  %2124 = vst.msk [vmem:[#allocation2 + $0x100] sm:$0xff] %vm227_vm3, %v2107_v20  ;;  %v5947_v46 = vrot.slane %v12638_v33, 4  ;;  %v9306_v9 = vpop.permute.xlu1 %9305  ;;  %v14295_v34 = vunpack.c.h.bf16 %v12433_v2  ;;  %v4544_v52 = vunpack.c.l.bf16 %v9872_v17  ;;  %v9666_v2 = vld [vmem:[%s14009_s3 + $0x98] sm:$0xff]   ;;  %8441 = vmatprep.mubr.msk.bf16.mxu1 %vm227_vm3, %v12541_v49  ;;  %v12703_v10 = vld [vmem:[%s9955_s6 + $0xcc] sm:$0xff]   ;;  %6515 = vmatprep.subr.bf16.mxu0 %v12011_v18  ;;  %v9668_v56 = vld [vmem:[%s14009_s3 + $0xa0] sm:$0xff]  }
 0x236   : > { %v3822_v5 = vmul.f32 %v9303_v12, %v14292_v22  ;;  %v3821_v6 = vmul.f32 %v9302_v27, %v14294_v30  ;;  %v3835_v0 = vpack.c.bf16 %v3820_v25, %v3819_v44  ;;  %2519 = vst.msk [vmem:[#allocation2 + $0x100] sm:$0xff] %vm1128_vm11, %v2500_v42  ;;  %v4545_v25 = vunpack.c.l.bf16 %v9873_v37  ;;  %v12679_v42 = vld [vmem:[%s9955_s6 + $0xd0] sm:$0xff]   ;;  %6886 = vmatpush1.bf16.msra.mxu1 %v9666_v2  ;;  %v14299_v2 = vld [vmem:[#allocation4_spill] sm:$0xff] }
 0x237   : > { %v2989_v50 = vsel %vm706_vm8, %v2986_v14, %v2988_v43  ;;  %3007 = vst.msk [vmem:[#allocation2 + $0x118] sm:$0xf] %vm230_vm5, %v2988_v43  ;;  %v12654_v61 = vpack.i.bf16 %v4204_v45, %v14295_v34  ;;  %v9308_v53 = vunpack.i.h.bf16 %v9306_v9  ;;  %v9307_v13 = vunpack.i.l.bf16 %v9306_v9  ;;  %v2502_v45 = vpop.permute.xlu0 %2501  ;;  %v12672_v12 = vld [vmem:[#allocation2 + $0xf8] sm:$0xff]  ;;  %6887 = vmatprep.subr.bf16.mxu1 %v12011_v18 }
 0x238   : > { %3006 = vst.msk [vmem:[#allocation2 + $0x108] sm:$0xff] %vm227_vm3, %v2989_v50  ;;  %v3836_v14 = vpack.c.bf16 %v3822_v5, %v3821_v6  ;;  %v3851_v44 = vrot.slane %v3835_v0, 4  ;;  %v5948_v54 = vsel %vm706_vm8, %v5943_v35, %v5947_v46  ;;  %v12674_v27 = vpack.i.bf16 %v4744_v62, %v4743_v47  ;;  %v12689_v62 = vld [vmem:[#allocation2 + $0xf0] sm:$0xff] }
 0x239   : > { %v12676_v43 = vpack.i.bf16 %v3324_v11, %v3323_v15  ;;  %v4548_v20 = vunpack.c.l.bf16 %v12679_v42  ;;  %v14296_v57 = vmax.f32 %v12288_v19, 0.0  ;;  %v14297_v22 = vmax.f32 %v12266_v31, 0.0  ;;  %2520 = vst.msk [vmem:[#allocation2 + $0x110] sm:$0xf] %vm1136_vm12, %v2502_v45  ;;  %6132 = vmatmul.mubr.bf16.gmra.mrb[140].mxu0 %v5948_v54  ;;  %v9311_v15 = vpop.permute.xlu1 %9310  ;;  %v9653_v31 = vld [vmem:[%s14009_s3 + $0x118] sm:$0xff]   ;;  %v12699_v11 = vld [vmem:[%s9955_s6 + $0xc4] sm:$0xff]  }
 0x23a   : > { %3866 = vrot.lane.b32.xlu1 %v3851_v44, %s9898_s9  ;;  %v5953_v24 = vrot.slane %v12672_v12, 4  ;;  %v3852_v47 = vrot.slane %v3836_v14, 4  ;;  %v12696_v19 = vpack.i.bf16 %v4545_v25, %v4544_v52  ;;  %v4956_v5 = vunpack.c.l.bf16 %v12699_v11  ;;  %v12707_v6 = vld [vmem:[%s9955_s6 + $0xd4] sm:$0xff]   ;;  %v12723_v25 = vld [vmem:[%s9955_s6 + $0xc8] sm:$0xff]   ;;  %6516 = vmatpush1.bf16.msra.mxu0 %v9653_v31 }
 0x23b   : > { %v3824_v40 = vmul.f32 %v9308_v53, %v14296_v57  ;;  %v3823_v35 = vmul.f32 %v9307_v13, %v14297_v22  ;;  %v4959_v30 = vunpack.c.h.bf16 %v12703_v10  ;;  %v4960_v49 = vunpack.c.l.bf16 %v12707_v6  ;;  %7064 = vmatprep.subr.bf16.mxu0 %v12011_v18  ;;  %6888 = vmatpush1.bf16.msra.mxu1 %v9668_v56 }
 0x23c   : > { %v9313_v50 = vunpack.i.h.bf16 %v9311_v15  ;;  %v9312_v9 = vunpack.i.l.bf16 %v9311_v15  ;;  %v5954_v34 = vsel %vm706_vm8, %v5949_v28, %v5953_v24  ;;  %v9316_v17 = vpop.permute.xlu0 %9315  ;;  %v3853_v52 = vsel %vm706_vm8, %v3851_v44, %v3852_v47  ;;  %6333 = vmatmul.mubr.bf16.gmra.mrb[172].mxu1 %v12558_v7  ;;  %6889 = vmatprep.subr.bf16.mxu1 %v12011_v18 }
 0x23d   : > { %v3837_v0 = vpack.c.bf16 %v3824_v40, %v3823_v35  ;;  %8421 = vmatprep.mubr.msk.bf16.mxu0 %vm227_vm3, %v5954_v34  ;;  %v5951_v37 = vrot.slane %v12689_v62, 4  ;;  %v4546_v14 = vunpack.c.l.bf16 %v12723_v25  ;;  %v4547_v28 = vunpack.c.h.bf16 %v12723_v25  ;;  %3868 = vrot.lane.b32.xlu0 %v3853_v52, %s9898_s9  ;;  %v12744_v52 = vld [vmem:[#allocation2 + $0x100] sm:$0xff] }
 0x23e   : > { %v14298_v53 = vmax.f32 %v12280_v1, 0.0  ;;  %v14300_v45 = vmax.f32 %v14299_v2, 0.0  ;;  %v9318_v57 = vunpack.i.h.bf16 %v9316_v17  ;;  %v9317_v40 = vunpack.i.l.bf16 %v9316_v17  ;;  %9390 = vperm.xlu1 %9053, %v12401_v32   ;;  %v9321_v44 = vpop.permute.xlu1 %9320  ;;  %8442 = vmatprep.mubr.msk.bf16.mxu1 %vm227_vm3, %v12590_v59 }
 0x23f   : > { %v3854_v22 = vrot.slane %v3837_v0, 4  ;;  %v12734_v35 = vld [vmem:[#allocation2 + $0x108] sm:$0xff]  ;;  %v12736_v15 = vpack.i.bf16 %v4956_v5, %v4548_v20  ;;  %v4957_v34 = vunpack.c.h.bf16 %v12699_v11  ;;  %v4958_v1 = vunpack.c.l.bf16 %v12703_v10  ;;  %v9665_v11 = vld [vmem:[%s14009_s3 + $0x20] sm:$0xff]  }
 0x240   : > { %v3826_v13 = vmul.f32 %v9313_v50, %v14298_v53  ;;  %v3825_v54 = vmul.f32 %v9312_v9, %v14300_v45  ;;  %v14301_v9 = vmax.f32 %v12341_v39, 0.0  ;;  %v14302_v17 = vmax.f32 %v12319_v29, 0.0  ;;  %v9670_v20 = vld [vmem:[%s14009_s3 + $0xa8] sm:$0xff]   ;;  %v9326_v5 = vpop.permute.xlu0 %9325 }
 0x241   : > { %v9323_v2 = vunpack.i.h.bf16 %v9321_v44  ;;  %v9322_v31 = vunpack.i.l.bf16 %v9321_v44  ;;  %v3855_v0 = vsel %vm706_vm8, %v3852_v47, %v3854_v22  ;;  %v5952_v29 = vsel %vm706_vm8, %v5947_v46, %v5951_v37  ;;  %9385 = vperm.xlu0 %9042, %v12513_v3   ;;  %v5886_v47 = vld [vmem:[#allocation2 + $0x118] sm:$0xf]  ;;  %6890 = vmatpush1.bf16.msra.mxu1 %v9670_v20 }
 0x242   : > { %v3838_v50 = vpack.c.bf16 %v3826_v13, %v3825_v54  ;;  %v3828_v53 = vmul.f32 %v9318_v57, %v14301_v9  ;;  %v3827_v32 = vmul.f32 %v9317_v40, %v14302_v17  ;;  %v5957_v39 = vrot.slane %v12734_v35, 4  ;;  %3870 = vrot.lane.b32.xlu1 %v3855_v0, %s9898_s9  ;;  %6140 = vmatmul.mubr.bf16.gmra.mrb[144].mxu0 %v5952_v29  ;;  %v9331_v7 = vpop.permute.xlu1 %9330 }
 0x243   : > { %v14303_v13 = vmax.f32 %v12330_v16, 0.0  ;;  %v9328_v54 = vunpack.i.h.bf16 %v9326_v5  ;;  %v9327_v57 = vunpack.i.l.bf16 %v9326_v5  ;;  %v14304_v40 = vmax.f32 %v12307_v58, 0.0 }
 0x244   : > { %v3839_v56 = vpack.c.bf16 %v3828_v53, %v3827_v32  ;;  %v5958_v18 = vsel %vm706_vm8, %v5953_v24, %v5957_v39  ;;  %v5955_v16 = vrot.slane %v12744_v52, 4  ;;  %v3856_v44 = vrot.slane %v3838_v50, 4  ;;  %v9672_v24 = vld [vmem:[%s14009_s3 + $0xb0] sm:$0xff]   ;;  %6341 = vmatmul.mubr.bf16.gmra.mrb[176].mxu1 %v12638_v33 }
 0x245   : > { %v3830_v45 = vmul.f32 %v9323_v2, %v14303_v13  ;;  %v3829_v46 = vmul.f32 %v9322_v31, %v14304_v40  ;;  %v14305_v9 = vmax.f32 %v12371_v63, 0.0  ;;  %v14306_v3 = vmax.f32 %v12363_v21, 0.0  ;;  %8422 = vmatprep.mubr.msk.bf16.mxu0 %vm227_vm3, %v5958_v18  ;;  %v9336_v31 = vpop.permute.xlu0 %9335  ;;  %v12780_v63 = vld [vmem:[#allocation2] sm:$0xff]  ;;  %9395 = vperm.xlu0 %9042, %v12526_v60   ;;  %v5885_v18 = vld [vmem:[#allocation2 + $0x110] sm:$0xf] }
 0x246   : > { %v9333_v58 = vunpack.i.h.bf16 %v9331_v7  ;;  %v9332_v32 = vunpack.i.l.bf16 %v9331_v7  ;;  %v5961_v5 = vrot.slane %v5886_v47, 4  ;;  %v3858_v0 = vrot.slane %v3839_v56, 4  ;;  %6891 = vmatprep.subr.bf16.mxu1 %v12780_v63  ;;  %9405 = vperm.xlu1 %9053, %v12524_v55   ;;  %v9341_v47 = vpop.permute.xlu1 %9340  ;;  %v9674_v55 = vld [vmem:[%s14009_s3 + $0xb8] sm:$0xff]  }
 0x247   : > { %v3832_v53 = vmul.f32 %v9328_v54, %v14305_v9  ;;  %v3831_v17 = vmul.f32 %v9327_v57, %v14306_v3  ;;  %v3840_v2 = vpack.c.bf16 %v3830_v45, %v3829_v46  ;;  %v3857_v50 = vsel %vm706_vm8, %v3854_v22, %v3856_v44  ;;  %6892 = vmatpush1.bf16.msra.mxu1 %v9672_v24 }
 0x248   : > { %v14307_v29 = vmax.f32 %v12367_v51, 0.0  ;;  %v14308_v20 = vmax.f32 %v12359_v38, 0.0  ;;  %v9338_v57 = vunpack.i.h.bf16 %v9336_v31  ;;  %v9337_v56 = vunpack.i.l.bf16 %v9336_v31  ;;  %6893 = vmatprep.subr.bf16.mxu1 %v12780_v63  ;;  %8443 = vmatprep.mubr.msk.bf16.mxu1 %vm227_vm3, %v12672_v12 }
 0x249   : > { %v3841_v21 = vpack.c.bf16 %v3832_v53, %v3831_v17  ;;  %v3860_v45 = vrot.slane %v3840_v2, 4  ;;  %v5956_v22 = vsel %vm706_vm8, %v5951_v37, %v5955_v16  ;;  %v3859_v51 = vsel %vm706_vm8, %v3856_v44, %v3858_v0  ;;  %v9346_v53 = vpop.permute.xlu0 %9345  ;;  %9400 = vperm.xlu0 %9042, %v12545_v26  }
 0x24a   : > { %v3834_v13 = vmul.f32 %v9333_v58, %v14307_v29  ;;  %v3833_v54 = vmul.f32 %v9332_v32, %v14308_v20  ;;  %v3394_v38 = vrot.slane %v9338_v57, 7  ;;  %v9343_v7 = vunpack.i.h.bf16 %v9341_v47  ;;  %9410 = vperm.xlu1 %9053, %v12535_v41   ;;  %6148 = vmatmul.mubr.bf16.gmra.mrb[148].mxu0 %v5956_v22  ;;  %v9351_v31 = vpop.permute.xlu1 %9350 }
 0x24b   : > { %v3862_v40 = vrot.slane %v3841_v21, 4  ;;  %v3393_v60 = vrot.slane %v9337_v56, 7  ;;  %v9342_v9 = vunpack.i.l.bf16 %v9341_v47  ;;  %v5962_v3 = vsel %vm706_vm8, %v5957_v39, %v5961_v5  ;;  %6894 = vmatpush1.bf16.msra.mxu1 %v9674_v55 }
 0x24c   : > { %v3842_v46 = vpack.c.bf16 %v3834_v13, %v3833_v54  ;;  %v12801_v37 = vsel %vm706_vm8, %v3858_v0, %v3860_v45  ;;  %v3398_v17 = vrot.slane %v9343_v7, 7  ;;  %v9348_v58 = vunpack.i.h.bf16 %v9346_v53  ;;  %v14309_v0 = vld [vmem:[#allocation7_spill] sm:$0xff]  ;;  %8423 = vmatprep.mubr.msk.bf16.mxu0 %vm227_vm3, %v5962_v3  ;;  %7297 = vmatprep.subr.bf16.mxu1 %v12780_v63  ;;  %v14313_v7 = vld [vmem:[#allocation6_spill] sm:$0xff] }
 0x24d   : > { %v9347_v32 = vunpack.i.l.bf16 %v9346_v53  ;;  %v3395_v24 = vsel %vm624_vm7, %v3393_v60, %v3394_v38  ;;  %v3396_v2 = vrot.slane %v9342_v9, 7  ;;  %v5959_v39 = vrot.slane %v5885_v18, 4  ;;  %v9356_v56 = vpop.permute.xlu0 %9355  ;;  %3872 = vrot.lane.b32.xlu0 %v3857_v50, %s9898_s9  ;;  %v14315_v9 = vld [vmem:[#allocation8_spill] sm:$0xff]  ;;  %6349 = vmatmul.mubr.bf16.gmra.mrb[180].mxu1 %v12689_v62 }
 0x24e   : > { %v12804_v44 = vrot.slane %v3842_v46, 4  ;;  %v12812_v5 = vsel %vm706_vm8, %v3860_v45, %v3862_v40  ;;  %v14310_v21 = vmax.f32 %v14309_v0, 0.0  ;;  %v4275_v13 = vrot.slane %v9348_v58, 1  ;;  %v14311_v45 = vld [vmem:[#allocation9_spill] sm:$0xff]  ;;  %3874 = vrot.lane.b32.xlu1 %v3859_v51, %s9898_s9 }
 0x24f   : > { %v3400_v20 = vrot.slane %v9347_v32, 7  ;;  %v9353_v41 = vunpack.i.h.bf16 %v9351_v31  ;;  %v3397_v26 = vsel %vm624_vm7, %v3394_v38, %v3396_v2  ;;  %v3399_v54 = vsel %vm624_vm7, %v3396_v2, %v3398_v17  ;;  %v12837_v2 = vpop.f32.mrb[96].mxu0 }
 0x250   : > { %v3442_v29 = vmul.f32 %v3395_v24, %v14310_v21  ;;  %v9352_v57 = vunpack.i.l.bf16 %v9351_v31  ;;  %v12821_v47 = vsel %vm706_vm8, %v3862_v40, %v12804_v44  ;;  %v14312_v22 = vmax.f32 %v14311_v45, 0.0  ;;  %v9361_v24 = vpop.permute.xlu1 %9360  ;;  %v5499_v21 = vpop.f32.mrb[97].mxu0 }
 0x251   : > { %v14314_v18 = vmax.f32 %v14313_v7, 0.0  ;;  %v3401_v55 = vsel %vm624_vm7, %v3398_v17, %v3400_v20  ;;  %v4278_v38 = vrot.slane %v9353_v41, 1  ;;  %v14316_v53 = vmax.f32 %v14315_v9, 0.0  ;;  %9415 = vperm.xlu0 %9042, %v12654_v61   ;;  %v14319_v61 = vld [vmem:[#allocation29_spill] sm:$0xff] }
 0x252   : > { %v3443_v46 = vmul.f32 %v3397_v26, %v14312_v22  ;;  %v4276_v3 = vrot.slane %v9352_v57, 1  ;;  %v9358_v58 = vunpack.i.h.bf16 %v9356_v56  ;;  %v9357_v32 = vunpack.i.l.bf16 %v9356_v56  ;;  %v9366_v57 = vpop.permute.xlu0 %9365  ;;  %v12846_v56 = vpop.f32.mrb[98].mxu0  ;;  %9425 = vperm.xlu1 %9053, %v12595_v36  }
 0x253   : > { %v12828_v60 = vmul.f32 %v3399_v54, %v14314_v18  ;;  %v12835_v40 = vmul.f32 %v3401_v55, %v14316_v53  ;;  %v9363_v31 = vunpack.i.h.bf16 %v9361_v24  ;;  %v9362_v0 = vunpack.i.l.bf16 %v9361_v24  ;;  %v6358_v53 = vld [vmem:[#allocation2 + $0xb8] sm:$0xff] }
 0x254   : > { %v5960_v17 = vsel %vm706_vm8, %v5955_v16, %v5959_v39  ;;  %v3458_v51 = vpack.c.bf16 %v3443_v46, %v3442_v29  ;;  %v4277_v41 = vsel %vm1512_vm9, %v4275_v13, %v4276_v3  ;;  %v4279_v26 = vsel %vm1512_vm9, %v4276_v3, %v4278_v38  ;;  %v5502_v13 = vpop.f32.mrb[99].mxu0  ;;  %v9371_v9 = vpop.permute.xlu1 %9370 }
 0x255   : > { %v3459_v50 = vpack.c.bf16 %v12835_v40, %v12828_v60  ;;  %v4282_v54 = vrot.slane %v9358_v58, 1  ;;  %v14317_v45 = vmax.f32 %v12273_v4, 0.0  ;;  %v14318_v7 = vmax.f32 %v12294_v48, 0.0  ;;  %6156 = vmatmul.mubr.bf16.gmra.mrb[152].mxu0 %v5960_v17  ;;  %v5296_v3 = vpop.f32.mrb[88].mxu1  ;;  %9420 = vperm.xlu0 %9042, %v12676_v43  }
 0x256   : > { %v4280_v39 = vrot.slane %v9357_v32, 1  ;;  %v3404_v29 = vrot.slane %v9363_v31, 7  ;;  %v3402_v46 = vrot.slane %v9362_v0, 7  ;;  %v9368_v18 = vunpack.i.h.bf16 %v9366_v57  ;;  %8480 = vmatprep.mubr.msk.bf16.mxu0 %vm227_vm3, %v6358_v53  ;;  %v5298_v36 = vpop.f32.mrb[89].mxu1  ;;  %9430 = vperm.xlu1 %9053, %v12674_v27  }
 0x257   : > { %v4324_v22 = vmul.f32 %v4277_v41, %v14317_v45  ;;  %v4325_v16 = vmul.f32 %v4279_v26, %v14318_v7  ;;  %v9367_v55 = vunpack.i.l.bf16 %v9366_v57  ;;  %v12855_v58 = vrot.slane %v3458_v51, 4  ;;  %v9376_v26 = vpop.permute.xlu0 %9375  ;;  %v5299_v57 = vpop.f32.mrb[90].mxu1  ;;  %v14322_v45 = vld [vmem:[#allocation11_spill] sm:$0xff] }
 0x258   : > { %v4281_v48 = vsel %vm1512_vm9, %v4278_v38, %v4280_v39  ;;  %v4283_v32 = vsel %vm1512_vm9, %v4280_v39, %v4282_v54  ;;  %v9373_v24 = vunpack.i.h.bf16 %v9371_v9  ;;  %v14320_v31 = vmax.f32 %v14319_v61, 0.0  ;;  %v12874_v36 = vpop.f32.mrb[100].mxu0 }
 0x259   : > { %v4340_v4 = vpack.c.bf16 %v4325_v16, %v4324_v22  ;;  %v14321_v21 = vmax.f32 %v12284_v23, 0.0  ;;  %v3403_v41 = vsel %vm624_vm7, %v3400_v20, %v3402_v46  ;;  %v3405_v51 = vsel %vm624_vm7, %v3402_v46, %v3404_v29  ;;  %3498 = vst.msk [vmem:[#allocation2 + $0x110] sm:$0xf0] %vm233_vm4, %v12855_v58  ;;  %v14324_v16 = vld [vmem:[#allocation13_spill] sm:$0xff]  ;;  %v5301_v23 = vpop.f32.mrb[91].mxu1  ;;  %3876 = vrot.lane.b32.xlu0 %v12801_v37, %s9898_s9  ;;  %v14333_v37 = vld [vmem:[#allocation12_spill] sm:$0xff] }
 0x25a   : > { %v4326_v0 = vmul.f32 %v4281_v48, %v14320_v31  ;;  %v14323_v22 = vmax.f32 %v14322_v45, 0.0  ;;  %v14325_v39 = vmax.f32 %v14324_v16, 0.0  ;;  %v4286_v53 = vrot.slane %v9368_v18, 1  ;;  %v5507_v18 = vpop.f32.mrb[101].mxu0  ;;  %v9381_v16 = vpop.permute.xlu1 %9380  ;;  %3880 = vrot.lane.b32.xlu1 %v12821_v47, %s9898_s9  ;;  %v14331_v47 = vld [vmem:[#allocation10_spill] sm:$0xff] }
 0x25b   : > { %v4327_v17 = vmul.f32 %v4283_v32, %v14321_v21  ;;  %v4356_v38 = vrot.slane %v4340_v4, 4  ;;  %v4284_v46 = vrot.slane %v9367_v55, 1  ;;  %v3408_v48 = vrot.slane %v9373_v24, 7  ;;  %v14326_v21 = vld [vmem:[#allocation59_spill] sm:$0xff]  ;;  %v12882_v55 = vpop.f32.mrb[102].mxu0 }
 0x25c   : > { %v3446_v7 = vmul.f32 %v3403_v41, %v14323_v22  ;;  %v3447_v13 = vmul.f32 %v3405_v51, %v14325_v39  ;;  %v9372_v32 = vunpack.i.l.bf16 %v9371_v9  ;;  %v9378_v61 = vunpack.i.h.bf16 %v9376_v26  ;;  %v9657_v9 = vld [vmem:[%s14009_s3] sm:$0xff]   ;;  %v5510_v39 = vpop.f32.mrb[103].mxu0 }
 0x25d   : > { %v4341_v20 = vpack.c.bf16 %v4327_v17, %v4326_v0  ;;  %4380 = vst.msk [vmem:[#allocation2 + $0x118] sm:$0xf0] %vm233_vm4, %v4356_v38  ;;  %v9377_v31 = vunpack.i.l.bf16 %v9376_v26  ;;  %v12878_v41 = vadd.f32 %v14326_v21, %v5296_v3  ;;  %v4285_v27 = vsel %vm1512_vm9, %v4282_v54, %v4284_v46  ;;  %v14328_v26 = vld [vmem:[#allocation18_spill] sm:$0xff]  ;;  %v6357_v54 = vld [vmem:[#allocation2 + $0xb0] sm:$0xff]  ;;  %3878 = vrot.lane.b32.xlu0 %v12812_v5, %s9898_s9 }
 0x25e   : > { %v3460_v4 = vpack.c.bf16 %v3447_v13, %v3446_v7  ;;  %v4287_v43 = vsel %vm1512_vm9, %v4284_v46, %v4286_v53  ;;  %v3406_v0 = vrot.slane %v9372_v32, 7  ;;  %v14327_v24 = vmax.f32 %v12323_v8, 0.0  ;;  %6526 = vmatmul.mubr.bf16.vlgmr.msra.gmra.mrb[156].mxu0 %v6357_v54  ;;  %v6360_v32 = vld [vmem:[#allocation2 + $0xc8] sm:$0xff]  ;;  %v14337_v54 = vld [vmem:[#allocation31_spill] sm:$0xff]  ;;  %9435 = vperm.xlu1 %9053, %v12696_v19  }
 0x25f   : > { %v4357_v51 = vrot.slane %v4341_v20, 4  ;;  %v14329_v45 = vmax.f32 %v14328_v26, 0.0  ;;  %v12891_v22 = vrot.slane %v9378_v61, 1  ;;  %v4288_v7 = vrot.slane %v9377_v31, 1  ;;  %v14330_v20 = vld [vmem:[#allocation61_spill] sm:$0xff]  ;;  %8481 = vmatprep.mubr.msk.bf16.mxu0 %vm227_vm3, %v6360_v32  ;;  %7065 = vmatpush1.bf16.msra.mxu0 %v9657_v9 }
 0x260   : > { %v4328_v17 = vmul.f32 %v4285_v27, %v14327_v24  ;;  %v3407_v8 = vsel %vm624_vm7, %v3404_v29, %v3406_v0  ;;  %v3409_v23 = vsel %vm624_vm7, %v3406_v0, %v3408_v48  ;;  %v12901_v46 = vadd.f32 %v14330_v20, %v5299_v57  ;;  %v14335_v57 = vld [vmem:[#allocation19_spill] sm:$0xff]  ;;  %7066 = vmatprep.subr.bf16.mxu0 %v12780_v63 }
 0x261   : > { %v4329_v3 = vmul.f32 %v4287_v43, %v14329_v45  ;;  %v4358_v13 = vsel %vm706_vm8, %v4356_v38, %v4357_v51  ;;  %v14332_v31 = vmax.f32 %v14331_v47, 0.0  ;;  %v14334_v18 = vmax.f32 %v14333_v37, 0.0  ;;  %3882 = vrot.lane.b32.xlu0 %v12804_v44, %s9898_s9 }
 0x262   : > { %4381 = vst.msk [vmem:[#allocation2 + $0x128] sm:$0xff] %vm227_vm3, %v4358_v13  ;;  %v4289_v38 = vsel %vm1512_vm9, %v4286_v53, %v4288_v7  ;;  %v4291_v29 = vsel %vm1512_vm9, %v4288_v7, %v12891_v22  ;;  %v14336_v43 = vmax.f32 %v14335_v57, 0.0  ;;  %v9383_v24 = vunpack.i.h.bf16 %v9381_v16  ;;  %9445 = vperm.xlu1 %9053, %v12736_v15  }
 0x263   : > { %v4342_v61 = vpack.c.bf16 %v4329_v3, %v4328_v17  ;;  %v3448_v21 = vmul.f32 %v3407_v8, %v14332_v31  ;;  %v3449_v27 = vmul.f32 %v3409_v23, %v14334_v18  ;;  %v9382_v26 = vunpack.i.l.bf16 %v9381_v16  ;;  %v9659_v17 = vld [vmem:[%s14009_s3 + $0x8] sm:$0xff]   ;;  %v6362_v31 = vld [vmem:[#allocation2 + $0xd8] sm:$0xff] }
 0x264   : > { %v4330_v0 = vmul.f32 %v4289_v38, %v14336_v43  ;;  %v14338_v39 = vmax.f32 %v14337_v54, 0.0  ;;  %v3475_v7 = vrot.slane %v3459_v50, 4  ;;  %v12925_v16 = vrot.slane %v9383_v24, 7  ;;  %v6686_v13 = vld [vmem:[#allocation2 + $0x118] sm:$0xf0]  ;;  %7067 = vmatpush1.bf16.msra.mxu0 %v9659_v17  ;;  %v9661_v50 = vld [vmem:[%s14009_s3 + $0x10] sm:$0xff]  }
 0x265   : > { %v4359_v45 = vrot.slane %v4342_v61, 4  ;;  %v3461_v3 = vpack.c.bf16 %v3449_v27, %v3448_v21  ;;  %v3410_v9 = vrot.slane %v9382_v26, 7  ;;  %v9454_v8 = vpack.i.bf16 %v4960_v49, %v4959_v30  ;;  %v6359_v61 = vld [vmem:[#allocation2 + $0xc0] sm:$0xff]  ;;  %7068 = vmatprep.subr.bf16.mxu0 %v12780_v63  ;;  %v9663_v27 = vld [vmem:[%s14009_s3 + $0x18] sm:$0xff]   ;;  %v5304_v17 = vpop.f32.mrb[92].mxu1 }
 0x266   : > { %v4331_v53 = vmul.f32 %v4291_v29, %v14338_v39  ;;  %v3477_v23 = vrot.slane %v3460_v4, 4  ;;  %v9439_v5 = vpack.i.bf16 %v4547_v28, %v4546_v14  ;;  %v3476_v60 = vsel %vm706_vm8, %v12855_v58, %v3475_v7  ;;  %v14339_v28 = vld [vmem:[#allocation17_spill] sm:$0xff]  ;;  %6534 = vmatmul.mubr.bf16.gmra.mrb[160].mxu0 %v6359_v61  ;;  %v5513_v29 = vpop.f32.mrb[104].mxu0 }
 0x267   : > { %v4360_v19 = vsel %vm706_vm8, %v4357_v51, %v4359_v45  ;;  %v3411_v40 = vsel %vm624_vm7, %v3408_v48, %v3410_v9  ;;  %v3413_v30 = vsel %vm624_vm7, %v3410_v9, %v12925_v16  ;;  %v6736_v49 = vrot.slane %v6686_v13, 4  ;;  %3499 = vst.msk [vmem:[#allocation2 + $0x120] sm:$0xff] %vm227_vm3, %v3476_v60  ;;  %v14341_v51 = vld [vmem:[#allocation3_spill] sm:$0xff]  ;;  %8482 = vmatprep.mubr.msk.bf16.mxu0 %vm227_vm3, %v6362_v31  ;;  %v9671_v60 = vld [vmem:[%s14009_s3 + $0x38] sm:$0xff]  }
 0x268   : > { %v4343_v20 = vpack.c.bf16 %v4331_v53, %v4330_v0  ;;  %4382 = vst.msk [vmem:[#allocation2 + $0x138] sm:$0xff] %vm227_vm3, %v4360_v19  ;;  %v3478_v25 = vsel %vm706_vm8, %v3475_v7, %v3477_v23  ;;  %v14340_v58 = vmax.f32 %v14339_v28, 0.0  ;;  %v14342_v48 = vmax.f32 %v14341_v51, 0.0  ;;  %7069 = vmatpush1.bf16.msra.mxu0 %v9661_v50  ;;  %9455 = vperm.xlu1 %9053, %v9454_v8   ;;  %v5515_v0 = vpop.f32.mrb[105].mxu0  ;;  %v9667_v53 = vld [vmem:[%s14009_s3 + $0x28] sm:$0xff]  }
 0x269   : > { %3500 = vst.msk [vmem:[#allocation2 + $0x130] sm:$0xff] %vm227_vm3, %v3478_v25  ;;  %v3479_v47 = vrot.slane %v3461_v3, 4  ;;  %v12958_v21 = vld [vmem:[#allocation2 + $0x128] sm:$0xff]  ;;  %9440 = vperm.xlu0 %9042, %v9439_v5   ;;  %v9449_v57 = vpack.i.bf16 %v4958_v1, %v4957_v34  ;;  %7070 = vmatprep.subr.bf16.mxu0 %v12780_v63  ;;  %v5516_v24 = vpop.f32.mrb[106].mxu0  ;;  %v12989_v10 = vadd.f32 %v12837_v2, %v5304_v17  ;;  %v5306_v34 = vpop.f32.mrb[93].mxu1  ;;  %v6361_v1 = vld [vmem:[#allocation2 + $0xd0] sm:$0xff] }
 0x26a   : > { %v12948_v14 = vrot.slane %v4343_v20, 4  ;;  %v3450_v4 = vmul.f32 %v3411_v40, %v14340_v58  ;;  %v3451_v32 = vmul.f32 %v3413_v30, %v14342_v48  ;;  %v6737_v15 = vrot.slane %v12958_v21, 4  ;;  %v5307_v3 = vpop.f32.mrb[94].mxu1 }
 0x26b   : > { %v3480_v44 = vsel %vm706_vm8, %v3477_v23, %v3479_v47  ;;  %v12993_v54 = vadd.f32 %v12846_v56, %v5307_v3  ;;  %v5309_v39 = vpop.f32.mrb[95].mxu1  ;;  %v9669_v56 = vld [vmem:[%s14009_s3 + $0x30] sm:$0xff]  }
 0x26c   : > { %v4362_v37 = vsel %vm706_vm8, %v4359_v45, %v12948_v14  ;;  %v3462_v18 = vpack.c.bf16 %v3451_v32, %v3450_v4  ;;  %3501 = vst.msk [vmem:[#allocation2 + $0x140] sm:$0xff] %vm227_vm3, %v3480_v44  ;;  %v6738_v38 = vsel %vm706_vm8, %v6736_v49, %v6737_v15  ;;  %v5518_v45 = vpop.f32.mrb[107].mxu0  ;;  %7071 = vmatpush1.bf16.msra.mxu0 %v9663_v27  ;;  %v9675_v4 = vld [vmem:[%s14009_s3 + $0x48] sm:$0xff]  }
 0x26d   : > { %4383 = vst.msk [vmem:[#allocation2 + $0x148] sm:$0xff] %vm227_vm3, %v4362_v37  ;;  %8525 = vmatprep.mubr.msk.bf16.mxu1 %vm227_vm3, %v6738_v38  ;;  %9450 = vperm.xlu0 %9042, %v9449_v57   ;;  %v5521_v2 = vpop.f32.mrb[108].mxu0  ;;  %v5312_v13 = vpop.f32.mrb[96].mxu1  ;;  %v9677_v38 = vld [vmem:[%s14009_s3 + $0x58] sm:$0xff]  }
 0x26e   : > { %v12978_v43 = vrot.slane %v3462_v18, 4  ;;  %7072 = vmatprep.subr.bf16.mxu0 %v12780_v63  ;;  %6542 = vmatmul.mubr.bf16.gmra.mrb[164].mxu0 %v6361_v1  ;;  %v5523_v7 = vpop.f32.mrb[109].mxu0  ;;  %v5314_v23 = vpop.f32.mrb[97].mxu1  ;;  %v13040_v18 = vld [vmem:[#allocation2 + $0x118] sm:$0xff] }
 0x26f   : > { %8483 = vmatprep.mubr.msk.bf16.mxu0 %vm227_vm3, %v12590_v59  ;;  %v5524_v9 = vpop.f32.mrb[110].mxu0  ;;  %v13005_v59 = vadd.f32 %v12874_v36, %v5312_v13  ;;  %v5315_v19 = vpop.f32.mrb[98].mxu1 }
 0x270   : > { %v3482_v26 = vsel %vm706_vm8, %v3479_v47, %v12978_v43  ;;  %7073 = vmatpush1.bf16.msra.mxu0 %v9665_v11  ;;  %v5526_v8 = vpop.f32.mrb[111].mxu0  ;;  %v13010_v20 = vadd.f32 %v12882_v55, %v5315_v19  ;;  %v5317_v5 = vpop.f32.mrb[99].mxu1  ;;  %v9673_v55 = vld [vmem:[%s14009_s3 + $0x40] sm:$0xff]  }
 0x271   : > { %3502 = vst.msk [vmem:[#allocation2 + $0x150] sm:$0xff] %vm227_vm3, %v3482_v26  ;;  %7074 = vmatprep.subr.bf16.mxu0 %v12780_v63 }
 0x272   : > { %v5529_v36 = vpop.f32.mrb[112].mxu0 }
 0x273   : > { %v5531_v40 = vpop.f32.mrb[113].mxu0 }
 0x274   : > { %7075 = vmatpush1.bf16.msra.mxu0 %v9667_v53  ;;  %v5532_v30 = vpop.f32.mrb[114].mxu0 }
 0x275   : > { %7076 = vmatprep.subr.bf16.mxu0 %v12780_v63 }
 0x276   : > { %6550 = vmatmul.mubr.bf16.gmra.mrb[168].mxu0 %v12638_v33  ;;  %v5320_v49 = vpop.f32.mrb[100].mxu1  ;;  %v5534_v33 = vpop.f32.mrb[115].mxu0 }
 0x277   : > { %8484 = vmatprep.mubr.msk.bf16.mxu0 %vm227_vm3, %v12672_v12  ;;  %v13021_v50 = vadd.f32 %v5513_v29, %v5320_v49  ;;  %v5322_v12 = vpop.f32.mrb[101].mxu1 }
 0x278   : > { %7077 = vmatpush1.bf16.msra.mxu0 %v9669_v56  ;;  %v5323_v25 = vpop.f32.mrb[102].mxu1 }
 0x279   : > { %7078 = vmatprep.subr.bf16.mxu0 %v12780_v63  ;;  %v13025_v28 = vadd.f32 %v5516_v24, %v5323_v25  ;;  %v5325_v58 = vpop.f32.mrb[103].mxu1 }
 0x27a   : > { %v5537_v51 = vpop.f32.mrb[116].mxu0 }
 0x27b   : > { %v5539_v48 = vpop.f32.mrb[117].mxu0 }
 0x27c   : > { %7079 = vmatpush1.bf16.msra.mxu0 %v9671_v60  ;;  %v5540_v32 = vpop.f32.mrb[118].mxu0  ;;  %v13067_v60 = vld [vmem:[%s14010_s4] ss:$0 sm:$0xff] }
 0x27d   : > { %7080 = vmatprep.subr.bf16.mxu0 %v12780_v63  ;;  %v5542_v47 = vpop.f32.mrb[119].mxu0 }
 0x27e   : > { %6558 = vmatmul.mubr.bf16.gmra.mrb[172].mxu0 %v12689_v62  ;;  %v5328_v61 = vpop.f32.mrb[104].mxu1  ;;  %v9676_v62 = vld [vmem:[%s14009_s3 + $0x50] sm:$0xff]  }
 0x27f   : > { %8485 = vmatprep.mubr.msk.bf16.mxu0 %vm227_vm3, %v12734_v35  ;;  %v13036_v31 = vadd.f32 %v5521_v2, %v5328_v61  ;;  %v5330_v35 = vpop.f32.mrb[105].mxu1 }
 0x280   : > { %7081 = vmatpush1.bf16.msra.mxu0 %v9673_v55  ;;  %v5331_v37 = vpop.f32.mrb[106].mxu1 }
 0x281   : > { %7082 = vmatprep.subr.bf16.mxu0 %v12780_v63  ;;  %v13042_v44 = vadd.f32 %v5524_v9, %v5331_v37  ;;  %v5333_v27 = vpop.f32.mrb[107].mxu1  ;;  %v13092_v37 = vld [vmem:[%s14008_s2] ss:$0 sm:$0xff] }
 0x282   : > { %v5545_v29 = vpop.f32.mrb[120].mxu0 }
 0x283   : > { %v5547_v57 = vpop.f32.mrb[121].mxu0 }
 0x284   : > { %7083 = vmatpush1.bf16.msra.mxu0 %v9675_v4  ;;  %v5548_v0 = vpop.f32.mrb[122].mxu0  ;;  %v14345_v57 = vld [vmem:[#allocation24_spill] sm:$0xff] }
 0x285   : > { %7084 = vmatprep.subr.bf16.mxu0 %v12780_v63  ;;  %v5550_v24 = vpop.f32.mrb[123].mxu0 }
 0x286   : > { %6566 = vmatmul.mubr.bf16.gmra.mrb[176].mxu0 %v12744_v52  ;;  %v5336_v52 = vpop.f32.mrb[108].mxu1 }
 0x287   : > { %8486 = vmatprep.mubr.msk.bf16.mxu0 %vm227_vm3, %v13040_v18  ;;  %v13050_v26 = vadd.f32 %v5529_v36, %v5336_v52  ;;  %v5338_v17 = vpop.f32.mrb[109].mxu1  ;;  %v14346_v52 = vld [vmem:[#allocation21_spill] sm:$0xff] }
 0x288   : > { %7085 = vmatpush1.bf16.msra.mxu0 %v9676_v62  ;;  %v5339_v45 = vpop.f32.mrb[110].mxu1  ;;  %v13108_v24 = vadd.f32 %v13092_v37, %v14346_v52  ;;  %v14347_v17 = vld [vmem:[#allocation23_spill] sm:$0xff] }
 0x289   : > { %7086 = vmatprep.subr.bf16.mxu0 %v12780_v63  ;;  %v13053_v11 = vadd.f32 %v5532_v30, %v5339_v45  ;;  %v5341_v34 = vpop.f32.mrb[111].mxu1  ;;  %v13112_v45 = vadd.f32 %v13092_v37, %v14347_v17  ;;  %v9678_v17 = vld [vmem:[%s14009_s3 + $0xc0] sm:$0xff]  }
 0x28c   : > { %7087 = vmatpush1.bf16.msra.mxu0 %v9677_v38  ;;  %v14344_v38 = vld [vmem:[#allocation15_spill] sm:$0xff] }
 0x28d   : > { %7615 = vmatprep.subr.bf16.mxu0 %v12780_v63 }
 0x28e   : > { %v5344_v1 = vpop.f32.mrb[112].mxu1 }
 0x28f   : > { %v13055_v3 = vadd.f32 %v5537_v51, %v5344_v1  ;;  %v5346_v39 = vpop.f32.mrb[113].mxu1 }
 0x290   : > { %v5347_v53 = vpop.f32.mrb[114].mxu1 }
 0x291   : > { %v13057_v2 = vadd.f32 %v5540_v32, %v5347_v53  ;;  %v5349_v7 = vpop.f32.mrb[115].mxu1 }
 0x292   : > { %v14348_v7 = vld [vmem:[#allocation37_spill] sm:$0xff] }
 0x29c   : > { %v5352_v9 = vpop.f32.mrb[116].mxu1 }
 0x29d   : > { %v13059_v13 = vadd.f32 %v5545_v29, %v5352_v9  ;;  %v5354_v8 = vpop.f32.mrb[117].mxu1  ;;  %v13100_v29 = vadd.f32 %v13092_v37, %v14344_v38  ;;  %v13120_v9 = vadd.f32 %v13092_v37, %v14348_v7  ;;  %v14354_v38 = vld [vmem:[#allocation35_spill] sm:$0xff] }
 0x29e   : > { %v5355_v56 = vpop.f32.mrb[118].mxu1  ;;  %v13123_v8 = vld [vmem:[#allocation2 + $0x138] sm:$0xff] }
 0x29f   : > { %v13061_v23 = vadd.f32 %v5548_v0, %v5355_v56  ;;  %v5357_v19 = vpop.f32.mrb[119].mxu1  ;;  %v13104_v0 = vadd.f32 %v13092_v37, %v14345_v57  ;;  %v14349_v56 = vld [vmem:[#allocation26_spill] sm:$0xff]  ;;  %v13160_v57 = vadd.f32 %v13092_v37, %v14354_v38 }
 0x2a0   : > { %v13127_v19 = vadd.f32 %v13092_v37, %v14349_v56 }
 0x2a4   : > { %v5723_v5 = vpop.f32.mrb[120].mxu1 }
 0x2a5   : > { %v5786_v36 = vadd.f32 %v5723_v5, %v12878_v41  ;;  %v5725_v40 = vpop.f32.mrb[121].mxu1  ;;  %v14350_v5 = vld [vmem:[#allocation28_spill] sm:$0xff] }
 0x2a6   : > { %v5726_v30 = vpop.f32.mrb[122].mxu1 }
 0x2a7   : > { %v5809_v49 = vadd.f32 %v13067_v60, %v5786_v36  ;;  %v5787_v33 = vadd.f32 %v5726_v30, %v12901_v46  ;;  %v5728_v55 = vpop.f32.mrb[123].mxu1  ;;  %v13131_v36 = vadd.f32 %v13092_v37, %v14350_v5 }
 0x2a8   : > { %v14351_v55 = vld [vmem:[#allocation54_spill] sm:$0xff] }
 0x2a9   : > { %5825 = vst [vmem:[%s13073_s20] sm:$0xff] %v5809_v49  ;;  %v5810_v12 = vadd.f32 %v13067_v60, %v5787_v33 }
 0x2ab   : > { %5826 = vst [vmem:[%s13073_s20 + $0x8] sm:$0xff] %v5810_v12  ;;  %v4711_v12 = vadd.f32 %v13092_v37, %v14351_v55 }
 0x2ac   : > { %v5731_v41 = vpop.f32.mrb[124].mxu1  ;;  %v3867_v48 = vpop.permute.xlu1 %3866 }
 0x2ad   : > { %v5788_v25 = vadd.f32 %v5731_v41, %v12989_v10  ;;  %v5733_v58 = vpop.f32.mrb[125].mxu1  ;;  %3893 = vst.msk [vmem:[#allocation2 + $0x110] sm:$0xf0] %vm1126_vm10, %v3867_v48  ;;  %v14049_v48 = vrot.slane %v13123_v8, 4  ;;  %v4733_v56 = vmax.f32 %v4711_v12, 0.0 }
 0x2ae   : > { %v5734_v4 = vpop.f32.mrb[126].mxu1  ;;  %v14352_v58 = vld [vmem:[#allocation56_spill] sm:$0xff]  ;;  %v9882_v12 = vld [vmem:[%s9955_s6 + $0xdc] sm:$0x1] }
 0x2af   : > { %v5811_v51 = vadd.f32 %v13067_v60, %v5788_v25  ;;  %v5789_v32 = vadd.f32 %v5734_v4, %v12993_v54  ;;  %v5736_v61 = vpop.f32.mrb[127].mxu1  ;;  %v3869_v47 = vpop.permute.xlu0 %3868  ;;  %v14343_v54 = vld [vmem:[#allocation14_spill] sm:$0xff]  ;;  %v4714_v4 = vadd.f32 %v13092_v37, %v14352_v58 }
 0x2b0   : > { %3894 = vst.msk [vmem:[#allocation2 + $0x120] sm:$0xff] %vm1128_vm11, %v3869_v47  ;;  %v13096_v27 = vadd.f32 %v13092_v37, %v14343_v54  ;;  %v14353_v61 = vld [vmem:[#allocation34_spill] sm:$0xff]  ;;  %v4182_v54 = vmax.f32 %v13131_v36, 0.0  ;;  %v14365_v36 = vld [vmem:[#allocation63_spill] sm:$0xff] }
 0x2b1   : > { %5827 = vst [vmem:[%s13073_s20 + $0x10] sm:$0xff] %v5811_v51  ;;  %v5812_v46 = vadd.f32 %v13067_v60, %v5789_v32 }
 0x2b3   : > { %5828 = vst [vmem:[%s13073_s20 + $0x18] sm:$0xff] %v5812_v46  ;;  %v13153_v46 = vadd.f32 %v13092_v37, %v14353_v61  ;;  %v6742_v61 = vsel %vm706_vm8, %v6737_v15, %v14049_v48  ;;  %v6646_v15 = vld [vmem:[#allocation2 + $0x108] sm:$0xff] }
 0x2b4   : > { %v5739_v62 = vpop.f32.mrb[128].mxu1  ;;  %v13116_v39 = vld [vmem:[#allocation2 + $0x110] sm:$0xff] }
 0x2b5   : > { %v5790_v10 = vadd.f32 %v5739_v62, %v13005_v59  ;;  %v5741_v35 = vpop.f32.mrb[129].mxu1  ;;  %6574 = vmatmul.mubr.bf16.gmra.mrb[180].mxu0 %v13116_v39  ;;  %v6685_v40 = vld [vmem:[#allocation2 + $0x110] sm:$0xf0] }
 0x2b6   : > { %v5742_v59 = vpop.f32.mrb[130].mxu1  ;;  %8487 = vmatprep.mubr.msk.bf16.mxu0 %vm227_vm3, %v12958_v21  ;;  %v6733_v62 = vrot.slane %v6685_v40, 4  ;;  %v4962_v35 = vunpack.c.l.bf16 %v9882_v12 }
 0x2b7   : > { %v5813_v34 = vadd.f32 %v13067_v60, %v5790_v10  ;;  %v5791_v1 = vadd.f32 %v5742_v59, %v13010_v20  ;;  %v5744_v53 = vpop.f32.mrb[131].mxu1  ;;  %v13147_v51 = vld [vmem:[#allocation2 + $0x120] sm:$0xff] }
 0x2b8   : > { %v14048_v10 = vrot.slane %v13147_v51, 4  ;;  %v14356_v53 = vld [vmem:[#allocation27_spill] sm:$0xff] }
 0x2b9   : > { %5829 = vst [vmem:[%s13073_s20 + $0x20] sm:$0xff] %v5813_v34  ;;  %v5814_v20 = vadd.f32 %v13067_v60, %v5791_v1  ;;  %v14355_v34 = vld [vmem:[#allocation25_spill] sm:$0xff]  ;;  %v13172_v7 = vadd.f32 %v13092_v37, %v14356_v53 }
 0x2ba   : > { %v13168_v1 = vadd.f32 %v13092_v37, %v14355_v34  ;;  %v4183_v34 = vmax.f32 %v13160_v57, 0.0 }
 0x2bb   : > { %5830 = vst [vmem:[%s13073_s20 + $0x28] sm:$0xff] %v5814_v20  ;;  %v6735_v20 = vsel %vm706_vm8, %v6733_v62, %v14048_v10  ;;  %v14358_v62 = vld [vmem:[#allocation43_spill] sm:$0xff] }
 0x2bc   : > { %v5747_v47 = vpop.f32.mrb[132].mxu1  ;;  %6904 = vmatmul.mubr.bf16.vlgmr.msra.gmra.mrb[184].mxu1 %v6735_v20 }
 0x2bd   : > { %v5792_v59 = vadd.f32 %v5747_v47, %v13021_v50  ;;  %v5749_v52 = vpop.f32.mrb[133].mxu1  ;;  %v4734_v50 = vmax.f32 %v4714_v4, 0.0  ;;  %v14357_v47 = vld [vmem:[#allocation42_spill] sm:$0xff]  ;;  %v13191_v4 = vadd.f32 %v13092_v37, %v14358_v62  ;;  %6582 = vmatmul.mubr.bf16.gmra.mrb[184].mxu0 %v13147_v51  ;;  %8526 = vmatprep.mubr.msk.bf16.mxu1 %vm227_vm3, %v6742_v61  ;;  %v14361_v61 = vld [vmem:[#allocation60_spill] sm:$0xff] }
 0x2be   : > { %v5750_v5 = vpop.f32.mrb[134].mxu1  ;;  %v13187_v38 = vadd.f32 %v13092_v37, %v14357_v47  ;;  %v9391_v52 = vpop.permute.xlu1 %9390  ;;  %8545 = vmatprep.mubr.msk.bf16.mxu0 %vm227_vm3, %v6646_v15  ;;  %7298 = vmatpush1.bf16.msra.mxu1 %v9678_v17  ;;  %v14360_v47 = vld [vmem:[#allocation58_spill] sm:$0xff] }
 0x2bf   : > { %v5815_v40 = vadd.f32 %v13067_v60, %v5792_v59  ;;  %v5793_v55 = vadd.f32 %v5750_v5, %v13025_v28  ;;  %v5752_v58 = vpop.f32.mrb[135].mxu1  ;;  %v14359_v59 = vld [vmem:[#allocation45_spill] sm:$0xff]  ;;  %v9393_v53 = vunpack.i.h.bf16 %v9391_v52  ;;  %v9392_v5 = vunpack.i.l.bf16 %v9391_v52  ;;  %v9881_v52 = vld [vmem:[%s9955_s6 + $0xd8] sm:$0xf]  ;;  %7299 = vmatprep.subr.bf16.mxu1 %v12780_v63 }
 0x2c0   : > { %v13195_v28 = vadd.f32 %v13092_v37, %v14359_v59  ;;  %v9679_v58 = vld [vmem:[%s14009_s3 + $0xc8] sm:$0xff]   ;;  %v13208_v62 = vadd.f32 %v13092_v37, %v14360_v47  ;;  %v13212_v59 = vadd.f32 %v13092_v37, %v14361_v61  ;;  %v4550_v25 = vunpack.c.l.bf16 %v9881_v52  ;;  %v9386_v41 = vpop.permute.xlu0 %9385  ;;  %v14364_v17 = vld [vmem:[#allocation62_spill] sm:$0xff] }
 0x2c1   : > { %5831 = vst [vmem:[%s13073_s20 + $0x30] sm:$0xff] %v5815_v40  ;;  %v5816_v20 = vadd.f32 %v13067_v60, %v5793_v55  ;;  %v4549_v40 = vunpack.c.h.bf16 %v12679_v42  ;;  %v14362_v55 = vld [vmem:[#allocation44_spill] sm:$0xff]  ;;  %v4776_v33 = vmul.f32 %v9393_v53, %v4734_v50  ;;  %v4775_v10 = vmul.f32 %v9392_v5, %v4733_v56  ;;  %v14363_v42 = vld [vmem:[#allocation46_spill] sm:$0xff] }
 0x2c2   : > { %v13220_v15 = vadd.f32 %v13092_v37, %v14362_v55  ;;  %v13228_v52 = vadd.f32 %v13092_v37, %v14363_v42  ;;  %v3871_v30 = vpop.permute.xlu1 %3870  ;;  %v13232_v32 = vadd.f32 %v13092_v37, %v14364_v17  ;;  %v9388_v56 = vunpack.i.h.bf16 %v9386_v41  ;;  %v13235_v5 = vld [vmem:[#allocation2 + $0x148] sm:$0xff]  ;;  %7300 = vmatpush1.bf16.msra.mxu1 %v9679_v58 }
 0x2c3   : > { %5832 = vst [vmem:[%s13073_s20 + $0x38] sm:$0xff] %v5816_v20  ;;  %v4781_v55 = vpack.c.bf16 %v4776_v33, %v4775_v10  ;;  %3895 = vst.msk [vmem:[#allocation2 + $0x130] sm:$0xff] %vm1128_vm11, %v3871_v30  ;;  %v9387_v50 = vunpack.i.l.bf16 %v9386_v41  ;;  %v4735_v20 = vmax.f32 %v13208_v62, 0.0  ;;  %v4736_v42 = vmax.f32 %v13212_v59, 0.0  ;;  %7301 = vmatprep.subr.bf16.mxu1 %v12780_v63  ;;  %v9680_v30 = vld [vmem:[%s14009_s3 + $0xd0] sm:$0xff]   ;;  %v9690_v33 = vld [vmem:[%s14009_s3 + $0x60] sm:$0xff]  }
 0x2c4   : > { %v5755_v53 = vpop.f32.mrb[136].mxu1  ;;  %v9459_v61 = vpack.i.bf16 %v4550_v25, %v4549_v40  ;;  %v4294_v10 = vrot.slane %v9388_v56, 1  ;;  %v6645_v59 = vld [vmem:[#allocation2 + $0x100] sm:$0xff] }
 0x2c5   : > { %v5794_v49 = vadd.f32 %v5755_v53, %v13036_v31  ;;  %v5757_v47 = vpop.f32.mrb[137].mxu1  ;;  %v13247_v41 = vrot.slane %v4781_v55, 4  ;;  %v4292_v58 = vrot.slane %v9387_v50, 1  ;;  %v4961_v31 = vunpack.c.h.bf16 %v12707_v6  ;;  %7097 = vmatmul.mubr.bf16.vlgmr.msra.gmra.mrb[188].mxu0 %v6645_v59 }
 0x2c6   : > { %v5758_v62 = vpop.f32.mrb[138].mxu1  ;;  %v9406_v17 = vpop.permute.xlu1 %9405  ;;  %v6745_v53 = vrot.slane %v13235_v5, 4  ;;  %8546 = vmatprep.mubr.msk.bf16.mxu0 %vm227_vm3, %v13040_v18  ;;  %7302 = vmatpush1.bf16.msra.mxu1 %v9680_v30  ;;  %v9691_v18 = vld [vmem:[%s14009_s3 + $0x68] sm:$0xff]  }
 0x2c7   : > { %v5817_v25 = vadd.f32 %v13067_v60, %v5794_v49  ;;  %v5795_v40 = vadd.f32 %v5758_v62, %v13042_v44  ;;  %v9396_v47 = vpop.permute.xlu0 %9395  ;;  %v4293_v55 = vsel %vm1512_vm9, %v12891_v22, %v4292_v58  ;;  %v4295_v56 = vsel %vm1512_vm9, %v4292_v58, %v4294_v10  ;;  %4792 = vrot.lane.b32.xlu0 %v13247_v41, %s9898_s9  ;;  %v5760_v6 = vpop.f32.mrb[139].mxu1  ;;  %v9681_v58 = vld [vmem:[%s14009_s3 + $0xd8] sm:$0xff]  }
 0x2c8   : > { %v9408_v50 = vunpack.i.h.bf16 %v9406_v17  ;;  %v9407_v48 = vunpack.i.l.bf16 %v9406_v17  ;;  %v4332_v44 = vmul.f32 %v4293_v55, %v4182_v54  ;;  %v4333_v49 = vmul.f32 %v4295_v56, %v4183_v34  ;;  %7616 = vmatpush1.bf16.msra.mxu0 %v9690_v33  ;;  %7303 = vmatprep.subr.bf16.mxu1 %v12780_v63 }
 0x2c9   : > { %5833 = vst [vmem:[%s13073_s20 + $0x40] sm:$0xff] %v5817_v25  ;;  %v5818_v22 = vadd.f32 %v13067_v60, %v5795_v40  ;;  %v9398_v12 = vunpack.i.h.bf16 %v9396_v47  ;;  %v13275_v54 = vadd.f32 %v13092_v37, %v14365_v36  ;;  %v9397_v62 = vunpack.i.l.bf16 %v9396_v47  ;;  %7617 = vmatprep.subr.bf16.mxu0 %v12780_v63 }
 0x2ca   : > { %v13277_v57 = vrot.slane %v9408_v50, 1  ;;  %v4296_v34 = vrot.slane %v9407_v48, 1  ;;  %v4344_v30 = vpack.c.bf16 %v4333_v49, %v4332_v44  ;;  %v9411_v33 = vpop.permute.xlu1 %9410  ;;  %v14366_v40 = vrot.slane %v13123_v8, 4  ;;  %7304 = vmatpush1.bf16.msra.mxu1 %v9681_v58 }
 0x2cb   : > { %5834 = vst [vmem:[%s13073_s20 + $0x48] sm:$0xff] %v5818_v22  ;;  %v4778_v59 = vmul.f32 %v9398_v12, %v4736_v42  ;;  %v9401_v25 = vpop.permute.xlu0 %9400  ;;  %v13289_v55 = vpack.i.bf16 %v4962_v35, %v4961_v31  ;;  %v4777_v56 = vmul.f32 %v9397_v62, %v4735_v20  ;;  %v9413_v50 = vunpack.i.h.bf16 %v9411_v33  ;;  %9460 = vperm.xlu0 %9042, %v9459_v61   ;;  %v9682_v35 = vld [vmem:[%s14009_s3 + $0xe0] sm:$0xff]   ;;  %v9692_v61 = vld [vmem:[%s14009_s3 + $0x70] sm:$0xff]  }
 0x2cc   : > { %v13287_v17 = vsel %vm706_vm8, %v14366_v40, %v6745_v53  ;;  %v4297_v48 = vsel %vm1512_vm9, %v4294_v10, %v4296_v34  ;;  %v4299_v47 = vsel %vm1512_vm9, %v4296_v34, %v13277_v57  ;;  %v5763_v42 = vpop.f32.mrb[140].mxu1  ;;  %v4363_v6 = vrot.slane %v4344_v30, 4  ;;  %7618 = vmatpush1.bf16.msra.mxu0 %v9691_v18  ;;  %7305 = vmatprep.subr.bf16.mxu1 %v12780_v63 }
 0x2cd   : > { %v14367_v44 = vmax.f32 %v13127_v19, 0.0  ;;  %v14368_v22 = vmax.f32 %v13153_v46, 0.0  ;;  %v9412_v36 = vunpack.i.l.bf16 %v9411_v33  ;;  %v5765_v40 = vpop.f32.mrb[141].mxu1  ;;  %v4782_v20 = vpack.c.bf16 %v4778_v59, %v4777_v56  ;;  %v13306_v46 = vld [vmem:[#allocation2 + $0x130] sm:$0xff]  ;;  %7619 = vmatprep.subr.bf16.mxu0 %v12780_v63  ;;  %7105 = vmatmul.mubr.bf16.gmra.mrb[192].mxu0 %v13116_v39 }
 0x2ce   : > { %v13304_v10 = vrot.slane %v9413_v50, 7  ;;  %v9403_v19 = vunpack.i.h.bf16 %v9401_v25  ;;  %v9402_v31 = vunpack.i.l.bf16 %v9401_v25  ;;  %v5766_v34 = vpop.f32.mrb[142].mxu1  ;;  %v4364_v58 = vsel %vm706_vm8, %v12948_v14, %v4363_v6  ;;  %v3875_v59 = vpop.permute.xlu1 %3874  ;;  %8547 = vmatprep.mubr.msk.bf16.mxu0 %vm227_vm3, %v12958_v21  ;;  %7306 = vmatpush1.bf16.msra.mxu1 %v9682_v35 }
 0x2cf   : > { %v4334_v49 = vmul.f32 %v4297_v48, %v14367_v44  ;;  %v4335_v12 = vmul.f32 %v4299_v47, %v14368_v22  ;;  %v3418_v62 = vrot.slane %v9412_v36, 7  ;;  %v5796_v30 = vadd.f32 %v5763_v42, %v13050_v26  ;;  %v3873_v33 = vpop.permute.xlu0 %3872  ;;  %4384 = vst.msk [vmem:[#allocation2 + $0x158] sm:$0xff] %vm227_vm3, %v4364_v58  ;;  %v5768_v63 = vpop.f32.mrb[143].mxu1  ;;  %v13334_v22 = vld [vmem:[#allocation2] sm:$0xff]  ;;  %v9693_v58 = vld [vmem:[%s14009_s3 + $0x78] sm:$0xff]  }
 0x2d0   : > { %v13315_v25 = vrot.slane %v4782_v20, 4  ;;  %v3416_v48 = vrot.slane %v9403_v19, 7  ;;  %v3414_v47 = vrot.slane %v9402_v31, 7  ;;  %v5797_v56 = vadd.f32 %v5766_v34, %v13053_v11  ;;  %3897 = vst.msk [vmem:[#allocation2 + $0x150] sm:$0xff] %vm1128_vm11, %v3875_v59  ;;  %3896 = vst.msk [vmem:[#allocation2 + $0x140] sm:$0xff] %vm1128_vm11, %v3873_v33  ;;  %7620 = vmatpush1.bf16.msra.mxu0 %v9692_v61  ;;  %7307 = vmatprep.subr.bf16.mxu1 %v13334_v22 }
 0x2d1   : > { %v4345_v18 = vpack.c.bf16 %v4335_v12, %v4334_v49  ;;  %v3421_v26 = vsel %vm624_vm7, %v3418_v62, %v13304_v10  ;;  %v5819_v39 = vadd.f32 %v13067_v60, %v5796_v30  ;;  %v6739_v50 = vrot.slane %v13306_v46, 4  ;;  %v9683_v12 = vld [vmem:[%s14009_s3 + $0xe8] sm:$0xff]   ;;  %7621 = vmatprep.subr.bf16.mxu0 %v13334_v22 }
 0x2d2   : > { %v14369_v11 = vmax.f32 %v13120_v9, 0.0  ;;  %v3419_v44 = vsel %vm624_vm7, %v3416_v48, %v3418_v62  ;;  %v3415_v21 = vsel %vm624_vm7, %v12925_v16, %v3414_v47  ;;  %v3417_v49 = vsel %vm624_vm7, %v3414_v47, %v3416_v48  ;;  %v9426_v19 = vpop.permute.xlu1 %9425  ;;  %7308 = vmatpush1.bf16.msra.mxu1 %v9683_v12 }
 0x2d3   : > { %v13322_v14 = vrot.slane %v4345_v18, 4  ;;  %v14370_v9 = vmax.f32 %v13108_v24, 0.0  ;;  %v14371_v35 = vmax.f32 %v13096_v27, 0.0  ;;  %v14372_v16 = vmax.f32 %v13100_v29, 0.0  ;;  %5835 = vst [vmem:[%s13073_s20 + $0x50] sm:$0xff] %v5819_v39  ;;  %v9416_v31 = vpop.permute.xlu0 %9415  ;;  %7309 = vmatprep.subr.bf16.mxu1 %v13334_v22 }
 0x2d4   : > { %v3455_v42 = vmul.f32 %v3421_v26, %v14369_v11  ;;  %v5820_v34 = vadd.f32 %v13067_v60, %v5797_v56  ;;  %v14373_v24 = vrot.slane %v13147_v51, 4  ;;  %v4789_v29 = vsel %vm706_vm8, %v13247_v41, %v13315_v25  ;;  %v9684_v56 = vld [vmem:[%s14009_s3 + $0xf0] sm:$0xff]   ;;  %7622 = vmatpush1.bf16.msra.mxu0 %v9693_v58 }
 0x2d5   : > { %v4366_v36 = vsel %vm706_vm8, %v4363_v6, %v13322_v14  ;;  %v3454_v40 = vmul.f32 %v3419_v44, %v14370_v9  ;;  %v3452_v61 = vmul.f32 %v3415_v21, %v14371_v35  ;;  %v3453_v20 = vmul.f32 %v3417_v49, %v14372_v16  ;;  %4794 = vrot.lane.b32.xlu1 %v4789_v29, %s9898_s9  ;;  %v9694_v49 = vld [vmem:[%s14009_s3 + $0x80] sm:$0xff]  }
 0x2d6   : > { %4385 = vst.msk [vmem:[#allocation2 + $0x168] sm:$0xff] %vm227_vm3, %v4366_v36  ;;  %v6740_v27 = vsel %vm706_vm8, %v14373_v24, %v6739_v50  ;;  %v9428_v6 = vunpack.i.h.bf16 %v9426_v19  ;;  %v9427_v30 = vunpack.i.l.bf16 %v9426_v19  ;;  %v9418_v59 = vunpack.i.h.bf16 %v9416_v31  ;;  %5836 = vst [vmem:[%s13073_s20 + $0x58] sm:$0xff] %v5820_v34  ;;  %7113 = vmatmul.mubr.bf16.gmra.mrb[196].mxu0 %v13147_v51  ;;  %v9431_v39 = vpop.permute.xlu1 %9430  ;;  %7623 = vmatprep.subr.bf16.mxu0 %v13334_v22 }
 0x2d7   : > { %v3464_v18 = vpack.c.bf16 %v3455_v42, %v3454_v40  ;;  %v3463_v62 = vpack.c.bf16 %v3453_v20, %v3452_v61  ;;  %6912 = vmatmul.mubr.bf16.gmra.mrb[188].mxu1 %v6740_v27  ;;  %v4737_v33 = vmax.f32 %v13232_v32, 0.0  ;;  %v4738_v48 = vmax.f32 %v13275_v54, 0.0  ;;  %v9421_v11 = vpop.permute.xlu0 %9420  ;;  %8548 = vmatprep.mubr.msk.bf16.mxu0 %vm227_vm3, %v13123_v8  ;;  %v13386_v40 = vld [vmem:[#allocation2 + $0x140] sm:$0xff] }
 0x2d8   : > { %8527 = vmatprep.mubr.msk.bf16.mxu1 %vm227_vm3, %v13287_v17  ;;  %v4306_v41 = vrot.slane %v9428_v6, 1  ;;  %v9417_v47 = vunpack.i.l.bf16 %v9416_v31  ;;  %v4304_v63 = vrot.slane %v9427_v30, 1  ;;  %v4302_v26 = vrot.slane %v9418_v59, 1  ;;  %7310 = vmatpush1.bf16.msra.mxu1 %v9684_v56 }
 0x2d9   : > { %v13373_v32 = vrot.slane %v3464_v18, 4  ;;  %v3483_v54 = vrot.slane %v3463_v62, 4  ;;  %v9433_v17 = vunpack.i.h.bf16 %v9431_v39  ;;  %v9432_v44 = vunpack.i.l.bf16 %v9431_v39  ;;  %9465 = vperm.xlu1 %9053, %v13289_v55   ;;  %v13397_v55 = vld [vmem:[#allocation2 + $0x158] sm:$0xff]  ;;  %7311 = vmatprep.subr.bf16.mxu1 %v13334_v22 }
 0x2da   : > { %v4300_v42 = vrot.slane %v9417_v47, 1  ;;  %v9423_v21 = vunpack.i.h.bf16 %v9421_v11  ;;  %v4307_v51 = vsel %vm1512_vm9, %v4304_v63, %v4306_v41  ;;  %v4305_v12 = vsel %vm1512_vm9, %v4302_v26, %v4304_v63  ;;  %7624 = vmatpush1.bf16.msra.mxu0 %v9694_v49  ;;  %v5771_v63 = vpop.f32.mrb[144].mxu1  ;;  %v13435_v49 = vld [vmem:[#allocation2 + $0x150] sm:$0xff] }
 0x2db   : > { %v9422_v36 = vunpack.i.l.bf16 %v9421_v11  ;;  %v3484_v9 = vsel %vm706_vm8, %v12978_v43, %v3483_v54  ;;  %v14374_v35 = vmax.f32 %v13191_v4, 0.0  ;;  %v14375_v16 = vmax.f32 %v13168_v1, 0.0  ;;  %v9685_v43 = vld [vmem:[%s14009_s3 + $0xf8] sm:$0xff]   ;;  %v3877_v6 = vpop.permute.xlu0 %3876  ;;  %7625 = vmatprep.subr.bf16.mxu0 %v13334_v22 }
 0x2dc   : > { %v4301_v19 = vsel %vm1512_vm9, %v13277_v57, %v4300_v42  ;;  %v4303_v31 = vsel %vm1512_vm9, %v4300_v42, %v4302_v26  ;;  %3503 = vst.msk [vmem:[#allocation2 + $0x160] sm:$0xff] %vm227_vm3, %v3484_v9  ;;  %v14376_v4 = vmax.f32 %v13187_v38, 0.0  ;;  %v14377_v1 = vmax.f32 %v13195_v28, 0.0  ;;  %v13406_v57 = vpop.permute.xlu1 %3880  ;;  %7312 = vmatpush1.bf16.msra.mxu1 %v9685_v43  ;;  %v9686_v26 = vld [vmem:[%s14009_s3 + $0x100] sm:$0xff]   ;;  %v5773_v9 = vpop.f32.mrb[145].mxu1 }
 0x2dd   : > { %v4339_v61 = vmul.f32 %v4307_v51, %v14374_v35  ;;  %v4338_v20 = vmul.f32 %v4305_v12, %v14375_v16  ;;  %v4780_v27 = vmul.f32 %v9433_v17, %v4738_v48  ;;  %v4779_v29 = vmul.f32 %v9432_v44, %v4737_v33  ;;  %3898 = vst.msk [vmem:[#allocation2 + $0x160] sm:$0xff] %vm1128_vm11, %v3877_v6  ;;  %v14380_v51 = vld [vmem:[#allocation47_spill] sm:$0xff]  ;;  %v13451_v35 = vld [vmem:[#allocation2 + $0x168] sm:$0xff] }
 0x2de   : > { %v4336_v34 = vmul.f32 %v4301_v19, %v14376_v4  ;;  %v4337_v24 = vmul.f32 %v4303_v31, %v14377_v1  ;;  %v3424_v18 = vrot.slane %v9423_v21, 7  ;;  %v3422_v62 = vrot.slane %v9422_v36, 7  ;;  %7121 = vmatmul.mubr.bf16.gmra.mrb[200].mxu0 %v13306_v46  ;;  %7313 = vmatprep.subr.bf16.mxu1 %v13334_v22  ;;  %v5774_v19 = vpop.f32.mrb[146].mxu1  ;;  %v14381_v31 = vld [vmem:[#allocation48_spill] sm:$0xff] }
 0x2df   : > { %v4347_v58 = vpack.c.bf16 %v4339_v61, %v4338_v20  ;;  %v6743_v30 = vrot.slane %v13386_v40, 4  ;;  %v4783_v59 = vpack.c.bf16 %v4780_v27, %v4779_v29  ;;  %v6749_v28 = vrot.slane %v13397_v55, 4  ;;  %v3879_v21 = vpop.permute.xlu0 %3878  ;;  %8549 = vmatprep.mubr.msk.bf16.mxu0 %vm227_vm3, %v13235_v5  ;;  %v5776_v4 = vpop.f32.mrb[147].mxu1  ;;  %v9687_v1 = vld [vmem:[%s14009_s3 + $0x108] sm:$0xff]   ;;  %v14382_v27 = vld [vmem:[#allocation49_spill] sm:$0xff] }
 0x2e0   : > { %v4346_v38 = vpack.c.bf16 %v4337_v24, %v4336_v34  ;;  %v3486_v33 = vsel %vm706_vm8, %v3483_v54, %v13373_v32  ;;  %v3423_v41 = vsel %vm624_vm7, %v13304_v10, %v3422_v62  ;;  %v3425_v47 = vsel %vm624_vm7, %v3422_v62, %v3424_v18  ;;  %v9695_v10 = vld [vmem:[%s14009_s3 + $0x88] sm:$0xff]   ;;  %v9436_v44 = vpop.permute.xlu1 %9435  ;;  %7314 = vmatpush1.bf16.msra.mxu1 %v9686_v26  ;;  %v9696_v24 = vld [vmem:[%s14009_s3 + $0x90] sm:$0xff]   ;;  %v13500_v26 = vpop.f32.mrb[124].mxu0 }
 0x2e1   : > { %v4369_v48 = vrot.slane %v4347_v58, 4  ;;  %v6744_v56 = vsel %vm706_vm8, %v6739_v50, %v6743_v30  ;;  %3504 = vst.msk [vmem:[#allocation2 + $0x170] sm:$0xff] %vm227_vm3, %v3486_v33  ;;  %v4790_v11 = vrot.slane %v4783_v59, 4  ;;  %v14378_v54 = vmax.f32 %v13104_v0, 0.0  ;;  %7626 = vmatpush1.bf16.msra.mxu0 %v9695_v10  ;;  %7315 = vmatprep.subr.bf16.mxu1 %v13334_v22 }
 0x2e2   : > { %v4367_v39 = vrot.slane %v4346_v38, 4  ;;  %v14379_v17 = vmax.f32 %v13112_v45, 0.0  ;;  %6920 = vmatmul.mubr.bf16.gmra.mrb[192].mxu1 %v6744_v56  ;;  %v13439_v12 = vadd.f32 %v13092_v37, %v14380_v51  ;;  %v6750_v0 = vsel %vm706_vm8, %v6745_v53, %v6749_v28  ;;  %3899 = vst.msk [vmem:[#allocation2 + $0x170] sm:$0xff] %vm1128_vm11, %v3879_v21  ;;  %7627 = vmatprep.subr.bf16.mxu0 %v13334_v22 }
 0x2e3   : > { %v3456_v42 = vmul.f32 %v3423_v41, %v14378_v54  ;;  %4388 = vst.msk [vmem:[#allocation2 + $0x198] sm:$0xf] %vm230_vm5, %v4369_v48  ;;  %v9438_v45 = vunpack.i.h.bf16 %v9436_v44  ;;  %v5798_v36 = vadd.f32 %v5771_v63, %v13055_v3  ;;  %8528 = vmatprep.mubr.msk.bf16.mxu1 %vm227_vm3, %v6750_v0  ;;  %v9437_v53 = vunpack.i.l.bf16 %v9436_v44  ;;  %4798 = vrot.lane.b32.xlu1 %v4790_v11, %s9898_s9  ;;  %v3883_v18 = vpop.permute.xlu0 %3882  ;;  %v9697_v44 = vld [vmem:[%s14009_s3 + $0x98] sm:$0xff]  }
 0x2e4   : > { %v3457_v50 = vmul.f32 %v3425_v47, %v14379_v17  ;;  %v4368_v61 = vsel %vm706_vm8, %v13322_v14, %v4367_v39  ;;  %v4370_v16 = vsel %vm706_vm8, %v4367_v39, %v4369_v48  ;;  %v13461_v3 = vadd.f32 %v13092_v37, %v14381_v31  ;;  %v13481_v58 = vpop.permute.xlu1 %9445  ;;  %v14383_v48 = vld [vmem:[#allocation53_spill] sm:$0xff]  ;;  %v14384_v39 = vld [vmem:[#allocation51_spill] sm:$0xff]  ;;  %v6103_v17 = vpop.f32.mrb[125].mxu0  ;;  %7316 = vmatpush1.bf16.msra.mxu1 %v9687_v1 }
 0x2e5   : > { %4386 = vst.msk [vmem:[#allocation2 + $0x178] sm:$0xff] %vm227_vm3, %v4368_v61  ;;  %4387 = vst.msk [vmem:[#allocation2 + $0x188] sm:$0xff] %vm227_vm3, %v4370_v16  ;;  %v5821_v43 = vadd.f32 %v13067_v60, %v5798_v36  ;;  %v4791_v14 = vsel %vm706_vm8, %v13315_v25, %v4790_v11  ;;  %v6747_v34 = vrot.slane %v13435_v49, 4  ;;  %v13477_v29 = vadd.f32 %v13092_v37, %v14382_v27 }
 0x2e6   : > { %v3465_v20 = vpack.c.bf16 %v3457_v50, %v3456_v42  ;;  %4796 = vrot.lane.b32.xlu0 %v4791_v14, %s9898_s9  ;;  %v5799_v25 = vadd.f32 %v5774_v19, %v13057_v2  ;;  %v6753_v62 = vrot.slane %v13451_v35, 4  ;;  %v4538_v38 = vmax.f32 %v13172_v7, 0.0  ;;  %v5779_v42 = vpop.f32.mrb[148].mxu1  ;;  %v13515_v50 = vld [vmem:[#allocation2 + $0x160] sm:$0xff]  ;;  %7628 = vmatpush1.bf16.msra.mxu0 %v9696_v24 }
 0x2e7   : > { %v4539_v59 = vmax.f32 %v13220_v15, 0.0  ;;  %v4540_v33 = vmax.f32 %v13228_v52, 0.0  ;;  %v13490_v41 = vadd.f32 %v13092_v37, %v14383_v48  ;;  %5837 = vst [vmem:[%s13073_s20 + $0x60] sm:$0xff] %v5821_v43  ;;  %v13497_v47 = vrot.slane %v9438_v45, 7  ;;  %7129 = vmatmul.mubr.bf16.gmra.mrb[204].mxu0 %v13386_v40  ;;  %7317 = vmatprep.subr.bf16.mxu1 %v13334_v22 }
 0x2e8   : > { %v3487_v6 = vrot.slane %v3465_v20, 4  ;;  %v4579_v56 = vrot.slane %v9437_v53, 7  ;;  %v5822_v63 = vadd.f32 %v13067_v60, %v5799_v25  ;;  %v4950_v10 = vmax.f32 %v13439_v12, 0.0  ;;  %v9456_v0 = vpop.permute.xlu1 %9455  ;;  %v9441_v45 = vpop.permute.xlu0 %9440  ;;  %8550 = vmatprep.mubr.msk.bf16.mxu0 %vm227_vm3, %v13397_v55  ;;  %7629 = vmatprep.subr.bf16.mxu0 %v13334_v22  ;;  %v9689_v25 = vld [vmem:[%s14009_s3 + $0x118] sm:$0xff]  }
 0x2e9   : > { %v13505_v11 = vadd.f32 %v13092_v37, %v14384_v39  ;;  %v6748_v54 = vsel %vm706_vm8, %v6743_v30, %v6747_v34  ;;  %v9688_v37 = vld [vmem:[%s14009_s3 + $0x110] sm:$0xff]   ;;  %v4541_v21 = vmax.f32 %v13461_v3, 0.0  ;;  %v4951_v51 = vmax.f32 %v13477_v29, 0.0  ;;  %v5781_v20 = vpop.f32.mrb[149].mxu1  ;;  %v6104_v53 = vpop.f32.mrb[126].mxu0  ;;  %v9705_v12 = vld [vmem:[%s14009_s3 + $0xb8] sm:$0xff]  }
 0x2ea   : > { %v3488_v2 = vsel %vm706_vm8, %v13373_v32, %v3487_v6  ;;  %3506 = vst.msk [vmem:[#allocation2 + $0x190] sm:$0xf] %vm230_vm5, %v3487_v6  ;;  %v9447_v32 = vunpack.i.l.bf16 %v13481_v58  ;;  %5838 = vst [vmem:[%s13073_s20 + $0x68] sm:$0xff] %v5822_v63  ;;  %6928 = vmatmul.mubr.bf16.gmra.mrb[196].mxu1 %v6748_v54  ;;  %v6754_v30 = vsel %vm706_vm8, %v6749_v28, %v6753_v62  ;;  %v9458_v9 = vunpack.i.h.bf16 %v9456_v0  ;;  %v5782_v3 = vpop.f32.mrb[150].mxu1 }
 0x2eb   : > { %3505 = vst.msk [vmem:[#allocation2 + $0x180] sm:$0xff] %vm227_vm3, %v3488_v2  ;;  %v5800_v36 = vadd.f32 %v5779_v42, %v13059_v13  ;;  %8529 = vmatprep.mubr.msk.bf16.mxu1 %vm227_vm3, %v6754_v30  ;;  %v9457_v61 = vunpack.i.l.bf16 %v9456_v0  ;;  %v9443_v16 = vunpack.i.h.bf16 %v9441_v45  ;;  %v4953_v19 = vmax.f32 %v13490_v41, 0.0  ;;  %v6106_v13 = vpop.f32.mrb[127].mxu0  ;;  %v5784_v6 = vpop.f32.mrb[151].mxu1  ;;  %7318 = vmatpush1.bf16.msra.mxu1 %v9688_v37 }
 0x2ec   : > { %3901 = vst.msk [vmem:[#allocation2 + $0x190] sm:$0xf] %vm1136_vm12, %v3883_v18  ;;  %v4581_v28 = vsel %vm624_vm7, %v4579_v56, %v13497_v47  ;;  %v6751_v43 = vrot.slane %v13515_v50, 4  ;;  %v13543_v14 = vld [vmem:[#allocation2 + $0x178] sm:$0xff]  ;;  %v9448_v4 = vunpack.i.h.bf16 %v13481_v58  ;;  %v13548_v1 = vrot.slane %v9447_v32, 7  ;;  %7630 = vmatpush1.bf16.msra.mxu0 %v9697_v44  ;;  %v9698_v18 = vld [vmem:[%s14009_s3 + $0xa0] sm:$0xff]   ;;  %v9451_v56 = vpop.permute.xlu0 %9450  ;;  %7319 = vmatprep.subr.bf16.mxu1 %v13334_v22 }
 0x2ed   : > { %3900 = vst.msk [vmem:[#allocation2 + $0x180] sm:$0xff] %vm1128_vm11, %v13406_v57  ;;  %v9442_v57 = vunpack.i.l.bf16 %v9441_v45  ;;  %v5823_v31 = vadd.f32 %v13067_v60, %v5800_v36  ;;  %v4584_v24 = vrot.slane %v9443_v16, 7  ;;  %v13556_v48 = vrot.slane %v9458_v9, 1  ;;  %7631 = vmatprep.subr.bf16.mxu0 %v13334_v22  ;;  %v6294_v52 = vpop.f32.mrb[152].mxu1 }
 0x2ee   : > { %v4996_v2 = vrot.slane %v9457_v61, 1  ;;  %v5801_v58 = vadd.f32 %v5782_v3, %v13061_v23  ;;  %v6757_v63 = vrot.slane %v13543_v14, 4  ;;  %v4598_v39 = vmul.f32 %v4581_v28, %v4538_v38  ;;  %v13579_v38 = vld [vmem:[#allocation2 + $0x170] sm:$0xff]  ;;  %v6296_v0 = vpop.f32.mrb[153].mxu1 }
 0x2ef   : > { %v4582_v27 = vrot.slane %v9442_v57, 7  ;;  %5839 = vst [vmem:[%s13073_s20 + $0x70] sm:$0xff] %v5823_v31  ;;  %v4587_v32 = vsel %vm624_vm7, %v4584_v24, %v13548_v1  ;;  %v6752_v7 = vsel %vm706_vm8, %v6747_v34, %v6751_v43  ;;  %v9452_v30 = vunpack.i.l.bf16 %v9451_v56  ;;  %7320 = vmatpush1.bf16.msra.mxu1 %v9689_v25  ;;  %v9700_v34 = vld [vmem:[%s14009_s3 + $0xa8] sm:$0xff]   ;;  %7137 = vmatmul.mubr.bf16.gmra.mrb[208].mxu0 %v13435_v49 }
 0x2f0   : > { %v4601_v17 = vmul.f32 %v4587_v32, %v4541_v21  ;;  %v5824_v44 = vadd.f32 %v13067_v60, %v5801_v58  ;;  %v6758_v15 = vsel %vm706_vm8, %v6753_v62, %v6757_v63  ;;  %7632 = vmatpush1.bf16.msra.mxu0 %v9698_v18  ;;  %v4952_v60 = vmax.f32 %v13505_v11, 0.0  ;;  %8551 = vmatprep.mubr.msk.bf16.mxu0 %vm227_vm3, %v13451_v35  ;;  %v6297_v11 = vpop.f32.mrb[154].mxu1 }
 0x2f1   : > { %v4583_v54 = vsel %vm624_vm7, %v13497_v47, %v4582_v27  ;;  %v4585_v42 = vsel %vm624_vm7, %v4582_v27, %v4584_v24  ;;  %v9453_v47 = vunpack.i.h.bf16 %v9451_v56  ;;  %v13597_v62 = vadd.f32 %v6294_v52, %v13500_v26  ;;  %v6299_v57 = vpop.f32.mrb[155].mxu1  ;;  %7921 = vmatprep.subr.bf16.mxu1 %v13334_v22  ;;  %7633 = vmatprep.subr.bf16.mxu0 %v13334_v22 }
 0x2f2   : > { %v4599_v23 = vmul.f32 %v4583_v54, %v4539_v59  ;;  %v4600_v37 = vmul.f32 %v4585_v42, %v4540_v33  ;;  %v13587_v59 = vld [vmem:[#allocation2 + $0x188] sm:$0xff]  ;;  %v4999_v33 = vsel %vm1512_vm9, %v4996_v2, %v13556_v48  ;;  %6936 = vmatmul.mubr.bf16.gmra.mrb[200].mxu1 %v6752_v7  ;;  %v4991_v45 = vrot.slane %v9448_v4, 1  ;;  %5840 = vst [vmem:[%s13073_s20 + $0x78] sm:$0xff] %v5824_v44  ;;  %v9703_v4 = vld [vmem:[%s14009_s3 + $0xb0] sm:$0xff]   ;;  %v6302_v58 = vpop.f32.mrb[156].mxu1  ;;  %v6109_v56 = vpop.f32.mrb[128].mxu0 }
 0x2f3   : > { %v4994_v36 = vrot.slane %v9453_v47, 1  ;;  %v4992_v9 = vrot.slane %v9452_v30, 1  ;;  %8530 = vmatprep.mubr.msk.bf16.mxu1 %vm227_vm3, %v6758_v15  ;;  %v6755_v61 = vrot.slane %v13579_v38, 4  ;;  %v13604_v16 = vadd.f32 %v6297_v11, %v6104_v53  ;;  %v6111_v54 = vpop.f32.mrb[129].mxu0 }
 0x2f4   : > { %v4605_v21 = vpack.c.bf16 %v4601_v17, %v4600_v37  ;;  %v6761_v20 = vrot.slane %v13587_v59, 4  ;;  %v4604_v26 = vpack.c.bf16 %v4599_v23, %v4598_v39  ;;  %v5013_v31 = vmul.f32 %v4999_v33, %v4953_v19  ;;  %7634 = vmatpush1.bf16.msra.mxu0 %v9700_v34  ;;  %v13640_v39 = vld [vmem:[#allocation2 + $0x180] sm:$0xff]  ;;  %v6690_v17 = vld [vmem:[#allocation2 + $0x198] sm:$0xf] }
 0x2f5   : > { %v4997_v3 = vsel %vm1512_vm9, %v4994_v36, %v4996_v2  ;;  %v4993_v13 = vsel %vm1512_vm9, %v4991_v45, %v4992_v9  ;;  %v4995_v53 = vsel %vm1512_vm9, %v4992_v9, %v4994_v36  ;;  %7635 = vmatprep.subr.bf16.mxu0 %v13334_v22  ;;  %v6756_v2 = vsel %vm706_vm8, %v6751_v43, %v6755_v61  ;;  %v6304_v43 = vpop.f32.mrb[157].mxu1 }
 0x2f6   : > { %v13609_v28 = vrot.slane %v4605_v21, 4  ;;  %v5012_v24 = vmul.f32 %v4997_v3, %v4952_v60  ;;  %v5010_v27 = vmul.f32 %v4993_v13, %v4950_v10  ;;  %v5011_v6 = vmul.f32 %v4995_v53, %v4951_v51  ;;  %v6305_v42 = vpop.f32.mrb[158].mxu1  ;;  %v6689_v21 = vld [vmem:[#allocation2 + $0x190] sm:$0xf] }
 0x2f7   : > { %v4610_v41 = vrot.slane %v4604_v26, 4  ;;  %v6762_v51 = vsel %vm706_vm8, %v6757_v63, %v6761_v20  ;;  %7145 = vmatmul.mubr.bf16.gmra.mrb[212].mxu0 %v13515_v50  ;;  %v13645_v32 = vadd.f32 %v6302_v58, %v6109_v56  ;;  %v6112_v63 = vpop.f32.mrb[130].mxu0  ;;  %v6307_v37 = vpop.f32.mrb[159].mxu1  ;;  %v6759_v47 = vrot.slane %v13640_v39, 4 }
 0x2f8   : > { %v5017_v19 = vpack.c.bf16 %v5013_v31, %v5012_v24  ;;  %v5016_v25 = vpack.c.bf16 %v5011_v6, %v5010_v27  ;;  %7636 = vmatpush1.bf16.msra.mxu0 %v9703_v4  ;;  %8552 = vmatprep.mubr.msk.bf16.mxu0 %vm227_vm3, %v13543_v14  ;;  %v13652_v7 = vadd.f32 %v6305_v42, %v6112_v63  ;;  %v6114_v44 = vpop.f32.mrb[131].mxu0  ;;  %v6765_v30 = vrot.slane %v6690_v17, 4  ;;  %v6310_v52 = vpop.f32.mrb[160].mxu1  ;;  %v9701_v17 = vld [vmem:[%s14009_s3 + $0xc8] sm:$0xff]  }
 0x2f9   : > { %4619 = vst.msk [vmem:[#allocation2 + $0x190] sm:$0xf0] %vm233_vm4, %v4610_v41  ;;  %v4612_v18 = vsel %vm706_vm8, %v4610_v41, %v13609_v28  ;;  %7637 = vmatprep.subr.bf16.mxu0 %v13334_v22  ;;  %v6760_v15 = vsel %vm706_vm8, %v6755_v61, %v6759_v47  ;;  %v6312_v33 = vpop.f32.mrb[161].mxu1  ;;  %v6763_v3 = vrot.slane %v6689_v21, 4 }
 0x2fa   : > { %4620 = vst.msk [vmem:[#allocation2 + $0x1a0] sm:$0xff] %vm227_vm3, %v4612_v18  ;;  %v13634_v29 = vrot.slane %v5017_v19, 4  ;;  %v5022_v10 = vrot.slane %v5016_v25, 4  ;;  %6944 = vmatmul.mubr.bf16.gmra.mrb[204].mxu1 %v6756_v2  ;;  %v6766_v34 = vsel %vm706_vm8, %v6761_v20, %v6765_v30  ;;  %v6117_v60 = vpop.f32.mrb[132].mxu0  ;;  %v6313_v36 = vpop.f32.mrb[162].mxu1 }
 0x2fb   : > { %8531 = vmatprep.mubr.msk.bf16.mxu1 %vm227_vm3, %v6762_v51  ;;  %v13660_v0 = vadd.f32 %v6310_v52, %v6117_v60  ;;  %v6119_v45 = vpop.f32.mrb[133].mxu0  ;;  %v6315_v57 = vpop.f32.mrb[163].mxu1  ;;  %v6764_v4 = vsel %vm706_vm8, %v6759_v47, %v6763_v3  ;;  %v9704_v52 = vld [vmem:[%s14009_s3 + $0xd8] sm:$0xff]  }
 0x2fc   : > { %v5024_v23 = vsel %vm706_vm8, %v5022_v10, %v13634_v29  ;;  %5031 = vst.msk [vmem:[#allocation2 + $0x198] sm:$0xf0] %vm233_vm4, %v5022_v10  ;;  %7638 = vmatpush1.bf16.msra.mxu0 %v9705_v12  ;;  %v6120_v11 = vpop.f32.mrb[134].mxu0  ;;  %v9699_v10 = vld [vmem:[%s14009_s3 + $0xc0] sm:$0xff]  }
 0x2fd   : > { %5032 = vst.msk [vmem:[#allocation2 + $0x1a8] sm:$0xff] %vm227_vm3, %v5024_v23  ;;  %7753 = vmatprep.subr.bf16.mxu0 %v13334_v22  ;;  %v13664_v31 = vadd.f32 %v6313_v36, %v6120_v11  ;;  %v6122_v20 = vpop.f32.mrb[135].mxu0 }
 0x2ff   : > { %7153 = vmatmul.mubr.bf16.gmra.mrb[216].mxu0 %v13579_v38  ;;  %v6318_v24 = vpop.f32.mrb[164].mxu1 }
 0x300   : > { %v6320_v6 = vpop.f32.mrb[165].mxu1 }
 0x301   : > { %v6321_v25 = vpop.f32.mrb[166].mxu1 }
 0x302   : > { %6952 = vmatmul.mubr.bf16.gmra.mrb[208].mxu1 %v6760_v15  ;;  %v6125_v27 = vpop.f32.mrb[136].mxu0  ;;  %v6323_v2 = vpop.f32.mrb[167].mxu1 }
 0x303   : > { %8532 = vmatprep.mubr.msk.bf16.mxu1 %vm227_vm3, %v6766_v34  ;;  %v7480_v9 = vld [vmem:[#allocation2 + $0x198] sm:$0xf0]  ;;  %v13674_v41 = vadd.f32 %v6318_v24, %v6125_v27  ;;  %v6127_v19 = vpop.f32.mrb[137].mxu0 }
 0x304   : > { %v13662_v26 = vld [vmem:[#allocation2 + $0x1a8] sm:$0xff]  ;;  %v7520_v61 = vrot.slane %v7480_v9, 4  ;;  %v6128_v18 = vpop.f32.mrb[138].mxu0 }
 0x305   : > { %v7521_v13 = vrot.slane %v13662_v26, 4  ;;  %v13676_v58 = vadd.f32 %v6321_v25, %v6128_v18  ;;  %v6130_v12 = vpop.f32.mrb[139].mxu0  ;;  %v9712_v18 = vld [vmem:[%s14009_s3 + $0xf8] sm:$0xff]  }
 0x307   : > { %v7522_v53 = vsel %vm706_vm8, %v7520_v61, %v7521_v13  ;;  %v6326_v51 = vpop.f32.mrb[168].mxu1  ;;  %v9708_v61 = vld [vmem:[%s14009_s3 + $0xe8] sm:$0xff]  }
 0x308   : > { %8634 = vmatprep.mubr.msk.bf16.mxu0 %vm227_vm3, %v7522_v53  ;;  %v6328_v43 = vpop.f32.mrb[169].mxu1 }
 0x309   : > { %v6329_v42 = vpop.f32.mrb[170].mxu1 }
 0x30a   : > { %6960 = vmatmul.mubr.bf16.gmra.mrb[212].mxu1 %v6764_v4  ;;  %v6331_v63 = vpop.f32.mrb[171].mxu1 }
 0x30b   : > { %8589 = vmatprep.mubr.msk.bf16.mxu1 %vm227_vm3, %v13123_v8 }
 0x30c   : > { %v6133_v56 = vpop.f32.mrb[140].mxu0 }
 0x30d   : > { %v13684_v8 = vadd.f32 %v6326_v51, %v6133_v56  ;;  %v6135_v54 = vpop.f32.mrb[141].mxu0 }
 0x30e   : > { %v6136_v23 = vpop.f32.mrb[142].mxu0  ;;  %v13747_v54 = vld [vmem:[%s14010_s4] ss:$0 sm:$0xff] }
 0x30f   : > { %v13690_v37 = vadd.f32 %v6329_v42, %v6136_v23  ;;  %v6334_v44 = vpop.f32.mrb[172].mxu1  ;;  %v9716_v42 = vld [vmem:[%s14009_s3 + $0x108] sm:$0xff]  }
 0x310   : > { %v6336_v47 = vpop.f32.mrb[173].mxu1 }
 0x311   : > { %v6337_v15 = vpop.f32.mrb[174].mxu1 }
 0x312   : > { %7330 = vmatmul.mubr.bf16.vlgmr.msra.gmra.mrb[216].mxu1 %v13306_v46  ;;  %v6138_v46 = vpop.f32.mrb[143].mxu0  ;;  %v6339_v33 = vpop.f32.mrb[175].mxu1 }
 0x313   : > { %8590 = vmatprep.mubr.msk.bf16.mxu1 %vm227_vm3, %v13235_v5  ;;  %7922 = vmatpush1.bf16.msra.mxu1 %v9699_v10  ;;  %v9702_v5 = vld [vmem:[%s14009_s3 + $0xd0] sm:$0xff]  }
 0x314   : > { %7923 = vmatprep.subr.bf16.mxu1 %v13334_v22 }
 0x315   : > { %v6141_v30 = vpop.f32.mrb[144].mxu0 }
 0x316   : > { %v13702_v34 = vadd.f32 %v6334_v44, %v6141_v30  ;;  %v6143_v60 = vpop.f32.mrb[145].mxu0  ;;  %v9718_v44 = vld [vmem:[%s14009_s3 + $0x110] sm:$0xff]   ;;  %v9720_v30 = vld [vmem:[%s14009_s3 + $0x118] sm:$0xff]  }
 0x317   : > { %7924 = vmatpush1.bf16.msra.mxu1 %v9701_v17  ;;  %v6144_v21 = vpop.f32.mrb[146].mxu0  ;;  %v6342_v36 = vpop.f32.mrb[176].mxu1 }
 0x318   : > { %7925 = vmatprep.subr.bf16.mxu1 %v13334_v22  ;;  %v13705_v45 = vadd.f32 %v6337_v15, %v6144_v21  ;;  %v6344_v9 = vpop.f32.mrb[177].mxu1 }
 0x319   : > { %v6345_v57 = vpop.f32.mrb[178].mxu1 }
 0x31a   : > { %7338 = vmatmul.mubr.bf16.gmra.mrb[220].mxu1 %v13386_v40  ;;  %v6146_v40 = vpop.f32.mrb[147].mxu0  ;;  %v6347_v53 = vpop.f32.mrb[179].mxu1 }
 0x31b   : > { %8591 = vmatprep.mubr.msk.bf16.mxu1 %vm227_vm3, %v13397_v55  ;;  %7926 = vmatpush1.bf16.msra.mxu1 %v9702_v5  ;;  %v9706_v55 = vld [vmem:[%s14009_s3 + $0xe0] sm:$0xff]  }
 0x31c   : > { %7927 = vmatprep.subr.bf16.mxu1 %v13334_v22 }
 0x31d   : > { %v6149_v11 = vpop.f32.mrb[148].mxu0 }
 0x31e   : > { %v13717_v20 = vadd.f32 %v6342_v36, %v6149_v11  ;;  %v6151_v3 = vpop.f32.mrb[149].mxu0 }
 0x31f   : > { %7928 = vmatpush1.bf16.msra.mxu1 %v9704_v52  ;;  %v6152_v4 = vpop.f32.mrb[150].mxu0 }
 0x320   : > { %7929 = vmatprep.subr.bf16.mxu1 %v13334_v22  ;;  %v13720_v24 = vadd.f32 %v6345_v57, %v6152_v4  ;;  %v6350_v27 = vpop.f32.mrb[180].mxu1 }
 0x321   : > { %v6352_v6 = vpop.f32.mrb[181].mxu1 }
 0x322   : > { %7346 = vmatmul.mubr.bf16.gmra.mrb[224].mxu1 %v13435_v49  ;;  %v6154_v49 = vpop.f32.mrb[151].mxu0  ;;  %v6353_v25 = vpop.f32.mrb[182].mxu1 }
 0x323   : > { %8592 = vmatprep.mubr.msk.bf16.mxu1 %vm227_vm3, %v13451_v35  ;;  %7930 = vmatpush1.bf16.msra.mxu1 %v9706_v55  ;;  %v9710_v35 = vld [vmem:[%s14009_s3 + $0xf0] sm:$0xff]   ;;  %v6355_v10 = vpop.f32.mrb[183].mxu1 }
 0x324   : > { %7931 = vmatprep.subr.bf16.mxu1 %v13334_v22 }
 0x327   : > { %7932 = vmatpush1.bf16.msra.mxu1 %v9708_v61 }
 0x328   : > { %7933 = vmatprep.subr.bf16.mxu1 %v13334_v22  ;;  %v6157_v19 = vpop.f32.mrb[152].mxu0 }
 0x329   : > { %v13732_v2 = vadd.f32 %v6350_v27, %v6157_v19  ;;  %v6159_v12 = vpop.f32.mrb[153].mxu0  ;;  %v14385_v19 = vld [vmem:[#allocation50_spill] sm:$0xff] }
 0x32a   : > { %7354 = vmatmul.mubr.bf16.gmra.mrb[228].mxu1 %v13515_v50  ;;  %v6160_v51 = vpop.f32.mrb[154].mxu0 }
 0x32b   : > { %8593 = vmatprep.mubr.msk.bf16.mxu1 %vm227_vm3, %v13543_v14  ;;  %7934 = vmatpush1.bf16.msra.mxu1 %v9710_v35  ;;  %v13735_v56 = vadd.f32 %v6353_v25, %v6160_v51  ;;  %v6162_v50 = vpop.f32.mrb[155].mxu0  ;;  %v9714_v14 = vld [vmem:[%s14009_s3 + $0x100] sm:$0xff]  }
 0x32c   : > { %7935 = vmatprep.subr.bf16.mxu1 %v13334_v22 }
 0x32f   : > { %7936 = vmatpush1.bf16.msra.mxu1 %v9712_v18  ;;  %v14386_v18 = vld [vmem:[#allocation52_spill] sm:$0xff] }
 0x330   : > { %7937 = vmatprep.subr.bf16.mxu1 %v13334_v22 }
 0x331   : > { %v6527_v43 = vpop.f32.mrb[156].mxu0 }
 0x332   : > { %7362 = vmatmul.mubr.bf16.gmra.mrb[232].mxu1 %v13579_v38  ;;  %v6590_v17 = vadd.f32 %v6527_v43, %v13597_v62  ;;  %v6529_v23 = vpop.f32.mrb[157].mxu0  ;;  %v13764_v62 = vld [vmem:[#allocation2 + $0x198] sm:$0xff] }
 0x333   : > { %8594 = vmatprep.mubr.msk.bf16.mxu1 %vm227_vm3, %v13587_v59  ;;  %7938 = vmatpush1.bf16.msra.mxu1 %v9714_v14  ;;  %v6530_v38 = vpop.f32.mrb[158].mxu0 }
 0x334   : > { %7939 = vmatprep.subr.bf16.mxu1 %v13334_v22  ;;  %v6613_v63 = vadd.f32 %v13747_v54, %v6590_v17  ;;  %v6591_v46 = vadd.f32 %v6530_v38, %v13604_v16  ;;  %v6532_v5 = vpop.f32.mrb[159].mxu0 }
 0x336   : > { %6629 = vst [vmem:[%s13073_s20 + $0x80] sm:$0xff] %v6613_v63  ;;  %v6614_v47 = vadd.f32 %v13747_v54, %v6591_v46 }
 0x337   : > { %7940 = vmatpush1.bf16.msra.mxu1 %v9716_v42 }
 0x338   : > { %7941 = vmatprep.subr.bf16.mxu1 %v13334_v22  ;;  %6630 = vst [vmem:[%s13073_s20 + $0x88] sm:$0xff] %v6614_v47 }
 0x339   : > { %v6535_v16 = vpop.f32.mrb[160].mxu0  ;;  %v4793_v60 = vpop.permute.xlu0 %4792 }
 0x33a   : > { %7370 = vmatmul.mubr.bf16.gmra.mrb[236].mxu1 %v13640_v39  ;;  %v6592_v15 = vadd.f32 %v6535_v16, %v13645_v32  ;;  %v6537_v52 = vpop.f32.mrb[161].mxu0  ;;  %4804 = vst.msk [vmem:[#allocation2 + $0x190] sm:$0xf0] %vm1126_vm10, %v4793_v60 }
 0x33b   : > { %8595 = vmatprep.mubr.msk.bf16.mxu1 %vm227_vm3, %v13764_v62  ;;  %7942 = vmatpush1.bf16.msra.mxu1 %v9718_v44  ;;  %v6538_v33 = vpop.f32.mrb[162].mxu0 }
 0x33c   : > { %7943 = vmatprep.subr.bf16.mxu1 %v13334_v22  ;;  %v6615_v21 = vadd.f32 %v13747_v54, %v6592_v15  ;;  %v6593_v40 = vadd.f32 %v6538_v33, %v13652_v7  ;;  %v6540_v55 = vpop.f32.mrb[163].mxu0 }
 0x33e   : > { %6631 = vst [vmem:[%s13073_s20 + $0x90] sm:$0xff] %v6615_v21  ;;  %v6616_v36 = vadd.f32 %v13747_v54, %v6593_v40 }
 0x33f   : > { %7944 = vmatpush1.bf16.msra.mxu1 %v9720_v30  ;;  %v9707_v30 = vld [vmem:[%s14009_s3] sm:$0xff]  }
 0x340   : > { %6632 = vst [vmem:[%s13073_s20 + $0x98] sm:$0xff] %v6616_v36 }
 0x341   : > { %v6543_v32 = vpop.f32.mrb[164].mxu0  ;;  %v13780_v61 = vld [vmem:[#allocation2 + $0x190] sm:$0xff] }
 0x342   : > { %v6594_v9 = vadd.f32 %v6543_v32, %v13660_v0  ;;  %v6545_v11 = vpop.f32.mrb[165].mxu0  ;;  %7378 = vmatmul.mubr.bf16.gmra.mrb[240].mxu1 %v13780_v61  ;;  %v7479_v17 = vld [vmem:[#allocation2 + $0x190] sm:$0xf0] }
 0x343   : > { %v6546_v57 = vpop.f32.mrb[166].mxu0  ;;  %8596 = vmatprep.mubr.msk.bf16.mxu1 %vm227_vm3, %v13662_v26  ;;  %v9709_v11 = vld [vmem:[%s14009_s3 + $0x8] sm:$0xff]  }
 0x344   : > { %v6617_v3 = vadd.f32 %v13747_v54, %v6594_v9  ;;  %v6595_v53 = vadd.f32 %v6546_v57, %v13664_v31  ;;  %v6548_v7 = vpop.f32.mrb[167].mxu0  ;;  %v9884_v31 = vld [vmem:[%s14008_s2] ss:$0 sm:$0xff] }
 0x345   : > { %v4532_v25 = vadd.f32 %v9884_v31, %v14385_v19  ;;  %v4535_v12 = vadd.f32 %v9884_v31, %v14386_v18 }
 0x346   : > { %6633 = vst [vmem:[%s13073_s20 + $0xa0] sm:$0xff] %v6617_v3  ;;  %v6618_v4 = vadd.f32 %v13747_v54, %v6595_v53 }
 0x347   : > { %v4795_v0 = vpop.permute.xlu1 %4794  ;;  %v4542_v63 = vmax.f32 %v4532_v25, 0.0  ;;  %v4543_v46 = vmax.f32 %v4535_v12, 0.0 }
 0x348   : > { %6634 = vst [vmem:[%s13073_s20 + $0xa8] sm:$0xff] %v6618_v4  ;;  %4805 = vst.msk [vmem:[#allocation2 + $0x1a0] sm:$0xff] %vm1128_vm11, %v4795_v0  ;;  %v14388_v4 = vld [vmem:[#allocation57_spill] sm:$0xff] }
 0x349   : > { %v6551_v49 = vpop.f32.mrb[168].mxu0  ;;  %v4947_v0 = vadd.f32 %v9884_v31, %v14388_v4 }
 0x34a   : > { %v6596_v35 = vadd.f32 %v6551_v49, %v13674_v41  ;;  %v6553_v27 = vpop.f32.mrb[169].mxu0  ;;  %v9461_v51 = vpop.permute.xlu0 %9460 }
 0x34b   : > { %v6554_v6 = vpop.f32.mrb[170].mxu0  ;;  %v9463_v43 = vunpack.i.h.bf16 %v9461_v51  ;;  %v9462_v42 = vunpack.i.l.bf16 %v9461_v51 }
 0x34c   : > { %v6619_v10 = vadd.f32 %v13747_v54, %v6596_v35  ;;  %v6597_v50 = vadd.f32 %v6554_v6, %v13676_v58  ;;  %v6556_v14 = vpop.f32.mrb[171].mxu0  ;;  %v7517_v58 = vrot.slane %v7479_v17, 4  ;;  %v9711_v35 = vld [vmem:[%s14009_s3 + $0x10] sm:$0xff]   ;;  %v9885_v17 = vld [vmem:[#allocation2] sm:$0xff] }
 0x34d   : > { %v4590_v23 = vrot.slane %v9463_v43, 7  ;;  %v4588_v38 = vrot.slane %v9462_v42, 7  ;;  %v4955_v43 = vmax.f32 %v4947_v0, 0.0 }
 0x34e   : > { %6635 = vst [vmem:[%s13073_s20 + $0xb0] sm:$0xff] %v6619_v10  ;;  %v6620_v41 = vadd.f32 %v13747_v54, %v6597_v50 }
 0x34f   : > { %v13802_v5 = vld [vmem:[#allocation2 + $0x1a0] sm:$0xff]  ;;  %v4589_v44 = vsel %vm624_vm7, %v13548_v1, %v4588_v38  ;;  %v4591_v47 = vsel %vm624_vm7, %v4588_v38, %v4590_v23 }
 0x350   : > { %6636 = vst [vmem:[%s13073_s20 + $0xb8] sm:$0xff] %v6620_v41  ;;  %7386 = vmatmul.mubr.bf16.gmra.mrb[244].mxu1 %v13802_v5  ;;  %v7518_v16 = vrot.slane %v13802_v5, 4  ;;  %v4602_v52 = vmul.f32 %v4589_v44, %v4542_v63  ;;  %v4603_v60 = vmul.f32 %v4591_v47, %v4543_v46  ;;  %v9715_v46 = vld [vmem:[%s14009_s3 + $0x20] sm:$0xff]   ;;  %v9717_v47 = vld [vmem:[%s14009_s3 + $0x28] sm:$0xff]  }
 0x351   : > { %v6559_v15 = vpop.f32.mrb[172].mxu0 }
 0x352   : > { %v6598_v33 = vadd.f32 %v6559_v15, %v13684_v8  ;;  %v6561_v21 = vpop.f32.mrb[173].mxu0  ;;  %v7519_v1 = vsel %vm706_vm8, %v7517_v58, %v7518_v16  ;;  %v4606_v55 = vpack.c.bf16 %v4603_v60, %v4602_v52  ;;  %v9719_v58 = vld [vmem:[%s14009_s3 + $0x30] sm:$0xff]   ;;  %v9721_v52 = vld [vmem:[%s14009_s3 + $0x38] sm:$0xff]  }
 0x353   : > { %v6562_v40 = vpop.f32.mrb[174].mxu0  ;;  %7648 = vmatmul.mubr.bf16.vlgmr.msra.gmra.mrb[220].mxu0 %v7519_v1 }
 0x354   : > { %v6621_v36 = vadd.f32 %v13747_v54, %v6598_v33  ;;  %v6599_v32 = vadd.f32 %v6562_v40, %v13690_v37  ;;  %v6564_v9 = vpop.f32.mrb[175].mxu0  ;;  %7754 = vmatpush1.bf16.msra.mxu0 %v9707_v30  ;;  %v4613_v57 = vrot.slane %v4606_v55, 4  ;;  %v14387_v37 = vld [vmem:[#allocation55_spill] sm:$0xff] }
 0x355   : > { %7755 = vmatprep.subr.bf16.mxu0 %v13334_v22  ;;  %v4944_v7 = vadd.f32 %v9884_v31, %v14387_v37 }
 0x356   : > { %6637 = vst [vmem:[%s13073_s20 + $0xc0] sm:$0xff] %v6621_v36  ;;  %v6622_v8 = vadd.f32 %v13747_v54, %v6599_v32  ;;  %v4614_v3 = vsel %vm706_vm8, %v13609_v28, %v4613_v57  ;;  %4622 = vst.msk [vmem:[#allocation2 + $0x1c0] sm:$0xf] %vm230_vm5, %v4613_v57  ;;  %v9722_v36 = vld [vmem:[%s14009_s3 + $0x40] sm:$0xff]  }
 0x357   : > { %4621 = vst.msk [vmem:[#allocation2 + $0x1b0] sm:$0xff] %vm227_vm3, %v4614_v3  ;;  %v4954_v14 = vmax.f32 %v4944_v7, 0.0  ;;  %v9724_v3 = vld [vmem:[%s14009_s3 + $0x50] sm:$0xff]  }
 0x358   : > { %6638 = vst [vmem:[%s13073_s20 + $0xc8] sm:$0xff] %v6622_v8  ;;  %v4797_v53 = vpop.permute.xlu0 %4796  ;;  %7756 = vmatpush1.bf16.msra.mxu0 %v9709_v11  ;;  %v9466_v49 = vpop.permute.xlu1 %9465  ;;  %v7815_v8 = vld [vmem:[#allocation2 + $0x1d8] sm:$0xff] }
 0x359   : > { %v6567_v27 = vpop.f32.mrb[176].mxu0  ;;  %4806 = vst.msk [vmem:[#allocation2 + $0x1b0] sm:$0xff] %vm1128_vm11, %v4797_v53  ;;  %v9468_v6 = vunpack.i.h.bf16 %v9466_v49  ;;  %v9467_v28 = vunpack.i.l.bf16 %v9466_v49  ;;  %7757 = vmatprep.subr.bf16.mxu0 %v13334_v22  ;;  %v9713_v22 = vld [vmem:[%s14009_s3 + $0x18] sm:$0xff]  }
 0x35a   : > { %v6600_v19 = vadd.f32 %v6567_v27, %v13702_v34  ;;  %v6569_v25 = vpop.f32.mrb[177].mxu0  ;;  %v9725_v53 = vld [vmem:[%s14009_s3 + $0x58] sm:$0xff]  }
 0x35b   : > { %v6570_v31 = vpop.f32.mrb[178].mxu0  ;;  %v5002_v18 = vrot.slane %v9468_v6, 1  ;;  %v5000_v12 = vrot.slane %v9467_v28, 1 }
 0x35c   : > { %v6623_v10 = vadd.f32 %v13747_v54, %v6600_v19  ;;  %v6601_v51 = vadd.f32 %v6570_v31, %v13705_v45  ;;  %v6572_v50 = vpop.f32.mrb[179].mxu0  ;;  %7758 = vmatpush1.bf16.msra.mxu0 %v9711_v35  ;;  %v4799_v42 = vpop.permute.xlu1 %4798 }
 0x35d   : > { %v5001_v34 = vsel %vm1512_vm9, %v13556_v48, %v5000_v12  ;;  %v5003_v41 = vsel %vm1512_vm9, %v5000_v12, %v5002_v18  ;;  %4807 = vst.msk [vmem:[#allocation2 + $0x1c0] sm:$0xf] %vm1136_vm12, %v4799_v42  ;;  %7759 = vmatprep.subr.bf16.mxu0 %v9885_v17 }
 0x35e   : > { %6639 = vst [vmem:[%s13073_s20 + $0xd0] sm:$0xff] %v6623_v10  ;;  %v6624_v45 = vadd.f32 %v13747_v54, %v6601_v51  ;;  %v5014_v23 = vmul.f32 %v5001_v34, %v4954_v14  ;;  %v5015_v38 = vmul.f32 %v5003_v41, %v4955_v43 }
 0x360   : > { %6640 = vst [vmem:[%s13073_s20 + $0xd8] sm:$0xff] %v6624_v45  ;;  %v5018_v63 = vpack.c.bf16 %v5015_v38, %v5014_v23  ;;  %7760 = vmatpush1.bf16.msra.mxu0 %v9713_v22  ;;  %v7810_v30 = vld [vmem:[#allocation2 + $0x1b0] sm:$0xff] }
 0x361   : > { %7761 = vmatprep.subr.bf16.mxu0 %v9885_v17  ;;  %v7523_v60 = vrot.slane %v7810_v30, 4 }
 0x362   : > { %v5025_v48 = vrot.slane %v5018_v63, 4 }
 0x363   : > { %v7524_v55 = vsel %vm706_vm8, %v7518_v16, %v7523_v60 }
 0x364   : > { %v5026_v44 = vsel %vm706_vm8, %v13634_v29, %v5025_v48  ;;  %5034 = vst.msk [vmem:[#allocation2 + $0x1c8] sm:$0xf] %vm230_vm5, %v5025_v48  ;;  %7762 = vmatpush1.bf16.msra.mxu0 %v9715_v46  ;;  %v7483_v9 = vld [vmem:[#allocation2 + $0x1c0] sm:$0xf] }
 0x365   : > { %5033 = vst.msk [vmem:[#allocation2 + $0x1b8] sm:$0xff] %vm227_vm3, %v5026_v44  ;;  %7763 = vmatprep.subr.bf16.mxu0 %v9885_v17  ;;  %v7527_v11 = vrot.slane %v7483_v9, 4  ;;  %v7812_v16 = vld [vmem:[#allocation2 + $0x1c0] sm:$0xff] }
 0x367   : > { %v7528_v57 = vsel %vm706_vm8, %v7523_v60, %v7527_v11 }
 0x368   : > { %7764 = vmatpush1.bf16.msra.mxu0 %v9717_v47 }
 0x369   : > { %7765 = vmatprep.subr.bf16.mxu0 %v9885_v17 }
 0x36b   : > { %v7484_v15 = vld [vmem:[#allocation2 + $0x1c8] sm:$0xf] }
 0x36c   : > { %7766 = vmatpush1.bf16.msra.mxu0 %v9719_v58  ;;  %v7811_v29 = vld [vmem:[#allocation2 + $0x1b8] sm:$0xff]  ;;  %v7529_v21 = vrot.slane %v7484_v15, 4  ;;  %v7813_v1 = vld [vmem:[#allocation2 + $0x1c8] sm:$0xff] }
 0x36d   : > { %8688 = vmatprep.mubr.msk.bf16.mxu1 %vm227_vm3, %v7811_v29  ;;  %7767 = vmatprep.subr.bf16.mxu0 %v9885_v17  ;;  %v7525_v33 = vrot.slane %v7811_v29, 4 }
 0x36e   : > { %7954 = vmatmul.mubr.bf16.vlgmr.msra.gmra.mrb[248].mxu1 %v7810_v30 }
 0x36f   : > { %8689 = vmatprep.mubr.msk.bf16.mxu1 %vm227_vm3, %v7813_v1  ;;  %v7526_v40 = vsel %vm706_vm8, %v7521_v13, %v7525_v33  ;;  %v7530_v32 = vsel %vm706_vm8, %v7525_v33, %v7529_v21  ;;  %v9723_v13 = vld [vmem:[%s14009_s3 + $0x48] sm:$0xff]  }
 0x370   : > { %7768 = vmatpush1.bf16.msra.mxu0 %v9721_v52  ;;  %8635 = vmatprep.mubr.msk.bf16.mxu0 %vm227_vm3, %v7526_v40 }
 0x371   : > { %7656 = vmatmul.mubr.bf16.gmra.mrb[224].mxu0 %v7524_v55  ;;  %7769 = vmatprep.subr.bf16.mxu0 %v9885_v17 }
 0x372   : > { %8636 = vmatprep.mubr.msk.bf16.mxu0 %vm227_vm3, %v7530_v32 }
 0x374   : > { %7770 = vmatpush1.bf16.msra.mxu0 %v9722_v36 }
 0x375   : > { %7771 = vmatprep.subr.bf16.mxu0 %v9885_v17 }
 0x376   : > { %7962 = vmatmul.mubr.bf16.gmra.mrb[252].mxu1 %v7812_v16 }
 0x377   : > { %8690 = vmatprep.mubr.msk.bf16.mxu1 %vm227_vm3, %v7815_v8 }
 0x378   : > { %7772 = vmatpush1.bf16.msra.mxu0 %v9723_v13 }
 0x379   : > { %7664 = vmatmul.mubr.bf16.gmra.mrb[228].mxu0 %v7528_v57  ;;  %7773 = vmatprep.subr.bf16.mxu0 %v9885_v17 }
 0x37a   : > { %8649 = vmatprep.mubr.msk.bf16.mxu0 %vm227_vm3, %v13587_v59 }
 0x37c   : > { %7774 = vmatpush1.bf16.msra.mxu0 %v9724_v3 }
 0x37d   : > { %7775 = vmatprep.subr.bf16.mxu0 %v9885_v17 }
 0x37e   : > { %7970 = vmatmul.mubr.bf16.gmra.mrb[0].mxu1 %v9885_v17 }
 0x380   : > { %7776 = vmatpush1.bf16.msra.mxu0 %v9725_v53 }
 0x383   : > { %7786 = vmatmul.mubr.bf16.vlgmr.msra.gmra.mrb[232].mxu0 %v13640_v39 }
 0x384   : > { %8650 = vmatprep.mubr.msk.bf16.mxu0 %vm227_vm3, %v13764_v62 }
 0x388   : > { %v6575_v37 = vpop.f32.mrb[180].mxu0 }
 0x389   : > { %v6602_v59 = vadd.f32 %v6575_v37, %v13717_v20  ;;  %v6577_v7 = vpop.f32.mrb[181].mxu0 }
 0x38a   : > { %v6578_v4 = vpop.f32.mrb[182].mxu0 }
 0x38b   : > { %7794 = vmatmul.mubr.bf16.gmra.mrb[236].mxu0 %v13780_v61  ;;  %v6625_v0 = vadd.f32 %v13747_v54, %v6602_v59  ;;  %v6603_v49 = vadd.f32 %v6578_v4, %v13720_v24  ;;  %v6580_v35 = vpop.f32.mrb[183].mxu0 }
 0x38c   : > { %8651 = vmatprep.mubr.msk.bf16.mxu0 %vm227_vm3, %v13662_v26 }
 0x38d   : > { %6641 = vst [vmem:[%s13073_s20 + $0xe0] sm:$0xff] %v6625_v0  ;;  %v6626_v39 = vadd.f32 %v13747_v54, %v6603_v49 }
 0x38f   : > { %6642 = vst [vmem:[%s13073_s20 + $0xe8] sm:$0xff] %v6626_v39  ;;  %v6905_v62 = vpop.f32.mrb[184].mxu1 }
 0x390   : > { %v6583_v61 = vpop.f32.mrb[184].mxu0  ;;  %v6907_v27 = vpop.f32.mrb[185].mxu1 }
 0x391   : > { %v6604_v20 = vadd.f32 %v6583_v61, %v13732_v2  ;;  %v6585_v26 = vpop.f32.mrb[185].mxu0  ;;  %v6908_v6 = vpop.f32.mrb[186].mxu1 }
 0x392   : > { %v6586_v28 = vpop.f32.mrb[186].mxu0  ;;  %v6910_v19 = vpop.f32.mrb[187].mxu1 }
 0x393   : > { %7802 = vmatmul.mubr.bf16.gmra.mrb[240].mxu0 %v13802_v5  ;;  %v6627_v24 = vadd.f32 %v13747_v54, %v6604_v20  ;;  %v6605_v25 = vadd.f32 %v6586_v28, %v13735_v56  ;;  %v6588_v31 = vpop.f32.mrb[187].mxu0 }
 0x395   : > { %6643 = vst [vmem:[%s13073_s20 + $0xf0] sm:$0xff] %v6627_v24  ;;  %v6628_v18 = vadd.f32 %v13747_v54, %v6605_v25 }
 0x397   : > { %6644 = vst [vmem:[%s13073_s20 + $0xf8] sm:$0xff] %v6628_v18 }
 0x398   : > { %v7098_v12 = vpop.f32.mrb[188].mxu0 }
 0x399   : > { %v13911_v10 = vadd.f32 %v7098_v12, %v6905_v62  ;;  %v7100_v51 = vpop.f32.mrb[189].mxu0 }
 0x39a   : > { %v7101_v5 = vpop.f32.mrb[190].mxu0 }
 0x39b   : > { %v13913_v50 = vadd.f32 %v7101_v5, %v6908_v6  ;;  %v7103_v2 = vpop.f32.mrb[191].mxu0 }
 0x3a0   : > { %v7106_v14 = vpop.f32.mrb[192].mxu0 }
 0x3a1   : > { %v7108_v43 = vpop.f32.mrb[193].mxu0 }
 0x3a2   : > { %v7109_v42 = vpop.f32.mrb[194].mxu0 }
 0x3a3   : > { %v7111_v22 = vpop.f32.mrb[195].mxu0 }
 0x3a9   : > { %v7114_v17 = vpop.f32.mrb[196].mxu0 }
 0x3aa   : > { %v6913_v34 = vpop.f32.mrb[188].mxu1  ;;  %v7116_v63 = vpop.f32.mrb[197].mxu0 }
 0x3ab   : > { %v13915_v41 = vadd.f32 %v7106_v14, %v6913_v34  ;;  %v6915_v56 = vpop.f32.mrb[189].mxu1  ;;  %v7117_v46 = vpop.f32.mrb[198].mxu0 }
 0x3ac   : > { %v6916_v45 = vpop.f32.mrb[190].mxu1  ;;  %v7119_v48 = vpop.f32.mrb[199].mxu0 }
 0x3ad   : > { %v13917_v23 = vadd.f32 %v7109_v42, %v6916_v45  ;;  %v6918_v38 = vpop.f32.mrb[191].mxu1 }
 0x3b1   : > { %v7122_v47 = vpop.f32.mrb[200].mxu0 }
 0x3b2   : > { %v7124_v15 = vpop.f32.mrb[201].mxu0 }
 0x3b3   : > { %v7125_v52 = vpop.f32.mrb[202].mxu0 }
 0x3b4   : > { %v7127_v21 = vpop.f32.mrb[203].mxu0 }
 0x3b5   : > { %v6921_v44 = vpop.f32.mrb[192].mxu1 }
 0x3b6   : > { %v13919_v58 = vadd.f32 %v7114_v17, %v6921_v44  ;;  %v6923_v30 = vpop.f32.mrb[193].mxu1 }
 0x3b7   : > { %v6924_v29 = vpop.f32.mrb[194].mxu1 }
 0x3b8   : > { %v13921_v60 = vadd.f32 %v7117_v46, %v6924_v29  ;;  %v6926_v33 = vpop.f32.mrb[195].mxu1 }
 0x3ba   : > { %v7130_v40 = vpop.f32.mrb[204].mxu0 }
 0x3bb   : > { %v7132_v32 = vpop.f32.mrb[205].mxu0 }
 0x3bc   : > { %v7133_v13 = vpop.f32.mrb[206].mxu0 }
 0x3bd   : > { %v6929_v1 = vpop.f32.mrb[196].mxu1  ;;  %v7135_v16 = vpop.f32.mrb[207].mxu0 }
 0x3be   : > { %v13923_v55 = vadd.f32 %v7122_v47, %v6929_v1  ;;  %v6931_v36 = vpop.f32.mrb[197].mxu1 }
 0x3bf   : > { %v6932_v9 = vpop.f32.mrb[198].mxu1 }
 0x3c0   : > { %v13925_v11 = vadd.f32 %v7125_v52, %v6932_v9  ;;  %v6934_v8 = vpop.f32.mrb[199].mxu1 }
 0x3c2   : > { %v7138_v3 = vpop.f32.mrb[208].mxu0 }
 0x3c3   : > { %v7140_v59 = vpop.f32.mrb[209].mxu0 }
 0x3c4   : > { %v7141_v4 = vpop.f32.mrb[210].mxu0 }
 0x3c5   : > { %v6937_v57 = vpop.f32.mrb[200].mxu1  ;;  %v7143_v35 = vpop.f32.mrb[211].mxu0 }
 0x3c6   : > { %v13927_v53 = vadd.f32 %v7130_v40, %v6937_v57  ;;  %v6939_v37 = vpop.f32.mrb[201].mxu1 }
 0x3c7   : > { %v6940_v7 = vpop.f32.mrb[202].mxu1 }
 0x3c8   : > { %v13929_v0 = vadd.f32 %v7133_v13, %v6940_v7  ;;  %v6942_v49 = vpop.f32.mrb[203].mxu1 }
 0x3ca   : > { %v7146_v62 = vpop.f32.mrb[212].mxu0 }
 0x3cb   : > { %v7148_v20 = vpop.f32.mrb[213].mxu0 }
 0x3cc   : > { %v7149_v6 = vpop.f32.mrb[214].mxu0 }
 0x3cd   : > { %v6945_v39 = vpop.f32.mrb[204].mxu1  ;;  %v7151_v24 = vpop.f32.mrb[215].mxu0 }
 0x3ce   : > { %v13931_v61 = vadd.f32 %v7138_v3, %v6945_v39  ;;  %v6947_v27 = vpop.f32.mrb[205].mxu1 }
 0x3cf   : > { %v6948_v26 = vpop.f32.mrb[206].mxu1 }
 0x3d0   : > { %v13933_v28 = vadd.f32 %v7141_v4, %v6948_v26  ;;  %v6950_v19 = vpop.f32.mrb[207].mxu1 }
 0x3d2   : > { %v7154_v31 = vpop.f32.mrb[216].mxu0 }
 0x3d3   : > { %v7156_v51 = vpop.f32.mrb[217].mxu0 }
 0x3d4   : > { %v7157_v2 = vpop.f32.mrb[218].mxu0 }
 0x3d5   : > { %v6953_v25 = vpop.f32.mrb[208].mxu1  ;;  %v7159_v42 = vpop.f32.mrb[219].mxu0 }
 0x3d6   : > { %v13935_v18 = vadd.f32 %v7146_v62, %v6953_v25  ;;  %v6955_v12 = vpop.f32.mrb[209].mxu1 }
 0x3d7   : > { %v6956_v5 = vpop.f32.mrb[210].mxu1 }
 0x3d8   : > { %v13937_v14 = vadd.f32 %v7149_v6, %v6956_v5  ;;  %v6958_v43 = vpop.f32.mrb[211].mxu1 }
 0x3dd   : > { %v6961_v22 = vpop.f32.mrb[212].mxu1 }
 0x3de   : > { %v13939_v34 = vadd.f32 %v7154_v31, %v6961_v22  ;;  %v6963_v56 = vpop.f32.mrb[213].mxu1 }
 0x3df   : > { %v6964_v45 = vpop.f32.mrb[214].mxu1 }
 0x3e0   : > { %v13941_v17 = vadd.f32 %v7157_v2, %v6964_v45  ;;  %v6966_v38 = vpop.f32.mrb[215].mxu1 }
 0x3e5   : > { %v7331_v63 = vpop.f32.mrb[216].mxu1 }
 0x3e6   : > { %v7394_v46 = vadd.f32 %v7331_v63, %v13911_v10  ;;  %v7333_v48 = vpop.f32.mrb[217].mxu1 }
 0x3e7   : > { %v7334_v44 = vpop.f32.mrb[218].mxu1 }
 0x3e8   : > { %v7417_v47 = vadd.f32 %v13747_v54, %v7394_v46  ;;  %v7395_v30 = vadd.f32 %v7334_v44, %v13913_v50  ;;  %v7336_v15 = vpop.f32.mrb[219].mxu1 }
 0x3ea   : > { %7433 = vst [vmem:[%s13073_s20 + $0x100] sm:$0xff] %v7417_v47  ;;  %v7418_v29 = vadd.f32 %v13747_v54, %v7395_v30 }
 0x3ec   : > { %7434 = vst [vmem:[%s13073_s20 + $0x108] sm:$0xff] %v7418_v29 }
 0x3ed   : > { %v7339_v52 = vpop.f32.mrb[220].mxu1 }
 0x3ee   : > { %v7396_v33 = vadd.f32 %v7339_v52, %v13915_v41  ;;  %v7341_v21 = vpop.f32.mrb[221].mxu1 }
 0x3ef   : > { %v7342_v1 = vpop.f32.mrb[222].mxu1 }
 0x3f0   : > { %v7419_v10 = vadd.f32 %v13747_v54, %v7396_v33  ;;  %v7397_v40 = vadd.f32 %v7342_v1, %v13917_v23  ;;  %v7344_v36 = vpop.f32.mrb[223].mxu1 }
 0x3f2   : > { %7435 = vst [vmem:[%s13073_s20 + $0x110] sm:$0xff] %v7419_v10  ;;  %v7420_v50 = vadd.f32 %v13747_v54, %v7397_v40 }
 0x3f4   : > { %7436 = vst [vmem:[%s13073_s20 + $0x118] sm:$0xff] %v7420_v50 }
 0x3f5   : > { %v7347_v32 = vpop.f32.mrb[224].mxu1 }
 0x3f6   : > { %v7398_v9 = vadd.f32 %v7347_v32, %v13919_v58  ;;  %v7349_v13 = vpop.f32.mrb[225].mxu1 }
 0x3f7   : > { %v7350_v8 = vpop.f32.mrb[226].mxu1 }
 0x3f8   : > { %v7421_v41 = vadd.f32 %v13747_v54, %v7398_v9  ;;  %v7399_v16 = vadd.f32 %v7350_v8, %v13921_v60  ;;  %v7352_v57 = vpop.f32.mrb[227].mxu1 }
 0x3fa   : > { %7437 = vst [vmem:[%s13073_s20 + $0x120] sm:$0xff] %v7421_v41  ;;  %v7422_v23 = vadd.f32 %v13747_v54, %v7399_v16 }
 0x3fc   : > { %7438 = vst [vmem:[%s13073_s20 + $0x128] sm:$0xff] %v7422_v23 }
 0x3fd   : > { %v7355_v3 = vpop.f32.mrb[228].mxu1 }
 0x3fe   : > { %v7400_v37 = vadd.f32 %v7355_v3, %v13923_v55  ;;  %v7357_v59 = vpop.f32.mrb[229].mxu1 }
 0x3ff   : > { %v7358_v7 = vpop.f32.mrb[230].mxu1 }
 0x400   : > { %v7423_v58 = vadd.f32 %v13747_v54, %v7400_v37  ;;  %v7401_v4 = vadd.f32 %v7358_v7, %v13925_v11  ;;  %v7360_v49 = vpop.f32.mrb[231].mxu1 }
 0x402   : > { %7439 = vst [vmem:[%s13073_s20 + $0x130] sm:$0xff] %v7423_v58  ;;  %v7424_v60 = vadd.f32 %v13747_v54, %v7401_v4 }
 0x404   : > { %7440 = vst [vmem:[%s13073_s20 + $0x138] sm:$0xff] %v7424_v60 }
 0x405   : > { %v7363_v35 = vpop.f32.mrb[232].mxu1 }
 0x406   : > { %v7402_v39 = vadd.f32 %v7363_v35, %v13927_v53  ;;  %v7365_v62 = vpop.f32.mrb[233].mxu1 }
 0x407   : > { %v7366_v27 = vpop.f32.mrb[234].mxu1 }
 0x408   : > { %v7425_v55 = vadd.f32 %v13747_v54, %v7402_v39  ;;  %v7403_v20 = vadd.f32 %v7366_v27, %v13929_v0  ;;  %v7368_v26 = vpop.f32.mrb[235].mxu1 }
 0x40a   : > { %7441 = vst [vmem:[%s13073_s20 + $0x140] sm:$0xff] %v7425_v55  ;;  %v7426_v11 = vadd.f32 %v13747_v54, %v7403_v20 }
 0x40c   : > { %7442 = vst [vmem:[%s13073_s20 + $0x148] sm:$0xff] %v7426_v11 }
 0x40d   : > { %v7371_v6 = vpop.f32.mrb[236].mxu1 }
 0x40e   : > { %v7404_v19 = vadd.f32 %v7371_v6, %v13931_v61  ;;  %v7373_v24 = vpop.f32.mrb[237].mxu1 }
 0x40f   : > { %v7374_v25 = vpop.f32.mrb[238].mxu1 }
 0x410   : > { %v7427_v53 = vadd.f32 %v13747_v54, %v7404_v19  ;;  %v7405_v31 = vadd.f32 %v7374_v25, %v13933_v28  ;;  %v7376_v12 = vpop.f32.mrb[239].mxu1 }
 0x412   : > { %7443 = vst [vmem:[%s13073_s20 + $0x150] sm:$0xff] %v7427_v53  ;;  %v7428_v0 = vadd.f32 %v13747_v54, %v7405_v31 }
 0x414   : > { %7444 = vst [vmem:[%s13073_s20 + $0x158] sm:$0xff] %v7428_v0 }
 0x415   : > { %v7379_v51 = vpop.f32.mrb[240].mxu1 }
 0x416   : > { %v7406_v5 = vadd.f32 %v7379_v51, %v13935_v18  ;;  %v7381_v2 = vpop.f32.mrb[241].mxu1 }
 0x417   : > { %v7382_v43 = vpop.f32.mrb[242].mxu1 }
 0x418   : > { %v7429_v61 = vadd.f32 %v13747_v54, %v7406_v5  ;;  %v7407_v42 = vadd.f32 %v7382_v43, %v13937_v14  ;;  %v7384_v22 = vpop.f32.mrb[243].mxu1 }
 0x41a   : > { %7445 = vst [vmem:[%s13073_s20 + $0x160] sm:$0xff] %v7429_v61  ;;  %v7430_v28 = vadd.f32 %v13747_v54, %v7407_v42 }
 0x41c   : > { %7446 = vst [vmem:[%s13073_s20 + $0x168] sm:$0xff] %v7430_v28 }
 0x423   : > { %v7387_v56 = vpop.f32.mrb[244].mxu1 }
 0x424   : > { %v7408_v45 = vadd.f32 %v7387_v56, %v13939_v34  ;;  %v7389_v38 = vpop.f32.mrb[245].mxu1 }
 0x425   : > { %v7390_v63 = vpop.f32.mrb[246].mxu1 }
 0x426   : > { %v7431_v18 = vadd.f32 %v13747_v54, %v7408_v45  ;;  %v7409_v46 = vadd.f32 %v7390_v63, %v13941_v17  ;;  %v7392_v48 = vpop.f32.mrb[247].mxu1  ;;  %v7649_v44 = vpop.f32.mrb[220].mxu0 }
 0x427   : > { %v7651_v47 = vpop.f32.mrb[221].mxu0 }
 0x428   : > { %7447 = vst [vmem:[%s13073_s20 + $0x170] sm:$0xff] %v7431_v18  ;;  %v7432_v14 = vadd.f32 %v13747_v54, %v7409_v46  ;;  %v7652_v30 = vpop.f32.mrb[222].mxu0 }
 0x429   : > { %v7654_v15 = vpop.f32.mrb[223].mxu0 }
 0x42a   : > { %7448 = vst [vmem:[%s13073_s20 + $0x178] sm:$0xff] %v7432_v14 }
 0x441   : > { %v7955_v29 = vpop.f32.mrb[248].mxu1 }
 0x442   : > { %v7957_v52 = vpop.f32.mrb[249].mxu1 }
 0x443   : > { %v7958_v33 = vpop.f32.mrb[250].mxu1 }
 0x444   : > { %v7657_v21 = vpop.f32.mrb[224].mxu0  ;;  %v7960_v34 = vpop.f32.mrb[251].mxu1 }
 0x445   : > { %v7659_v1 = vpop.f32.mrb[225].mxu0 }
 0x446   : > { %v7660_v10 = vpop.f32.mrb[226].mxu0 }
 0x447   : > { %v7662_v40 = vpop.f32.mrb[227].mxu0 }
 0x449   : > { %v7963_v36 = vpop.f32.mrb[252].mxu1 }
 0x44a   : > { %v7965_v50 = vpop.f32.mrb[253].mxu1 }
 0x44b   : > { %v7966_v17 = vpop.f32.mrb[254].mxu1 }
 0x44c   : > { %v7665_v32 = vpop.f32.mrb[228].mxu0  ;;  %v7968_v9 = vpop.f32.mrb[255].mxu1 }
 0x44d   : > { %v7667_v13 = vpop.f32.mrb[229].mxu0 }
 0x44e   : > { %v7668_v8 = vpop.f32.mrb[230].mxu0 }
 0x44f   : > { %v7670_v41 = vpop.f32.mrb[231].mxu0 }
 0x451   : > { %v7971_v16 = vpop.f32.mrb[0].mxu1 }
 0x452   : > { %v7973_v57 = vpop.f32.mrb[1].mxu1 }
 0x453   : > { %v7974_v23 = vpop.f32.mrb[2].mxu1 }
 0x454   : > { %v7976_v3 = vpop.f32.mrb[3].mxu1 }
 0x456   : > { %v7787_v37 = vpop.f32.mrb[232].mxu0 }
 0x457   : > { %v7788_v59 = vadd.f32 %v7787_v37, %v7649_v44  ;;  %v7789_v7 = vpop.f32.mrb[233].mxu0 }
 0x458   : > { %v7790_v58 = vpop.f32.mrb[234].mxu0 }
 0x459   : > { %v7978_v4 = vadd.f32 %v7955_v29, %v7788_v59  ;;  %v7791_v49 = vadd.f32 %v7790_v58, %v7652_v30  ;;  %v7792_v60 = vpop.f32.mrb[235].mxu0 }
 0x45b   : > { %v7991_v35 = vadd.f32 %v13747_v54, %v7978_v4  ;;  %v7979_v39 = vadd.f32 %v7958_v33, %v7791_v49 }
 0x45d   : > { %7997 = vst [vmem:[%s13073_s20 + $0x180] sm:$0xff] %v7991_v35  ;;  %v7992_v62 = vadd.f32 %v13747_v54, %v7979_v39 }
 0x45e   : > { %v7795_v27 = vpop.f32.mrb[236].mxu0 }
 0x45f   : > { %7998 = vst [vmem:[%s13073_s20 + $0x188] sm:$0xff] %v7992_v62  ;;  %v7796_v55 = vadd.f32 %v7795_v27, %v7657_v21  ;;  %v7797_v20 = vpop.f32.mrb[237].mxu0 }
 0x460   : > { %v7798_v26 = vpop.f32.mrb[238].mxu0 }
 0x461   : > { %v7980_v11 = vadd.f32 %v7963_v36, %v7796_v55  ;;  %v7799_v6 = vadd.f32 %v7798_v26, %v7660_v10  ;;  %v7800_v19 = vpop.f32.mrb[239].mxu0 }
 0x463   : > { %v7993_v24 = vadd.f32 %v13747_v54, %v7980_v11  ;;  %v7981_v25 = vadd.f32 %v7966_v17, %v7799_v6 }
 0x465   : > { %7999 = vst [vmem:[%s13073_s20 + $0x190] sm:$0xff] %v7993_v24  ;;  %v7994_v53 = vadd.f32 %v13747_v54, %v7981_v25 }
 0x466   : > { %v7803_v31 = vpop.f32.mrb[240].mxu0 }
 0x467   : > { %8000 = vst [vmem:[%s13073_s20 + $0x198] sm:$0xff] %v7994_v53  ;;  %v7804_v12 = vadd.f32 %v7803_v31, %v7665_v32  ;;  %v7805_v0 = vpop.f32.mrb[241].mxu0 }
 0x468   : > { %v7806_v51 = vpop.f32.mrb[242].mxu0 }
 0x469   : > { %v7982_v5 = vadd.f32 %v7971_v16, %v7804_v12  ;;  %v7807_v2 = vadd.f32 %v7806_v51, %v7668_v8  ;;  %v7808_v43 = vpop.f32.mrb[243].mxu0 }
 0x46b   : > { %v7995_v61 = vadd.f32 %v13747_v54, %v7982_v5  ;;  %v7983_v42 = vadd.f32 %v7974_v23, %v7807_v2 }
 0x46d   : > { %8001 = vst [vmem:[%s13073_s20 + $0x1a0] sm:$0xff] %v7995_v61  ;;  %v7996_v22 = vadd.f32 %v13747_v54, %v7983_v42 }
 0x46f   : > { %8002 = vst [vmem:[%s13073_s20 + $0x1a8] sm:$0xff] %v7996_v22 }
 0x470 PF: > { %s15_s18 = sadd.s32 1, %s9892_s18  }
 0x471   : > { %p12_p4 = scmp.ge.s32.totalorder %s15_s18, 4  }
 0x473   :  { %14 = sbr.rel (!%p12_p4) target bundleno = 1 (0x1), region = 72 }

</bundles_post_ra>
